<compile_context>
chip_gen: v7x
topology: tpu7x:2x2x1
jax: 0.10.0
libtpu: 0.0.40
codegen_flags: <defaults>
</compile_context>

<pallas_src>
import jax
import jax.numpy as jnp
from jax.experimental import pallas as pl
from jax.experimental.pallas import tpu as pltpu

CPAD = 128                        # lane-dense channel padding for all kernel outputs
VMEM_LIMIT = 32 * 1024 * 1024     # safe on v5e/v6e (128 MiB) and v7x (64 MiB physical)

_BLOCKS = (("block1", 32), ("block2", 64), ("block3", 128))
_FC_K_CHUNKS = 4                  # fc1 contraction split: 4608 -> 4 x 1152


# ----------------------------------------------------------------------------
# Fused conv-block kernel: ONE matmul over the stacked (4*Mp, K) quadrant im2col
# with BN-scale already folded into the weight, quadrant max (== MaxPool2d(2,2)),
# + BN shift, LeakyReLU(0.1).  Output is a dense (Mp, 128) slab.
# ----------------------------------------------------------------------------
def _conv_pool_kernel(p_ref, w_ref, shift_ref, o_ref):
    mp = o_ref.shape[0]
    z = jnp.dot(p_ref[...], w_ref[...], preferred_element_type=jnp.float32)  # (4*Mp, 128)
    # 2x2 maxpool: max over the four quadrant slabs (sublane-aligned static slices).
    zq = jnp.maximum(jnp.maximum(z[0 * mp:1 * mp], z[1 * mp:2 * mp]),
                     jnp.maximum(z[2 * mp:3 * mp], z[3 * mp:4 * mp]))
    # Additive BN shift commutes with max; LeakyReLU is monotonic so it commutes too.
    zq = zq + shift_ref[...]
    o_ref[...] = jnp.maximum(zq, 0.1 * zq)          # LeakyReLU(0.1)


def conv_block_pool(x, wm, shift, cout):
    """x: (B,H,W,Cin) NHWC -> (B,H//2,W//2,cout): conv3x3(pad=1)+BN+LeakyReLU+pool."""
    B, H, W, Cin = x.shape
    Ho, Wo = H // 2, W // 2
    Mp = B * Ho * Wo
    K = 9 * Cin

    # Pool-quadrant im2col, stacked along M into one (4*Mp, K) array (XLA glue).
    xp = jnp.pad(x, ((0, 0), (1, 1), (1, 1), (0, 0)))
    quads = []
    for di in range(2):
        for dj in range(2):
            cols = [xp[:, di + ki: di + ki + H: 2, dj + kj: dj + kj + W: 2, :]
                    for ki in range(3) for kj in range(3)]
            quads.append(jnp.concatenate(cols, axis=-1).reshape(Mp, K))
    p = jnp.concatenate(quads, axis=0)               # (4*Mp, K), quadrant-major rows

    out = pl.pallas_call(
        _conv_pool_kernel,
        out_shape=jax.ShapeDtypeStruct((Mp, CPAD), jnp.float32),
        grid_spec=pltpu.PrefetchScalarGridSpec(
            num_scalar_prefetch=0,
            grid=(1,),
            in_specs=[
                pl.BlockSpec((4 * Mp, K), lambda i: (0, 0)),
                pl.BlockSpec((K, CPAD), lambda i: (0, 0)),
                pl.BlockSpec((1, CPAD), lambda i: (0, 0)),
            ],
            out_specs=pl.BlockSpec((Mp, CPAD), lambda i: (0, 0)),
        ),
        compiler_params=pltpu.CompilerParams(
            dimension_semantics=("arbitrary",),
            vmem_limit_bytes=VMEM_LIMIT,
        ),
    )(p, wm, shift)
    return out.reshape(B, Ho, Wo, CPAD)[..., :cout]


# ----------------------------------------------------------------------------
# Fused FC head: fc1 (bf16 weight, BN scale folded in, f32 accumulate over a K grid)
# -> +shift -> ReLU -> fc2 + bias.  h=(B,512) never leaves VMEM.
# ----------------------------------------------------------------------------
def _fc_fused_kernel(x_ref, w1_ref, t1_ref, w2_ref, b2_ref, o_ref, acc_ref):
    k = pl.program_id(0)

    @pl.when(k == 0)
    def _():
        acc_ref[...] = jnp.zeros_like(acc_ref)

    acc_ref[...] += jnp.dot(x_ref[...].astype(jnp.bfloat16), w1_ref[...],
                            preferred_element_type=jnp.float32)

    @pl.when(k == pl.num_programs(0) - 1)
    def _():
        h = jnp.maximum(acc_ref[...] + t1_ref[...], 0.0)   # BN shift + ReLU
        # TODO(synk): Dropout(0.5) is identity in eval mode; training-mode dropout not implemented.
        o_ref[...] = jnp.dot(h, w2_ref[...], preferred_element_type=jnp.float32) + b2_ref[...]


def fc_fused(x, w1, t1, w2, b2, nout=4):
    B, K = x.shape
    N1 = w1.shape[1]
    assert K % _FC_K_CHUNKS == 0
    kc = K // _FC_K_CHUNKS
    out = pl.pallas_call(
        _fc_fused_kernel,
        out_shape=jax.ShapeDtypeStruct((B, CPAD), jnp.float32),
        grid_spec=pltpu.PrefetchScalarGridSpec(
            num_scalar_prefetch=0,
            grid=(_FC_K_CHUNKS,),
            in_specs=[
                pl.BlockSpec((B, kc), lambda k: (0, k)),
                pl.BlockSpec((kc, N1), lambda k: (k, 0)),
                pl.BlockSpec((1, N1), lambda k: (0, 0)),
                pl.BlockSpec((N1, CPAD), lambda k: (0, 0)),
                pl.BlockSpec((1, CPAD), lambda k: (0, 0)),
            ],
            out_specs=pl.BlockSpec((B, CPAD), lambda k: (0, 0)),
            scratch_shapes=[pltpu.VMEM((B, N1), jnp.float32)],
        ),
        compiler_params=pltpu.CompilerParams(
            dimension_semantics=("arbitrary",),
            vmem_limit_bytes=VMEM_LIMIT,
        ),
    )(x, w1, t1, w2, b2)
    return out[:, :nout]


# ----------------------------------------------------------------------------
# Parameter prep (outside jit, once): fold eval-mode BN scale INTO the weights,
# keep only the additive shift; zero-pad to lane-dense 128 columns; permute fc1
# columns to the NHWC flatten order; cast fc1 weight to bf16.
# ----------------------------------------------------------------------------
def prepare_params(params, eps=1e-5):
    prepped = {}
    for name, cout in _BLOCKS:
        w, b, gamma, beta, mean, var = params[name]
        cin = w.shape[1]
        scale = gamma / jnp.sqrt(var + eps)                              # (cout,)
        # PyTorch conv weight (Cout,Cin,3,3) -> matmul weight rows ordered (ki,kj,cin),
        # with the BN scale folded into the output columns.
        wm = jnp.transpose(w, (2, 3, 1, 0)).reshape(9 * cin, cout) * scale[None, :]
        wm = jnp.pad(wm, ((0, 0), (0, CPAD - cout)))
        shift = beta + (b - mean) * scale
        prepped[name] = (wm, jnp.pad(shift, (0, CPAD - cout))[None, :])

    w1, b1, g1, be1, m1, v1 = params["fc1"]
    # Fold PyTorch's x.view(-1, 128*6*6) NCHW flatten (c,h,w) into fc1 columns -> (h,w,c)
    w1_hwc = w1.reshape(512, 128, 6, 6).transpose(0, 2, 3, 1).reshape(512, 128 * 6 * 6)
    scale1 = g1 / jnp.sqrt(v1 + eps)
    shift1 = be1 + (b1 - m1) * scale1
    w1_folded = (w1_hwc * scale1[:, None]).T.astype(jnp.bfloat16)        # (4608, 512) bf16
    w2, b2 = params["fc2"]
    prepped["fc"] = (
        w1_folded,
        shift1[None, :],
        jnp.pad(jnp.transpose(w2), ((0, 0), (0, CPAD - w2.shape[0]))),   # (512, 128) f32
        jnp.pad(b2, (0, CPAD - b2.shape[0]))[None, :],                   # (1, 128)
    )
    return prepped


def leaky_relu_cnn_forward(x_nchw, prepped):
    B = x_nchw.shape[0]
    x = jnp.transpose(x_nchw, (0, 2, 3, 1))               # NCHW -> NHWC (B,48,48,1)
    for name, cout in _BLOCKS:
        wm, shift = prepped[name]
        x = conv_block_pool(x, wm, shift, cout)            # ->(B,24,24,32)->(B,12,12,64)->(B,6,6,128)
    x = x.reshape(B, 6 * 6 * 128)                          # (h,w,c) flatten; fc1 columns permuted to match
    w1, t1, w2, b2 = prepped["fc"]
    return fc_fused(x, w1, t1, w2, b2, nout=4)             # (B, 4)


# ----------------------------------------------------------------------------
# Deterministic parameter init (shapes from the PyTorch module __init__)
# ----------------------------------------------------------------------------
def init_params(key):
    ks = jax.random.split(key, 16)

    def conv_p(kw, kb, cout, cin):
        w = 0.1 * jax.random.normal(kw, (cout, cin, 3, 3), jnp.float32)
        b = 0.1 * jax.random.normal(kb, (cout,), jnp.float32)
        return w, b

    def bn_p(kg, kb, c):
        gamma = 1.0 + 0.1 * jax.random.normal(kg, (c,), jnp.float32)
        beta = 0.1 * jax.random.normal(kb, (c,), jnp.float32)
        return gamma, beta, jnp.zeros((c,), jnp.float32), jnp.ones((c,), jnp.float32)

    p = {}
    p["block1"] = conv_p(ks[0], ks[1], 32, 1) + bn_p(ks[2], ks[3], 32)
    p["block2"] = conv_p(ks[4], ks[5], 64, 32) + bn_p(ks[6], ks[7], 64)
    p["block3"] = conv_p(ks[8], ks[9], 128, 64) + bn_p(ks[10], ks[11], 128)
    w1 = 0.02 * jax.random.normal(ks[12], (512, 128 * 6 * 6), jnp.float32)
    b1 = 0.02 * jax.random.normal(ks[13], (512,), jnp.float32)
    p["fc1"] = (w1, b1) + bn_p(ks[14], ks[15], 512)
    w2 = 0.05 * jax.random.normal(jax.random.fold_in(key, 99), (4, 512), jnp.float32)
    b2 = 0.05 * jax.random.normal(jax.random.fold_in(key, 100), (4,), jnp.float32)
    p["fc2"] = (w2, b2)
    return p


if __name__ == "__main__":
    key = jax.random.PRNGKey(0)
    params = init_params(key)
    prepped = prepare_params(params)   # once, outside jit (BN fold / bf16 cast / padding)
    # input spatial 48x48 so three MaxPool(2,2) stages give 6x6 as fc1 (128*6*6 -> 512) requires
    x = jax.random.normal(jax.random.fold_in(key, 7), (2, 1, 48, 48), jnp.float32)

    fwd = jax.jit(leaky_relu_cnn_forward)
    out = jax.block_until_ready(fwd(x, prepped))
    assert out.shape == (2, 4) and bool(jnp.all(jnp.isfinite(out)))
    print("KERNEL_OK")
</pallas_src>

<mosaic_0001>
module attributes {stable_mosaic.version = 11 : i64} {
  func.func @_conv_pool_kernel(%arg0: i32, %arg1: memref<4608x9xf32, #tpu.memory_space<vmem>>, %arg2: memref<9x128xf32, #tpu.memory_space<vmem>>, %arg3: memref<1x128xf32, #tpu.memory_space<vmem>>, %arg4: memref<1152x128xf32, #tpu.memory_space<vmem>>) attributes {dimension_semantics = [#tpu.dimension_semantics<arbitrary>], iteration_bounds = array<i64: 1>, scalar_prefetch = 0 : i64, scratch_operands = 0 : i64, tpu.core_type = #tpu.core_type<tc>, window_params = [{pipeline_mode = #tpu.pipeline_mode<synchronous>, transform_indices = @transform_0, window_bounds = array<i64: 4608, 9>}, {pipeline_mode = #tpu.pipeline_mode<synchronous>, transform_indices = @transform_1, window_bounds = array<i64: 9, 128>}, {pipeline_mode = #tpu.pipeline_mode<synchronous>, transform_indices = @transform_2, window_bounds = array<i64: 1, 128>}, {pipeline_mode = #tpu.pipeline_mode<synchronous>, transform_indices = @transform_3, window_bounds = array<i64: 1152, 128>}]} {
    %c0 = arith.constant 0 : index
    %c0_0 = arith.constant 0 : index
    %0 = vector.load %arg1[%c0, %c0_0] : memref<4608x9xf32, #tpu.memory_space<vmem>>, vector<4608x9xf32>
    %c0_1 = arith.constant 0 : index
    %c0_2 = arith.constant 0 : index
    %1 = vector.load %arg2[%c0_1, %c0_2] : memref<9x128xf32, #tpu.memory_space<vmem>>, vector<9x128xf32>
    %cst = arith.constant dense<0.000000e+00> : vector<4608x128xf32>
    %2 = tpu.matmul %0, %1, %cst {dimension_numbers = #tpu.dot_dimension_numbers<[1], [0], [0], [1], [0, 0, 1, 1], [], []>} : vector<4608x9xf32>, vector<9x128xf32>, vector<4608x128xf32> -> vector<4608x128xf32>
    %3 = vector.extract_strided_slice %2 {offsets = [0, 0], sizes = [1152, 128], strides = [1, 1]} : vector<4608x128xf32> to vector<1152x128xf32>
    %4 = vector.extract_strided_slice %2 {offsets = [1152, 0], sizes = [1152, 128], strides = [1, 1]} : vector<4608x128xf32> to vector<1152x128xf32>
    %5 = arith.maximumf %3, %4 : vector<1152x128xf32>
    %6 = vector.extract_strided_slice %2 {offsets = [2304, 0], sizes = [1152, 128], strides = [1, 1]} : vector<4608x128xf32> to vector<1152x128xf32>
    %7 = vector.extract_strided_slice %2 {offsets = [3456, 0], sizes = [1152, 128], strides = [1, 1]} : vector<4608x128xf32> to vector<1152x128xf32>
    %8 = arith.maximumf %6, %7 : vector<1152x128xf32>
    %9 = arith.maximumf %5, %8 : vector<1152x128xf32>
    %c0_3 = arith.constant 0 : index
    %c0_4 = arith.constant 0 : index
    %10 = vector.load %arg3[%c0_3, %c0_4] : memref<1x128xf32, #tpu.memory_space<vmem>>, vector<1x128xf32>
    %11 = vector.broadcast %10 : vector<1x128xf32> to vector<1152x128xf32>
    %12 = arith.addf %9, %11 : vector<1152x128xf32>
    %cst_5 = arith.constant 1.000000e-01 : f32
    %13 = vector.broadcast %cst_5 : f32 to vector<1152x128xf32>
    %14 = arith.mulf %13, %12 : vector<1152x128xf32>
    %15 = arith.maximumf %12, %14 : vector<1152x128xf32>
    %c0_6 = arith.constant 0 : index
    %c0_7 = arith.constant 0 : index
    %16 = vector.load %arg4[%c0_6, %c0_7] : memref<1152x128xf32, #tpu.memory_space<vmem>>, vector<1152x128xf32>
    tpu.vector_store %arg4[%c0_6, %c0_7], %15 {strides = array<i32>} : memref<1152x128xf32, #tpu.memory_space<vmem>>, vector<1152x128xf32>,
    return
  }
  func.func @transform_0(%arg0: i32) -> (i32, i32) {
    %c0_i32 = arith.constant 0 : i32
    %c0_i32_0 = arith.constant 0 : i32
    %c0_i32_1 = arith.constant 0 : i32
    return %c0_i32, %c0_i32_0 : i32, i32
  }
  func.func @transform_1(%arg0: i32) -> (i32, i32) {
    %c0_i32 = arith.constant 0 : i32
    %c0_i32_0 = arith.constant 0 : i32
    %c0_i32_1 = arith.constant 0 : i32
    return %c0_i32, %c0_i32_0 : i32, i32
  }
  func.func @transform_2(%arg0: i32) -> (i32, i32) {
    %c0_i32 = arith.constant 0 : i32
    %c0_i32_0 = arith.constant 0 : i32
    %c0_i32_1 = arith.constant 0 : i32
    return %c0_i32, %c0_i32_0 : i32, i32
  }
  func.func @transform_3(%arg0: i32) -> (i32, i32) {
    %c0_i32 = arith.constant 0 : i32
    %c0_i32_0 = arith.constant 0 : i32
    %c0_i32_1 = arith.constant 0 : i32
    return %c0_i32, %c0_i32_0 : i32, i32
  }
}

module attributes {stable_mosaic.version = 11 : i64} {
  func.func @_conv_pool_kernel(%arg0: i32, %arg1: memref<1152x288xf32, #tpu.memory_space<vmem>>, %arg2: memref<288x128xf32, #tpu.memory_space<vmem>>, %arg3: memref<1x128xf32, #tpu.memory_space<vmem>>, %arg4: memref<288x128xf32, #tpu.memory_space<vmem>>) attributes {dimension_semantics = [#tpu.dimension_semantics<arbitrary>], iteration_bounds = array<i64: 1>, scalar_prefetch = 0 : i64, scratch_operands = 0 : i64, tpu.core_type = #tpu.core_type<tc>, window_params = [{pipeline_mode = #tpu.pipeline_mode<synchronous>, transform_indices = @transform_0, window_bounds = array<i64: 1152, 288>}, {pipeline_mode = #tpu.pipeline_mode<synchronous>, transform_indices = @transform_1, window_bounds = array<i64: 288, 128>}, {pipeline_mode = #tpu.pipeline_mode<synchronous>, transform_indices = @transform_2, window_bounds = array<i64: 1, 128>}, {pipeline_mode = #tpu.pipeline_mode<synchronous>, transform_indices = @transform_3, window_bounds = array<i64: 288, 128>}]} {
    %c0 = arith.constant 0 : index
    %c0_0 = arith.constant 0 : index
    %0 = vector.load %arg1[%c0, %c0_0] : memref<1152x288xf32, #tpu.memory_space<vmem>>, vector<1152x288xf32>
    %c0_1 = arith.constant 0 : index
    %c0_2 = arith.constant 0 : index
    %1 = vector.load %arg2[%c0_1, %c0_2] : memref<288x128xf32, #tpu.memory_space<vmem>>, vector<288x128xf32>
    %cst = arith.constant dense<0.000000e+00> : vector<1152x128xf32>
    %2 = tpu.matmul %0, %1, %cst {dimension_numbers = #tpu.dot_dimension_numbers<[1], [0], [0], [1], [0, 0, 1, 1], [], []>} : vector<1152x288xf32>, vector<288x128xf32>, vector<1152x128xf32> -> vector<1152x128xf32>
    %3 = vector.extract_strided_slice %2 {offsets = [0, 0], sizes = [288, 128], strides = [1, 1]} : vector<1152x128xf32> to vector<288x128xf32>
    %4 = vector.extract_strided_slice %2 {offsets = [288, 0], sizes = [288, 128], strides = [1, 1]} : vector<1152x128xf32> to vector<288x128xf32>
    %5 = arith.maximumf %3, %4 : vector<288x128xf32>
    %6 = vector.extract_strided_slice %2 {offsets = [576, 0], sizes = [288, 128], strides = [1, 1]} : vector<1152x128xf32> to vector<288x128xf32>
    %7 = vector.extract_strided_slice %2 {offsets = [864, 0], sizes = [288, 128], strides = [1, 1]} : vector<1152x128xf32> to vector<288x128xf32>
    %8 = arith.maximumf %6, %7 : vector<288x128xf32>
    %9 = arith.maximumf %5, %8 : vector<288x128xf32>
    %c0_3 = arith.constant 0 : index
    %c0_4 = arith.constant 0 : index
    %10 = vector.load %arg3[%c0_3, %c0_4] : memref<1x128xf32, #tpu.memory_space<vmem>>, vector<1x128xf32>
    %11 = vector.broadcast %10 : vector<1x128xf32> to vector<288x128xf32>
    %12 = arith.addf %9, %11 : vector<288x128xf32>
    %cst_5 = arith.constant 1.000000e-01 : f32
    %13 = vector.broadcast %cst_5 : f32 to vector<288x128xf32>
    %14 = arith.mulf %13, %12 : vector<288x128xf32>
    %15 = arith.maximumf %12, %14 : vector<288x128xf32>
    %c0_6 = arith.constant 0 : index
    %c0_7 = arith.constant 0 : index
    %16 = vector.load %arg4[%c0_6, %c0_7] : memref<288x128xf32, #tpu.memory_space<vmem>>, vector<288x128xf32>
    tpu.vector_store %arg4[%c0_6, %c0_7], %15 {strides = array<i32>} : memref<288x128xf32, #tpu.memory_space<vmem>>, vector<288x128xf32>,
    return
  }
  func.func @transform_0(%arg0: i32) -> (i32, i32) {
    %c0_i32 = arith.constant 0 : i32
    %c0_i32_0 = arith.constant 0 : i32
    %c0_i32_1 = arith.constant 0 : i32
    return %c0_i32, %c0_i32_0 : i32, i32
  }
  func.func @transform_1(%arg0: i32) -> (i32, i32) {
    %c0_i32 = arith.constant 0 : i32
    %c0_i32_0 = arith.constant 0 : i32
    %c0_i32_1 = arith.constant 0 : i32
    return %c0_i32, %c0_i32_0 : i32, i32
  }
  func.func @transform_2(%arg0: i32) -> (i32, i32) {
    %c0_i32 = arith.constant 0 : i32
    %c0_i32_0 = arith.constant 0 : i32
    %c0_i32_1 = arith.constant 0 : i32
    return %c0_i32, %c0_i32_0 : i32, i32
  }
  func.func @transform_3(%arg0: i32) -> (i32, i32) {
    %c0_i32 = arith.constant 0 : i32
    %c0_i32_0 = arith.constant 0 : i32
    %c0_i32_1 = arith.constant 0 : i32
    return %c0_i32, %c0_i32_0 : i32, i32
  }
}

module attributes {stable_mosaic.version = 11 : i64} {
  func.func @_conv_pool_kernel(%arg0: i32, %arg1: memref<288x576xf32, #tpu.memory_space<vmem>>, %arg2: memref<576x128xf32, #tpu.memory_space<vmem>>, %arg3: memref<1x128xf32, #tpu.memory_space<vmem>>, %arg4: memref<72x128xf32, #tpu.memory_space<vmem>>) attributes {dimension_semantics = [#tpu.dimension_semantics<arbitrary>], iteration_bounds = array<i64: 1>, scalar_prefetch = 0 : i64, scratch_operands = 0 : i64, tpu.core_type = #tpu.core_type<tc>, window_params = [{pipeline_mode = #tpu.pipeline_mode<synchronous>, transform_indices = @transform_0, window_bounds = array<i64: 288, 576>}, {pipeline_mode = #tpu.pipeline_mode<synchronous>, transform_indices = @transform_1, window_bounds = array<i64: 576, 128>}, {pipeline_mode = #tpu.pipeline_mode<synchronous>, transform_indices = @transform_2, window_bounds = array<i64: 1, 128>}, {pipeline_mode = #tpu.pipeline_mode<synchronous>, transform_indices = @transform_3, window_bounds = array<i64: 72, 128>}]} {
    %c0 = arith.constant 0 : index
    %c0_0 = arith.constant 0 : index
    %0 = vector.load %arg1[%c0, %c0_0] : memref<288x576xf32, #tpu.memory_space<vmem>>, vector<288x576xf32>
    %c0_1 = arith.constant 0 : index
    %c0_2 = arith.constant 0 : index
    %1 = vector.load %arg2[%c0_1, %c0_2] : memref<576x128xf32, #tpu.memory_space<vmem>>, vector<576x128xf32>
    %cst = arith.constant dense<0.000000e+00> : vector<288x128xf32>
    %2 = tpu.matmul %0, %1, %cst {dimension_numbers = #tpu.dot_dimension_numbers<[1], [0], [0], [1], [0, 0, 1, 1], [], []>} : vector<288x576xf32>, vector<576x128xf32>, vector<288x128xf32> -> vector<288x128xf32>
    %3 = vector.extract_strided_slice %2 {offsets = [0, 0], sizes = [72, 128], strides = [1, 1]} : vector<288x128xf32> to vector<72x128xf32>
    %4 = vector.extract_strided_slice %2 {offsets = [72, 0], sizes = [72, 128], strides = [1, 1]} : vector<288x128xf32> to vector<72x128xf32>
    %5 = arith.maximumf %3, %4 : vector<72x128xf32>
    %6 = vector.extract_strided_slice %2 {offsets = [144, 0], sizes = [72, 128], strides = [1, 1]} : vector<288x128xf32> to vector<72x128xf32>
    %7 = vector.extract_strided_slice %2 {offsets = [216, 0], sizes = [72, 128], strides = [1, 1]} : vector<288x128xf32> to vector<72x128xf32>
    %8 = arith.maximumf %6, %7 : vector<72x128xf32>
    %9 = arith.maximumf %5, %8 : vector<72x128xf32>
    %c0_3 = arith.constant 0 : index
    %c0_4 = arith.constant 0 : index
    %10 = vector.load %arg3[%c0_3, %c0_4] : memref<1x128xf32, #tpu.memory_space<vmem>>, vector<1x128xf32>
    %11 = vector.broadcast %10 : vector<1x128xf32> to vector<72x128xf32>
    %12 = arith.addf %9, %11 : vector<72x128xf32>
    %cst_5 = arith.constant 1.000000e-01 : f32
    %13 = vector.broadcast %cst_5 : f32 to vector<72x128xf32>
    %14 = arith.mulf %13, %12 : vector<72x128xf32>
    %15 = arith.maximumf %12, %14 : vector<72x128xf32>
    %c0_6 = arith.constant 0 : index
    %c0_7 = arith.constant 0 : index
    %16 = vector.load %arg4[%c0_6, %c0_7] : memref<72x128xf32, #tpu.memory_space<vmem>>, vector<72x128xf32>
    tpu.vector_store %arg4[%c0_6, %c0_7], %15 {strides = array<i32>} : memref<72x128xf32, #tpu.memory_space<vmem>>, vector<72x128xf32>,
    return
  }
  func.func @transform_0(%arg0: i32) -> (i32, i32) {
    %c0_i32 = arith.constant 0 : i32
    %c0_i32_0 = arith.constant 0 : i32
    %c0_i32_1 = arith.constant 0 : i32
    return %c0_i32, %c0_i32_0 : i32, i32
  }
  func.func @transform_1(%arg0: i32) -> (i32, i32) {
    %c0_i32 = arith.constant 0 : i32
    %c0_i32_0 = arith.constant 0 : i32
    %c0_i32_1 = arith.constant 0 : i32
    return %c0_i32, %c0_i32_0 : i32, i32
  }
  func.func @transform_2(%arg0: i32) -> (i32, i32) {
    %c0_i32 = arith.constant 0 : i32
    %c0_i32_0 = arith.constant 0 : i32
    %c0_i32_1 = arith.constant 0 : i32
    return %c0_i32, %c0_i32_0 : i32, i32
  }
  func.func @transform_3(%arg0: i32) -> (i32, i32) {
    %c0_i32 = arith.constant 0 : i32
    %c0_i32_0 = arith.constant 0 : i32
    %c0_i32_1 = arith.constant 0 : i32
    return %c0_i32, %c0_i32_0 : i32, i32
  }
}

module attributes {stable_mosaic.version = 11 : i64} {
  func.func @_fc_fused_kernel(%arg0: i32, %arg1: memref<2x1152xf32, #tpu.memory_space<vmem>>, %arg2: memref<1152x512xbf16, #tpu.memory_space<vmem>>, %arg3: memref<1x512xf32, #tpu.memory_space<vmem>>, %arg4: memref<512x128xf32, #tpu.memory_space<vmem>>, %arg5: memref<1x128xf32, #tpu.memory_space<vmem>>, %arg6: memref<2x128xf32, #tpu.memory_space<vmem>>, %arg7: memref<2x512xf32, #tpu.memory_space<vmem>>) attributes {dimension_semantics = [#tpu.dimension_semantics<arbitrary>], iteration_bounds = array<i64: 4>, scalar_prefetch = 0 : i64, scratch_operands = 1 : i64, tpu.core_type = #tpu.core_type<tc>, window_params = [{transform_indices = @transform_0, window_bounds = array<i64: 2, 1152>}, {transform_indices = @transform_1, window_bounds = array<i64: 1152, 512>}, {pipeline_mode = #tpu.pipeline_mode<synchronous>, transform_indices = @transform_2, window_bounds = array<i64: 1, 512>}, {pipeline_mode = #tpu.pipeline_mode<synchronous>, transform_indices = @transform_3, window_bounds = array<i64: 512, 128>}, {pipeline_mode = #tpu.pipeline_mode<synchronous>, transform_indices = @transform_4, window_bounds = array<i64: 1, 128>}, {pipeline_mode = #tpu.pipeline_mode<synchronous>, transform_indices = @transform_5, window_bounds = array<i64: 2, 128>}]} {
    %c0_i32 = arith.constant 0 : i32
    %0 = arith.cmpi eq, %arg0, %c0_i32 : i32
    %1 = arith.extui %0 : i1 to i32
    %c0_i32_0 = arith.constant 0 : i32
    %2 = arith.cmpi ne, %1, %c0_i32_0 : i32
    scf.if %2 {
      %cst_9 = arith.constant 0.000000e+00 : f32
      %13 = vector.broadcast %cst_9 : f32 to vector<2x512xf32>
      %c0_10 = arith.constant 0 : index
      %c0_11 = arith.constant 0 : index
      %14 = vector.load %arg7[%c0_10, %c0_11] : memref<2x512xf32, #tpu.memory_space<vmem>>, vector<2x512xf32>
      tpu.vector_store %arg7[%c0_10, %c0_11], %13 {strides = array<i32>} : memref<2x512xf32, #tpu.memory_space<vmem>>, vector<2x512xf32>,
    } else {
    }
    %c0 = arith.constant 0 : index
    %c0_1 = arith.constant 0 : index
    %3 = vector.load %arg7[%c0, %c0_1] : memref<2x512xf32, #tpu.memory_space<vmem>>, vector<2x512xf32>
    %c0_2 = arith.constant 0 : index
    %c0_3 = arith.constant 0 : index
    %4 = vector.load %arg1[%c0_2, %c0_3] : memref<2x1152xf32, #tpu.memory_space<vmem>>, vector<2x1152xf32>
    %5 = arith.truncf %4 : vector<2x1152xf32> to vector<2x1152xbf16>
    %c0_4 = arith.constant 0 : index
    %c0_5 = arith.constant 0 : index
    %6 = vector.load %arg2[%c0_4, %c0_5] : memref<1152x512xbf16, #tpu.memory_space<vmem>>, vector<1152x512xbf16>
    %cst = arith.constant dense<0.000000e+00> : vector<2x512xf32>
    %7 = tpu.matmul %5, %6, %cst {dimension_numbers = #tpu.dot_dimension_numbers<[1], [0], [0], [1], [0, 0, 1, 1], [], []>} : vector<2x1152xbf16>, vector<1152x512xbf16>, vector<2x512xf32> -> vector<2x512xf32>
    %8 = arith.addf %3, %7 : vector<2x512xf32>
    %c0_6 = arith.constant 0 : index
    %c0_7 = arith.constant 0 : index
    %9 = vector.load %arg7[%c0_6, %c0_7] : memref<2x512xf32, #tpu.memory_space<vmem>>, vector<2x512xf32>
    tpu.vector_store %arg7[%c0_6, %c0_7], %8 {strides = array<i32>} : memref<2x512xf32, #tpu.memory_space<vmem>>, vector<2x512xf32>,
    %c3_i32 = arith.constant 3 : i32
    %10 = arith.cmpi eq, %arg0, %c3_i32 : i32
    %11 = arith.extui %10 : i1 to i32
    %c0_i32_8 = arith.constant 0 : i32
    %12 = arith.cmpi ne, %11, %c0_i32_8 : i32
    scf.if %12 {
      %c0_9 = arith.constant 0 : index
      %c0_10 = arith.constant 0 : index
      %13 = vector.load %arg7[%c0_9, %c0_10] : memref<2x512xf32, #tpu.memory_space<vmem>>, vector<2x512xf32>
      %c0_11 = arith.constant 0 : index
      %c0_12 = arith.constant 0 : index
      %14 = vector.load %arg3[%c0_11, %c0_12] : memref<1x512xf32, #tpu.memory_space<vmem>>, vector<1x512xf32>
      %15 = vector.broadcast %14 : vector<1x512xf32> to vector<2x512xf32>
      %16 = arith.addf %13, %15 : vector<2x512xf32>
      %cst_13 = arith.constant 0.000000e+00 : f32
      %17 = vector.broadcast %cst_13 : f32 to vector<2x512xf32>
      %18 = arith.maximumf %16, %17 : vector<2x512xf32>
      %c0_14 = arith.constant 0 : index
      %c0_15 = arith.constant 0 : index
      %19 = vector.load %arg4[%c0_14, %c0_15] : memref<512x128xf32, #tpu.memory_space<vmem>>, vector<512x128xf32>
      %cst_16 = arith.constant dense<0.000000e+00> : vector<2x128xf32>
      %20 = tpu.matmul %18, %19, %cst_16 {dimension_numbers = #tpu.dot_dimension_numbers<[1], [0], [0], [1], [0, 0, 1, 1], [], []>} : vector<2x512xf32>, vector<512x128xf32>, vector<2x128xf32> -> vector<2x128xf32>
      %c0_17 = arith.constant 0 : index
      %c0_18 = arith.constant 0 : index
      %21 = vector.load %arg5[%c0_17, %c0_18] : memref<1x128xf32, #tpu.memory_space<vmem>>, vector<1x128xf32>
      %22 = vector.broadcast %21 : vector<1x128xf32> to vector<2x128xf32>
      %23 = arith.addf %20, %22 : vector<2x128xf32>
      %c0_19 = arith.constant 0 : index
      %c0_20 = arith.constant 0 : index
      %24 = vector.load %arg6[%c0_19, %c0_20] : memref<2x128xf32, #tpu.memory_space<vmem>>, vector<2x128xf32>
      tpu.vector_store %arg6[%c0_19, %c0_20], %23 {strides = array<i32>} : memref<2x128xf32, #tpu.memory_space<vmem>>, vector<2x128xf32>,
    } else {
    }
    return
  }
  func.func @transform_0(%arg0: i32) -> (i32, i32) {
    %c0_i32 = arith.constant 0 : i32
    %c0_i32_0 = arith.constant 0 : i32
    return %c0_i32, %arg0 : i32, i32
  }
  func.func @transform_1(%arg0: i32) -> (i32, i32) {
    %c0_i32 = arith.constant 0 : i32
    %c0_i32_0 = arith.constant 0 : i32
    return %arg0, %c0_i32 : i32, i32
  }
  func.func @transform_2(%arg0: i32) -> (i32, i32) {
    %c0_i32 = arith.constant 0 : i32
    %c0_i32_0 = arith.constant 0 : i32
    %c0_i32_1 = arith.constant 0 : i32
    return %c0_i32, %c0_i32_0 : i32, i32
  }
  func.func @transform_3(%arg0: i32) -> (i32, i32) {
    %c0_i32 = arith.constant 0 : i32
    %c0_i32_0 = arith.constant 0 : i32
    %c0_i32_1 = arith.constant 0 : i32
    return %c0_i32, %c0_i32_0 : i32, i32
  }
  func.func @transform_4(%arg0: i32) -> (i32, i32) {
    %c0_i32 = arith.constant 0 : i32
    %c0_i32_0 = arith.constant 0 : i32
    %c0_i32_1 = arith.constant 0 : i32
    return %c0_i32, %c0_i32_0 : i32, i32
  }
  func.func @transform_5(%arg0: i32) -> (i32, i32) {
    %c0_i32 = arith.constant 0 : i32
    %c0_i32_0 = arith.constant 0 : i32
    %c0_i32_1 = arith.constant 0 : i32
    return %c0_i32, %c0_i32_0 : i32, i32
  }
}

</mosaic_0001>

<bundles_post_ra>
// kernel: leaky_relu_cnn_forward.4
= control target key start
LH: loop header
LB: loop body
LE: loop exit
PB: predicated region body
PF: predicated region fallthrough
CT: control target
= control target key end

     0   :  { %vm2321_vm0 = vcmask 1040384   ;;  %vm592_vm1 = vcmask 72704   ;;  %vm8324_vm2 = vmmov 1   ;;  %s12110_s1 = inlined_call_operand.vmem [shape: f32[9,128], index: 1, kind: input, shape index: {}]   ;;  %s12111_s0 = inlined_call_operand.vmem [shape: f32[4608,9], index: 0, kind: input, shape index: {}]   ;;  %s12112_s2 = inlined_call_operand.vmem [shape: f32[1,128], index: 2, kind: input, shape index: {}]   ;;  %s12113_s3 = inlined_call_operand.vmem [shape: f32[1152,128], index: 3, kind: output, shape index: {}]  }
   0x1   :  { %v590_v0 = vld [vmem:[%s12110_s1] sm:$0xff]  ;;  %v591_v1 = vld [vmem:[%s12110_s1 + $0x8] sm:$0x1]  ;;  %vm8314_vm3 = vmpackc.low %vm2321_vm0, %vm8324_vm2 }
   0x2   :  { %v8313_v2 = vpack.c.bf16 %v591_v1, %v590_v0  ;;  %v14_v3 = vld [vmem:[%s12111_s0] sm:$0xff]  ;;  %v15_v5 = vld [vmem:[%s12111_s0 + $0x8] sm:$0xff]  ;;  %v16_v7 = vld [vmem:[%s12111_s0 + $0x10] sm:$0xff] }
   0x3   :  { %v302_v4 = vld [vmem:[%s12111_s0 + $0x900] sm:$0xff]  ;;  %7449 = vmatprep.mubr.msk.f32.mxu0 %vm592_vm1, %v14_v3  ;;  %v303_v6 = vld [vmem:[%s12111_s0 + $0x908] sm:$0xff]  ;;  %v304_v8 = vld [vmem:[%s12111_s0 + $0x910] sm:$0xff] }
   0x4   :  { %7881 = vmatprep.mubr.msk.f32.mxu1 %vm592_vm1, %v302_v4  ;;  %8315 = vmatprep.subr.msk.bf16.mxu0 %vm8314_vm3, %v8313_v2  ;;  %v17_v9 = vld [vmem:[%s12111_s0 + $0x18] sm:$0xff]  ;;  %v18_v11 = vld [vmem:[%s12111_s0 + $0x20] sm:$0xff]  ;;  %v19_v13 = vld [vmem:[%s12111_s0 + $0x28] sm:$0xff] }
   0x5   :  { %8319 = vmatprep.subr.msk.bf16.mxu1 %vm8314_vm3, %v8313_v2  ;;  %8318 = vmatpush3.bf16.msk.msra.mxu0 %vm8314_vm3, %v8313_v2  ;;  %v305_v10 = vld [vmem:[%s12111_s0 + $0x918] sm:$0xff]  ;;  %v306_v12 = vld [vmem:[%s12111_s0 + $0x920] sm:$0xff]  ;;  %v307_v14 = vld [vmem:[%s12111_s0 + $0x928] sm:$0xff] }
   0x6   :  { %8320 = vmatpush3.bf16.msk.msra.mxu1 %vm8314_vm3, %v8313_v2  ;;  %v20_v15 = vld [vmem:[%s12111_s0 + $0x30] sm:$0xff]  ;;  %v21_v17 = vld [vmem:[%s12111_s0 + $0x38] sm:$0xff]  ;;  %v22_v19 = vld [vmem:[%s12111_s0 + $0x40] sm:$0xff] }
   0x7   :  { %v308_v16 = vld [vmem:[%s12111_s0 + $0x930] sm:$0xff]  ;;  %v309_v18 = vld [vmem:[%s12111_s0 + $0x938] sm:$0xff]  ;;  %v310_v20 = vld [vmem:[%s12111_s0 + $0x940] sm:$0xff] }
   0x8   :  { %7450 = vmatmul.mubr.msk.f32.vlgmr.msra.gmra.mrb[0].mxu0 %vm592_vm1, %v15_v5  ;;  %v23_v21 = vld [vmem:[%s12111_s0 + $0x48] sm:$0xff]  ;;  %v24_v23 = vld [vmem:[%s12111_s0 + $0x50] sm:$0xff]  ;;  %v25_v25 = vld [vmem:[%s12111_s0 + $0x58] sm:$0xff] }
   0x9   :  { %7882 = vmatmul.mubr.msk.f32.vlgmr.msra.gmra.mrb[0].mxu1 %vm592_vm1, %v303_v6  ;;  %7452 = vmatprep.mubr.msk.f32.mxu0 %vm592_vm1, %v16_v7  ;;  %v311_v22 = vld [vmem:[%s12111_s0 + $0x948] sm:$0xff]  ;;  %v312_v24 = vld [vmem:[%s12111_s0 + $0x950] sm:$0xff]  ;;  %v313_v26 = vld [vmem:[%s12111_s0 + $0x958] sm:$0xff] }
   0xa   :  { %7884 = vmatprep.mubr.msk.f32.mxu1 %vm592_vm1, %v304_v8  ;;  %v26_v27 = vld [vmem:[%s12111_s0 + $0x60] sm:$0xff]  ;;  %v27_v29 = vld [vmem:[%s12111_s0 + $0x68] sm:$0xff]  ;;  %v28_v31 = vld [vmem:[%s12111_s0 + $0x70] sm:$0xff] }
   0xb   :  { %v314_v28 = vld [vmem:[%s12111_s0 + $0x960] sm:$0xff]  ;;  %v315_v30 = vld [vmem:[%s12111_s0 + $0x968] sm:$0xff]  ;;  %v316_v32 = vld [vmem:[%s12111_s0 + $0x970] sm:$0xff] }
   0xc   :  { %7453 = vmatmul.mubr.msk.f32.gmra.mrb[2].mxu0 %vm592_vm1, %v17_v9  ;;  %v29_v33 = vld [vmem:[%s12111_s0 + $0x78] sm:$0xff]  ;;  %v30_v35 = vld [vmem:[%s12111_s0 + $0x80] sm:$0xff]  ;;  %v31_v37 = vld [vmem:[%s12111_s0 + $0x88] sm:$0xff] }
   0xd   :  { %7885 = vmatmul.mubr.msk.f32.gmra.mrb[2].mxu1 %vm592_vm1, %v305_v10  ;;  %7455 = vmatprep.mubr.msk.f32.mxu0 %vm592_vm1, %v18_v11  ;;  %v317_v34 = vld [vmem:[%s12111_s0 + $0x978] sm:$0xff]  ;;  %v318_v36 = vld [vmem:[%s12111_s0 + $0x980] sm:$0xff]  ;;  %v319_v38 = vld [vmem:[%s12111_s0 + $0x988] sm:$0xff] }
   0xe   :  { %7887 = vmatprep.mubr.msk.f32.mxu1 %vm592_vm1, %v306_v12  ;;  %v32_v39 = vld [vmem:[%s12111_s0 + $0x90] sm:$0xff]  ;;  %v33_v41 = vld [vmem:[%s12111_s0 + $0x98] sm:$0xff]  ;;  %v34_v43 = vld [vmem:[%s12111_s0 + $0xa0] sm:$0xff] }
   0xf   :  { %v320_v40 = vld [vmem:[%s12111_s0 + $0x990] sm:$0xff]  ;;  %v321_v42 = vld [vmem:[%s12111_s0 + $0x998] sm:$0xff]  ;;  %v322_v44 = vld [vmem:[%s12111_s0 + $0x9a0] sm:$0xff] }
  0x10   :  { %7456 = vmatmul.mubr.msk.f32.gmra.mrb[4].mxu0 %vm592_vm1, %v19_v13  ;;  %v35_v45 = vld [vmem:[%s12111_s0 + $0xa8] sm:$0xff]  ;;  %v36_v47 = vld [vmem:[%s12111_s0 + $0xb0] sm:$0xff]  ;;  %v37_v49 = vld [vmem:[%s12111_s0 + $0xb8] sm:$0xff] }
  0x11   :  { %7888 = vmatmul.mubr.msk.f32.gmra.mrb[4].mxu1 %vm592_vm1, %v307_v14  ;;  %7458 = vmatprep.mubr.msk.f32.mxu0 %vm592_vm1, %v20_v15  ;;  %v323_v46 = vld [vmem:[%s12111_s0 + $0x9a8] sm:$0xff]  ;;  %v324_v48 = vld [vmem:[%s12111_s0 + $0x9b0] sm:$0xff]  ;;  %v325_v50 = vld [vmem:[%s12111_s0 + $0x9b8] sm:$0xff] }
  0x12   :  { %7890 = vmatprep.mubr.msk.f32.mxu1 %vm592_vm1, %v308_v16  ;;  %v38_v51 = vld [vmem:[%s12111_s0 + $0xc0] sm:$0xff]  ;;  %v39_v53 = vld [vmem:[%s12111_s0 + $0xc8] sm:$0xff]  ;;  %v40_v55 = vld [vmem:[%s12111_s0 + $0xd0] sm:$0xff] }
  0x13   :  { %v326_v52 = vld [vmem:[%s12111_s0 + $0x9c0] sm:$0xff]  ;;  %v327_v54 = vld [vmem:[%s12111_s0 + $0x9c8] sm:$0xff]  ;;  %v328_v56 = vld [vmem:[%s12111_s0 + $0x9d0] sm:$0xff] }
  0x14   :  { %7459 = vmatmul.mubr.msk.f32.gmra.mrb[6].mxu0 %vm592_vm1, %v21_v17  ;;  %v41_v57 = vld [vmem:[%s12111_s0 + $0xd8] sm:$0xff]  ;;  %v42_v59 = vld [vmem:[%s12111_s0 + $0xe0] sm:$0xff]  ;;  %v43_v61 = vld [vmem:[%s12111_s0 + $0xe8] sm:$0xff] }
  0x15   :  { %7891 = vmatmul.mubr.msk.f32.gmra.mrb[6].mxu1 %vm592_vm1, %v309_v18  ;;  %7461 = vmatprep.mubr.msk.f32.mxu0 %vm592_vm1, %v22_v19  ;;  %v329_v58 = vld [vmem:[%s12111_s0 + $0x9d8] sm:$0xff]  ;;  %v330_v60 = vld [vmem:[%s12111_s0 + $0x9e0] sm:$0xff]  ;;  %v331_v62 = vld [vmem:[%s12111_s0 + $0x9e8] sm:$0xff] }
  0x16   :  { %7893 = vmatprep.mubr.msk.f32.mxu1 %vm592_vm1, %v310_v20  ;;  %v44_v63 = vld [vmem:[%s12111_s0 + $0xf0] sm:$0xff]  ;;  %v45_v1 = vld [vmem:[%s12111_s0 + $0xf8] sm:$0xff]  ;;  %v46_v3 = vld [vmem:[%s12111_s0 + $0x100] sm:$0xff] }
  0x17   :  { %v332_v0 = vld [vmem:[%s12111_s0 + $0x9f0] sm:$0xff]  ;;  %v333_v2 = vld [vmem:[%s12111_s0 + $0x9f8] sm:$0xff]  ;;  %v334_v4 = vld [vmem:[%s12111_s0 + $0xa00] sm:$0xff] }
  0x18   :  { %7462 = vmatmul.mubr.msk.f32.gmra.mrb[8].mxu0 %vm592_vm1, %v23_v21  ;;  %v47_v5 = vld [vmem:[%s12111_s0 + $0x108] sm:$0xff]  ;;  %v48_v7 = vld [vmem:[%s12111_s0 + $0x110] sm:$0xff]  ;;  %v49_v9 = vld [vmem:[%s12111_s0 + $0x118] sm:$0xff] }
  0x19   :  { %7894 = vmatmul.mubr.msk.f32.gmra.mrb[8].mxu1 %vm592_vm1, %v311_v22  ;;  %7464 = vmatprep.mubr.msk.f32.mxu0 %vm592_vm1, %v24_v23  ;;  %v335_v6 = vld [vmem:[%s12111_s0 + $0xa08] sm:$0xff]  ;;  %v336_v8 = vld [vmem:[%s12111_s0 + $0xa10] sm:$0xff]  ;;  %v337_v10 = vld [vmem:[%s12111_s0 + $0xa18] sm:$0xff] }
  0x1a   :  { %7896 = vmatprep.mubr.msk.f32.mxu1 %vm592_vm1, %v312_v24  ;;  %v50_v11 = vld [vmem:[%s12111_s0 + $0x120] sm:$0xff]  ;;  %v51_v13 = vld [vmem:[%s12111_s0 + $0x128] sm:$0xff]  ;;  %v52_v15 = vld [vmem:[%s12111_s0 + $0x130] sm:$0xff] }
  0x1b   :  { %v338_v12 = vld [vmem:[%s12111_s0 + $0xa20] sm:$0xff]  ;;  %v339_v14 = vld [vmem:[%s12111_s0 + $0xa28] sm:$0xff]  ;;  %v340_v16 = vld [vmem:[%s12111_s0 + $0xa30] sm:$0xff] }
  0x1c   :  { %7465 = vmatmul.mubr.msk.f32.gmra.mrb[10].mxu0 %vm592_vm1, %v25_v25  ;;  %v53_v17 = vld [vmem:[%s12111_s0 + $0x138] sm:$0xff]  ;;  %v54_v19 = vld [vmem:[%s12111_s0 + $0x140] sm:$0xff]  ;;  %v55_v21 = vld [vmem:[%s12111_s0 + $0x148] sm:$0xff] }
  0x1d   :  { %7897 = vmatmul.mubr.msk.f32.gmra.mrb[10].mxu1 %vm592_vm1, %v313_v26  ;;  %7467 = vmatprep.mubr.msk.f32.mxu0 %vm592_vm1, %v26_v27  ;;  %v341_v18 = vld [vmem:[%s12111_s0 + $0xa38] sm:$0xff]  ;;  %v342_v20 = vld [vmem:[%s12111_s0 + $0xa40] sm:$0xff]  ;;  %v343_v22 = vld [vmem:[%s12111_s0 + $0xa48] sm:$0xff] }
  0x1e   :  { %7899 = vmatprep.mubr.msk.f32.mxu1 %vm592_vm1, %v314_v28  ;;  %v56_v23 = vld [vmem:[%s12111_s0 + $0x150] sm:$0xff]  ;;  %v57_v25 = vld [vmem:[%s12111_s0 + $0x158] sm:$0xff]  ;;  %v58_v27 = vld [vmem:[%s12111_s0 + $0x160] sm:$0xff] }
  0x1f   :  { %v344_v24 = vld [vmem:[%s12111_s0 + $0xa50] sm:$0xff]  ;;  %v345_v26 = vld [vmem:[%s12111_s0 + $0xa58] sm:$0xff]  ;;  %v346_v28 = vld [vmem:[%s12111_s0 + $0xa60] sm:$0xff] }
  0x20   :  { %7468 = vmatmul.mubr.msk.f32.gmra.mrb[12].mxu0 %vm592_vm1, %v27_v29  ;;  %v59_v29 = vld [vmem:[%s12111_s0 + $0x168] sm:$0xff] }
  0x21   :  { %7900 = vmatmul.mubr.msk.f32.gmra.mrb[12].mxu1 %vm592_vm1, %v315_v30  ;;  %7470 = vmatprep.mubr.msk.f32.mxu0 %vm592_vm1, %v28_v31  ;;  %v347_v30 = vld [vmem:[%s12111_s0 + $0xa68] sm:$0xff]  ;;  %v60_v31 = vld [vmem:[%s12111_s0 + $0x170] sm:$0xff] }
  0x22   :  { %7902 = vmatprep.mubr.msk.f32.mxu1 %vm592_vm1, %v316_v32  ;;  %v348_v32 = vld [vmem:[%s12111_s0 + $0xa70] sm:$0xff] }
  0x24   :  { %7471 = vmatmul.mubr.msk.f32.gmra.mrb[14].mxu0 %vm592_vm1, %v29_v33  ;;  %v61_v33 = vld [vmem:[%s12111_s0 + $0x178] sm:$0xff] }
  0x25   :  { %7903 = vmatmul.mubr.msk.f32.gmra.mrb[14].mxu1 %vm592_vm1, %v317_v34  ;;  %7473 = vmatprep.mubr.msk.f32.mxu0 %vm592_vm1, %v30_v35  ;;  %v349_v34 = vld [vmem:[%s12111_s0 + $0xa78] sm:$0xff]  ;;  %v62_v35 = vld [vmem:[%s12111_s0 + $0x180] sm:$0xff] }
  0x26   :  { %7905 = vmatprep.mubr.msk.f32.mxu1 %vm592_vm1, %v318_v36  ;;  %v350_v36 = vld [vmem:[%s12111_s0 + $0xa80] sm:$0xff] }
  0x28   :  { %7474 = vmatmul.mubr.msk.f32.gmra.mrb[16].mxu0 %vm592_vm1, %v31_v37  ;;  %v63_v37 = vld [vmem:[%s12111_s0 + $0x188] sm:$0xff] }
  0x29   :  { %7906 = vmatmul.mubr.msk.f32.gmra.mrb[16].mxu1 %vm592_vm1, %v319_v38  ;;  %7476 = vmatprep.mubr.msk.f32.mxu0 %vm592_vm1, %v32_v39  ;;  %v351_v38 = vld [vmem:[%s12111_s0 + $0xa88] sm:$0xff]  ;;  %v64_v39 = vld [vmem:[%s12111_s0 + $0x190] sm:$0xff] }
  0x2a   :  { %7908 = vmatprep.mubr.msk.f32.mxu1 %vm592_vm1, %v320_v40  ;;  %v352_v40 = vld [vmem:[%s12111_s0 + $0xa90] sm:$0xff] }
  0x2c   :  { %7477 = vmatmul.mubr.msk.f32.gmra.mrb[18].mxu0 %vm592_vm1, %v33_v41  ;;  %v65_v41 = vld [vmem:[%s12111_s0 + $0x198] sm:$0xff] }
  0x2d   :  { %7909 = vmatmul.mubr.msk.f32.gmra.mrb[18].mxu1 %vm592_vm1, %v321_v42  ;;  %7479 = vmatprep.mubr.msk.f32.mxu0 %vm592_vm1, %v34_v43  ;;  %v353_v42 = vld [vmem:[%s12111_s0 + $0xa98] sm:$0xff]  ;;  %v66_v43 = vld [vmem:[%s12111_s0 + $0x1a0] sm:$0xff] }
  0x2e   :  { %7911 = vmatprep.mubr.msk.f32.mxu1 %vm592_vm1, %v322_v44  ;;  %v354_v44 = vld [vmem:[%s12111_s0 + $0xaa0] sm:$0xff] }
  0x30   :  { %7480 = vmatmul.mubr.msk.f32.gmra.mrb[20].mxu0 %vm592_vm1, %v35_v45  ;;  %v67_v45 = vld [vmem:[%s12111_s0 + $0x1a8] sm:$0xff] }
  0x31   :  { %7912 = vmatmul.mubr.msk.f32.gmra.mrb[20].mxu1 %vm592_vm1, %v323_v46  ;;  %7482 = vmatprep.mubr.msk.f32.mxu0 %vm592_vm1, %v36_v47  ;;  %v355_v46 = vld [vmem:[%s12111_s0 + $0xaa8] sm:$0xff]  ;;  %v68_v47 = vld [vmem:[%s12111_s0 + $0x1b0] sm:$0xff] }
  0x32   :  { %7914 = vmatprep.mubr.msk.f32.mxu1 %vm592_vm1, %v324_v48  ;;  %v356_v48 = vld [vmem:[%s12111_s0 + $0xab0] sm:$0xff] }
  0x34   :  { %7483 = vmatmul.mubr.msk.f32.gmra.mrb[22].mxu0 %vm592_vm1, %v37_v49  ;;  %v69_v49 = vld [vmem:[%s12111_s0 + $0x1b8] sm:$0xff] }
  0x35   :  { %7915 = vmatmul.mubr.msk.f32.gmra.mrb[22].mxu1 %vm592_vm1, %v325_v50  ;;  %7485 = vmatprep.mubr.msk.f32.mxu0 %vm592_vm1, %v38_v51  ;;  %v357_v50 = vld [vmem:[%s12111_s0 + $0xab8] sm:$0xff]  ;;  %v70_v51 = vld [vmem:[%s12111_s0 + $0x1c0] sm:$0xff] }
  0x36   :  { %7917 = vmatprep.mubr.msk.f32.mxu1 %vm592_vm1, %v326_v52  ;;  %v358_v52 = vld [vmem:[%s12111_s0 + $0xac0] sm:$0xff] }
  0x38   :  { %7486 = vmatmul.mubr.msk.f32.gmra.mrb[24].mxu0 %vm592_vm1, %v39_v53  ;;  %v71_v53 = vld [vmem:[%s12111_s0 + $0x1c8] sm:$0xff] }
  0x39   :  { %7918 = vmatmul.mubr.msk.f32.gmra.mrb[24].mxu1 %vm592_vm1, %v327_v54  ;;  %7488 = vmatprep.mubr.msk.f32.mxu0 %vm592_vm1, %v40_v55  ;;  %v359_v54 = vld [vmem:[%s12111_s0 + $0xac8] sm:$0xff]  ;;  %v72_v55 = vld [vmem:[%s12111_s0 + $0x1d0] sm:$0xff] }
  0x3a   :  { %7920 = vmatprep.mubr.msk.f32.mxu1 %vm592_vm1, %v328_v56  ;;  %v360_v56 = vld [vmem:[%s12111_s0 + $0xad0] sm:$0xff] }
  0x3c   :  { %7489 = vmatmul.mubr.msk.f32.gmra.mrb[26].mxu0 %vm592_vm1, %v41_v57  ;;  %v73_v57 = vld [vmem:[%s12111_s0 + $0x1d8] sm:$0xff] }
  0x3d   :  { %7921 = vmatmul.mubr.msk.f32.gmra.mrb[26].mxu1 %vm592_vm1, %v329_v58  ;;  %7491 = vmatprep.mubr.msk.f32.mxu0 %vm592_vm1, %v42_v59  ;;  %v361_v58 = vld [vmem:[%s12111_s0 + $0xad8] sm:$0xff]  ;;  %v74_v59 = vld [vmem:[%s12111_s0 + $0x1e0] sm:$0xff] }
  0x3e   :  { %7923 = vmatprep.mubr.msk.f32.mxu1 %vm592_vm1, %v330_v60  ;;  %v362_v60 = vld [vmem:[%s12111_s0 + $0xae0] sm:$0xff] }
  0x40   :  { %7492 = vmatmul.mubr.msk.f32.gmra.mrb[28].mxu0 %vm592_vm1, %v43_v61  ;;  %v75_v61 = vld [vmem:[%s12111_s0 + $0x1e8] sm:$0xff] }
  0x41   :  { %7924 = vmatmul.mubr.msk.f32.gmra.mrb[28].mxu1 %vm592_vm1, %v331_v62  ;;  %7494 = vmatprep.mubr.msk.f32.mxu0 %vm592_vm1, %v44_v63  ;;  %v363_v62 = vld [vmem:[%s12111_s0 + $0xae8] sm:$0xff]  ;;  %v76_v63 = vld [vmem:[%s12111_s0 + $0x1f0] sm:$0xff] }
  0x42   :  { %7926 = vmatprep.mubr.msk.f32.mxu1 %vm592_vm1, %v332_v0  ;;  %v364_v0 = vld [vmem:[%s12111_s0 + $0xaf0] sm:$0xff] }
  0x44   :  { %7495 = vmatmul.mubr.msk.f32.gmra.mrb[30].mxu0 %vm592_vm1, %v45_v1  ;;  %v77_v1 = vld [vmem:[%s12111_s0 + $0x1f8] sm:$0xff] }
  0x45   :  { %7927 = vmatmul.mubr.msk.f32.gmra.mrb[30].mxu1 %vm592_vm1, %v333_v2  ;;  %7497 = vmatprep.mubr.msk.f32.mxu0 %vm592_vm1, %v46_v3  ;;  %v365_v2 = vld [vmem:[%s12111_s0 + $0xaf8] sm:$0xff]  ;;  %v78_v3 = vld [vmem:[%s12111_s0 + $0x200] sm:$0xff] }
  0x46   :  { %7929 = vmatprep.mubr.msk.f32.mxu1 %vm592_vm1, %v334_v4  ;;  %v366_v4 = vld [vmem:[%s12111_s0 + $0xb00] sm:$0xff] }
  0x48   :  { %7498 = vmatmul.mubr.msk.f32.gmra.mrb[32].mxu0 %vm592_vm1, %v47_v5  ;;  %v79_v5 = vld [vmem:[%s12111_s0 + $0x208] sm:$0xff] }
  0x49   :  { %7930 = vmatmul.mubr.msk.f32.gmra.mrb[32].mxu1 %vm592_vm1, %v335_v6  ;;  %7500 = vmatprep.mubr.msk.f32.mxu0 %vm592_vm1, %v48_v7  ;;  %v367_v6 = vld [vmem:[%s12111_s0 + $0xb08] sm:$0xff]  ;;  %v80_v7 = vld [vmem:[%s12111_s0 + $0x210] sm:$0xff] }
  0x4a   :  { %7932 = vmatprep.mubr.msk.f32.mxu1 %vm592_vm1, %v336_v8  ;;  %v368_v8 = vld [vmem:[%s12111_s0 + $0xb10] sm:$0xff] }
  0x4c   :  { %7501 = vmatmul.mubr.msk.f32.gmra.mrb[34].mxu0 %vm592_vm1, %v49_v9  ;;  %v81_v9 = vld [vmem:[%s12111_s0 + $0x218] sm:$0xff] }
  0x4d   :  { %7933 = vmatmul.mubr.msk.f32.gmra.mrb[34].mxu1 %vm592_vm1, %v337_v10  ;;  %7503 = vmatprep.mubr.msk.f32.mxu0 %vm592_vm1, %v50_v11  ;;  %v369_v10 = vld [vmem:[%s12111_s0 + $0xb18] sm:$0xff]  ;;  %v82_v11 = vld [vmem:[%s12111_s0 + $0x220] sm:$0xff] }
  0x4e   :  { %7935 = vmatprep.mubr.msk.f32.mxu1 %vm592_vm1, %v338_v12  ;;  %v370_v12 = vld [vmem:[%s12111_s0 + $0xb20] sm:$0xff] }
  0x50   :  { %7504 = vmatmul.mubr.msk.f32.gmra.mrb[36].mxu0 %vm592_vm1, %v51_v13  ;;  %v83_v13 = vld [vmem:[%s12111_s0 + $0x228] sm:$0xff] }
  0x51   :  { %7936 = vmatmul.mubr.msk.f32.gmra.mrb[36].mxu1 %vm592_vm1, %v339_v14  ;;  %7506 = vmatprep.mubr.msk.f32.mxu0 %vm592_vm1, %v52_v15  ;;  %v371_v14 = vld [vmem:[%s12111_s0 + $0xb28] sm:$0xff]  ;;  %v84_v15 = vld [vmem:[%s12111_s0 + $0x230] sm:$0xff] }
  0x52   :  { %7938 = vmatprep.mubr.msk.f32.mxu1 %vm592_vm1, %v340_v16  ;;  %v372_v16 = vld [vmem:[%s12111_s0 + $0xb30] sm:$0xff] }
  0x54   :  { %7507 = vmatmul.mubr.msk.f32.gmra.mrb[38].mxu0 %vm592_vm1, %v53_v17  ;;  %v85_v17 = vld [vmem:[%s12111_s0 + $0x238] sm:$0xff] }
  0x55   :  { %7939 = vmatmul.mubr.msk.f32.gmra.mrb[38].mxu1 %vm592_vm1, %v341_v18  ;;  %7509 = vmatprep.mubr.msk.f32.mxu0 %vm592_vm1, %v54_v19  ;;  %v373_v18 = vld [vmem:[%s12111_s0 + $0xb38] sm:$0xff]  ;;  %v86_v19 = vld [vmem:[%s12111_s0 + $0x240] sm:$0xff] }
  0x56   :  { %7941 = vmatprep.mubr.msk.f32.mxu1 %vm592_vm1, %v342_v20  ;;  %v374_v20 = vld [vmem:[%s12111_s0 + $0xb40] sm:$0xff] }
  0x58   :  { %7510 = vmatmul.mubr.msk.f32.gmra.mrb[40].mxu0 %vm592_vm1, %v55_v21  ;;  %v87_v21 = vld [vmem:[%s12111_s0 + $0x248] sm:$0xff] }
  0x59   :  { %7942 = vmatmul.mubr.msk.f32.gmra.mrb[40].mxu1 %vm592_vm1, %v343_v22  ;;  %7512 = vmatprep.mubr.msk.f32.mxu0 %vm592_vm1, %v56_v23  ;;  %v375_v22 = vld [vmem:[%s12111_s0 + $0xb48] sm:$0xff]  ;;  %v88_v23 = vld [vmem:[%s12111_s0 + $0x250] sm:$0xff] }
  0x5a   :  { %7944 = vmatprep.mubr.msk.f32.mxu1 %vm592_vm1, %v344_v24  ;;  %v376_v24 = vld [vmem:[%s12111_s0 + $0xb50] sm:$0xff] }
  0x5c   :  { %7513 = vmatmul.mubr.msk.f32.gmra.mrb[42].mxu0 %vm592_vm1, %v57_v25  ;;  %v89_v25 = vld [vmem:[%s12111_s0 + $0x258] sm:$0xff] }
  0x5d   :  { %7945 = vmatmul.mubr.msk.f32.gmra.mrb[42].mxu1 %vm592_vm1, %v345_v26  ;;  %7515 = vmatprep.mubr.msk.f32.mxu0 %vm592_vm1, %v58_v27  ;;  %v377_v26 = vld [vmem:[%s12111_s0 + $0xb58] sm:$0xff]  ;;  %v90_v27 = vld [vmem:[%s12111_s0 + $0x260] sm:$0xff] }
  0x5e   :  { %7947 = vmatprep.mubr.msk.f32.mxu1 %vm592_vm1, %v346_v28  ;;  %v378_v28 = vld [vmem:[%s12111_s0 + $0xb60] sm:$0xff] }
  0x60   :  { %7516 = vmatmul.mubr.msk.f32.gmra.mrb[44].mxu0 %vm592_vm1, %v59_v29  ;;  %v91_v29 = vld [vmem:[%s12111_s0 + $0x268] sm:$0xff] }
  0x61   :  { %7948 = vmatmul.mubr.msk.f32.gmra.mrb[44].mxu1 %vm592_vm1, %v347_v30  ;;  %7518 = vmatprep.mubr.msk.f32.mxu0 %vm592_vm1, %v60_v31  ;;  %v379_v30 = vld [vmem:[%s12111_s0 + $0xb68] sm:$0xff]  ;;  %v92_v31 = vld [vmem:[%s12111_s0 + $0x270] sm:$0xff] }
  0x62   :  { %7950 = vmatprep.mubr.msk.f32.mxu1 %vm592_vm1, %v348_v32  ;;  %v380_v32 = vld [vmem:[%s12111_s0 + $0xb70] sm:$0xff] }
  0x64   :  { %7519 = vmatmul.mubr.msk.f32.gmra.mrb[46].mxu0 %vm592_vm1, %v61_v33  ;;  %v93_v33 = vld [vmem:[%s12111_s0 + $0x278] sm:$0xff] }
  0x65   :  { %7951 = vmatmul.mubr.msk.f32.gmra.mrb[46].mxu1 %vm592_vm1, %v349_v34  ;;  %7521 = vmatprep.mubr.msk.f32.mxu0 %vm592_vm1, %v62_v35  ;;  %v381_v34 = vld [vmem:[%s12111_s0 + $0xb78] sm:$0xff]  ;;  %v94_v35 = vld [vmem:[%s12111_s0 + $0x280] sm:$0xff] }
  0x66   :  { %7953 = vmatprep.mubr.msk.f32.mxu1 %vm592_vm1, %v350_v36  ;;  %v382_v36 = vld [vmem:[%s12111_s0 + $0xb80] sm:$0xff] }
  0x68   :  { %7522 = vmatmul.mubr.msk.f32.gmra.mrb[48].mxu0 %vm592_vm1, %v63_v37  ;;  %v95_v37 = vld [vmem:[%s12111_s0 + $0x288] sm:$0xff] }
  0x69   :  { %7954 = vmatmul.mubr.msk.f32.gmra.mrb[48].mxu1 %vm592_vm1, %v351_v38  ;;  %7524 = vmatprep.mubr.msk.f32.mxu0 %vm592_vm1, %v64_v39  ;;  %v383_v38 = vld [vmem:[%s12111_s0 + $0xb88] sm:$0xff]  ;;  %v96_v39 = vld [vmem:[%s12111_s0 + $0x290] sm:$0xff] }
  0x6a   :  { %7956 = vmatprep.mubr.msk.f32.mxu1 %vm592_vm1, %v352_v40  ;;  %v384_v40 = vld [vmem:[%s12111_s0 + $0xb90] sm:$0xff] }
  0x6c   :  { %7525 = vmatmul.mubr.msk.f32.gmra.mrb[50].mxu0 %vm592_vm1, %v65_v41  ;;  %v97_v41 = vld [vmem:[%s12111_s0 + $0x298] sm:$0xff] }
  0x6d   :  { %7957 = vmatmul.mubr.msk.f32.gmra.mrb[50].mxu1 %vm592_vm1, %v353_v42  ;;  %7527 = vmatprep.mubr.msk.f32.mxu0 %vm592_vm1, %v66_v43  ;;  %v385_v42 = vld [vmem:[%s12111_s0 + $0xb98] sm:$0xff]  ;;  %v98_v43 = vld [vmem:[%s12111_s0 + $0x2a0] sm:$0xff] }
  0x6e   :  { %7959 = vmatprep.mubr.msk.f32.mxu1 %vm592_vm1, %v354_v44  ;;  %v386_v44 = vld [vmem:[%s12111_s0 + $0xba0] sm:$0xff] }
  0x70   :  { %7528 = vmatmul.mubr.msk.f32.gmra.mrb[52].mxu0 %vm592_vm1, %v67_v45  ;;  %v99_v45 = vld [vmem:[%s12111_s0 + $0x2a8] sm:$0xff] }
  0x71   :  { %7960 = vmatmul.mubr.msk.f32.gmra.mrb[52].mxu1 %vm592_vm1, %v355_v46  ;;  %7530 = vmatprep.mubr.msk.f32.mxu0 %vm592_vm1, %v68_v47  ;;  %v387_v46 = vld [vmem:[%s12111_s0 + $0xba8] sm:$0xff]  ;;  %v100_v47 = vld [vmem:[%s12111_s0 + $0x2b0] sm:$0xff] }
  0x72   :  { %7962 = vmatprep.mubr.msk.f32.mxu1 %vm592_vm1, %v356_v48  ;;  %v388_v48 = vld [vmem:[%s12111_s0 + $0xbb0] sm:$0xff] }
  0x74   :  { %7531 = vmatmul.mubr.msk.f32.gmra.mrb[54].mxu0 %vm592_vm1, %v69_v49  ;;  %v101_v49 = vld [vmem:[%s12111_s0 + $0x2b8] sm:$0xff] }
  0x75   :  { %7963 = vmatmul.mubr.msk.f32.gmra.mrb[54].mxu1 %vm592_vm1, %v357_v50  ;;  %7533 = vmatprep.mubr.msk.f32.mxu0 %vm592_vm1, %v70_v51  ;;  %v389_v50 = vld [vmem:[%s12111_s0 + $0xbb8] sm:$0xff]  ;;  %v102_v51 = vld [vmem:[%s12111_s0 + $0x2c0] sm:$0xff] }
  0x76   :  { %7965 = vmatprep.mubr.msk.f32.mxu1 %vm592_vm1, %v358_v52  ;;  %v390_v52 = vld [vmem:[%s12111_s0 + $0xbc0] sm:$0xff] }
  0x78   :  { %7534 = vmatmul.mubr.msk.f32.gmra.mrb[56].mxu0 %vm592_vm1, %v71_v53  ;;  %v103_v53 = vld [vmem:[%s12111_s0 + $0x2c8] sm:$0xff] }
  0x79   :  { %7966 = vmatmul.mubr.msk.f32.gmra.mrb[56].mxu1 %vm592_vm1, %v359_v54  ;;  %7536 = vmatprep.mubr.msk.f32.mxu0 %vm592_vm1, %v72_v55  ;;  %v391_v54 = vld [vmem:[%s12111_s0 + $0xbc8] sm:$0xff]  ;;  %v104_v55 = vld [vmem:[%s12111_s0 + $0x2d0] sm:$0xff] }
  0x7a   :  { %7968 = vmatprep.mubr.msk.f32.mxu1 %vm592_vm1, %v360_v56  ;;  %v392_v56 = vld [vmem:[%s12111_s0 + $0xbd0] sm:$0xff] }
  0x7c   :  { %7537 = vmatmul.mubr.msk.f32.gmra.mrb[58].mxu0 %vm592_vm1, %v73_v57  ;;  %v105_v57 = vld [vmem:[%s12111_s0 + $0x2d8] sm:$0xff] }
  0x7d   :  { %7969 = vmatmul.mubr.msk.f32.gmra.mrb[58].mxu1 %vm592_vm1, %v361_v58  ;;  %7539 = vmatprep.mubr.msk.f32.mxu0 %vm592_vm1, %v74_v59  ;;  %v393_v58 = vld [vmem:[%s12111_s0 + $0xbd8] sm:$0xff]  ;;  %v106_v59 = vld [vmem:[%s12111_s0 + $0x2e0] sm:$0xff] }
  0x7e   :  { %7971 = vmatprep.mubr.msk.f32.mxu1 %vm592_vm1, %v362_v60  ;;  %v394_v60 = vld [vmem:[%s12111_s0 + $0xbe0] sm:$0xff] }
  0x80   :  { %7540 = vmatmul.mubr.msk.f32.gmra.mrb[60].mxu0 %vm592_vm1, %v75_v61  ;;  %v107_v61 = vld [vmem:[%s12111_s0 + $0x2e8] sm:$0xff] }
  0x81   :  { %7972 = vmatmul.mubr.msk.f32.gmra.mrb[60].mxu1 %vm592_vm1, %v363_v62  ;;  %7542 = vmatprep.mubr.msk.f32.mxu0 %vm592_vm1, %v76_v63  ;;  %v395_v62 = vld [vmem:[%s12111_s0 + $0xbe8] sm:$0xff]  ;;  %v108_v63 = vld [vmem:[%s12111_s0 + $0x2f0] sm:$0xff] }
  0x82   :  { %7974 = vmatprep.mubr.msk.f32.mxu1 %vm592_vm1, %v364_v0  ;;  %v396_v0 = vld [vmem:[%s12111_s0 + $0xbf0] sm:$0xff] }
  0x84   :  { %7543 = vmatmul.mubr.msk.f32.gmra.mrb[62].mxu0 %vm592_vm1, %v77_v1  ;;  %v109_v1 = vld [vmem:[%s12111_s0 + $0x2f8] sm:$0xff] }
  0x85   :  { %7975 = vmatmul.mubr.msk.f32.gmra.mrb[62].mxu1 %vm592_vm1, %v365_v2  ;;  %7545 = vmatprep.mubr.msk.f32.mxu0 %vm592_vm1, %v78_v3  ;;  %v397_v2 = vld [vmem:[%s12111_s0 + $0xbf8] sm:$0xff]  ;;  %v110_v3 = vld [vmem:[%s12111_s0 + $0x300] sm:$0xff] }
  0x86   :  { %7977 = vmatprep.mubr.msk.f32.mxu1 %vm592_vm1, %v366_v4  ;;  %v398_v4 = vld [vmem:[%s12111_s0 + $0xc00] sm:$0xff] }
  0x88   :  { %7546 = vmatmul.mubr.msk.f32.gmra.mrb[64].mxu0 %vm592_vm1, %v79_v5  ;;  %v111_v5 = vld [vmem:[%s12111_s0 + $0x308] sm:$0xff] }
  0x89   :  { %7978 = vmatmul.mubr.msk.f32.gmra.mrb[64].mxu1 %vm592_vm1, %v367_v6  ;;  %7548 = vmatprep.mubr.msk.f32.mxu0 %vm592_vm1, %v80_v7  ;;  %v399_v6 = vld [vmem:[%s12111_s0 + $0xc08] sm:$0xff]  ;;  %v112_v7 = vld [vmem:[%s12111_s0 + $0x310] sm:$0xff] }
  0x8a   :  { %7980 = vmatprep.mubr.msk.f32.mxu1 %vm592_vm1, %v368_v8  ;;  %v400_v8 = vld [vmem:[%s12111_s0 + $0xc10] sm:$0xff] }
  0x8c   :  { %7549 = vmatmul.mubr.msk.f32.gmra.mrb[66].mxu0 %vm592_vm1, %v81_v9  ;;  %v113_v9 = vld [vmem:[%s12111_s0 + $0x318] sm:$0xff] }
  0x8d   :  { %7981 = vmatmul.mubr.msk.f32.gmra.mrb[66].mxu1 %vm592_vm1, %v369_v10  ;;  %7551 = vmatprep.mubr.msk.f32.mxu0 %vm592_vm1, %v82_v11  ;;  %v401_v10 = vld [vmem:[%s12111_s0 + $0xc18] sm:$0xff]  ;;  %v114_v11 = vld [vmem:[%s12111_s0 + $0x320] sm:$0xff] }
  0x8e   :  { %7983 = vmatprep.mubr.msk.f32.mxu1 %vm592_vm1, %v370_v12  ;;  %v402_v12 = vld [vmem:[%s12111_s0 + $0xc20] sm:$0xff] }
  0x90   :  { %7552 = vmatmul.mubr.msk.f32.gmra.mrb[68].mxu0 %vm592_vm1, %v83_v13  ;;  %v115_v13 = vld [vmem:[%s12111_s0 + $0x328] sm:$0xff] }
  0x91   :  { %7984 = vmatmul.mubr.msk.f32.gmra.mrb[68].mxu1 %vm592_vm1, %v371_v14  ;;  %7554 = vmatprep.mubr.msk.f32.mxu0 %vm592_vm1, %v84_v15  ;;  %v403_v14 = vld [vmem:[%s12111_s0 + $0xc28] sm:$0xff]  ;;  %v116_v15 = vld [vmem:[%s12111_s0 + $0x330] sm:$0xff] }
  0x92   :  { %7986 = vmatprep.mubr.msk.f32.mxu1 %vm592_vm1, %v372_v16  ;;  %v404_v16 = vld [vmem:[%s12111_s0 + $0xc30] sm:$0xff] }
  0x94   :  { %7555 = vmatmul.mubr.msk.f32.gmra.mrb[70].mxu0 %vm592_vm1, %v85_v17  ;;  %v117_v17 = vld [vmem:[%s12111_s0 + $0x338] sm:$0xff] }
  0x95   :  { %7987 = vmatmul.mubr.msk.f32.gmra.mrb[70].mxu1 %vm592_vm1, %v373_v18  ;;  %7557 = vmatprep.mubr.msk.f32.mxu0 %vm592_vm1, %v86_v19  ;;  %v405_v18 = vld [vmem:[%s12111_s0 + $0xc38] sm:$0xff]  ;;  %v118_v19 = vld [vmem:[%s12111_s0 + $0x340] sm:$0xff] }
  0x96   :  { %7989 = vmatprep.mubr.msk.f32.mxu1 %vm592_vm1, %v374_v20  ;;  %v406_v20 = vld [vmem:[%s12111_s0 + $0xc40] sm:$0xff] }
  0x98   :  { %7558 = vmatmul.mubr.msk.f32.gmra.mrb[72].mxu0 %vm592_vm1, %v87_v21  ;;  %v119_v21 = vld [vmem:[%s12111_s0 + $0x348] sm:$0xff] }
  0x99   :  { %7990 = vmatmul.mubr.msk.f32.gmra.mrb[72].mxu1 %vm592_vm1, %v375_v22  ;;  %7560 = vmatprep.mubr.msk.f32.mxu0 %vm592_vm1, %v88_v23  ;;  %v407_v22 = vld [vmem:[%s12111_s0 + $0xc48] sm:$0xff]  ;;  %v120_v23 = vld [vmem:[%s12111_s0 + $0x350] sm:$0xff] }
  0x9a   :  { %7992 = vmatprep.mubr.msk.f32.mxu1 %vm592_vm1, %v376_v24  ;;  %v408_v24 = vld [vmem:[%s12111_s0 + $0xc50] sm:$0xff] }
  0x9c   :  { %7561 = vmatmul.mubr.msk.f32.gmra.mrb[74].mxu0 %vm592_vm1, %v89_v25  ;;  %v121_v25 = vld [vmem:[%s12111_s0 + $0x358] sm:$0xff] }
  0x9d   :  { %7993 = vmatmul.mubr.msk.f32.gmra.mrb[74].mxu1 %vm592_vm1, %v377_v26  ;;  %7563 = vmatprep.mubr.msk.f32.mxu0 %vm592_vm1, %v90_v27  ;;  %v409_v26 = vld [vmem:[%s12111_s0 + $0xc58] sm:$0xff]  ;;  %v122_v27 = vld [vmem:[%s12111_s0 + $0x360] sm:$0xff] }
  0x9e   :  { %7995 = vmatprep.mubr.msk.f32.mxu1 %vm592_vm1, %v378_v28  ;;  %v410_v28 = vld [vmem:[%s12111_s0 + $0xc60] sm:$0xff] }
  0xa0   :  { %7564 = vmatmul.mubr.msk.f32.gmra.mrb[76].mxu0 %vm592_vm1, %v91_v29 }
  0xa1   :  { %7996 = vmatmul.mubr.msk.f32.gmra.mrb[76].mxu1 %vm592_vm1, %v379_v30  ;;  %7566 = vmatprep.mubr.msk.f32.mxu0 %vm592_vm1, %v92_v31 }
  0xa2   :  { %7998 = vmatprep.mubr.msk.f32.mxu1 %vm592_vm1, %v380_v32 }
  0xa4   :  { %7567 = vmatmul.mubr.msk.f32.gmra.mrb[78].mxu0 %vm592_vm1, %v93_v33  ;;  %v123_v33 = vld [vmem:[%s12111_s0 + $0x368] sm:$0xff] }
  0xa5   :  { %7999 = vmatmul.mubr.msk.f32.gmra.mrb[78].mxu1 %vm592_vm1, %v381_v34  ;;  %7569 = vmatprep.mubr.msk.f32.mxu0 %vm592_vm1, %v94_v35  ;;  %v411_v34 = vld [vmem:[%s12111_s0 + $0xc68] sm:$0xff]  ;;  %v124_v35 = vld [vmem:[%s12111_s0 + $0x370] sm:$0xff] }
  0xa6   :  { %8001 = vmatprep.mubr.msk.f32.mxu1 %vm592_vm1, %v382_v36  ;;  %v412_v36 = vld [vmem:[%s12111_s0 + $0xc70] sm:$0xff] }
  0xa8   :  { %7570 = vmatmul.mubr.msk.f32.gmra.mrb[80].mxu0 %vm592_vm1, %v95_v37 }
  0xa9   :  { %8002 = vmatmul.mubr.msk.f32.gmra.mrb[80].mxu1 %vm592_vm1, %v383_v38  ;;  %7572 = vmatprep.mubr.msk.f32.mxu0 %vm592_vm1, %v96_v39 }
  0xaa   :  { %8004 = vmatprep.mubr.msk.f32.mxu1 %vm592_vm1, %v384_v40 }
  0xac   :  { %7573 = vmatmul.mubr.msk.f32.gmra.mrb[82].mxu0 %vm592_vm1, %v97_v41  ;;  %v125_v41 = vld [vmem:[%s12111_s0 + $0x378] sm:$0xff] }
  0xad   :  { %8005 = vmatmul.mubr.msk.f32.gmra.mrb[82].mxu1 %vm592_vm1, %v385_v42  ;;  %7575 = vmatprep.mubr.msk.f32.mxu0 %vm592_vm1, %v98_v43  ;;  %v413_v42 = vld [vmem:[%s12111_s0 + $0xc78] sm:$0xff]  ;;  %v126_v43 = vld [vmem:[%s12111_s0 + $0x380] sm:$0xff] }
  0xae   :  { %8007 = vmatprep.mubr.msk.f32.mxu1 %vm592_vm1, %v386_v44  ;;  %v414_v44 = vld [vmem:[%s12111_s0 + $0xc80] sm:$0xff] }
  0xb0   :  { %7576 = vmatmul.mubr.msk.f32.gmra.mrb[84].mxu0 %vm592_vm1, %v99_v45 }
  0xb1   :  { %8008 = vmatmul.mubr.msk.f32.gmra.mrb[84].mxu1 %vm592_vm1, %v387_v46  ;;  %7578 = vmatprep.mubr.msk.f32.mxu0 %vm592_vm1, %v100_v47 }
  0xb2   :  { %8010 = vmatprep.mubr.msk.f32.mxu1 %vm592_vm1, %v388_v48 }
  0xb4   :  { %7579 = vmatmul.mubr.msk.f32.gmra.mrb[86].mxu0 %vm592_vm1, %v101_v49  ;;  %v127_v49 = vld [vmem:[%s12111_s0 + $0x388] sm:$0xff] }
  0xb5   :  { %8011 = vmatmul.mubr.msk.f32.gmra.mrb[86].mxu1 %vm592_vm1, %v389_v50  ;;  %7581 = vmatprep.mubr.msk.f32.mxu0 %vm592_vm1, %v102_v51  ;;  %v415_v50 = vld [vmem:[%s12111_s0 + $0xc88] sm:$0xff]  ;;  %v128_v51 = vld [vmem:[%s12111_s0 + $0x390] sm:$0xff] }
  0xb6   :  { %8013 = vmatprep.mubr.msk.f32.mxu1 %vm592_vm1, %v390_v52  ;;  %v416_v52 = vld [vmem:[%s12111_s0 + $0xc90] sm:$0xff] }
  0xb8   :  { %7582 = vmatmul.mubr.msk.f32.gmra.mrb[88].mxu0 %vm592_vm1, %v103_v53 }
  0xb9   :  { %8014 = vmatmul.mubr.msk.f32.gmra.mrb[88].mxu1 %vm592_vm1, %v391_v54  ;;  %7584 = vmatprep.mubr.msk.f32.mxu0 %vm592_vm1, %v104_v55 }
  0xba   :  { %8016 = vmatprep.mubr.msk.f32.mxu1 %vm592_vm1, %v392_v56 }
  0xbc   :  { %7585 = vmatmul.mubr.msk.f32.gmra.mrb[90].mxu0 %vm592_vm1, %v105_v57  ;;  %v129_v57 = vld [vmem:[%s12111_s0 + $0x398] sm:$0xff] }
  0xbd   :  { %8017 = vmatmul.mubr.msk.f32.gmra.mrb[90].mxu1 %vm592_vm1, %v393_v58  ;;  %7587 = vmatprep.mubr.msk.f32.mxu0 %vm592_vm1, %v106_v59  ;;  %v417_v58 = vld [vmem:[%s12111_s0 + $0xc98] sm:$0xff]  ;;  %v130_v59 = vld [vmem:[%s12111_s0 + $0x3a0] sm:$0xff] }
  0xbe   :  { %8019 = vmatprep.mubr.msk.f32.mxu1 %vm592_vm1, %v394_v60  ;;  %v418_v60 = vld [vmem:[%s12111_s0 + $0xca0] sm:$0xff] }
  0xc0   :  { %7588 = vmatmul.mubr.msk.f32.gmra.mrb[92].mxu0 %vm592_vm1, %v107_v61 }
  0xc1   :  { %8020 = vmatmul.mubr.msk.f32.gmra.mrb[92].mxu1 %vm592_vm1, %v395_v62  ;;  %7590 = vmatprep.mubr.msk.f32.mxu0 %vm592_vm1, %v108_v63 }
  0xc2   :  { %8022 = vmatprep.mubr.msk.f32.mxu1 %vm592_vm1, %v396_v0 }
  0xc4   :  { %7591 = vmatmul.mubr.msk.f32.gmra.mrb[94].mxu0 %vm592_vm1, %v109_v1  ;;  %v131_v1 = vld [vmem:[%s12111_s0 + $0x3a8] sm:$0xff] }
  0xc5   :  { %8023 = vmatmul.mubr.msk.f32.gmra.mrb[94].mxu1 %vm592_vm1, %v397_v2  ;;  %7593 = vmatprep.mubr.msk.f32.mxu0 %vm592_vm1, %v110_v3  ;;  %v419_v2 = vld [vmem:[%s12111_s0 + $0xca8] sm:$0xff]  ;;  %v132_v3 = vld [vmem:[%s12111_s0 + $0x3b0] sm:$0xff] }
  0xc6   :  { %8025 = vmatprep.mubr.msk.f32.mxu1 %vm592_vm1, %v398_v4  ;;  %v420_v4 = vld [vmem:[%s12111_s0 + $0xcb0] sm:$0xff] }
  0xc8   :  { %7594 = vmatmul.mubr.msk.f32.gmra.mrb[96].mxu0 %vm592_vm1, %v111_v5 }
  0xc9   :  { %8026 = vmatmul.mubr.msk.f32.gmra.mrb[96].mxu1 %vm592_vm1, %v399_v6  ;;  %7596 = vmatprep.mubr.msk.f32.mxu0 %vm592_vm1, %v112_v7 }
  0xca   :  { %8028 = vmatprep.mubr.msk.f32.mxu1 %vm592_vm1, %v400_v8 }
  0xcc   :  { %7597 = vmatmul.mubr.msk.f32.gmra.mrb[98].mxu0 %vm592_vm1, %v113_v9  ;;  %v133_v9 = vld [vmem:[%s12111_s0 + $0x3b8] sm:$0xff] }
  0xcd   :  { %8029 = vmatmul.mubr.msk.f32.gmra.mrb[98].mxu1 %vm592_vm1, %v401_v10  ;;  %7599 = vmatprep.mubr.msk.f32.mxu0 %vm592_vm1, %v114_v11  ;;  %v421_v10 = vld [vmem:[%s12111_s0 + $0xcb8] sm:$0xff]  ;;  %v134_v11 = vld [vmem:[%s12111_s0 + $0x3c0] sm:$0xff] }
  0xce   :  { %8031 = vmatprep.mubr.msk.f32.mxu1 %vm592_vm1, %v402_v12  ;;  %v422_v12 = vld [vmem:[%s12111_s0 + $0xcc0] sm:$0xff] }
  0xd0   :  { %7600 = vmatmul.mubr.msk.f32.gmra.mrb[100].mxu0 %vm592_vm1, %v115_v13 }
  0xd1   :  { %8032 = vmatmul.mubr.msk.f32.gmra.mrb[100].mxu1 %vm592_vm1, %v403_v14  ;;  %7602 = vmatprep.mubr.msk.f32.mxu0 %vm592_vm1, %v116_v15 }
  0xd2   :  { %8034 = vmatprep.mubr.msk.f32.mxu1 %vm592_vm1, %v404_v16 }
  0xd4   :  { %7603 = vmatmul.mubr.msk.f32.gmra.mrb[102].mxu0 %vm592_vm1, %v117_v17  ;;  %v135_v17 = vld [vmem:[%s12111_s0 + $0x3c8] sm:$0xff] }
  0xd5   :  { %8035 = vmatmul.mubr.msk.f32.gmra.mrb[102].mxu1 %vm592_vm1, %v405_v18  ;;  %7605 = vmatprep.mubr.msk.f32.mxu0 %vm592_vm1, %v118_v19  ;;  %v423_v18 = vld [vmem:[%s12111_s0 + $0xcc8] sm:$0xff]  ;;  %v136_v19 = vld [vmem:[%s12111_s0 + $0x3d0] sm:$0xff] }
  0xd6   :  { %8037 = vmatprep.mubr.msk.f32.mxu1 %vm592_vm1, %v406_v20  ;;  %v424_v20 = vld [vmem:[%s12111_s0 + $0xcd0] sm:$0xff] }
  0xd8   :  { %7606 = vmatmul.mubr.msk.f32.gmra.mrb[104].mxu0 %vm592_vm1, %v119_v21 }
  0xd9   :  { %8038 = vmatmul.mubr.msk.f32.gmra.mrb[104].mxu1 %vm592_vm1, %v407_v22  ;;  %7608 = vmatprep.mubr.msk.f32.mxu0 %vm592_vm1, %v120_v23 }
  0xda   :  { %8040 = vmatprep.mubr.msk.f32.mxu1 %vm592_vm1, %v408_v24 }
  0xdb   :  { %v9219_v29 = vpop.f32.mrb[0].mxu0 }
  0xdc   :  { %v9221_v30 = vpop.f32.mrb[0].mxu1  ;;  %v9223_v31 = vpop.f32.mrb[1].mxu0  ;;  %7609 = vmatmul.mubr.msk.f32.gmra.mrb[106].mxu0 %vm592_vm1, %v121_v25  ;;  %v137_v25 = vld [vmem:[%s12111_s0 + $0x3d8] sm:$0xff] }
  0xdd   :  { %v9226_v32 = vpop.f32.mrb[1].mxu1  ;;  %8041 = vmatmul.mubr.msk.f32.gmra.mrb[106].mxu1 %vm592_vm1, %v409_v26  ;;  %7611 = vmatprep.mubr.msk.f32.mxu0 %vm592_vm1, %v122_v27  ;;  %v425_v26 = vld [vmem:[%s12111_s0 + $0xcd8] sm:$0xff]  ;;  %v138_v27 = vld [vmem:[%s12111_s0 + $0x3e0] sm:$0xff] }
  0xde   :  { %8043 = vmatprep.mubr.msk.f32.mxu1 %vm592_vm1, %v410_v28  ;;  %v426_v28 = vld [vmem:[%s12111_s0 + $0xce0] sm:$0xff] }
  0xdf   :  { %v9243_v37 = vpop.f32.mrb[2].mxu0 }
  0xe0   :  { %v9245_v38 = vpop.f32.mrb[2].mxu1  ;;  %v9247_v39 = vpop.f32.mrb[3].mxu0  ;;  %7612 = vmatmul.mubr.msk.f32.gmra.mrb[108].mxu0 %vm592_vm1, %v123_v33 }
  0xe1   :  { %v9250_v40 = vpop.f32.mrb[3].mxu1  ;;  %8044 = vmatmul.mubr.msk.f32.gmra.mrb[108].mxu1 %vm592_vm1, %v411_v34  ;;  %7614 = vmatprep.mubr.msk.f32.mxu0 %vm592_vm1, %v124_v35 }
  0xe2   :  { %8046 = vmatprep.mubr.msk.f32.mxu1 %vm592_vm1, %v412_v36 }
  0xe3   :  { %v9267_v45 = vpop.f32.mrb[4].mxu0 }
  0xe4   :  { %v9269_v46 = vpop.f32.mrb[4].mxu1  ;;  %v9271_v47 = vpop.f32.mrb[5].mxu0  ;;  %7615 = vmatmul.mubr.msk.f32.gmra.mrb[110].mxu0 %vm592_vm1, %v125_v41  ;;  %v139_v41 = vld [vmem:[%s12111_s0 + $0x3e8] sm:$0xff] }
  0xe5   :  { %v9274_v48 = vpop.f32.mrb[5].mxu1  ;;  %8047 = vmatmul.mubr.msk.f32.gmra.mrb[110].mxu1 %vm592_vm1, %v413_v42  ;;  %7617 = vmatprep.mubr.msk.f32.mxu0 %vm592_vm1, %v126_v43  ;;  %v427_v42 = vld [vmem:[%s12111_s0 + $0xce8] sm:$0xff]  ;;  %v140_v43 = vld [vmem:[%s12111_s0 + $0x3f0] sm:$0xff] }
  0xe6   :  { %8049 = vmatprep.mubr.msk.f32.mxu1 %vm592_vm1, %v414_v44  ;;  %v428_v44 = vld [vmem:[%s12111_s0 + $0xcf0] sm:$0xff] }
  0xe7   :  { %v9291_v53 = vpop.f32.mrb[6].mxu0 }
  0xe8   :  { %v9293_v54 = vpop.f32.mrb[6].mxu1  ;;  %v9295_v55 = vpop.f32.mrb[7].mxu0  ;;  %7618 = vmatmul.mubr.msk.f32.gmra.mrb[112].mxu0 %vm592_vm1, %v127_v49 }
  0xe9   :  { %v9298_v56 = vpop.f32.mrb[7].mxu1  ;;  %8050 = vmatmul.mubr.msk.f32.gmra.mrb[112].mxu1 %vm592_vm1, %v415_v50  ;;  %7620 = vmatprep.mubr.msk.f32.mxu0 %vm592_vm1, %v128_v51 }
  0xea   :  { %8052 = vmatprep.mubr.msk.f32.mxu1 %vm592_vm1, %v416_v52 }
  0xeb   :  { %v9315_v61 = vpop.f32.mrb[8].mxu0 }
  0xec   :  { %v9317_v62 = vpop.f32.mrb[8].mxu1  ;;  %v9319_v63 = vpop.f32.mrb[9].mxu0  ;;  %7621 = vmatmul.mubr.msk.f32.gmra.mrb[114].mxu0 %vm592_vm1, %v129_v57  ;;  %v141_v57 = vld [vmem:[%s12111_s0 + $0x3f8] sm:$0xff] }
  0xed   :  { %v9322_v0 = vpop.f32.mrb[9].mxu1  ;;  %8053 = vmatmul.mubr.msk.f32.gmra.mrb[114].mxu1 %vm592_vm1, %v417_v58  ;;  %7623 = vmatprep.mubr.msk.f32.mxu0 %vm592_vm1, %v130_v59  ;;  %v429_v58 = vld [vmem:[%s12111_s0 + $0xcf8] sm:$0xff]  ;;  %v142_v59 = vld [vmem:[%s12111_s0 + $0x400] sm:$0xff] }
  0xee   :  { %8055 = vmatprep.mubr.msk.f32.mxu1 %vm592_vm1, %v418_v60  ;;  %v430_v60 = vld [vmem:[%s12111_s0 + $0xd00] sm:$0xff] }
  0xef   :  { %v9339_v5 = vpop.f32.mrb[10].mxu0 }
  0xf0   :  { %v9341_v6 = vpop.f32.mrb[10].mxu1  ;;  %v9343_v7 = vpop.f32.mrb[11].mxu0  ;;  %7624 = vmatmul.mubr.msk.f32.gmra.mrb[116].mxu0 %vm592_vm1, %v131_v1 }
  0xf1   :  { %v9346_v8 = vpop.f32.mrb[11].mxu1  ;;  %8056 = vmatmul.mubr.msk.f32.gmra.mrb[116].mxu1 %vm592_vm1, %v419_v2  ;;  %7626 = vmatprep.mubr.msk.f32.mxu0 %vm592_vm1, %v132_v3 }
  0xf2   :  { %8058 = vmatprep.mubr.msk.f32.mxu1 %vm592_vm1, %v420_v4 }
  0xf3   :  { %v9363_v13 = vpop.f32.mrb[12].mxu0 }
  0xf4   :  { %v9365_v14 = vpop.f32.mrb[12].mxu1  ;;  %v9367_v15 = vpop.f32.mrb[13].mxu0  ;;  %7627 = vmatmul.mubr.msk.f32.gmra.mrb[118].mxu0 %vm592_vm1, %v133_v9  ;;  %v143_v9 = vld [vmem:[%s12111_s0 + $0x408] sm:$0xff] }
  0xf5   :  { %v9370_v16 = vpop.f32.mrb[13].mxu1  ;;  %8059 = vmatmul.mubr.msk.f32.gmra.mrb[118].mxu1 %vm592_vm1, %v421_v10  ;;  %7629 = vmatprep.mubr.msk.f32.mxu0 %vm592_vm1, %v134_v11  ;;  %v431_v10 = vld [vmem:[%s12111_s0 + $0xd08] sm:$0xff]  ;;  %v144_v11 = vld [vmem:[%s12111_s0 + $0x410] sm:$0xff] }
  0xf6   :  { %8061 = vmatprep.mubr.msk.f32.mxu1 %vm592_vm1, %v422_v12  ;;  %v432_v12 = vld [vmem:[%s12111_s0 + $0xd10] sm:$0xff] }
  0xf7   :  { %v9387_v21 = vpop.f32.mrb[14].mxu0 }
  0xf8   :  { %v9389_v22 = vpop.f32.mrb[14].mxu1  ;;  %v9391_v23 = vpop.f32.mrb[15].mxu0  ;;  %7630 = vmatmul.mubr.msk.f32.gmra.mrb[120].mxu0 %vm592_vm1, %v135_v17 }
  0xf9   :  { %v9394_v24 = vpop.f32.mrb[15].mxu1  ;;  %8062 = vmatmul.mubr.msk.f32.gmra.mrb[120].mxu1 %vm592_vm1, %v423_v18  ;;  %7632 = vmatprep.mubr.msk.f32.mxu0 %vm592_vm1, %v136_v19 }
  0xfa   :  { %8064 = vmatprep.mubr.msk.f32.mxu1 %vm592_vm1, %v424_v20 }
  0xfb   :  { %v9411_v33 = vpop.f32.mrb[16].mxu0 }
  0xfc   :  { %v9413_v34 = vpop.f32.mrb[16].mxu1  ;;  %v9415_v35 = vpop.f32.mrb[17].mxu0  ;;  %7633 = vmatmul.mubr.msk.f32.gmra.mrb[122].mxu0 %vm592_vm1, %v137_v25  ;;  %v145_v25 = vld [vmem:[%s12111_s0 + $0x418] sm:$0xff] }
  0xfd   :  { %v9418_v36 = vpop.f32.mrb[17].mxu1  ;;  %8065 = vmatmul.mubr.msk.f32.gmra.mrb[122].mxu1 %vm592_vm1, %v425_v26  ;;  %7635 = vmatprep.mubr.msk.f32.mxu0 %vm592_vm1, %v138_v27  ;;  %v433_v26 = vld [vmem:[%s12111_s0 + $0xd18] sm:$0xff]  ;;  %v146_v27 = vld [vmem:[%s12111_s0 + $0x420] sm:$0xff] }
  0xfe   :  { %8067 = vmatprep.mubr.msk.f32.mxu1 %vm592_vm1, %v426_v28  ;;  %v434_v28 = vld [vmem:[%s12111_s0 + $0xd20] sm:$0xff] }
  0xff   :  { %v9435_v49 = vpop.f32.mrb[18].mxu0 }
 0x100   :  { %v9437_v50 = vpop.f32.mrb[18].mxu1  ;;  %v9439_v51 = vpop.f32.mrb[19].mxu0  ;;  %7636 = vmatmul.mubr.msk.f32.gmra.mrb[124].mxu0 %vm592_vm1, %v139_v41 }
 0x101   :  { %v9442_v52 = vpop.f32.mrb[19].mxu1  ;;  %8068 = vmatmul.mubr.msk.f32.gmra.mrb[124].mxu1 %vm592_vm1, %v427_v42  ;;  %7638 = vmatprep.mubr.msk.f32.mxu0 %vm592_vm1, %v140_v43 }
 0x102   :  { %8070 = vmatprep.mubr.msk.f32.mxu1 %vm592_vm1, %v428_v44 }
 0x103   :  { %v9459_v1 = vpop.f32.mrb[20].mxu0 }
 0x104   :  { %v9461_v2 = vpop.f32.mrb[20].mxu1  ;;  %v9463_v3 = vpop.f32.mrb[21].mxu0  ;;  %7639 = vmatmul.mubr.msk.f32.gmra.mrb[126].mxu0 %vm592_vm1, %v141_v57  ;;  %v147_v57 = vld [vmem:[%s12111_s0 + $0x428] sm:$0xff] }
 0x105   :  { %v9466_v4 = vpop.f32.mrb[21].mxu1  ;;  %8071 = vmatmul.mubr.msk.f32.gmra.mrb[126].mxu1 %vm592_vm1, %v429_v58  ;;  %7641 = vmatprep.mubr.msk.f32.mxu0 %vm592_vm1, %v142_v59  ;;  %v435_v58 = vld [vmem:[%s12111_s0 + $0xd28] sm:$0xff]  ;;  %v148_v59 = vld [vmem:[%s12111_s0 + $0x430] sm:$0xff] }
 0x106   :  { %8073 = vmatprep.mubr.msk.f32.mxu1 %vm592_vm1, %v430_v60  ;;  %v436_v60 = vld [vmem:[%s12111_s0 + $0xd30] sm:$0xff] }
 0x107   :  { %v9483_v17 = vpop.f32.mrb[22].mxu0 }
 0x108   :  { %v9485_v18 = vpop.f32.mrb[22].mxu1  ;;  %v9487_v19 = vpop.f32.mrb[23].mxu0  ;;  %7642 = vmatmul.mubr.msk.f32.gmra.mrb[128].mxu0 %vm592_vm1, %v143_v9 }
 0x109   :  { %v9490_v20 = vpop.f32.mrb[23].mxu1  ;;  %8074 = vmatmul.mubr.msk.f32.gmra.mrb[128].mxu1 %vm592_vm1, %v431_v10  ;;  %7644 = vmatprep.mubr.msk.f32.mxu0 %vm592_vm1, %v144_v11 }
 0x10a   :  { %8076 = vmatprep.mubr.msk.f32.mxu1 %vm592_vm1, %v432_v12 }
 0x10b   :  { %v9507_v41 = vpop.f32.mrb[24].mxu0 }
 0x10c   :  { %v9509_v42 = vpop.f32.mrb[24].mxu1  ;;  %v9511_v43 = vpop.f32.mrb[25].mxu0  ;;  %7645 = vmatmul.mubr.msk.f32.gmra.mrb[130].mxu0 %vm592_vm1, %v145_v25  ;;  %v149_v25 = vld [vmem:[%s12111_s0 + $0x438] sm:$0xff] }
 0x10d   :  { %12114 = vst [vmem:[#allocation2_spill] sm:$0xff] %v9509_v42  ;;  %12115 = vst [vmem:[#allocation3_spill] sm:$0xff] %v9511_v43  ;;  %v9514_v44 = vpop.f32.mrb[25].mxu1  ;;  %8077 = vmatmul.mubr.msk.f32.gmra.mrb[130].mxu1 %vm592_vm1, %v433_v26  ;;  %7647 = vmatprep.mubr.msk.f32.mxu0 %vm592_vm1, %v146_v27  ;;  %v437_v26 = vld [vmem:[%s12111_s0 + $0xd38] sm:$0xff]  ;;  %v150_v27 = vld [vmem:[%s12111_s0 + $0x440] sm:$0xff] }
 0x10e   :  { %12116 = vst [vmem:[#allocation4_spill] sm:$0xff] %v9514_v44  ;;  %8079 = vmatprep.mubr.msk.f32.mxu1 %vm592_vm1, %v434_v28  ;;  %v438_v28 = vld [vmem:[%s12111_s0 + $0xd40] sm:$0xff] }
 0x10f   :  { %v9531_v9 = vpop.f32.mrb[26].mxu0 }
 0x110   :  { %12117 = vst [vmem:[#allocation5_spill] sm:$0xff] %v9531_v9  ;;  %v9533_v10 = vpop.f32.mrb[26].mxu1  ;;  %v9535_v11 = vpop.f32.mrb[27].mxu0  ;;  %7648 = vmatmul.mubr.msk.f32.gmra.mrb[132].mxu0 %vm592_vm1, %v147_v57 }
 0x111   :  { %12118 = vst [vmem:[#allocation6_spill] sm:$0xff] %v9533_v10  ;;  %12119 = vst [vmem:[#allocation7_spill] sm:$0xff] %v9535_v11  ;;  %v9538_v12 = vpop.f32.mrb[27].mxu1  ;;  %8080 = vmatmul.mubr.msk.f32.gmra.mrb[132].mxu1 %vm592_vm1, %v435_v58  ;;  %7650 = vmatprep.mubr.msk.f32.mxu0 %vm592_vm1, %v148_v59  ;;  %v10954_v10 = vld [vmem:[%s12112_s2] ss:$0 sm:$0xff] }
 0x112   :  { %12120 = vst [vmem:[#allocation8_spill] sm:$0xff] %v9538_v12  ;;  %8082 = vmatprep.mubr.msk.f32.mxu1 %vm592_vm1, %v436_v60  ;;  %v151_v12 = vld [vmem:[%s12111_s0 + $0x448] sm:$0xff] }
 0x113   :  { %v9555_v57 = vpop.f32.mrb[28].mxu0 }
 0x114   :  { %12121 = vst [vmem:[#allocation9_spill] sm:$0xff] %v9555_v57  ;;  %v9557_v58 = vpop.f32.mrb[28].mxu1  ;;  %v9559_v59 = vpop.f32.mrb[29].mxu0  ;;  %7651 = vmatmul.mubr.msk.f32.gmra.mrb[134].mxu0 %vm592_vm1, %v149_v25  ;;  %v152_v25 = vld [vmem:[%s12111_s0 + $0x450] sm:$0xff]  ;;  %v153_v57 = vld [vmem:[%s12111_s0 + $0x458] sm:$0xff] }
 0x115   :  { %12122 = vst [vmem:[#allocation10_spill] sm:$0xff] %v9557_v58  ;;  %12123 = vst [vmem:[#allocation11_spill] sm:$0xff] %v9559_v59  ;;  %v9562_v60 = vpop.f32.mrb[29].mxu1  ;;  %8083 = vmatmul.mubr.msk.f32.gmra.mrb[134].mxu1 %vm592_vm1, %v437_v26  ;;  %7653 = vmatprep.mubr.msk.f32.mxu0 %vm592_vm1, %v150_v27  ;;  %v439_v58 = vld [vmem:[%s12111_s0 + $0xd48] sm:$0xff]  ;;  %v440_v26 = vld [vmem:[%s12111_s0 + $0xd50] sm:$0xff] }
 0x116   :  { %12124 = vst [vmem:[#allocation12_spill] sm:$0xff] %v9562_v60  ;;  %8085 = vmatprep.mubr.msk.f32.mxu1 %vm592_vm1, %v438_v28 }
 0x117   :  { %v9579_v60 = vpop.f32.mrb[30].mxu0 }
 0x118   :  { %12125 = vst [vmem:[#allocation13_spill] sm:$0xff] %v9579_v60  ;;  %v9581_v27 = vpop.f32.mrb[30].mxu1  ;;  %v9583_v28 = vpop.f32.mrb[31].mxu0  ;;  %7654 = vmatmul.mubr.msk.f32.gmra.mrb[136].mxu0 %vm592_vm1, %v151_v12  ;;  %v154_v12 = vld [vmem:[%s12111_s0 + $0x460] sm:$0xff]  ;;  %v155_v60 = vld [vmem:[%s12111_s0 + $0x468] sm:$0xff] }
 0x119   :  { %12126 = vst [vmem:[#allocation14_spill] sm:$0xff] %v9581_v27  ;;  %12127 = vst [vmem:[#allocation15_spill] sm:$0xff] %v9583_v28  ;;  %v9586_v59 = vpop.f32.mrb[31].mxu1  ;;  %8086 = vmatmul.mubr.msk.f32.gmra.mrb[136].mxu1 %vm592_vm1, %v439_v58  ;;  %7656 = vmatprep.mubr.msk.f32.mxu0 %vm592_vm1, %v152_v25  ;;  %v441_v27 = vld [vmem:[%s12111_s0 + $0xd58] sm:$0xff]  ;;  %v442_v58 = vld [vmem:[%s12111_s0 + $0xd60] sm:$0xff] }
 0x11a   :  { %12128 = vst [vmem:[#allocation16_spill] sm:$0xff] %v9586_v59  ;;  %8088 = vmatprep.mubr.msk.f32.mxu1 %vm592_vm1, %v440_v26 }
 0x11b   :  { %v9603_v59 = vpop.f32.mrb[32].mxu0 }
 0x11c   :  { %12129 = vst [vmem:[#allocation17_spill] sm:$0xff] %v9603_v59  ;;  %v9605_v25 = vpop.f32.mrb[32].mxu1  ;;  %v9607_v26 = vpop.f32.mrb[33].mxu0  ;;  %7657 = vmatmul.mubr.msk.f32.gmra.mrb[138].mxu0 %vm592_vm1, %v153_v57  ;;  %v156_v57 = vld [vmem:[%s12111_s0 + $0x470] sm:$0xff]  ;;  %v157_v59 = vld [vmem:[%s12111_s0 + $0x478] sm:$0xff] }
 0x11d   :  { %12130 = vst [vmem:[#allocation18_spill] sm:$0xff] %v9605_v25  ;;  %12131 = vst [vmem:[#allocation19_spill] sm:$0xff] %v9607_v26  ;;  %v9610_v28 = vpop.f32.mrb[33].mxu1  ;;  %8089 = vmatmul.mubr.msk.f32.gmra.mrb[138].mxu1 %vm592_vm1, %v441_v27  ;;  %7659 = vmatprep.mubr.msk.f32.mxu0 %vm592_vm1, %v154_v12  ;;  %v443_v25 = vld [vmem:[%s12111_s0 + $0xd68] sm:$0xff]  ;;  %v444_v27 = vld [vmem:[%s12111_s0 + $0xd70] sm:$0xff] }
 0x11e   :  { %12132 = vst [vmem:[#allocation20_spill] sm:$0xff] %v9610_v28  ;;  %8091 = vmatprep.mubr.msk.f32.mxu1 %vm592_vm1, %v442_v58 }
 0x11f   :  { %v9627_v28 = vpop.f32.mrb[34].mxu0 }
 0x120   :  { %12133 = vst [vmem:[#allocation21_spill] sm:$0xff] %v9627_v28  ;;  %v9629_v12 = vpop.f32.mrb[34].mxu1  ;;  %v9631_v58 = vpop.f32.mrb[35].mxu0  ;;  %7660 = vmatmul.mubr.msk.f32.gmra.mrb[140].mxu0 %vm592_vm1, %v155_v60  ;;  %v158_v60 = vld [vmem:[%s12111_s0 + $0x480] sm:$0xff]  ;;  %v159_v28 = vld [vmem:[%s12111_s0 + $0x488] sm:$0xff] }
 0x121   :  { %12134 = vst [vmem:[#allocation22_spill] sm:$0xff] %v9629_v12  ;;  %12135 = vst [vmem:[#allocation23_spill] sm:$0xff] %v9631_v58  ;;  %v9634_v26 = vpop.f32.mrb[35].mxu1  ;;  %8092 = vmatmul.mubr.msk.f32.gmra.mrb[140].mxu1 %vm592_vm1, %v443_v25  ;;  %7662 = vmatprep.mubr.msk.f32.mxu0 %vm592_vm1, %v156_v57  ;;  %v445_v12 = vld [vmem:[%s12111_s0 + $0xd78] sm:$0xff]  ;;  %v446_v25 = vld [vmem:[%s12111_s0 + $0xd80] sm:$0xff] }
 0x122   :  { %12136 = vst [vmem:[#allocation24_spill] sm:$0xff] %v9634_v26  ;;  %8094 = vmatprep.mubr.msk.f32.mxu1 %vm592_vm1, %v444_v27 }
 0x123   :  { %v9651_v26 = vpop.f32.mrb[36].mxu0 }
 0x124   :  { %12137 = vst [vmem:[#allocation25_spill] sm:$0xff] %v9651_v26  ;;  %v9653_v57 = vpop.f32.mrb[36].mxu1  ;;  %v9655_v27 = vpop.f32.mrb[37].mxu0  ;;  %7663 = vmatmul.mubr.msk.f32.gmra.mrb[142].mxu0 %vm592_vm1, %v157_v59  ;;  %v160_v59 = vld [vmem:[%s12111_s0 + $0x490] sm:$0xff]  ;;  %v161_v26 = vld [vmem:[%s12111_s0 + $0x498] sm:$0xff] }
 0x125   :  { %12138 = vst [vmem:[#allocation26_spill] sm:$0xff] %v9653_v57  ;;  %12139 = vst [vmem:[#allocation27_spill] sm:$0xff] %v9655_v27  ;;  %v9658_v58 = vpop.f32.mrb[37].mxu1  ;;  %8095 = vmatmul.mubr.msk.f32.gmra.mrb[142].mxu1 %vm592_vm1, %v445_v12  ;;  %7665 = vmatprep.mubr.msk.f32.mxu0 %vm592_vm1, %v158_v60  ;;  %v447_v57 = vld [vmem:[%s12111_s0 + $0xd88] sm:$0xff]  ;;  %v448_v12 = vld [vmem:[%s12111_s0 + $0xd90] sm:$0xff] }
 0x126   :  { %12140 = vst [vmem:[#allocation28_spill] sm:$0xff] %v9658_v58  ;;  %8097 = vmatprep.mubr.msk.f32.mxu1 %vm592_vm1, %v446_v25 }
 0x127   :  { %v9675_v58 = vpop.f32.mrb[38].mxu0 }
 0x128   :  { %12141 = vst [vmem:[#allocation29_spill] sm:$0xff] %v9675_v58  ;;  %v9677_v60 = vpop.f32.mrb[38].mxu1  ;;  %v9679_v25 = vpop.f32.mrb[39].mxu0  ;;  %7666 = vmatmul.mubr.msk.f32.gmra.mrb[144].mxu0 %vm592_vm1, %v159_v28  ;;  %v162_v28 = vld [vmem:[%s12111_s0 + $0x4a0] sm:$0xff]  ;;  %v163_v58 = vld [vmem:[%s12111_s0 + $0x4a8] sm:$0xff] }
 0x129   :  { %12142 = vst [vmem:[#allocation30_spill] sm:$0xff] %v9677_v60  ;;  %12143 = vst [vmem:[#allocation31_spill] sm:$0xff] %v9679_v25  ;;  %v9682_v27 = vpop.f32.mrb[39].mxu1  ;;  %8098 = vmatmul.mubr.msk.f32.gmra.mrb[144].mxu1 %vm592_vm1, %v447_v57  ;;  %7668 = vmatprep.mubr.msk.f32.mxu0 %vm592_vm1, %v160_v59  ;;  %v449_v60 = vld [vmem:[%s12111_s0 + $0xd98] sm:$0xff]  ;;  %v450_v57 = vld [vmem:[%s12111_s0 + $0xda0] sm:$0xff] }
 0x12a   :  { %12144 = vst [vmem:[#allocation32_spill] sm:$0xff] %v9682_v27  ;;  %8100 = vmatprep.mubr.msk.f32.mxu1 %vm592_vm1, %v448_v12 }
 0x12b   :  { %v9699_v27 = vpop.f32.mrb[40].mxu0 }
 0x12c   :  { %12145 = vst [vmem:[#allocation33_spill] sm:$0xff] %v9699_v27  ;;  %v9701_v59 = vpop.f32.mrb[40].mxu1  ;;  %v9703_v12 = vpop.f32.mrb[41].mxu0  ;;  %7669 = vmatmul.mubr.msk.f32.gmra.mrb[146].mxu0 %vm592_vm1, %v161_v26  ;;  %v164_v26 = vld [vmem:[%s12111_s0 + $0x4b0] sm:$0xff]  ;;  %v165_v27 = vld [vmem:[%s12111_s0 + $0x4b8] sm:$0xff] }
 0x12d   :  { %12146 = vst [vmem:[#allocation34_spill] sm:$0xff] %v9701_v59  ;;  %12147 = vst [vmem:[#allocation35_spill] sm:$0xff] %v9703_v12  ;;  %v9706_v25 = vpop.f32.mrb[41].mxu1  ;;  %8101 = vmatmul.mubr.msk.f32.gmra.mrb[146].mxu1 %vm592_vm1, %v449_v60  ;;  %7671 = vmatprep.mubr.msk.f32.mxu0 %vm592_vm1, %v162_v28  ;;  %v451_v59 = vld [vmem:[%s12111_s0 + $0xda8] sm:$0xff]  ;;  %v452_v60 = vld [vmem:[%s12111_s0 + $0xdb0] sm:$0xff] }
 0x12e   :  { %12148 = vst [vmem:[#allocation36_spill] sm:$0xff] %v9706_v25  ;;  %8103 = vmatprep.mubr.msk.f32.mxu1 %vm592_vm1, %v450_v57 }
 0x12f   :  { %v9723_v25 = vpop.f32.mrb[42].mxu0 }
 0x130   :  { %12149 = vst [vmem:[#allocation37_spill] sm:$0xff] %v9723_v25  ;;  %v9725_v28 = vpop.f32.mrb[42].mxu1  ;;  %v9727_v57 = vpop.f32.mrb[43].mxu0  ;;  %7672 = vmatmul.mubr.msk.f32.gmra.mrb[148].mxu0 %vm592_vm1, %v163_v58  ;;  %v166_v58 = vld [vmem:[%s12111_s0 + $0x4c0] sm:$0xff]  ;;  %v167_v25 = vld [vmem:[%s12111_s0 + $0x4c8] sm:$0xff] }
 0x131   :  { %12150 = vst [vmem:[#allocation38_spill] sm:$0xff] %v9725_v28  ;;  %12151 = vst [vmem:[#allocation39_spill] sm:$0xff] %v9727_v57  ;;  %v9730_v12 = vpop.f32.mrb[43].mxu1  ;;  %8104 = vmatmul.mubr.msk.f32.gmra.mrb[148].mxu1 %vm592_vm1, %v451_v59  ;;  %7674 = vmatprep.mubr.msk.f32.mxu0 %vm592_vm1, %v164_v26  ;;  %v453_v28 = vld [vmem:[%s12111_s0 + $0xdb8] sm:$0xff]  ;;  %v454_v59 = vld [vmem:[%s12111_s0 + $0xdc0] sm:$0xff] }
 0x132   :  { %12152 = vst [vmem:[#allocation40_spill] sm:$0xff] %v9730_v12  ;;  %8106 = vmatprep.mubr.msk.f32.mxu1 %vm592_vm1, %v452_v60 }
 0x133   :  { %v9747_v12 = vpop.f32.mrb[44].mxu0 }
 0x134   :  { %12153 = vst [vmem:[#allocation41_spill] sm:$0xff] %v9747_v12  ;;  %v9749_v26 = vpop.f32.mrb[44].mxu1  ;;  %v9751_v60 = vpop.f32.mrb[45].mxu0  ;;  %7675 = vmatmul.mubr.msk.f32.gmra.mrb[150].mxu0 %vm592_vm1, %v165_v27  ;;  %v168_v27 = vld [vmem:[%s12111_s0 + $0x4d0] sm:$0xff]  ;;  %v169_v12 = vld [vmem:[%s12111_s0 + $0x4d8] sm:$0xff] }
 0x135   :  { %12154 = vst [vmem:[#allocation42_spill] sm:$0xff] %v9749_v26  ;;  %12155 = vst [vmem:[#allocation43_spill] sm:$0xff] %v9751_v60  ;;  %v9754_v57 = vpop.f32.mrb[45].mxu1  ;;  %8107 = vmatmul.mubr.msk.f32.gmra.mrb[150].mxu1 %vm592_vm1, %v453_v28  ;;  %7677 = vmatprep.mubr.msk.f32.mxu0 %vm592_vm1, %v166_v58  ;;  %v455_v26 = vld [vmem:[%s12111_s0 + $0xdc8] sm:$0xff]  ;;  %v456_v28 = vld [vmem:[%s12111_s0 + $0xdd0] sm:$0xff] }
 0x136   :  { %12156 = vst [vmem:[#allocation44_spill] sm:$0xff] %v9754_v57  ;;  %8109 = vmatprep.mubr.msk.f32.mxu1 %vm592_vm1, %v454_v59 }
 0x137   :  { %v9771_v57 = vpop.f32.mrb[46].mxu0 }
 0x138   :  { %12157 = vst [vmem:[#allocation45_spill] sm:$0xff] %v9771_v57  ;;  %v9773_v58 = vpop.f32.mrb[46].mxu1  ;;  %v9775_v59 = vpop.f32.mrb[47].mxu0  ;;  %7678 = vmatmul.mubr.msk.f32.gmra.mrb[152].mxu0 %vm592_vm1, %v167_v25  ;;  %v170_v25 = vld [vmem:[%s12111_s0 + $0x4e0] sm:$0xff]  ;;  %v171_v57 = vld [vmem:[%s12111_s0 + $0x4e8] sm:$0xff] }
 0x139   :  { %12158 = vst [vmem:[#allocation46_spill] sm:$0xff] %v9773_v58  ;;  %12159 = vst [vmem:[#allocation47_spill] sm:$0xff] %v9775_v59  ;;  %v9778_v60 = vpop.f32.mrb[47].mxu1  ;;  %8110 = vmatmul.mubr.msk.f32.gmra.mrb[152].mxu1 %vm592_vm1, %v455_v26  ;;  %7680 = vmatprep.mubr.msk.f32.mxu0 %vm592_vm1, %v168_v27  ;;  %v457_v58 = vld [vmem:[%s12111_s0 + $0xdd8] sm:$0xff]  ;;  %v458_v26 = vld [vmem:[%s12111_s0 + $0xde0] sm:$0xff] }
 0x13a   :  { %12160 = vst [vmem:[#allocation48_spill] sm:$0xff] %v9778_v60  ;;  %8112 = vmatprep.mubr.msk.f32.mxu1 %vm592_vm1, %v456_v28 }
 0x13b   :  { %v9795_v60 = vpop.f32.mrb[48].mxu0 }
 0x13c   :  { %12161 = vst [vmem:[#allocation49_spill] sm:$0xff] %v9795_v60  ;;  %v9797_v27 = vpop.f32.mrb[48].mxu1  ;;  %v9799_v28 = vpop.f32.mrb[49].mxu0  ;;  %7681 = vmatmul.mubr.msk.f32.gmra.mrb[154].mxu0 %vm592_vm1, %v169_v12  ;;  %v172_v12 = vld [vmem:[%s12111_s0 + $0x4f0] sm:$0xff]  ;;  %v173_v60 = vld [vmem:[%s12111_s0 + $0x4f8] sm:$0xff] }
 0x13d   :  { %12162 = vst [vmem:[#allocation50_spill] sm:$0xff] %v9797_v27  ;;  %12163 = vst [vmem:[#allocation51_spill] sm:$0xff] %v9799_v28  ;;  %v9802_v59 = vpop.f32.mrb[49].mxu1  ;;  %8113 = vmatmul.mubr.msk.f32.gmra.mrb[154].mxu1 %vm592_vm1, %v457_v58  ;;  %7683 = vmatprep.mubr.msk.f32.mxu0 %vm592_vm1, %v170_v25  ;;  %v459_v27 = vld [vmem:[%s12111_s0 + $0xde8] sm:$0xff]  ;;  %v460_v58 = vld [vmem:[%s12111_s0 + $0xdf0] sm:$0xff] }
 0x13e   :  { %12164 = vst [vmem:[#allocation52_spill] sm:$0xff] %v9802_v59  ;;  %8115 = vmatprep.mubr.msk.f32.mxu1 %vm592_vm1, %v458_v26 }
 0x13f   :  { %v9819_v59 = vpop.f32.mrb[50].mxu0 }
 0x140   :  { %12165 = vst [vmem:[#allocation53_spill] sm:$0xff] %v9819_v59  ;;  %v9821_v25 = vpop.f32.mrb[50].mxu1  ;;  %v9823_v26 = vpop.f32.mrb[51].mxu0  ;;  %7684 = vmatmul.mubr.msk.f32.gmra.mrb[156].mxu0 %vm592_vm1, %v171_v57  ;;  %v174_v57 = vld [vmem:[%s12111_s0 + $0x500] sm:$0xff]  ;;  %v175_v59 = vld [vmem:[%s12111_s0 + $0x508] sm:$0xff] }
 0x141   :  { %12166 = vst [vmem:[#allocation54_spill] sm:$0xff] %v9821_v25  ;;  %12167 = vst [vmem:[#allocation55_spill] sm:$0xff] %v9823_v26  ;;  %v9826_v28 = vpop.f32.mrb[51].mxu1  ;;  %8116 = vmatmul.mubr.msk.f32.gmra.mrb[156].mxu1 %vm592_vm1, %v459_v27  ;;  %7686 = vmatprep.mubr.msk.f32.mxu0 %vm592_vm1, %v172_v12  ;;  %v461_v25 = vld [vmem:[%s12111_s0 + $0xdf8] sm:$0xff]  ;;  %v462_v27 = vld [vmem:[%s12111_s0 + $0xe00] sm:$0xff] }
 0x142   :  { %12168 = vst [vmem:[#allocation56_spill] sm:$0xff] %v9826_v28  ;;  %8118 = vmatprep.mubr.msk.f32.mxu1 %vm592_vm1, %v460_v58 }
 0x143   :  { %v9843_v28 = vpop.f32.mrb[52].mxu0 }
 0x144   :  { %12169 = vst [vmem:[#allocation57_spill] sm:$0xff] %v9843_v28  ;;  %v9845_v12 = vpop.f32.mrb[52].mxu1  ;;  %v9847_v58 = vpop.f32.mrb[53].mxu0  ;;  %7687 = vmatmul.mubr.msk.f32.gmra.mrb[158].mxu0 %vm592_vm1, %v173_v60  ;;  %v176_v60 = vld [vmem:[%s12111_s0 + $0x510] sm:$0xff]  ;;  %v177_v28 = vld [vmem:[%s12111_s0 + $0x518] sm:$0xff] }
 0x145   :  { %12170 = vst [vmem:[#allocation58_spill] sm:$0xff] %v9845_v12  ;;  %12171 = vst [vmem:[#allocation59_spill] sm:$0xff] %v9847_v58  ;;  %v9850_v26 = vpop.f32.mrb[53].mxu1  ;;  %8119 = vmatmul.mubr.msk.f32.gmra.mrb[158].mxu1 %vm592_vm1, %v461_v25  ;;  %7689 = vmatprep.mubr.msk.f32.mxu0 %vm592_vm1, %v174_v57  ;;  %v463_v12 = vld [vmem:[%s12111_s0 + $0xe08] sm:$0xff]  ;;  %v464_v25 = vld [vmem:[%s12111_s0 + $0xe10] sm:$0xff] }
 0x146   :  { %12172 = vst [vmem:[#allocation60_spill] sm:$0xff] %v9850_v26  ;;  %8121 = vmatprep.mubr.msk.f32.mxu1 %vm592_vm1, %v462_v27 }
 0x147   :  { %v9867_v26 = vpop.f32.mrb[54].mxu0 }
 0x148   :  { %12173 = vst [vmem:[#allocation61_spill] sm:$0xff] %v9867_v26  ;;  %v9869_v57 = vpop.f32.mrb[54].mxu1  ;;  %v9871_v27 = vpop.f32.mrb[55].mxu0  ;;  %7690 = vmatmul.mubr.msk.f32.gmra.mrb[160].mxu0 %vm592_vm1, %v175_v59  ;;  %v178_v59 = vld [vmem:[%s12111_s0 + $0x520] sm:$0xff]  ;;  %v179_v26 = vld [vmem:[%s12111_s0 + $0x528] sm:$0xff] }
 0x149   :  { %12174 = vst [vmem:[#allocation62_spill] sm:$0xff] %v9869_v57  ;;  %12175 = vst [vmem:[#allocation63_spill] sm:$0xff] %v9871_v27  ;;  %v9874_v58 = vpop.f32.mrb[55].mxu1  ;;  %8122 = vmatmul.mubr.msk.f32.gmra.mrb[160].mxu1 %vm592_vm1, %v463_v12  ;;  %7692 = vmatprep.mubr.msk.f32.mxu0 %vm592_vm1, %v176_v60  ;;  %v465_v57 = vld [vmem:[%s12111_s0 + $0xe18] sm:$0xff]  ;;  %v466_v12 = vld [vmem:[%s12111_s0 + $0xe20] sm:$0xff] }
 0x14a   :  { %12176 = vst [vmem:[#allocation64_spill] sm:$0xff] %v9874_v58  ;;  %8124 = vmatprep.mubr.msk.f32.mxu1 %vm592_vm1, %v464_v25 }
 0x14b   :  { %v9891_v58 = vpop.f32.mrb[56].mxu0 }
 0x14c   :  { %12177 = vst [vmem:[#allocation65_spill] sm:$0xff] %v9891_v58  ;;  %v9893_v60 = vpop.f32.mrb[56].mxu1  ;;  %v9895_v25 = vpop.f32.mrb[57].mxu0  ;;  %7693 = vmatmul.mubr.msk.f32.gmra.mrb[162].mxu0 %vm592_vm1, %v177_v28  ;;  %v180_v28 = vld [vmem:[%s12111_s0 + $0x530] sm:$0xff]  ;;  %v181_v58 = vld [vmem:[%s12111_s0 + $0x538] sm:$0xff] }
 0x14d   :  { %12178 = vst [vmem:[#allocation66_spill] sm:$0xff] %v9893_v60  ;;  %12179 = vst [vmem:[#allocation67_spill] sm:$0xff] %v9895_v25  ;;  %v9898_v27 = vpop.f32.mrb[57].mxu1  ;;  %8125 = vmatmul.mubr.msk.f32.gmra.mrb[162].mxu1 %vm592_vm1, %v465_v57  ;;  %7695 = vmatprep.mubr.msk.f32.mxu0 %vm592_vm1, %v178_v59  ;;  %v467_v60 = vld [vmem:[%s12111_s0 + $0xe28] sm:$0xff]  ;;  %v468_v57 = vld [vmem:[%s12111_s0 + $0xe30] sm:$0xff] }
 0x14e   :  { %12180 = vst [vmem:[#allocation68_spill] sm:$0xff] %v9898_v27  ;;  %8127 = vmatprep.mubr.msk.f32.mxu1 %vm592_vm1, %v466_v12 }
 0x14f   :  { %v9915_v27 = vpop.f32.mrb[58].mxu0 }
 0x150   :  { %12181 = vst [vmem:[#allocation69_spill] sm:$0xff] %v9915_v27  ;;  %v9917_v59 = vpop.f32.mrb[58].mxu1  ;;  %v9919_v12 = vpop.f32.mrb[59].mxu0  ;;  %7696 = vmatmul.mubr.msk.f32.gmra.mrb[164].mxu0 %vm592_vm1, %v179_v26  ;;  %v182_v26 = vld [vmem:[%s12111_s0 + $0x540] sm:$0xff]  ;;  %v183_v27 = vld [vmem:[%s12111_s0 + $0x548] sm:$0xff] }
 0x151   :  { %12182 = vst [vmem:[#allocation70_spill] sm:$0xff] %v9917_v59  ;;  %12183 = vst [vmem:[#allocation71_spill] sm:$0xff] %v9919_v12  ;;  %v9922_v25 = vpop.f32.mrb[59].mxu1  ;;  %8128 = vmatmul.mubr.msk.f32.gmra.mrb[164].mxu1 %vm592_vm1, %v467_v60  ;;  %7698 = vmatprep.mubr.msk.f32.mxu0 %vm592_vm1, %v180_v28  ;;  %v469_v59 = vld [vmem:[%s12111_s0 + $0xe38] sm:$0xff]  ;;  %v470_v60 = vld [vmem:[%s12111_s0 + $0xe40] sm:$0xff] }
 0x152   :  { %12184 = vst [vmem:[#allocation72_spill] sm:$0xff] %v9922_v25  ;;  %8130 = vmatprep.mubr.msk.f32.mxu1 %vm592_vm1, %v468_v57 }
 0x153   :  { %v9939_v25 = vpop.f32.mrb[60].mxu0 }
 0x154   :  { %12185 = vst [vmem:[#allocation73_spill] sm:$0xff] %v9939_v25  ;;  %v9941_v28 = vpop.f32.mrb[60].mxu1  ;;  %v9943_v57 = vpop.f32.mrb[61].mxu0  ;;  %7699 = vmatmul.mubr.msk.f32.gmra.mrb[166].mxu0 %vm592_vm1, %v181_v58  ;;  %v184_v58 = vld [vmem:[%s12111_s0 + $0x550] sm:$0xff]  ;;  %v185_v25 = vld [vmem:[%s12111_s0 + $0x558] sm:$0xff] }
 0x155   :  { %12186 = vst [vmem:[#allocation74_spill] sm:$0xff] %v9941_v28  ;;  %12187 = vst [vmem:[#allocation75_spill] sm:$0xff] %v9943_v57  ;;  %v9946_v12 = vpop.f32.mrb[61].mxu1  ;;  %8131 = vmatmul.mubr.msk.f32.gmra.mrb[166].mxu1 %vm592_vm1, %v469_v59  ;;  %7701 = vmatprep.mubr.msk.f32.mxu0 %vm592_vm1, %v182_v26  ;;  %v471_v28 = vld [vmem:[%s12111_s0 + $0xe48] sm:$0xff]  ;;  %v472_v59 = vld [vmem:[%s12111_s0 + $0xe50] sm:$0xff] }
 0x156   :  { %12188 = vst [vmem:[#allocation76_spill] sm:$0xff] %v9946_v12  ;;  %8133 = vmatprep.mubr.msk.f32.mxu1 %vm592_vm1, %v470_v60 }
 0x157   :  { %v9963_v12 = vpop.f32.mrb[62].mxu0 }
 0x158   :  { %12189 = vst [vmem:[#allocation77_spill] sm:$0xff] %v9963_v12  ;;  %v9965_v26 = vpop.f32.mrb[62].mxu1  ;;  %v9967_v60 = vpop.f32.mrb[63].mxu0  ;;  %7702 = vmatmul.mubr.msk.f32.gmra.mrb[168].mxu0 %vm592_vm1, %v183_v27  ;;  %v186_v27 = vld [vmem:[%s12111_s0 + $0x560] sm:$0xff]  ;;  %v187_v12 = vld [vmem:[%s12111_s0 + $0x568] sm:$0xff] }
 0x159   :  { %12190 = vst [vmem:[#allocation78_spill] sm:$0xff] %v9965_v26  ;;  %12191 = vst [vmem:[#allocation79_spill] sm:$0xff] %v9967_v60  ;;  %v9970_v57 = vpop.f32.mrb[63].mxu1  ;;  %8134 = vmatmul.mubr.msk.f32.gmra.mrb[168].mxu1 %vm592_vm1, %v471_v28  ;;  %7704 = vmatprep.mubr.msk.f32.mxu0 %vm592_vm1, %v184_v58  ;;  %v473_v26 = vld [vmem:[%s12111_s0 + $0xe58] sm:$0xff]  ;;  %v474_v28 = vld [vmem:[%s12111_s0 + $0xe60] sm:$0xff] }
 0x15a   :  { %12192 = vst [vmem:[#allocation80_spill] sm:$0xff] %v9970_v57  ;;  %8136 = vmatprep.mubr.msk.f32.mxu1 %vm592_vm1, %v472_v59 }
 0x15b   :  { %v9987_v57 = vpop.f32.mrb[64].mxu0 }
 0x15c   :  { %12193 = vst [vmem:[#allocation81_spill] sm:$0xff] %v9987_v57  ;;  %v9989_v58 = vpop.f32.mrb[64].mxu1  ;;  %v9991_v59 = vpop.f32.mrb[65].mxu0  ;;  %7705 = vmatmul.mubr.msk.f32.gmra.mrb[170].mxu0 %vm592_vm1, %v185_v25  ;;  %v188_v25 = vld [vmem:[%s12111_s0 + $0x570] sm:$0xff]  ;;  %v189_v57 = vld [vmem:[%s12111_s0 + $0x578] sm:$0xff] }
 0x15d   :  { %12194 = vst [vmem:[#allocation82_spill] sm:$0xff] %v9989_v58  ;;  %12195 = vst [vmem:[#allocation83_spill] sm:$0xff] %v9991_v59  ;;  %v9994_v60 = vpop.f32.mrb[65].mxu1  ;;  %8137 = vmatmul.mubr.msk.f32.gmra.mrb[170].mxu1 %vm592_vm1, %v473_v26  ;;  %7707 = vmatprep.mubr.msk.f32.mxu0 %vm592_vm1, %v186_v27  ;;  %v475_v58 = vld [vmem:[%s12111_s0 + $0xe68] sm:$0xff]  ;;  %v476_v26 = vld [vmem:[%s12111_s0 + $0xe70] sm:$0xff] }
 0x15e   :  { %12196 = vst [vmem:[#allocation84_spill] sm:$0xff] %v9994_v60  ;;  %8139 = vmatprep.mubr.msk.f32.mxu1 %vm592_vm1, %v474_v28 }
 0x15f   :  { %v10011_v60 = vpop.f32.mrb[66].mxu0 }
 0x160   :  { %12197 = vst [vmem:[#allocation85_spill] sm:$0xff] %v10011_v60  ;;  %v10013_v27 = vpop.f32.mrb[66].mxu1  ;;  %v10015_v28 = vpop.f32.mrb[67].mxu0  ;;  %7708 = vmatmul.mubr.msk.f32.gmra.mrb[172].mxu0 %vm592_vm1, %v187_v12  ;;  %v190_v12 = vld [vmem:[%s12111_s0 + $0x580] sm:$0xff]  ;;  %v191_v60 = vld [vmem:[%s12111_s0 + $0x588] sm:$0xff] }
 0x161   :  { %12198 = vst [vmem:[#allocation86_spill] sm:$0xff] %v10013_v27  ;;  %12199 = vst [vmem:[#allocation87_spill] sm:$0xff] %v10015_v28  ;;  %v10018_v59 = vpop.f32.mrb[67].mxu1  ;;  %8140 = vmatmul.mubr.msk.f32.gmra.mrb[172].mxu1 %vm592_vm1, %v475_v58  ;;  %7710 = vmatprep.mubr.msk.f32.mxu0 %vm592_vm1, %v188_v25  ;;  %v477_v27 = vld [vmem:[%s12111_s0 + $0xe78] sm:$0xff]  ;;  %v478_v58 = vld [vmem:[%s12111_s0 + $0xe80] sm:$0xff] }
 0x162   :  { %12200 = vst [vmem:[#allocation88_spill] sm:$0xff] %v10018_v59  ;;  %8142 = vmatprep.mubr.msk.f32.mxu1 %vm592_vm1, %v476_v26 }
 0x163   :  { %v10035_v59 = vpop.f32.mrb[68].mxu0 }
 0x164   :  { %12201 = vst [vmem:[#allocation89_spill] sm:$0xff] %v10035_v59  ;;  %v10037_v25 = vpop.f32.mrb[68].mxu1  ;;  %v10039_v26 = vpop.f32.mrb[69].mxu0  ;;  %7711 = vmatmul.mubr.msk.f32.gmra.mrb[174].mxu0 %vm592_vm1, %v189_v57  ;;  %v192_v57 = vld [vmem:[%s12111_s0 + $0x590] sm:$0xff]  ;;  %v193_v59 = vld [vmem:[%s12111_s0 + $0x598] sm:$0xff] }
 0x165   :  { %12202 = vst [vmem:[#allocation90_spill] sm:$0xff] %v10037_v25  ;;  %12203 = vst [vmem:[#allocation91_spill] sm:$0xff] %v10039_v26  ;;  %v10042_v28 = vpop.f32.mrb[69].mxu1  ;;  %8143 = vmatmul.mubr.msk.f32.gmra.mrb[174].mxu1 %vm592_vm1, %v477_v27  ;;  %7713 = vmatprep.mubr.msk.f32.mxu0 %vm592_vm1, %v190_v12  ;;  %v479_v25 = vld [vmem:[%s12111_s0 + $0xe88] sm:$0xff]  ;;  %v480_v27 = vld [vmem:[%s12111_s0 + $0xe90] sm:$0xff] }
 0x166   :  { %12204 = vst [vmem:[#allocation92_spill] sm:$0xff] %v10042_v28  ;;  %8145 = vmatprep.mubr.msk.f32.mxu1 %vm592_vm1, %v478_v58 }
 0x167   :  { %v10059_v28 = vpop.f32.mrb[70].mxu0 }
 0x168   :  { %12205 = vst [vmem:[#allocation93_spill] sm:$0xff] %v10059_v28  ;;  %v10061_v12 = vpop.f32.mrb[70].mxu1  ;;  %v10063_v58 = vpop.f32.mrb[71].mxu0  ;;  %7714 = vmatmul.mubr.msk.f32.gmra.mrb[176].mxu0 %vm592_vm1, %v191_v60  ;;  %v194_v60 = vld [vmem:[%s12111_s0 + $0x5a0] sm:$0xff]  ;;  %v195_v28 = vld [vmem:[%s12111_s0 + $0x5a8] sm:$0xff] }
 0x169   :  { %12206 = vst [vmem:[#allocation94_spill] sm:$0xff] %v10061_v12  ;;  %12207 = vst [vmem:[#allocation95_spill] sm:$0xff] %v10063_v58  ;;  %v10066_v26 = vpop.f32.mrb[71].mxu1  ;;  %8146 = vmatmul.mubr.msk.f32.gmra.mrb[176].mxu1 %vm592_vm1, %v479_v25  ;;  %7716 = vmatprep.mubr.msk.f32.mxu0 %vm592_vm1, %v192_v57  ;;  %v481_v12 = vld [vmem:[%s12111_s0 + $0xe98] sm:$0xff]  ;;  %v482_v25 = vld [vmem:[%s12111_s0 + $0xea0] sm:$0xff] }
 0x16a   :  { %12208 = vst [vmem:[#allocation96_spill] sm:$0xff] %v10066_v26  ;;  %8148 = vmatprep.mubr.msk.f32.mxu1 %vm592_vm1, %v480_v27 }
 0x16b   :  { %v10083_v26 = vpop.f32.mrb[72].mxu0 }
 0x16c   :  { %12209 = vst [vmem:[#allocation97_spill] sm:$0xff] %v10083_v26  ;;  %v10085_v57 = vpop.f32.mrb[72].mxu1  ;;  %v10087_v27 = vpop.f32.mrb[73].mxu0  ;;  %7717 = vmatmul.mubr.msk.f32.gmra.mrb[178].mxu0 %vm592_vm1, %v193_v59  ;;  %v196_v59 = vld [vmem:[%s12111_s0 + $0x5b0] sm:$0xff]  ;;  %v197_v26 = vld [vmem:[%s12111_s0 + $0x5b8] sm:$0xff] }
 0x16d   :  { %12210 = vst [vmem:[#allocation98_spill] sm:$0xff] %v10085_v57  ;;  %12211 = vst [vmem:[#allocation99_spill] sm:$0xff] %v10087_v27  ;;  %v10090_v58 = vpop.f32.mrb[73].mxu1  ;;  %8149 = vmatmul.mubr.msk.f32.gmra.mrb[178].mxu1 %vm592_vm1, %v481_v12  ;;  %7719 = vmatprep.mubr.msk.f32.mxu0 %vm592_vm1, %v194_v60  ;;  %v483_v57 = vld [vmem:[%s12111_s0 + $0xea8] sm:$0xff]  ;;  %v484_v12 = vld [vmem:[%s12111_s0 + $0xeb0] sm:$0xff] }
 0x16e   :  { %12212 = vst [vmem:[#allocation100_spill] sm:$0xff] %v10090_v58  ;;  %8151 = vmatprep.mubr.msk.f32.mxu1 %vm592_vm1, %v482_v25 }
 0x16f   :  { %v10107_v58 = vpop.f32.mrb[74].mxu0 }
 0x170   :  { %12213 = vst [vmem:[#allocation101_spill] sm:$0xff] %v10107_v58  ;;  %v10109_v60 = vpop.f32.mrb[74].mxu1  ;;  %v10111_v25 = vpop.f32.mrb[75].mxu0  ;;  %7720 = vmatmul.mubr.msk.f32.gmra.mrb[180].mxu0 %vm592_vm1, %v195_v28  ;;  %v198_v28 = vld [vmem:[%s12111_s0 + $0x5c0] sm:$0xff]  ;;  %v199_v58 = vld [vmem:[%s12111_s0 + $0x5c8] sm:$0xff] }
 0x171   :  { %12214 = vst [vmem:[#allocation102_spill] sm:$0xff] %v10109_v60  ;;  %12215 = vst [vmem:[#allocation103_spill] sm:$0xff] %v10111_v25  ;;  %v10114_v27 = vpop.f32.mrb[75].mxu1  ;;  %8152 = vmatmul.mubr.msk.f32.gmra.mrb[180].mxu1 %vm592_vm1, %v483_v57  ;;  %7722 = vmatprep.mubr.msk.f32.mxu0 %vm592_vm1, %v196_v59  ;;  %v485_v60 = vld [vmem:[%s12111_s0 + $0xeb8] sm:$0xff]  ;;  %v486_v57 = vld [vmem:[%s12111_s0 + $0xec0] sm:$0xff] }
 0x172   :  { %12216 = vst [vmem:[#allocation104_spill] sm:$0xff] %v10114_v27  ;;  %8154 = vmatprep.mubr.msk.f32.mxu1 %vm592_vm1, %v484_v12 }
 0x173   :  { %v10131_v27 = vpop.f32.mrb[76].mxu0 }
 0x174   :  { %12217 = vst [vmem:[#allocation105_spill] sm:$0xff] %v10131_v27  ;;  %v10133_v59 = vpop.f32.mrb[76].mxu1  ;;  %v10135_v12 = vpop.f32.mrb[77].mxu0  ;;  %7723 = vmatmul.mubr.msk.f32.gmra.mrb[182].mxu0 %vm592_vm1, %v197_v26  ;;  %v200_v26 = vld [vmem:[%s12111_s0 + $0x5d0] sm:$0xff]  ;;  %v201_v27 = vld [vmem:[%s12111_s0 + $0x5d8] sm:$0xff] }
 0x175   :  { %12218 = vst [vmem:[#allocation106_spill] sm:$0xff] %v10133_v59  ;;  %12219 = vst [vmem:[#allocation107_spill] sm:$0xff] %v10135_v12  ;;  %v10138_v25 = vpop.f32.mrb[77].mxu1  ;;  %8155 = vmatmul.mubr.msk.f32.gmra.mrb[182].mxu1 %vm592_vm1, %v485_v60  ;;  %7725 = vmatprep.mubr.msk.f32.mxu0 %vm592_vm1, %v198_v28  ;;  %v487_v59 = vld [vmem:[%s12111_s0 + $0xec8] sm:$0xff]  ;;  %v488_v60 = vld [vmem:[%s12111_s0 + $0xed0] sm:$0xff] }
 0x176   :  { %12220 = vst [vmem:[#allocation108_spill] sm:$0xff] %v10138_v25  ;;  %8157 = vmatprep.mubr.msk.f32.mxu1 %vm592_vm1, %v486_v57 }
 0x177   :  { %v10155_v25 = vpop.f32.mrb[78].mxu0 }
 0x178   :  { %12221 = vst [vmem:[#allocation109_spill] sm:$0xff] %v10155_v25  ;;  %v10157_v28 = vpop.f32.mrb[78].mxu1  ;;  %v10159_v57 = vpop.f32.mrb[79].mxu0  ;;  %7726 = vmatmul.mubr.msk.f32.gmra.mrb[184].mxu0 %vm592_vm1, %v199_v58  ;;  %v202_v58 = vld [vmem:[%s12111_s0 + $0x5e0] sm:$0xff]  ;;  %v203_v25 = vld [vmem:[%s12111_s0 + $0x5e8] sm:$0xff] }
 0x179   :  { %12222 = vst [vmem:[#allocation110_spill] sm:$0xff] %v10157_v28  ;;  %12223 = vst [vmem:[#allocation111_spill] sm:$0xff] %v10159_v57  ;;  %v10162_v12 = vpop.f32.mrb[79].mxu1  ;;  %8158 = vmatmul.mubr.msk.f32.gmra.mrb[184].mxu1 %vm592_vm1, %v487_v59  ;;  %7728 = vmatprep.mubr.msk.f32.mxu0 %vm592_vm1, %v200_v26  ;;  %v489_v28 = vld [vmem:[%s12111_s0 + $0xed8] sm:$0xff]  ;;  %v490_v59 = vld [vmem:[%s12111_s0 + $0xee0] sm:$0xff] }
 0x17a   :  { %12224 = vst [vmem:[#allocation112_spill] sm:$0xff] %v10162_v12  ;;  %8160 = vmatprep.mubr.msk.f32.mxu1 %vm592_vm1, %v488_v60 }
 0x17b   :  { %v10179_v12 = vpop.f32.mrb[80].mxu0 }
 0x17c   :  { %12225 = vst [vmem:[#allocation113_spill] sm:$0xff] %v10179_v12  ;;  %v10181_v26 = vpop.f32.mrb[80].mxu1  ;;  %v10183_v60 = vpop.f32.mrb[81].mxu0  ;;  %7729 = vmatmul.mubr.msk.f32.gmra.mrb[186].mxu0 %vm592_vm1, %v201_v27  ;;  %v204_v27 = vld [vmem:[%s12111_s0 + $0x5f0] sm:$0xff]  ;;  %v205_v12 = vld [vmem:[%s12111_s0 + $0x5f8] sm:$0xff] }
 0x17d   :  { %12226 = vst [vmem:[#allocation114_spill] sm:$0xff] %v10181_v26  ;;  %12227 = vst [vmem:[#allocation115_spill] sm:$0xff] %v10183_v60  ;;  %v10186_v57 = vpop.f32.mrb[81].mxu1  ;;  %8161 = vmatmul.mubr.msk.f32.gmra.mrb[186].mxu1 %vm592_vm1, %v489_v28  ;;  %7731 = vmatprep.mubr.msk.f32.mxu0 %vm592_vm1, %v202_v58  ;;  %v491_v26 = vld [vmem:[%s12111_s0 + $0xee8] sm:$0xff]  ;;  %v492_v28 = vld [vmem:[%s12111_s0 + $0xef0] sm:$0xff] }
 0x17e   :  { %12228 = vst [vmem:[#allocation116_spill] sm:$0xff] %v10186_v57  ;;  %8163 = vmatprep.mubr.msk.f32.mxu1 %vm592_vm1, %v490_v59 }
 0x17f   :  { %v10203_v57 = vpop.f32.mrb[82].mxu0 }
 0x180   :  { %12229 = vst [vmem:[#allocation117_spill] sm:$0xff] %v10203_v57  ;;  %v10205_v58 = vpop.f32.mrb[82].mxu1  ;;  %v10207_v59 = vpop.f32.mrb[83].mxu0  ;;  %7732 = vmatmul.mubr.msk.f32.gmra.mrb[188].mxu0 %vm592_vm1, %v203_v25  ;;  %v206_v25 = vld [vmem:[%s12111_s0 + $0x600] sm:$0xff]  ;;  %v207_v57 = vld [vmem:[%s12111_s0 + $0x608] sm:$0xff] }
 0x181   :  { %12230 = vst [vmem:[#allocation118_spill] sm:$0xff] %v10205_v58  ;;  %12231 = vst [vmem:[#allocation119_spill] sm:$0xff] %v10207_v59  ;;  %v10210_v60 = vpop.f32.mrb[83].mxu1  ;;  %8164 = vmatmul.mubr.msk.f32.gmra.mrb[188].mxu1 %vm592_vm1, %v491_v26  ;;  %7734 = vmatprep.mubr.msk.f32.mxu0 %vm592_vm1, %v204_v27  ;;  %v493_v58 = vld [vmem:[%s12111_s0 + $0xef8] sm:$0xff]  ;;  %v494_v26 = vld [vmem:[%s12111_s0 + $0xf00] sm:$0xff] }
 0x182   :  { %12232 = vst [vmem:[#allocation120_spill] sm:$0xff] %v10210_v60  ;;  %8166 = vmatprep.mubr.msk.f32.mxu1 %vm592_vm1, %v492_v28 }
 0x183   :  { %v10227_v60 = vpop.f32.mrb[84].mxu0 }
 0x184   :  { %12233 = vst [vmem:[#allocation121_spill] sm:$0xff] %v10227_v60  ;;  %v10229_v27 = vpop.f32.mrb[84].mxu1  ;;  %v10231_v28 = vpop.f32.mrb[85].mxu0  ;;  %7735 = vmatmul.mubr.msk.f32.gmra.mrb[190].mxu0 %vm592_vm1, %v205_v12  ;;  %v208_v12 = vld [vmem:[%s12111_s0 + $0x610] sm:$0xff]  ;;  %v209_v60 = vld [vmem:[%s12111_s0 + $0x618] sm:$0xff] }
 0x185   :  { %12234 = vst [vmem:[#allocation122_spill] sm:$0xff] %v10229_v27  ;;  %12235 = vst [vmem:[#allocation123_spill] sm:$0xff] %v10231_v28  ;;  %v10234_v59 = vpop.f32.mrb[85].mxu1  ;;  %8167 = vmatmul.mubr.msk.f32.gmra.mrb[190].mxu1 %vm592_vm1, %v493_v58  ;;  %7737 = vmatprep.mubr.msk.f32.mxu0 %vm592_vm1, %v206_v25  ;;  %v495_v27 = vld [vmem:[%s12111_s0 + $0xf08] sm:$0xff]  ;;  %v496_v58 = vld [vmem:[%s12111_s0 + $0xf10] sm:$0xff] }
 0x186   :  { %12236 = vst [vmem:[#allocation124_spill] sm:$0xff] %v10234_v59  ;;  %8169 = vmatprep.mubr.msk.f32.mxu1 %vm592_vm1, %v494_v26 }
 0x187   :  { %v10251_v59 = vpop.f32.mrb[86].mxu0 }
 0x188   :  { %12237 = vst [vmem:[#allocation125_spill] sm:$0xff] %v10251_v59  ;;  %v10253_v25 = vpop.f32.mrb[86].mxu1  ;;  %v10255_v26 = vpop.f32.mrb[87].mxu0  ;;  %7738 = vmatmul.mubr.msk.f32.gmra.mrb[192].mxu0 %vm592_vm1, %v207_v57  ;;  %v210_v57 = vld [vmem:[%s12111_s0 + $0x620] sm:$0xff]  ;;  %v211_v59 = vld [vmem:[%s12111_s0 + $0x628] sm:$0xff] }
 0x189   :  { %12238 = vst [vmem:[#allocation126_spill] sm:$0xff] %v10253_v25  ;;  %12239 = vst [vmem:[#allocation127_spill] sm:$0xff] %v10255_v26  ;;  %v10258_v28 = vpop.f32.mrb[87].mxu1  ;;  %8170 = vmatmul.mubr.msk.f32.gmra.mrb[192].mxu1 %vm592_vm1, %v495_v27  ;;  %7740 = vmatprep.mubr.msk.f32.mxu0 %vm592_vm1, %v208_v12  ;;  %v497_v25 = vld [vmem:[%s12111_s0 + $0xf18] sm:$0xff]  ;;  %v498_v27 = vld [vmem:[%s12111_s0 + $0xf20] sm:$0xff] }
 0x18a   :  { %12240 = vst [vmem:[#allocation128_spill] sm:$0xff] %v10258_v28  ;;  %8172 = vmatprep.mubr.msk.f32.mxu1 %vm592_vm1, %v496_v58 }
 0x18b   :  { %v10275_v28 = vpop.f32.mrb[88].mxu0 }
 0x18c   :  { %12241 = vst [vmem:[#allocation129_spill] sm:$0xff] %v10275_v28  ;;  %v10277_v12 = vpop.f32.mrb[88].mxu1  ;;  %v10279_v58 = vpop.f32.mrb[89].mxu0  ;;  %7741 = vmatmul.mubr.msk.f32.gmra.mrb[194].mxu0 %vm592_vm1, %v209_v60  ;;  %v212_v60 = vld [vmem:[%s12111_s0 + $0x630] sm:$0xff]  ;;  %v213_v28 = vld [vmem:[%s12111_s0 + $0x638] sm:$0xff] }
 0x18d   :  { %12242 = vst [vmem:[#allocation130_spill] sm:$0xff] %v10277_v12  ;;  %12243 = vst [vmem:[#allocation131_spill] sm:$0xff] %v10279_v58  ;;  %v10282_v26 = vpop.f32.mrb[89].mxu1  ;;  %8173 = vmatmul.mubr.msk.f32.gmra.mrb[194].mxu1 %vm592_vm1, %v497_v25  ;;  %7743 = vmatprep.mubr.msk.f32.mxu0 %vm592_vm1, %v210_v57  ;;  %v499_v12 = vld [vmem:[%s12111_s0 + $0xf28] sm:$0xff]  ;;  %v500_v25 = vld [vmem:[%s12111_s0 + $0xf30] sm:$0xff] }
 0x18e   :  { %12244 = vst [vmem:[#allocation132_spill] sm:$0xff] %v10282_v26  ;;  %8175 = vmatprep.mubr.msk.f32.mxu1 %vm592_vm1, %v498_v27 }
 0x18f   :  { %v10299_v26 = vpop.f32.mrb[90].mxu0 }
 0x190   :  { %12245 = vst [vmem:[#allocation133_spill] sm:$0xff] %v10299_v26  ;;  %v10301_v57 = vpop.f32.mrb[90].mxu1  ;;  %v10303_v27 = vpop.f32.mrb[91].mxu0  ;;  %7744 = vmatmul.mubr.msk.f32.gmra.mrb[196].mxu0 %vm592_vm1, %v211_v59  ;;  %v214_v59 = vld [vmem:[%s12111_s0 + $0x640] sm:$0xff]  ;;  %v215_v26 = vld [vmem:[%s12111_s0 + $0x648] sm:$0xff] }
 0x191   :  { %12246 = vst [vmem:[#allocation134_spill] sm:$0xff] %v10301_v57  ;;  %12247 = vst [vmem:[#allocation135_spill] sm:$0xff] %v10303_v27  ;;  %v10306_v58 = vpop.f32.mrb[91].mxu1  ;;  %8176 = vmatmul.mubr.msk.f32.gmra.mrb[196].mxu1 %vm592_vm1, %v499_v12  ;;  %7746 = vmatprep.mubr.msk.f32.mxu0 %vm592_vm1, %v212_v60  ;;  %v501_v57 = vld [vmem:[%s12111_s0 + $0xf38] sm:$0xff]  ;;  %v502_v12 = vld [vmem:[%s12111_s0 + $0xf40] sm:$0xff] }
 0x192   :  { %12248 = vst [vmem:[#allocation136_spill] sm:$0xff] %v10306_v58  ;;  %8178 = vmatprep.mubr.msk.f32.mxu1 %vm592_vm1, %v500_v25 }
 0x193   :  { %v10323_v58 = vpop.f32.mrb[92].mxu0 }
 0x194   :  { %12249 = vst [vmem:[#allocation137_spill] sm:$0xff] %v10323_v58  ;;  %v10325_v60 = vpop.f32.mrb[92].mxu1  ;;  %v10327_v25 = vpop.f32.mrb[93].mxu0  ;;  %7747 = vmatmul.mubr.msk.f32.gmra.mrb[198].mxu0 %vm592_vm1, %v213_v28  ;;  %v216_v28 = vld [vmem:[%s12111_s0 + $0x650] sm:$0xff]  ;;  %v217_v58 = vld [vmem:[%s12111_s0 + $0x658] sm:$0xff] }
 0x195   :  { %12250 = vst [vmem:[#allocation138_spill] sm:$0xff] %v10325_v60  ;;  %12251 = vst [vmem:[#allocation139_spill] sm:$0xff] %v10327_v25  ;;  %v10330_v27 = vpop.f32.mrb[93].mxu1  ;;  %8179 = vmatmul.mubr.msk.f32.gmra.mrb[198].mxu1 %vm592_vm1, %v501_v57  ;;  %7749 = vmatprep.mubr.msk.f32.mxu0 %vm592_vm1, %v214_v59  ;;  %v503_v60 = vld [vmem:[%s12111_s0 + $0xf48] sm:$0xff]  ;;  %v504_v57 = vld [vmem:[%s12111_s0 + $0xf50] sm:$0xff] }
 0x196   :  { %12252 = vst [vmem:[#allocation140_spill] sm:$0xff] %v10330_v27  ;;  %8181 = vmatprep.mubr.msk.f32.mxu1 %vm592_vm1, %v502_v12 }
 0x197   :  { %v10347_v27 = vpop.f32.mrb[94].mxu0 }
 0x198   :  { %12253 = vst [vmem:[#allocation141_spill] sm:$0xff] %v10347_v27  ;;  %v10349_v59 = vpop.f32.mrb[94].mxu1  ;;  %v10351_v12 = vpop.f32.mrb[95].mxu0  ;;  %7750 = vmatmul.mubr.msk.f32.gmra.mrb[200].mxu0 %vm592_vm1, %v215_v26  ;;  %v218_v26 = vld [vmem:[%s12111_s0 + $0x660] sm:$0xff]  ;;  %v219_v27 = vld [vmem:[%s12111_s0 + $0x668] sm:$0xff] }
 0x199   :  { %12254 = vst [vmem:[#allocation142_spill] sm:$0xff] %v10349_v59  ;;  %12255 = vst [vmem:[#allocation143_spill] sm:$0xff] %v10351_v12  ;;  %v10354_v25 = vpop.f32.mrb[95].mxu1  ;;  %8182 = vmatmul.mubr.msk.f32.gmra.mrb[200].mxu1 %vm592_vm1, %v503_v60  ;;  %7752 = vmatprep.mubr.msk.f32.mxu0 %vm592_vm1, %v216_v28  ;;  %v505_v59 = vld [vmem:[%s12111_s0 + $0xf58] sm:$0xff]  ;;  %v506_v60 = vld [vmem:[%s12111_s0 + $0xf60] sm:$0xff] }
 0x19a   :  { %12256 = vst [vmem:[#allocation144_spill] sm:$0xff] %v10354_v25  ;;  %8184 = vmatprep.mubr.msk.f32.mxu1 %vm592_vm1, %v504_v57 }
 0x19b   :  { %v10371_v25 = vpop.f32.mrb[96].mxu0 }
 0x19c   :  { %12257 = vst [vmem:[#allocation145_spill] sm:$0xff] %v10371_v25  ;;  %v10373_v28 = vpop.f32.mrb[96].mxu1  ;;  %v10375_v57 = vpop.f32.mrb[97].mxu0  ;;  %7753 = vmatmul.mubr.msk.f32.gmra.mrb[202].mxu0 %vm592_vm1, %v217_v58  ;;  %v220_v58 = vld [vmem:[%s12111_s0 + $0x670] sm:$0xff]  ;;  %v221_v25 = vld [vmem:[%s12111_s0 + $0x678] sm:$0xff] }
 0x19d   :  { %12258 = vst [vmem:[#allocation146_spill] sm:$0xff] %v10373_v28  ;;  %12259 = vst [vmem:[#allocation147_spill] sm:$0xff] %v10375_v57  ;;  %v10378_v12 = vpop.f32.mrb[97].mxu1  ;;  %8185 = vmatmul.mubr.msk.f32.gmra.mrb[202].mxu1 %vm592_vm1, %v505_v59  ;;  %7755 = vmatprep.mubr.msk.f32.mxu0 %vm592_vm1, %v218_v26  ;;  %v507_v28 = vld [vmem:[%s12111_s0 + $0xf68] sm:$0xff]  ;;  %v508_v59 = vld [vmem:[%s12111_s0 + $0xf70] sm:$0xff] }
 0x19e   :  { %12260 = vst [vmem:[#allocation148_spill] sm:$0xff] %v10378_v12  ;;  %8187 = vmatprep.mubr.msk.f32.mxu1 %vm592_vm1, %v506_v60 }
 0x19f   :  { %v10395_v12 = vpop.f32.mrb[98].mxu0 }
 0x1a0   :  { %12261 = vst [vmem:[#allocation149_spill] sm:$0xff] %v10395_v12  ;;  %v10397_v26 = vpop.f32.mrb[98].mxu1  ;;  %v10399_v60 = vpop.f32.mrb[99].mxu0  ;;  %7756 = vmatmul.mubr.msk.f32.gmra.mrb[204].mxu0 %vm592_vm1, %v219_v27  ;;  %v222_v27 = vld [vmem:[%s12111_s0 + $0x680] sm:$0xff]  ;;  %v223_v12 = vld [vmem:[%s12111_s0 + $0x688] sm:$0xff] }
 0x1a1   :  { %12262 = vst [vmem:[#allocation150_spill] sm:$0xff] %v10397_v26  ;;  %12263 = vst [vmem:[#allocation151_spill] sm:$0xff] %v10399_v60  ;;  %v10402_v57 = vpop.f32.mrb[99].mxu1  ;;  %8188 = vmatmul.mubr.msk.f32.gmra.mrb[204].mxu1 %vm592_vm1, %v507_v28  ;;  %7758 = vmatprep.mubr.msk.f32.mxu0 %vm592_vm1, %v220_v58  ;;  %v509_v26 = vld [vmem:[%s12111_s0 + $0xf78] sm:$0xff]  ;;  %v510_v28 = vld [vmem:[%s12111_s0 + $0xf80] sm:$0xff] }
 0x1a2   :  { %12264 = vst [vmem:[#allocation152_spill] sm:$0xff] %v10402_v57  ;;  %8190 = vmatprep.mubr.msk.f32.mxu1 %vm592_vm1, %v508_v59 }
 0x1a3   :  { %v10419_v57 = vpop.f32.mrb[100].mxu0 }
 0x1a4   :  { %12265 = vst [vmem:[#allocation153_spill] sm:$0xff] %v10419_v57  ;;  %v10421_v58 = vpop.f32.mrb[100].mxu1  ;;  %v10423_v59 = vpop.f32.mrb[101].mxu0  ;;  %7759 = vmatmul.mubr.msk.f32.gmra.mrb[206].mxu0 %vm592_vm1, %v221_v25  ;;  %v224_v25 = vld [vmem:[%s12111_s0 + $0x690] sm:$0xff]  ;;  %v225_v57 = vld [vmem:[%s12111_s0 + $0x698] sm:$0xff] }
 0x1a5   :  { %12266 = vst [vmem:[#allocation154_spill] sm:$0xff] %v10421_v58  ;;  %12267 = vst [vmem:[#allocation155_spill] sm:$0xff] %v10423_v59  ;;  %v10426_v60 = vpop.f32.mrb[101].mxu1  ;;  %8191 = vmatmul.mubr.msk.f32.gmra.mrb[206].mxu1 %vm592_vm1, %v509_v26  ;;  %7761 = vmatprep.mubr.msk.f32.mxu0 %vm592_vm1, %v222_v27  ;;  %v511_v58 = vld [vmem:[%s12111_s0 + $0xf88] sm:$0xff]  ;;  %v512_v26 = vld [vmem:[%s12111_s0 + $0xf90] sm:$0xff] }
 0x1a6   :  { %12268 = vst [vmem:[#allocation156_spill] sm:$0xff] %v10426_v60  ;;  %8193 = vmatprep.mubr.msk.f32.mxu1 %vm592_vm1, %v510_v28 }
 0x1a7   :  { %v10443_v60 = vpop.f32.mrb[102].mxu0 }
 0x1a8   :  { %12269 = vst [vmem:[#allocation157_spill] sm:$0xff] %v10443_v60  ;;  %v10445_v27 = vpop.f32.mrb[102].mxu1  ;;  %v10447_v28 = vpop.f32.mrb[103].mxu0  ;;  %7762 = vmatmul.mubr.msk.f32.gmra.mrb[208].mxu0 %vm592_vm1, %v223_v12  ;;  %v226_v12 = vld [vmem:[%s12111_s0 + $0x6a0] sm:$0xff]  ;;  %v227_v60 = vld [vmem:[%s12111_s0 + $0x6a8] sm:$0xff] }
 0x1a9   :  { %12270 = vst [vmem:[#allocation158_spill] sm:$0xff] %v10445_v27  ;;  %12271 = vst [vmem:[#allocation159_spill] sm:$0xff] %v10447_v28  ;;  %v10450_v59 = vpop.f32.mrb[103].mxu1  ;;  %8194 = vmatmul.mubr.msk.f32.gmra.mrb[208].mxu1 %vm592_vm1, %v511_v58  ;;  %7764 = vmatprep.mubr.msk.f32.mxu0 %vm592_vm1, %v224_v25  ;;  %v513_v27 = vld [vmem:[%s12111_s0 + $0xf98] sm:$0xff]  ;;  %v514_v58 = vld [vmem:[%s12111_s0 + $0xfa0] sm:$0xff] }
 0x1aa   :  { %12272 = vst [vmem:[#allocation160_spill] sm:$0xff] %v10450_v59  ;;  %8196 = vmatprep.mubr.msk.f32.mxu1 %vm592_vm1, %v512_v26 }
 0x1ab   :  { %v10467_v59 = vpop.f32.mrb[104].mxu0 }
 0x1ac   :  { %12273 = vst [vmem:[#allocation161_spill] sm:$0xff] %v10467_v59  ;;  %v10469_v25 = vpop.f32.mrb[104].mxu1  ;;  %v10471_v26 = vpop.f32.mrb[105].mxu0  ;;  %7765 = vmatmul.mubr.msk.f32.gmra.mrb[210].mxu0 %vm592_vm1, %v225_v57  ;;  %v228_v57 = vld [vmem:[%s12111_s0 + $0x6b0] sm:$0xff]  ;;  %v229_v59 = vld [vmem:[%s12111_s0 + $0x6b8] sm:$0xff] }
 0x1ad   :  { %12274 = vst [vmem:[#allocation162_spill] sm:$0xff] %v10469_v25  ;;  %12275 = vst [vmem:[#allocation163_spill] sm:$0xff] %v10471_v26  ;;  %v10474_v28 = vpop.f32.mrb[105].mxu1  ;;  %8197 = vmatmul.mubr.msk.f32.gmra.mrb[210].mxu1 %vm592_vm1, %v513_v27  ;;  %7767 = vmatprep.mubr.msk.f32.mxu0 %vm592_vm1, %v226_v12  ;;  %v515_v25 = vld [vmem:[%s12111_s0 + $0xfa8] sm:$0xff]  ;;  %v516_v27 = vld [vmem:[%s12111_s0 + $0xfb0] sm:$0xff] }
 0x1ae   :  { %12276 = vst [vmem:[#allocation164_spill] sm:$0xff] %v10474_v28  ;;  %8199 = vmatprep.mubr.msk.f32.mxu1 %vm592_vm1, %v514_v58 }
 0x1af   :  { %v10491_v28 = vpop.f32.mrb[106].mxu0 }
 0x1b0   :  { %12277 = vst [vmem:[#allocation165_spill] sm:$0xff] %v10491_v28  ;;  %v10493_v12 = vpop.f32.mrb[106].mxu1  ;;  %v10495_v58 = vpop.f32.mrb[107].mxu0  ;;  %7768 = vmatmul.mubr.msk.f32.gmra.mrb[212].mxu0 %vm592_vm1, %v227_v60  ;;  %v230_v60 = vld [vmem:[%s12111_s0 + $0x6c0] sm:$0xff]  ;;  %v231_v28 = vld [vmem:[%s12111_s0 + $0x6c8] sm:$0xff] }
 0x1b1   :  { %12278 = vst [vmem:[#allocation166_spill] sm:$0xff] %v10493_v12  ;;  %12279 = vst [vmem:[#allocation167_spill] sm:$0xff] %v10495_v58  ;;  %v10498_v26 = vpop.f32.mrb[107].mxu1  ;;  %8200 = vmatmul.mubr.msk.f32.gmra.mrb[212].mxu1 %vm592_vm1, %v515_v25  ;;  %7770 = vmatprep.mubr.msk.f32.mxu0 %vm592_vm1, %v228_v57  ;;  %v517_v12 = vld [vmem:[%s12111_s0 + $0xfb8] sm:$0xff]  ;;  %v518_v25 = vld [vmem:[%s12111_s0 + $0xfc0] sm:$0xff] }
 0x1b2   :  { %12280 = vst [vmem:[#allocation168_spill] sm:$0xff] %v10498_v26  ;;  %8202 = vmatprep.mubr.msk.f32.mxu1 %vm592_vm1, %v516_v27 }
 0x1b3   :  { %v10515_v26 = vpop.f32.mrb[108].mxu0 }
 0x1b4   :  { %12281 = vst [vmem:[#allocation169_spill] sm:$0xff] %v10515_v26  ;;  %v10517_v57 = vpop.f32.mrb[108].mxu1  ;;  %v10519_v27 = vpop.f32.mrb[109].mxu0  ;;  %7771 = vmatmul.mubr.msk.f32.gmra.mrb[214].mxu0 %vm592_vm1, %v229_v59  ;;  %v232_v59 = vld [vmem:[%s12111_s0 + $0x6d0] sm:$0xff]  ;;  %v233_v26 = vld [vmem:[%s12111_s0 + $0x6d8] sm:$0xff] }
 0x1b5   :  { %12282 = vst [vmem:[#allocation170_spill] sm:$0xff] %v10517_v57  ;;  %12283 = vst [vmem:[#allocation171_spill] sm:$0xff] %v10519_v27  ;;  %v10522_v58 = vpop.f32.mrb[109].mxu1  ;;  %8203 = vmatmul.mubr.msk.f32.gmra.mrb[214].mxu1 %vm592_vm1, %v517_v12  ;;  %7773 = vmatprep.mubr.msk.f32.mxu0 %vm592_vm1, %v230_v60  ;;  %v519_v57 = vld [vmem:[%s12111_s0 + $0xfc8] sm:$0xff]  ;;  %v520_v12 = vld [vmem:[%s12111_s0 + $0xfd0] sm:$0xff] }
 0x1b6   :  { %12284 = vst [vmem:[#allocation172_spill] sm:$0xff] %v10522_v58  ;;  %8205 = vmatprep.mubr.msk.f32.mxu1 %vm592_vm1, %v518_v25 }
 0x1b7   :  { %v10539_v58 = vpop.f32.mrb[110].mxu0 }
 0x1b8   :  { %12285 = vst [vmem:[#allocation173_spill] sm:$0xff] %v10539_v58  ;;  %v10541_v60 = vpop.f32.mrb[110].mxu1  ;;  %v10543_v25 = vpop.f32.mrb[111].mxu0  ;;  %7774 = vmatmul.mubr.msk.f32.gmra.mrb[216].mxu0 %vm592_vm1, %v231_v28  ;;  %v234_v28 = vld [vmem:[%s12111_s0 + $0x6e0] sm:$0xff]  ;;  %v235_v58 = vld [vmem:[%s12111_s0 + $0x6e8] sm:$0xff] }
 0x1b9   :  { %12286 = vst [vmem:[#allocation174_spill] sm:$0xff] %v10541_v60  ;;  %12287 = vst [vmem:[#allocation175_spill] sm:$0xff] %v10543_v25  ;;  %v10546_v27 = vpop.f32.mrb[111].mxu1  ;;  %8206 = vmatmul.mubr.msk.f32.gmra.mrb[216].mxu1 %vm592_vm1, %v519_v57  ;;  %7776 = vmatprep.mubr.msk.f32.mxu0 %vm592_vm1, %v232_v59  ;;  %v521_v60 = vld [vmem:[%s12111_s0 + $0xfd8] sm:$0xff]  ;;  %v522_v57 = vld [vmem:[%s12111_s0 + $0xfe0] sm:$0xff] }
 0x1ba   :  { %12288 = vst [vmem:[#allocation176_spill] sm:$0xff] %v10546_v27  ;;  %8208 = vmatprep.mubr.msk.f32.mxu1 %vm592_vm1, %v520_v12 }
 0x1bb   :  { %v10563_v27 = vpop.f32.mrb[112].mxu0 }
 0x1bc   :  { %12289 = vst [vmem:[#allocation177_spill] sm:$0xff] %v10563_v27  ;;  %v10565_v59 = vpop.f32.mrb[112].mxu1  ;;  %v10567_v12 = vpop.f32.mrb[113].mxu0  ;;  %7777 = vmatmul.mubr.msk.f32.gmra.mrb[218].mxu0 %vm592_vm1, %v233_v26  ;;  %v236_v26 = vld [vmem:[%s12111_s0 + $0x6f0] sm:$0xff]  ;;  %v237_v27 = vld [vmem:[%s12111_s0 + $0x6f8] sm:$0xff] }
 0x1bd   :  { %12290 = vst [vmem:[#allocation178_spill] sm:$0xff] %v10565_v59  ;;  %12291 = vst [vmem:[#allocation179_spill] sm:$0xff] %v10567_v12  ;;  %v10570_v25 = vpop.f32.mrb[113].mxu1  ;;  %8209 = vmatmul.mubr.msk.f32.gmra.mrb[218].mxu1 %vm592_vm1, %v521_v60  ;;  %7779 = vmatprep.mubr.msk.f32.mxu0 %vm592_vm1, %v234_v28  ;;  %v523_v59 = vld [vmem:[%s12111_s0 + $0xfe8] sm:$0xff]  ;;  %v524_v60 = vld [vmem:[%s12111_s0 + $0xff0] sm:$0xff] }
 0x1be   :  { %12292 = vst [vmem:[#allocation180_spill] sm:$0xff] %v10570_v25  ;;  %8211 = vmatprep.mubr.msk.f32.mxu1 %vm592_vm1, %v522_v57 }
 0x1bf   :  { %v10587_v25 = vpop.f32.mrb[114].mxu0 }
 0x1c0   :  { %12293 = vst [vmem:[#allocation181_spill] sm:$0xff] %v10587_v25  ;;  %v10589_v28 = vpop.f32.mrb[114].mxu1  ;;  %v10591_v57 = vpop.f32.mrb[115].mxu0  ;;  %7780 = vmatmul.mubr.msk.f32.gmra.mrb[220].mxu0 %vm592_vm1, %v235_v58  ;;  %v238_v58 = vld [vmem:[%s12111_s0 + $0x700] sm:$0xff]  ;;  %v239_v25 = vld [vmem:[%s12111_s0 + $0x708] sm:$0xff] }
 0x1c1   :  { %12294 = vst [vmem:[#allocation182_spill] sm:$0xff] %v10589_v28  ;;  %12295 = vst [vmem:[#allocation183_spill] sm:$0xff] %v10591_v57  ;;  %v10594_v12 = vpop.f32.mrb[115].mxu1  ;;  %8212 = vmatmul.mubr.msk.f32.gmra.mrb[220].mxu1 %vm592_vm1, %v523_v59  ;;  %7782 = vmatprep.mubr.msk.f32.mxu0 %vm592_vm1, %v236_v26  ;;  %v525_v28 = vld [vmem:[%s12111_s0 + $0xff8] sm:$0xff]  ;;  %v526_v59 = vld [vmem:[%s12111_s0 + $0x1000] sm:$0xff] }
 0x1c2   :  { %12296 = vst [vmem:[#allocation184_spill] sm:$0xff] %v10594_v12  ;;  %8214 = vmatprep.mubr.msk.f32.mxu1 %vm592_vm1, %v524_v60 }
 0x1c3   :  { %v10611_v12 = vpop.f32.mrb[116].mxu0 }
 0x1c4   :  { %12297 = vst [vmem:[#allocation185_spill] sm:$0xff] %v10611_v12  ;;  %v10613_v26 = vpop.f32.mrb[116].mxu1  ;;  %v10615_v60 = vpop.f32.mrb[117].mxu0  ;;  %7783 = vmatmul.mubr.msk.f32.gmra.mrb[222].mxu0 %vm592_vm1, %v237_v27  ;;  %v240_v27 = vld [vmem:[%s12111_s0 + $0x710] sm:$0xff]  ;;  %v241_v12 = vld [vmem:[%s12111_s0 + $0x718] sm:$0xff] }
 0x1c5   :  { %12298 = vst [vmem:[#allocation186_spill] sm:$0xff] %v10613_v26  ;;  %12299 = vst [vmem:[#allocation187_spill] sm:$0xff] %v10615_v60  ;;  %v10618_v57 = vpop.f32.mrb[117].mxu1  ;;  %8215 = vmatmul.mubr.msk.f32.gmra.mrb[222].mxu1 %vm592_vm1, %v525_v28  ;;  %7785 = vmatprep.mubr.msk.f32.mxu0 %vm592_vm1, %v238_v58  ;;  %v527_v26 = vld [vmem:[%s12111_s0 + $0x1008] sm:$0xff]  ;;  %v528_v28 = vld [vmem:[%s12111_s0 + $0x1010] sm:$0xff] }
 0x1c6   :  { %12300 = vst [vmem:[#allocation188_spill] sm:$0xff] %v10618_v57  ;;  %8217 = vmatprep.mubr.msk.f32.mxu1 %vm592_vm1, %v526_v59 }
 0x1c7   :  { %v10635_v57 = vpop.f32.mrb[118].mxu0 }
 0x1c8   :  { %12301 = vst [vmem:[#allocation189_spill] sm:$0xff] %v10635_v57  ;;  %v10637_v58 = vpop.f32.mrb[118].mxu1  ;;  %v10639_v59 = vpop.f32.mrb[119].mxu0  ;;  %7786 = vmatmul.mubr.msk.f32.gmra.mrb[224].mxu0 %vm592_vm1, %v239_v25  ;;  %v242_v25 = vld [vmem:[%s12111_s0 + $0x720] sm:$0xff]  ;;  %v243_v57 = vld [vmem:[%s12111_s0 + $0x728] sm:$0xff] }
 0x1c9   :  { %12302 = vst [vmem:[#allocation190_spill] sm:$0xff] %v10637_v58  ;;  %12303 = vst [vmem:[#allocation191_spill] sm:$0xff] %v10639_v59  ;;  %v10642_v60 = vpop.f32.mrb[119].mxu1  ;;  %8218 = vmatmul.mubr.msk.f32.gmra.mrb[224].mxu1 %vm592_vm1, %v527_v26  ;;  %7788 = vmatprep.mubr.msk.f32.mxu0 %vm592_vm1, %v240_v27  ;;  %v529_v58 = vld [vmem:[%s12111_s0 + $0x1018] sm:$0xff]  ;;  %v530_v26 = vld [vmem:[%s12111_s0 + $0x1020] sm:$0xff] }
 0x1ca   :  { %12304 = vst [vmem:[#allocation192_spill] sm:$0xff] %v10642_v60  ;;  %8220 = vmatprep.mubr.msk.f32.mxu1 %vm592_vm1, %v528_v28 }
 0x1cb   :  { %v10659_v60 = vpop.f32.mrb[120].mxu0 }
 0x1cc   :  { %12305 = vst [vmem:[#allocation193_spill] sm:$0xff] %v10659_v60  ;;  %v10661_v27 = vpop.f32.mrb[120].mxu1  ;;  %v10663_v28 = vpop.f32.mrb[121].mxu0  ;;  %7789 = vmatmul.mubr.msk.f32.gmra.mrb[226].mxu0 %vm592_vm1, %v241_v12  ;;  %v244_v12 = vld [vmem:[%s12111_s0 + $0x730] sm:$0xff]  ;;  %v245_v60 = vld [vmem:[%s12111_s0 + $0x738] sm:$0xff] }
 0x1cd   :  { %12306 = vst [vmem:[#allocation194_spill] sm:$0xff] %v10661_v27  ;;  %12307 = vst [vmem:[#allocation195_spill] sm:$0xff] %v10663_v28  ;;  %v10666_v59 = vpop.f32.mrb[121].mxu1  ;;  %8221 = vmatmul.mubr.msk.f32.gmra.mrb[226].mxu1 %vm592_vm1, %v529_v58  ;;  %7791 = vmatprep.mubr.msk.f32.mxu0 %vm592_vm1, %v242_v25  ;;  %v531_v27 = vld [vmem:[%s12111_s0 + $0x1028] sm:$0xff]  ;;  %v532_v58 = vld [vmem:[%s12111_s0 + $0x1030] sm:$0xff] }
 0x1ce   :  { %12308 = vst [vmem:[#allocation196_spill] sm:$0xff] %v10666_v59  ;;  %8223 = vmatprep.mubr.msk.f32.mxu1 %vm592_vm1, %v530_v26 }
 0x1cf   :  { %v10683_v59 = vpop.f32.mrb[122].mxu0 }
 0x1d0   :  { %12309 = vst [vmem:[#allocation197_spill] sm:$0xff] %v10683_v59  ;;  %v10685_v25 = vpop.f32.mrb[122].mxu1  ;;  %v10687_v26 = vpop.f32.mrb[123].mxu0  ;;  %7792 = vmatmul.mubr.msk.f32.gmra.mrb[228].mxu0 %vm592_vm1, %v243_v57  ;;  %v246_v57 = vld [vmem:[%s12111_s0 + $0x740] sm:$0xff]  ;;  %v247_v59 = vld [vmem:[%s12111_s0 + $0x748] sm:$0xff] }
 0x1d1   :  { %12310 = vst [vmem:[#allocation198_spill] sm:$0xff] %v10685_v25  ;;  %12311 = vst [vmem:[#allocation199_spill] sm:$0xff] %v10687_v26  ;;  %v10690_v28 = vpop.f32.mrb[123].mxu1  ;;  %8224 = vmatmul.mubr.msk.f32.gmra.mrb[228].mxu1 %vm592_vm1, %v531_v27  ;;  %7794 = vmatprep.mubr.msk.f32.mxu0 %vm592_vm1, %v244_v12  ;;  %v533_v25 = vld [vmem:[%s12111_s0 + $0x1038] sm:$0xff]  ;;  %v534_v27 = vld [vmem:[%s12111_s0 + $0x1040] sm:$0xff] }
 0x1d2   :  { %12312 = vst [vmem:[#allocation200_spill] sm:$0xff] %v10690_v28  ;;  %8226 = vmatprep.mubr.msk.f32.mxu1 %vm592_vm1, %v532_v58 }
 0x1d3   :  { %v10707_v28 = vpop.f32.mrb[124].mxu0 }
 0x1d4   :  { %12313 = vst [vmem:[#allocation201_spill] sm:$0xff] %v10707_v28  ;;  %v10709_v12 = vpop.f32.mrb[124].mxu1  ;;  %v10711_v58 = vpop.f32.mrb[125].mxu0  ;;  %7795 = vmatmul.mubr.msk.f32.gmra.mrb[230].mxu0 %vm592_vm1, %v245_v60  ;;  %v248_v60 = vld [vmem:[%s12111_s0 + $0x750] sm:$0xff]  ;;  %v249_v28 = vld [vmem:[%s12111_s0 + $0x758] sm:$0xff] }
 0x1d5   :  { %12314 = vst [vmem:[#allocation202_spill] sm:$0xff] %v10709_v12  ;;  %12315 = vst [vmem:[#allocation203_spill] sm:$0xff] %v10711_v58  ;;  %v10714_v26 = vpop.f32.mrb[125].mxu1  ;;  %8227 = vmatmul.mubr.msk.f32.gmra.mrb[230].mxu1 %vm592_vm1, %v533_v25  ;;  %7797 = vmatprep.mubr.msk.f32.mxu0 %vm592_vm1, %v246_v57  ;;  %v535_v12 = vld [vmem:[%s12111_s0 + $0x1048] sm:$0xff]  ;;  %v536_v25 = vld [vmem:[%s12111_s0 + $0x1050] sm:$0xff] }
 0x1d6   :  { %12316 = vst [vmem:[#allocation204_spill] sm:$0xff] %v10714_v26  ;;  %8229 = vmatprep.mubr.msk.f32.mxu1 %vm592_vm1, %v534_v27 }
 0x1d7   :  { %v10731_v26 = vpop.f32.mrb[126].mxu0 }
 0x1d8   :  { %12317 = vst [vmem:[#allocation205_spill] sm:$0xff] %v10731_v26  ;;  %v10733_v57 = vpop.f32.mrb[126].mxu1  ;;  %v10735_v27 = vpop.f32.mrb[127].mxu0  ;;  %7798 = vmatmul.mubr.msk.f32.gmra.mrb[232].mxu0 %vm592_vm1, %v247_v59  ;;  %v250_v59 = vld [vmem:[%s12111_s0 + $0x760] sm:$0xff]  ;;  %v251_v26 = vld [vmem:[%s12111_s0 + $0x768] sm:$0xff] }
 0x1d9   :  { %12318 = vst [vmem:[#allocation206_spill] sm:$0xff] %v10733_v57  ;;  %12319 = vst [vmem:[#allocation207_spill] sm:$0xff] %v10735_v27  ;;  %v10738_v58 = vpop.f32.mrb[127].mxu1  ;;  %8230 = vmatmul.mubr.msk.f32.gmra.mrb[232].mxu1 %vm592_vm1, %v535_v12  ;;  %7800 = vmatprep.mubr.msk.f32.mxu0 %vm592_vm1, %v248_v60  ;;  %v537_v57 = vld [vmem:[%s12111_s0 + $0x1058] sm:$0xff]  ;;  %v538_v12 = vld [vmem:[%s12111_s0 + $0x1060] sm:$0xff] }
 0x1da   :  { %12320 = vst [vmem:[#allocation208_spill] sm:$0xff] %v10738_v58  ;;  %8232 = vmatprep.mubr.msk.f32.mxu1 %vm592_vm1, %v536_v25 }
 0x1db   :  { %v10755_v58 = vpop.f32.mrb[128].mxu0 }
 0x1dc   :  { %12321 = vst [vmem:[#allocation209_spill] sm:$0xff] %v10755_v58  ;;  %v10757_v60 = vpop.f32.mrb[128].mxu1  ;;  %v10759_v25 = vpop.f32.mrb[129].mxu0  ;;  %7801 = vmatmul.mubr.msk.f32.gmra.mrb[234].mxu0 %vm592_vm1, %v249_v28  ;;  %v252_v28 = vld [vmem:[%s12111_s0 + $0x770] sm:$0xff]  ;;  %v253_v58 = vld [vmem:[%s12111_s0 + $0x778] sm:$0xff] }
 0x1dd   :  { %12322 = vst [vmem:[#allocation210_spill] sm:$0xff] %v10757_v60  ;;  %12323 = vst [vmem:[#allocation211_spill] sm:$0xff] %v10759_v25  ;;  %v10762_v27 = vpop.f32.mrb[129].mxu1  ;;  %8233 = vmatmul.mubr.msk.f32.gmra.mrb[234].mxu1 %vm592_vm1, %v537_v57  ;;  %7803 = vmatprep.mubr.msk.f32.mxu0 %vm592_vm1, %v250_v59  ;;  %v539_v60 = vld [vmem:[%s12111_s0 + $0x1068] sm:$0xff]  ;;  %v540_v57 = vld [vmem:[%s12111_s0 + $0x1070] sm:$0xff] }
 0x1de   :  { %12324 = vst [vmem:[#allocation212_spill] sm:$0xff] %v10762_v27  ;;  %8235 = vmatprep.mubr.msk.f32.mxu1 %vm592_vm1, %v538_v12 }
 0x1df   :  { %v10779_v27 = vpop.f32.mrb[130].mxu0 }
 0x1e0   :  { %12325 = vst [vmem:[#allocation213_spill] sm:$0xff] %v10779_v27  ;;  %v10781_v59 = vpop.f32.mrb[130].mxu1  ;;  %v10783_v12 = vpop.f32.mrb[131].mxu0  ;;  %7804 = vmatmul.mubr.msk.f32.gmra.mrb[236].mxu0 %vm592_vm1, %v251_v26  ;;  %v254_v26 = vld [vmem:[%s12111_s0 + $0x780] sm:$0xff]  ;;  %v255_v27 = vld [vmem:[%s12111_s0 + $0x788] sm:$0xff] }
 0x1e1   :  { %12326 = vst [vmem:[#allocation214_spill] sm:$0xff] %v10781_v59  ;;  %12327 = vst [vmem:[#allocation215_spill] sm:$0xff] %v10783_v12  ;;  %v10786_v25 = vpop.f32.mrb[131].mxu1  ;;  %8236 = vmatmul.mubr.msk.f32.gmra.mrb[236].mxu1 %vm592_vm1, %v539_v60  ;;  %7806 = vmatprep.mubr.msk.f32.mxu0 %vm592_vm1, %v252_v28  ;;  %v541_v59 = vld [vmem:[%s12111_s0 + $0x1078] sm:$0xff]  ;;  %v542_v60 = vld [vmem:[%s12111_s0 + $0x1080] sm:$0xff] }
 0x1e2   :  { %12328 = vst [vmem:[#allocation216_spill] sm:$0xff] %v10786_v25  ;;  %8238 = vmatprep.mubr.msk.f32.mxu1 %vm592_vm1, %v540_v57 }
 0x1e3   :  { %v10803_v25 = vpop.f32.mrb[132].mxu0 }
 0x1e4   :  { %12329 = vst [vmem:[#allocation217_spill] sm:$0xff] %v10803_v25  ;;  %v10805_v28 = vpop.f32.mrb[132].mxu1  ;;  %v10807_v57 = vpop.f32.mrb[133].mxu0  ;;  %7807 = vmatmul.mubr.msk.f32.gmra.mrb[238].mxu0 %vm592_vm1, %v253_v58  ;;  %v256_v58 = vld [vmem:[%s12111_s0 + $0x790] sm:$0xff]  ;;  %v257_v25 = vld [vmem:[%s12111_s0 + $0x798] sm:$0xff] }
 0x1e5   :  { %12330 = vst [vmem:[#allocation218_spill] sm:$0xff] %v10805_v28  ;;  %12331 = vst [vmem:[#allocation219_spill] sm:$0xff] %v10807_v57  ;;  %v10810_v12 = vpop.f32.mrb[133].mxu1  ;;  %8239 = vmatmul.mubr.msk.f32.gmra.mrb[238].mxu1 %vm592_vm1, %v541_v59  ;;  %7809 = vmatprep.mubr.msk.f32.mxu0 %vm592_vm1, %v254_v26  ;;  %v543_v28 = vld [vmem:[%s12111_s0 + $0x1088] sm:$0xff]  ;;  %v544_v59 = vld [vmem:[%s12111_s0 + $0x1090] sm:$0xff] }
 0x1e6   :  { %12332 = vst [vmem:[#allocation220_spill] sm:$0xff] %v10810_v12  ;;  %8241 = vmatprep.mubr.msk.f32.mxu1 %vm592_vm1, %v542_v60 }
 0x1e7   :  { %v10827_v12 = vpop.f32.mrb[134].mxu0 }
 0x1e8   :  { %12333 = vst [vmem:[#allocation221_spill] sm:$0xff] %v10827_v12  ;;  %v10829_v26 = vpop.f32.mrb[134].mxu1  ;;  %v10831_v60 = vpop.f32.mrb[135].mxu0  ;;  %7810 = vmatmul.mubr.msk.f32.gmra.mrb[240].mxu0 %vm592_vm1, %v255_v27  ;;  %v258_v27 = vld [vmem:[%s12111_s0 + $0x7a0] sm:$0xff]  ;;  %v259_v12 = vld [vmem:[%s12111_s0 + $0x7a8] sm:$0xff] }
 0x1e9   :  { %12334 = vst [vmem:[#allocation222_spill] sm:$0xff] %v10829_v26  ;;  %12335 = vst [vmem:[#allocation223_spill] sm:$0xff] %v10831_v60  ;;  %v10834_v57 = vpop.f32.mrb[135].mxu1  ;;  %8242 = vmatmul.mubr.msk.f32.gmra.mrb[240].mxu1 %vm592_vm1, %v543_v28  ;;  %7812 = vmatprep.mubr.msk.f32.mxu0 %vm592_vm1, %v256_v58  ;;  %v545_v26 = vld [vmem:[%s12111_s0 + $0x1098] sm:$0xff]  ;;  %v546_v28 = vld [vmem:[%s12111_s0 + $0x10a0] sm:$0xff] }
 0x1ea   :  { %12336 = vst [vmem:[#allocation224_spill] sm:$0xff] %v10834_v57  ;;  %8244 = vmatprep.mubr.msk.f32.mxu1 %vm592_vm1, %v544_v59 }
 0x1eb   :  { %v10851_v57 = vpop.f32.mrb[136].mxu0 }
 0x1ec   :  { %12337 = vst [vmem:[#allocation225_spill] sm:$0xff] %v10851_v57  ;;  %v10853_v58 = vpop.f32.mrb[136].mxu1  ;;  %v10855_v59 = vpop.f32.mrb[137].mxu0  ;;  %7813 = vmatmul.mubr.msk.f32.gmra.mrb[242].mxu0 %vm592_vm1, %v257_v25  ;;  %v260_v25 = vld [vmem:[%s12111_s0 + $0x7b0] sm:$0xff]  ;;  %v261_v57 = vld [vmem:[%s12111_s0 + $0x7b8] sm:$0xff] }
 0x1ed   :  { %12338 = vst [vmem:[#allocation226_spill] sm:$0xff] %v10853_v58  ;;  %12339 = vst [vmem:[#allocation227_spill] sm:$0xff] %v10855_v59  ;;  %v10858_v60 = vpop.f32.mrb[137].mxu1  ;;  %8245 = vmatmul.mubr.msk.f32.gmra.mrb[242].mxu1 %vm592_vm1, %v545_v26  ;;  %7815 = vmatprep.mubr.msk.f32.mxu0 %vm592_vm1, %v258_v27  ;;  %v547_v58 = vld [vmem:[%s12111_s0 + $0x10a8] sm:$0xff]  ;;  %v548_v26 = vld [vmem:[%s12111_s0 + $0x10b0] sm:$0xff] }
 0x1ee   :  { %12340 = vst [vmem:[#allocation228_spill] sm:$0xff] %v10858_v60  ;;  %8247 = vmatprep.mubr.msk.f32.mxu1 %vm592_vm1, %v546_v28 }
 0x1ef   :  { %v10875_v60 = vpop.f32.mrb[138].mxu0 }
 0x1f0   :  { %12341 = vst [vmem:[#allocation229_spill] sm:$0xff] %v10875_v60  ;;  %v10877_v27 = vpop.f32.mrb[138].mxu1  ;;  %v10879_v28 = vpop.f32.mrb[139].mxu0  ;;  %7816 = vmatmul.mubr.msk.f32.gmra.mrb[244].mxu0 %vm592_vm1, %v259_v12  ;;  %v262_v12 = vld [vmem:[%s12111_s0 + $0x7c0] sm:$0xff]  ;;  %v263_v60 = vld [vmem:[%s12111_s0 + $0x7c8] sm:$0xff] }
 0x1f1   :  { %12342 = vst [vmem:[#allocation230_spill] sm:$0xff] %v10877_v27  ;;  %12343 = vst [vmem:[#allocation231_spill] sm:$0xff] %v10879_v28  ;;  %v10882_v59 = vpop.f32.mrb[139].mxu1  ;;  %8248 = vmatmul.mubr.msk.f32.gmra.mrb[244].mxu1 %vm592_vm1, %v547_v58  ;;  %7818 = vmatprep.mubr.msk.f32.mxu0 %vm592_vm1, %v260_v25  ;;  %v549_v27 = vld [vmem:[%s12111_s0 + $0x10b8] sm:$0xff]  ;;  %v550_v58 = vld [vmem:[%s12111_s0 + $0x10c0] sm:$0xff] }
 0x1f2   :  { %12344 = vst [vmem:[#allocation232_spill] sm:$0xff] %v10882_v59  ;;  %8250 = vmatprep.mubr.msk.f32.mxu1 %vm592_vm1, %v548_v26 }
 0x1f3   :  { %v10899_v59 = vpop.f32.mrb[140].mxu0 }
 0x1f4   :  { %12345 = vst [vmem:[#allocation233_spill] sm:$0xff] %v10899_v59  ;;  %v10901_v25 = vpop.f32.mrb[140].mxu1  ;;  %v10903_v26 = vpop.f32.mrb[141].mxu0  ;;  %7819 = vmatmul.mubr.msk.f32.gmra.mrb[246].mxu0 %vm592_vm1, %v261_v57  ;;  %v264_v57 = vld [vmem:[%s12111_s0 + $0x7d0] sm:$0xff]  ;;  %v265_v59 = vld [vmem:[%s12111_s0 + $0x7d8] sm:$0xff] }
 0x1f5   :  { %12346 = vst [vmem:[#allocation234_spill] sm:$0xff] %v10901_v25  ;;  %12347 = vst [vmem:[#allocation235_spill] sm:$0xff] %v10903_v26  ;;  %v10906_v28 = vpop.f32.mrb[141].mxu1  ;;  %8251 = vmatmul.mubr.msk.f32.gmra.mrb[246].mxu1 %vm592_vm1, %v549_v27  ;;  %7821 = vmatprep.mubr.msk.f32.mxu0 %vm592_vm1, %v262_v12  ;;  %v551_v25 = vld [vmem:[%s12111_s0 + $0x10c8] sm:$0xff]  ;;  %v552_v27 = vld [vmem:[%s12111_s0 + $0x10d0] sm:$0xff] }
 0x1f6   :  { %12348 = vst [vmem:[#allocation236_spill] sm:$0xff] %v10906_v28  ;;  %8253 = vmatprep.mubr.msk.f32.mxu1 %vm592_vm1, %v550_v58 }
 0x1f7   :  { %v10923_v28 = vpop.f32.mrb[142].mxu0 }
 0x1f8   :  { %12349 = vst [vmem:[#allocation237_spill] sm:$0xff] %v10923_v28  ;;  %v10925_v12 = vpop.f32.mrb[142].mxu1  ;;  %v10927_v58 = vpop.f32.mrb[143].mxu0  ;;  %7822 = vmatmul.mubr.msk.f32.gmra.mrb[248].mxu0 %vm592_vm1, %v263_v60  ;;  %v266_v60 = vld [vmem:[%s12111_s0 + $0x7e0] sm:$0xff] }
 0x1f9   :  { %12350 = vst [vmem:[#allocation238_spill] sm:$0xff] %v10925_v12  ;;  %12351 = vst [vmem:[#allocation239_spill] sm:$0xff] %v10927_v58  ;;  %v10930_v26 = vpop.f32.mrb[143].mxu1  ;;  %8254 = vmatmul.mubr.msk.f32.gmra.mrb[248].mxu1 %vm592_vm1, %v551_v25  ;;  %7824 = vmatprep.mubr.msk.f32.mxu0 %vm592_vm1, %v264_v57  ;;  %v553_v12 = vld [vmem:[%s12111_s0 + $0x10d8] sm:$0xff]  ;;  %v554_v25 = vld [vmem:[%s12111_s0 + $0x10e0] sm:$0xff] }
 0x1fa   :  { %12352 = vst [vmem:[#allocation240_spill] sm:$0xff] %v10930_v26  ;;  %8256 = vmatprep.mubr.msk.f32.mxu1 %vm592_vm1, %v552_v27 }
 0x1fb   :  { %v7667_v26 = vpop.f32.mrb[144].mxu0 }
 0x1fc   :  { %v8099_v57 = vpop.f32.mrb[144].mxu1  ;;  %v5271_v27 = vmax.f32 %v9219_v29, %v7667_v26  ;;  %v3111_v28 = vpop.f32.mrb[145].mxu0  ;;  %7825 = vmatmul.mubr.msk.f32.gmra.mrb[250].mxu0 %vm592_vm1, %v265_v59  ;;  %v267_v29 = vld [vmem:[%s12111_s0 + $0x7e8] sm:$0xff]  ;;  %v268_v26 = vld [vmem:[%s12111_s0 + $0x7f0] sm:$0xff] }
 0x1fd   :  { %v5415_v58 = vmax.f32 %v9221_v30, %v8099_v57  ;;  %v4551_v11 = vpop.f32.mrb[145].mxu1  ;;  %8257 = vmatmul.mubr.msk.f32.gmra.mrb[250].mxu1 %vm592_vm1, %v553_v12  ;;  %v5270_v9 = vmax.f32 %v9223_v31, %v3111_v28  ;;  %7827 = vmatprep.mubr.msk.f32.mxu0 %vm592_vm1, %v266_v60  ;;  %v555_v30 = vld [vmem:[%s12111_s0 + $0x10e8] sm:$0xff]  ;;  %v556_v31 = vld [vmem:[%s12111_s0 + $0x10f0] sm:$0xff] }
 0x1fe   :  { %v5414_v44 = vmax.f32 %v9226_v32, %v4551_v11  ;;  %8259 = vmatprep.mubr.msk.f32.mxu1 %vm592_vm1, %v554_v25 }
 0x1ff   :  { %v5559_v59 = vmax.f32 %v5271_v27, %v5415_v58  ;;  %v7670_v11 = vpop.f32.mrb[146].mxu0 }
 0x200   :  { %v5558_v32 = vmax.f32 %v5270_v9, %v5414_v44  ;;  %v8102_v28 = vpop.f32.mrb[146].mxu1  ;;  %v5273_v60 = vmax.f32 %v9243_v37, %v7670_v11  ;;  %v3121_v57 = vpop.f32.mrb[147].mxu0  ;;  %7828 = vmatmul.mubr.msk.f32.gmra.mrb[252].mxu0 %vm592_vm1, %v267_v29  ;;  %v269_v37 = vld [vmem:[%s12111_s0 + $0x7f8] sm:$0xff] }
 0x201   :  { %v5710_v12 = vadd.f32 %v10954_v10, %v5559_v59  ;;  %v5417_v25 = vmax.f32 %v9245_v38, %v8102_v28  ;;  %v4561_v58 = vpop.f32.mrb[147].mxu1  ;;  %8260 = vmatmul.mubr.msk.f32.gmra.mrb[252].mxu1 %vm592_vm1, %v555_v30  ;;  %v5272_v43 = vmax.f32 %v9247_v39, %v3121_v57  ;;  %7830 = vmatprep.mubr.msk.f32.mxu0 %vm592_vm1, %v268_v26  ;;  %v557_v29 = vld [vmem:[%s12111_s0 + $0x10f8] sm:$0xff]  ;;  %v558_v26 = vld [vmem:[%s12111_s0 + $0x1100] sm:$0xff] }
 0x202   :  { %v5709_v27 = vadd.f32 %v10954_v10, %v5558_v32  ;;  %v5416_v44 = vmax.f32 %v9250_v40, %v4561_v58  ;;  %8262 = vmatprep.mubr.msk.f32.mxu1 %vm592_vm1, %v556_v31  ;;  %v270_v40 = vld [vmem:[%s12111_s0 + $0x800] sm:$0xff] }
 0x203   :  { %v5854_v38 = vmul.f32 0.1, %v5710_v12  ;;  %v5561_v9 = vmax.f32 %v5273_v60, %v5417_v25  ;;  %v7673_v32 = vpop.f32.mrb[148].mxu0 }
 0x204   :  { %v5853_v30 = vmul.f32 0.1, %v5709_v27  ;;  %v5560_v59 = vmax.f32 %v5272_v43, %v5416_v44  ;;  %v8105_v39 = vpop.f32.mrb[148].mxu1  ;;  %v5275_v28 = vmax.f32 %v9267_v45, %v7673_v32  ;;  %v3131_v25 = vpop.f32.mrb[149].mxu0  ;;  %7831 = vmatmul.mubr.msk.f32.gmra.mrb[254].mxu0 %vm592_vm1, %v269_v37 }
 0x205   :  { %v5998_v31 = vmax.f32 %v5710_v12, %v5854_v38  ;;  %v5712_v11 = vadd.f32 %v10954_v10, %v5561_v9  ;;  %v5419_v60 = vmax.f32 %v9269_v46, %v8105_v39  ;;  %v4571_v43 = vpop.f32.mrb[149].mxu1  ;;  %v5274_v44 = vmax.f32 %v9271_v47, %v3131_v25  ;;  %8263 = vmatmul.mubr.msk.f32.gmra.mrb[254].mxu1 %vm592_vm1, %v557_v29  ;;  %v271_v12 = vld [vmem:[%s12111_s0 + $0x808] sm:$0xff]  ;;  %v272_v9 = vld [vmem:[%s12111_s0 + $0x810] sm:$0xff] }
 0x206   :  { %v5997_v57 = vmax.f32 %v5709_v27, %v5853_v30  ;;  %v5711_v58 = vadd.f32 %v10954_v10, %v5560_v59  ;;  %v5418_v42 = vmax.f32 %v9274_v48, %v4571_v43  ;;  %7833 = vmatprep.mubr.msk.f32.mxu0 %vm592_vm1, %v270_v40  ;;  %8265 = vmatprep.mubr.msk.f32.mxu1 %vm592_vm1, %v558_v26  ;;  %v559_v47 = vld [vmem:[%s12111_s0 + $0x1108] sm:$0xff]  ;;  %v560_v29 = vld [vmem:[%s12111_s0 + $0x1110] sm:$0xff] }
 0x207   :  { %6142 = vst [vmem:[%s12113_s3 + $0x8] sm:$0xff] %v5998_v31  ;;  %v5856_v45 = vmul.f32 0.1, %v5712_v11  ;;  %v5563_v46 = vmax.f32 %v5275_v28, %v5419_v60  ;;  %v7676_v37 = vpop.f32.mrb[150].mxu0 }
 0x208   :  { %6141 = vst [vmem:[%s12113_s3] sm:$0xff] %v5997_v57  ;;  %v5855_v48 = vmul.f32 0.1, %v5711_v58  ;;  %v5562_v27 = vmax.f32 %v5274_v44, %v5418_v42  ;;  %v8108_v38 = vpop.f32.mrb[150].mxu1  ;;  %v5277_v32 = vmax.f32 %v9291_v53, %v7676_v37  ;;  %v3141_v40 = vpop.f32.mrb[151].mxu0  ;;  %7834 = vmatmul.mubr.msk.f32.gmra.mrb[0].mxu0 %vm592_vm1, %v271_v12  ;;  %v562_v44 = vld [vmem:[%s12111_s0 + $0x1120] sm:$0xff] }
 0x209   :  { %v6000_v30 = vmax.f32 %v5712_v11, %v5856_v45  ;;  %v5714_v59 = vadd.f32 %v10954_v10, %v5563_v46  ;;  %v5421_v39 = vmax.f32 %v9293_v54, %v8108_v38  ;;  %v4581_v42 = vpop.f32.mrb[151].mxu1  ;;  %v5276_v28 = vmax.f32 %v9295_v55, %v3141_v40  ;;  %8266 = vmatmul.mubr.msk.f32.gmra.mrb[0].mxu1 %vm592_vm1, %v559_v47  ;;  %v273_v11 = vld [vmem:[%s12111_s0 + $0x818] sm:$0xff]  ;;  %v276_v40 = vld [vmem:[%s12111_s0 + $0x830] sm:$0xff] }
 0x20a   :  { %v5999_v26 = vmax.f32 %v5711_v58, %v5855_v48  ;;  %v5713_v31 = vadd.f32 %v10954_v10, %v5562_v27  ;;  %v5420_v60 = vmax.f32 %v9298_v56, %v4581_v42  ;;  %7836 = vmatprep.mubr.msk.f32.mxu0 %vm592_vm1, %v272_v9  ;;  %8268 = vmatprep.mubr.msk.f32.mxu1 %vm592_vm1, %v560_v29  ;;  %v561_v55 = vld [vmem:[%s12111_s0 + $0x1118] sm:$0xff]  ;;  %v274_v58 = vld [vmem:[%s12111_s0 + $0x820] sm:$0xff]  ;;  %v564_v42 = vld [vmem:[%s12111_s0 + $0x1130] sm:$0xff] }
 0x20b   :  { %6144 = vst [vmem:[%s12113_s3 + $0x18] sm:$0xff] %v6000_v30  ;;  %v5858_v53 = vmul.f32 0.1, %v5714_v59  ;;  %v5565_v54 = vmax.f32 %v5277_v32, %v5421_v39  ;;  %v7679_v43 = vpop.f32.mrb[152].mxu0  ;;  %v275_v30 = vld [vmem:[%s12111_s0 + $0x828] sm:$0xff] }
 0x20c   :  { %6143 = vst [vmem:[%s12113_s3 + $0x10] sm:$0xff] %v5999_v26  ;;  %v5857_v56 = vmul.f32 0.1, %v5713_v31  ;;  %v5564_v25 = vmax.f32 %v5276_v28, %v5420_v60  ;;  %v8111_v57 = vpop.f32.mrb[152].mxu1  ;;  %v5279_v46 = vmax.f32 %v9315_v61, %v7679_v43  ;;  %v3151_v48 = vpop.f32.mrb[153].mxu0  ;;  %7837 = vmatmul.mubr.msk.f32.gmra.mrb[2].mxu0 %vm592_vm1, %v273_v11  ;;  %v277_v43 = vld [vmem:[%s12111_s0 + $0x838] sm:$0xff] }
 0x20d   :  { %v6002_v12 = vmax.f32 %v5714_v59, %v5858_v53  ;;  %v5716_v45 = vadd.f32 %v10954_v10, %v5565_v54  ;;  %v5423_v47 = vmax.f32 %v9317_v62, %v8111_v57  ;;  %v4591_v27 = vpop.f32.mrb[153].mxu1  ;;  %v5278_v9 = vmax.f32 %v9319_v63, %v3151_v48  ;;  %8269 = vmatmul.mubr.msk.f32.gmra.mrb[2].mxu1 %vm592_vm1, %v561_v55  ;;  %v563_v63 = vld [vmem:[%s12111_s0 + $0x1128] sm:$0xff] }
 0x20e   :  { %v6001_v37 = vmax.f32 %v5713_v31, %v5857_v56  ;;  %v5715_v38 = vadd.f32 %v10954_v10, %v5564_v25  ;;  %v5422_v29 = vmax.f32 %v9322_v0, %v4591_v27  ;;  %7839 = vmatprep.mubr.msk.f32.mxu0 %vm592_vm1, %v274_v58  ;;  %8271 = vmatprep.mubr.msk.f32.mxu1 %vm592_vm1, %v562_v44 }
 0x20f   :  { %6146 = vst [vmem:[%s12113_s3 + $0x28] sm:$0xff] %v6002_v12  ;;  %v5860_v61 = vmul.f32 0.1, %v5716_v45  ;;  %v5567_v62 = vmax.f32 %v5279_v46, %v5423_v47  ;;  %v7682_v32 = vpop.f32.mrb[154].mxu0  ;;  %v278_v12 = vld [vmem:[%s12111_s0 + $0x840] sm:$0xff] }
 0x210   :  { %6145 = vst [vmem:[%s12113_s3 + $0x20] sm:$0xff] %v6001_v37  ;;  %v5859_v0 = vmul.f32 0.1, %v5715_v38  ;;  %v5566_v59 = vmax.f32 %v5278_v9, %v5422_v29  ;;  %v8114_v39 = vpop.f32.mrb[154].mxu1  ;;  %v5281_v28 = vmax.f32 %v9339_v5, %v7682_v32  ;;  %v3161_v11 = vpop.f32.mrb[155].mxu0  ;;  %7840 = vmatmul.mubr.msk.f32.gmra.mrb[4].mxu0 %vm592_vm1, %v275_v30  ;;  %v280_v32 = vld [vmem:[%s12111_s0 + $0x850] sm:$0xff] }
 0x211   :  { %v6004_v26 = vmax.f32 %v5716_v45, %v5860_v61  ;;  %v5718_v31 = vadd.f32 %v10954_v10, %v5567_v62  ;;  %v5425_v60 = vmax.f32 %v9341_v6, %v8114_v39  ;;  %v4601_v53 = vpop.f32.mrb[155].mxu1  ;;  %v5280_v56 = vmax.f32 %v9343_v7, %v3161_v11  ;;  %8272 = vmatmul.mubr.msk.f32.gmra.mrb[4].mxu1 %vm592_vm1, %v563_v63  ;;  %v565_v7 = vld [vmem:[%s12111_s0 + $0x1138] sm:$0xff]  ;;  %v566_v45 = vld [vmem:[%s12111_s0 + $0x1140] sm:$0xff]  ;;  %v279_v62 = vld [vmem:[%s12111_s0 + $0x848] sm:$0xff] }
 0x212   :  { %v6003_v54 = vmax.f32 %v5715_v38, %v5859_v0  ;;  %v5717_v55 = vadd.f32 %v10954_v10, %v5566_v59  ;;  %v5424_v25 = vmax.f32 %v9346_v8, %v4601_v53  ;;  %7842 = vmatprep.mubr.msk.f32.mxu0 %vm592_vm1, %v276_v40  ;;  %8274 = vmatprep.mubr.msk.f32.mxu1 %vm592_vm1, %v564_v42  ;;  %v568_v39 = vld [vmem:[%s12111_s0 + $0x1150] sm:$0xff] }
 0x213   :  { %6148 = vst [vmem:[%s12113_s3 + $0x38] sm:$0xff] %v6004_v26  ;;  %v5862_v5 = vmul.f32 0.1, %v5718_v31  ;;  %v5569_v6 = vmax.f32 %v5281_v28, %v5425_v60  ;;  %v7685_v58 = vpop.f32.mrb[156].mxu0 }
 0x214   :  { %6147 = vst [vmem:[%s12113_s3 + $0x30] sm:$0xff] %v6003_v54  ;;  %v5861_v8 = vmul.f32 0.1, %v5717_v55  ;;  %v5568_v57 = vmax.f32 %v5280_v56, %v5424_v25  ;;  %v8117_v44 = vpop.f32.mrb[156].mxu1  ;;  %v5283_v48 = vmax.f32 %v9363_v13, %v7685_v58  ;;  %v3171_v37 = vpop.f32.mrb[157].mxu0  ;;  %7843 = vmatmul.mubr.msk.f32.gmra.mrb[6].mxu0 %vm592_vm1, %v277_v43  ;;  %v281_v56 = vld [vmem:[%s12111_s0 + $0x858] sm:$0xff] }
 0x215   :  { %v6006_v46 = vmax.f32 %v5718_v31, %v5862_v5  ;;  %v5720_v47 = vadd.f32 %v10954_v10, %v5569_v6  ;;  %v5427_v27 = vmax.f32 %v9365_v14, %v8117_v44  ;;  %v4611_v38 = vpop.f32.mrb[157].mxu1  ;;  %v5282_v30 = vmax.f32 %v9367_v15, %v3171_v37  ;;  %8275 = vmatmul.mubr.msk.f32.gmra.mrb[6].mxu1 %vm592_vm1, %v565_v7  ;;  %v567_v15 = vld [vmem:[%s12111_s0 + $0x1148] sm:$0xff]  ;;  %v282_v6 = vld [vmem:[%s12111_s0 + $0x860] sm:$0xff] }
 0x216   :  { %v6005_v9 = vmax.f32 %v5717_v55, %v5861_v8  ;;  %v5719_v29 = vadd.f32 %v10954_v10, %v5568_v57  ;;  %v5426_v61 = vmax.f32 %v9370_v16, %v4611_v38  ;;  %7845 = vmatprep.mubr.msk.f32.mxu0 %vm592_vm1, %v278_v12  ;;  %8277 = vmatprep.mubr.msk.f32.mxu1 %vm592_vm1, %v566_v45  ;;  %v570_v7 = vld [vmem:[%s12111_s0 + $0x1160] sm:$0xff]  ;;  %v283_v37 = vld [vmem:[%s12111_s0 + $0x868] sm:$0xff] }
 0x217   :  { %6150 = vst [vmem:[%s12113_s3 + $0x48] sm:$0xff] %v6006_v46  ;;  %v5864_v13 = vmul.f32 0.1, %v5720_v47  ;;  %v5571_v14 = vmax.f32 %v5283_v48, %v5427_v27  ;;  %v7688_v0 = vpop.f32.mrb[158].mxu0 }
 0x218   :  { %6149 = vst [vmem:[%s12113_s3 + $0x40] sm:$0xff] %v6005_v9  ;;  %v5863_v16 = vmul.f32 0.1, %v5719_v29  ;;  %v5570_v63 = vmax.f32 %v5282_v30, %v5426_v61  ;;  %v8120_v59 = vpop.f32.mrb[158].mxu1  ;;  %v5285_v26 = vmax.f32 %v9387_v21, %v7688_v0  ;;  %v3181_v28 = vpop.f32.mrb[159].mxu0  ;;  %7846 = vmatmul.mubr.msk.f32.gmra.mrb[8].mxu0 %vm592_vm1, %v279_v62  ;;  %v284_v30 = vld [vmem:[%s12111_s0 + $0x870] sm:$0xff] }
 0x219   :  { %v6008_v40 = vmax.f32 %v5720_v47, %v5864_v13  ;;  %v5722_v42 = vadd.f32 %v10954_v10, %v5571_v14  ;;  %v5429_v31 = vmax.f32 %v9389_v22, %v8120_v59  ;;  %v4621_v60 = vpop.f32.mrb[159].mxu1  ;;  %v5284_v54 = vmax.f32 %v9391_v23, %v3181_v28  ;;  %8278 = vmatmul.mubr.msk.f32.gmra.mrb[8].mxu1 %vm592_vm1, %v567_v15  ;;  %v569_v23 = vld [vmem:[%s12111_s0 + $0x1158] sm:$0xff]  ;;  %v572_v61 = vld [vmem:[%s12111_s0 + $0x1170] sm:$0xff]  ;;  %v286_v28 = vld [vmem:[%s12111_s0 + $0x880] sm:$0xff] }
 0x21a   :  { %v6007_v11 = vmax.f32 %v5719_v29, %v5863_v16  ;;  %v5721_v53 = vadd.f32 %v10954_v10, %v5570_v63  ;;  %v5428_v55 = vmax.f32 %v9394_v24, %v4621_v60  ;;  %7848 = vmatprep.mubr.msk.f32.mxu0 %vm592_vm1, %v280_v32  ;;  %8280 = vmatprep.mubr.msk.f32.mxu1 %vm592_vm1, %v568_v39  ;;  %v574_v60 = vld [vmem:[%s12111_s0 + $0x1180] sm:$0xff] }
 0x21b   :  { %6152 = vst [vmem:[%s12113_s3 + $0x58] sm:$0xff] %v6008_v40  ;;  %v5866_v21 = vmul.f32 0.1, %v5722_v42  ;;  %v5573_v22 = vmax.f32 %v5285_v26, %v5429_v31  ;;  %v7691_v43 = vpop.f32.mrb[160].mxu0  ;;  %v285_v40 = vld [vmem:[%s12111_s0 + $0x878] sm:$0xff] }
 0x21c   :  { %6151 = vst [vmem:[%s12113_s3 + $0x50] sm:$0xff] %v6007_v11  ;;  %v5865_v24 = vmul.f32 0.1, %v5721_v53  ;;  %v5572_v25 = vmax.f32 %v5284_v54, %v5428_v55  ;;  %v8123_v5 = vpop.f32.mrb[160].mxu1  ;;  %v5287_v58 = vmax.f32 %v9411_v33, %v7691_v43  ;;  %v3191_v12 = vpop.f32.mrb[161].mxu0  ;;  %7849 = vmatmul.mubr.msk.f32.gmra.mrb[10].mxu0 %vm592_vm1, %v281_v56  ;;  %v287_v43 = vld [vmem:[%s12111_s0 + $0x888] sm:$0xff] }
 0x21d   :  { %v6010_v8 = vmax.f32 %v5722_v42, %v5866_v21  ;;  %v5724_v57 = vadd.f32 %v10954_v10, %v5573_v22  ;;  %v5431_v44 = vmax.f32 %v9413_v34, %v8123_v5  ;;  %v4631_v45 = vpop.f32.mrb[161].mxu1  ;;  %v5286_v48 = vmax.f32 %v9415_v35, %v3191_v12  ;;  %8281 = vmatmul.mubr.msk.f32.gmra.mrb[10].mxu1 %vm592_vm1, %v569_v23  ;;  %v571_v35 = vld [vmem:[%s12111_s0 + $0x1168] sm:$0xff] }
 0x21e   :  { %v6009_v46 = vmax.f32 %v5721_v53, %v5865_v24  ;;  %v5723_v47 = vadd.f32 %v10954_v10, %v5572_v25  ;;  %v5430_v27 = vmax.f32 %v9418_v36, %v4631_v45  ;;  %7851 = vmatprep.mubr.msk.f32.mxu0 %vm592_vm1, %v282_v6  ;;  %8283 = vmatprep.mubr.msk.f32.mxu1 %vm592_vm1, %v570_v7 }
 0x21f   :  { %6154 = vst [vmem:[%s12113_s3 + $0x68] sm:$0xff] %v6010_v8  ;;  %v5868_v33 = vmul.f32 0.1, %v5724_v57  ;;  %v5575_v34 = vmax.f32 %v5287_v58, %v5431_v44  ;;  %v7694_v9 = vpop.f32.mrb[162].mxu0  ;;  %v288_v8 = vld [vmem:[%s12111_s0 + $0x890] sm:$0xff] }
 0x220   :  { %6153 = vst [vmem:[%s12113_s3 + $0x60] sm:$0xff] %v6009_v46  ;;  %v5867_v36 = vmul.f32 0.1, %v5723_v47  ;;  %v5574_v38 = vmax.f32 %v5286_v48, %v5430_v27  ;;  %v8126_v29 = vpop.f32.mrb[162].mxu1  ;;  %v5289_v14 = vmax.f32 %v9435_v49, %v7694_v9  ;;  %v3201_v16 = vpop.f32.mrb[163].mxu0  ;;  %7852 = vmatmul.mubr.msk.f32.gmra.mrb[12].mxu0 %vm592_vm1, %v283_v37  ;;  %v290_v9 = vld [vmem:[%s12111_s0 + $0x8a0] sm:$0xff] }
 0x221   :  { %v6012_v62 = vmax.f32 %v5724_v57, %v5868_v33  ;;  %v5726_v13 = vadd.f32 %v10954_v10, %v5575_v34  ;;  %v5433_v15 = vmax.f32 %v9437_v50, %v8126_v29  ;;  %v4641_v63 = vpop.f32.mrb[163].mxu1  ;;  %v5288_v32 = vmax.f32 %v9439_v51, %v3201_v16  ;;  %8284 = vmatmul.mubr.msk.f32.gmra.mrb[12].mxu1 %vm592_vm1, %v571_v35  ;;  %v573_v51 = vld [vmem:[%s12111_s0 + $0x1178] sm:$0xff]  ;;  %v576_v57 = vld [vmem:[%s12111_s0 + $0x1190] sm:$0xff]  ;;  %v578_v29 = vld [vmem:[%s12111_s0 + $0x11a0] sm:$0xff] }
 0x222   :  { %v6011_v0 = vmax.f32 %v5723_v47, %v5867_v36  ;;  %v5725_v59 = vadd.f32 %v10954_v10, %v5574_v38  ;;  %v5432_v39 = vmax.f32 %v9442_v52, %v4641_v63  ;;  %7854 = vmatprep.mubr.msk.f32.mxu0 %vm592_vm1, %v284_v30  ;;  %8286 = vmatprep.mubr.msk.f32.mxu1 %vm592_vm1, %v572_v61  ;;  %v289_v34 = vld [vmem:[%s12111_s0 + $0x898] sm:$0xff] }
 0x223   :  { %6156 = vst [vmem:[%s12113_s3 + $0x78] sm:$0xff] %v6012_v62  ;;  %v5870_v49 = vmul.f32 0.1, %v5726_v13  ;;  %v5577_v50 = vmax.f32 %v5289_v14, %v5433_v15  ;;  %v7697_v26 = vpop.f32.mrb[164].mxu0 }
 0x224   :  { %6155 = vst [vmem:[%s12113_s3 + $0x70] sm:$0xff] %v6011_v0  ;;  %v5869_v52 = vmul.f32 0.1, %v5725_v59  ;;  %v5576_v42 = vmax.f32 %v5288_v32, %v5432_v39  ;;  %v8129_v31 = vpop.f32.mrb[164].mxu1  ;;  %v5291_v54 = vmax.f32 %v9459_v1, %v7697_v26  ;;  %v3211_v56 = vpop.f32.mrb[165].mxu0  ;;  %7855 = vmatmul.mubr.msk.f32.gmra.mrb[14].mxu0 %vm592_vm1, %v285_v40  ;;  %v12355_v39 = vld [vmem:[#allocation4_spill] sm:$0xff] }
 0x225   :  { %v6014_v11 = vmax.f32 %v5726_v13, %v5870_v49  ;;  %v5728_v53 = vadd.f32 %v10954_v10, %v5577_v50  ;;  %v5435_v55 = vmax.f32 %v9461_v2, %v8129_v31  ;;  %v4651_v21 = vpop.f32.mrb[165].mxu1  ;;  %v5290_v24 = vmax.f32 %v9463_v3, %v3211_v56  ;;  %8287 = vmatmul.mubr.msk.f32.gmra.mrb[14].mxu1 %vm592_vm1, %v573_v51  ;;  %v575_v3 = vld [vmem:[%s12111_s0 + $0x1188] sm:$0xff]  ;;  %v12353_v13 = vld [vmem:[#allocation2_spill] sm:$0xff] }
 0x226   :  { %v6013_v22 = vmax.f32 %v5725_v59, %v5869_v52  ;;  %v5727_v23 = vadd.f32 %v10954_v10, %v5576_v42  ;;  %v5434_v25 = vmax.f32 %v9466_v4, %v4651_v21  ;;  %7857 = vmatprep.mubr.msk.f32.mxu0 %vm592_vm1, %v286_v28  ;;  %8289 = vmatprep.mubr.msk.f32.mxu1 %vm592_vm1, %v574_v60  ;;  %v12354_v59 = vld [vmem:[#allocation3_spill] sm:$0xff]  ;;  %v292_v28 = vld [vmem:[%s12111_s0 + $0x8b0] sm:$0xff]  ;;  %v12357_v56 = vld [vmem:[#allocation6_spill] sm:$0xff] }
 0x227   :  { %6158 = vst [vmem:[%s12113_s3 + $0x88] sm:$0xff] %v6014_v11  ;;  %v5872_v1 = vmul.f32 0.1, %v5728_v53  ;;  %v5579_v2 = vmax.f32 %v5291_v54, %v5435_v55  ;;  %v7700_v6 = vpop.f32.mrb[166].mxu0  ;;  %v291_v49 = vld [vmem:[%s12111_s0 + $0x8a8] sm:$0xff]  ;;  %v580_v60 = vld [vmem:[%s12111_s0 + $0x11b0] sm:$0xff] }
 0x228   :  { %6157 = vst [vmem:[%s12113_s3 + $0x80] sm:$0xff] %v6013_v22  ;;  %v5871_v4 = vmul.f32 0.1, %v5727_v23  ;;  %v5578_v5 = vmax.f32 %v5290_v24, %v5434_v25  ;;  %v8132_v7 = vpop.f32.mrb[166].mxu1  ;;  %v5293_v12 = vmax.f32 %v9483_v17, %v7700_v6  ;;  %v3221_v46 = vpop.f32.mrb[167].mxu0  ;;  %7858 = vmatmul.mubr.msk.f32.gmra.mrb[16].mxu0 %vm592_vm1, %v287_v43  ;;  %v579_v51 = vld [vmem:[%s12111_s0 + $0x11a8] sm:$0xff] }
 0x229   :  { %v6016_v58 = vmax.f32 %v5728_v53, %v5872_v1  ;;  %v5730_v44 = vadd.f32 %v10954_v10, %v5579_v2  ;;  %v5437_v45 = vmax.f32 %v9485_v18, %v8132_v7  ;;  %v4661_v47 = vpop.f32.mrb[167].mxu1  ;;  %v5292_v37 = vmax.f32 %v9487_v19, %v3221_v46  ;;  %8290 = vmatmul.mubr.msk.f32.gmra.mrb[16].mxu1 %vm592_vm1, %v575_v3  ;;  %v577_v19 = vld [vmem:[%s12111_s0 + $0x1198] sm:$0xff]  ;;  %v12358_v43 = vld [vmem:[#allocation7_spill] sm:$0xff]  ;;  %v12359_v2 = vld [vmem:[#allocation8_spill] sm:$0xff] }
 0x22a   :  { %v6015_v48 = vmax.f32 %v5727_v23, %v5871_v4  ;;  %v5729_v27 = vadd.f32 %v10954_v10, %v5578_v5  ;;  %v5436_v33 = vmax.f32 %v9490_v20, %v4661_v47  ;;  %7860 = vmatprep.mubr.msk.f32.mxu0 %vm592_vm1, %v288_v8  ;;  %8292 = vmatprep.mubr.msk.f32.mxu1 %vm592_vm1, %v576_v57  ;;  %v12356_v54 = vld [vmem:[#allocation5_spill] sm:$0xff] }
 0x22b   :  { %6160 = vst [vmem:[%s12113_s3 + $0x98] sm:$0xff] %v6016_v58  ;;  %v5874_v17 = vmul.f32 0.1, %v5730_v44  ;;  %v5581_v18 = vmax.f32 %v5293_v12, %v5437_v45  ;;  %v7703_v36 = vpop.f32.mrb[168].mxu0  ;;  %v293_v4 = vld [vmem:[%s12111_s0 + $0x8b8] sm:$0xff]  ;;  %v294_v12 = vld [vmem:[%s12111_s0 + $0x8c0] sm:$0xff] }
 0x22c   :  { %6159 = vst [vmem:[%s12113_s3 + $0x90] sm:$0xff] %v6015_v48  ;;  %v5873_v20 = vmul.f32 0.1, %v5729_v27  ;;  %v5580_v35 = vmax.f32 %v5292_v37, %v5436_v33  ;;  %v8135_v38 = vpop.f32.mrb[168].mxu1  ;;  %v5295_v62 = vmax.f32 %v9507_v41, %v7703_v36  ;;  %v3231_v15 = vpop.f32.mrb[169].mxu0  ;;  %7861 = vmatmul.mubr.msk.f32.gmra.mrb[18].mxu0 %vm592_vm1, %v289_v34  ;;  %v581_v7 = vld [vmem:[%s12111_s0 + $0x11b8] sm:$0xff] }
 0x22d   :  { %v6018_v30 = vmax.f32 %v5730_v44, %v5874_v17  ;;  %v5732_v61 = vadd.f32 %v10954_v10, %v5581_v18  ;;  %v5439_v14 = vmax.f32 %v12353_v13, %v8135_v38  ;;  %v4671_v16 = vpop.f32.mrb[169].mxu1  ;;  %v5294_v32 = vmax.f32 %v12354_v59, %v3231_v15  ;;  %8293 = vmatmul.mubr.msk.f32.gmra.mrb[18].mxu1 %vm592_vm1, %v577_v19  ;;  %v582_v45 = vld [vmem:[%s12111_s0 + $0x11c0] sm:$0xff]  ;;  %v12360_v48 = vld [vmem:[#allocation9_spill] sm:$0xff]  ;;  %v12363_v36 = vld [vmem:[#allocation12_spill] sm:$0xff] }
 0x22e   :  { %v6017_v63 = vmax.f32 %v5729_v27, %v5873_v20  ;;  %v5731_v0 = vadd.f32 %v10954_v10, %v5580_v35  ;;  %v5438_v40 = vmax.f32 %v12355_v39, %v4671_v16  ;;  %7863 = vmatprep.mubr.msk.f32.mxu0 %vm592_vm1, %v290_v9  ;;  %8295 = vmatprep.mubr.msk.f32.mxu1 %vm592_vm1, %v578_v29  ;;  %v12361_v37 = vld [vmem:[#allocation10_spill] sm:$0xff]  ;;  %v12362_v20 = vld [vmem:[#allocation11_spill] sm:$0xff]  ;;  %v296_v16 = vld [vmem:[%s12111_s0 + $0x8d0] sm:$0xff] }
 0x22f   :  { %6162 = vst [vmem:[%s12113_s3 + $0xa8] sm:$0xff] %v6018_v30  ;;  %v5876_v41 = vmul.f32 0.1, %v5732_v61  ;;  %v5583_v50 = vmax.f32 %v5295_v62, %v5439_v14  ;;  %v7706_v26 = vpop.f32.mrb[170].mxu0  ;;  %v295_v9 = vld [vmem:[%s12111_s0 + $0x8c8] sm:$0xff] }
 0x230   :  { %6161 = vst [vmem:[%s12113_s3 + $0xa0] sm:$0xff] %v6017_v63  ;;  %v5875_v52 = vmul.f32 0.1, %v5731_v0  ;;  %v5582_v42 = vmax.f32 %v5294_v32, %v5438_v40  ;;  %v8138_v31 = vpop.f32.mrb[170].mxu1  ;;  %v5297_v55 = vmax.f32 %v12356_v54, %v7706_v26  ;;  %v3241_v22 = vpop.f32.mrb[171].mxu0  ;;  %7864 = vmatmul.mubr.msk.f32.gmra.mrb[20].mxu0 %vm592_vm1, %v291_v49  ;;  %v584_v63 = vld [vmem:[%s12111_s0 + $0x11d0] sm:$0xff] }
 0x231   :  { %v6020_v11 = vmax.f32 %v5732_v61, %v5876_v41  ;;  %v5734_v53 = vadd.f32 %v10954_v10, %v5583_v50  ;;  %v5441_v21 = vmax.f32 %v12357_v56, %v8138_v31  ;;  %v4681_v23 = vpop.f32.mrb[171].mxu1  ;;  %v5296_v1 = vmax.f32 %v12358_v43, %v3241_v22  ;;  %8296 = vmatmul.mubr.msk.f32.gmra.mrb[20].mxu1 %vm592_vm1, %v579_v51  ;;  %v583_v61 = vld [vmem:[%s12111_s0 + $0x11c8] sm:$0xff]  ;;  %v12364_v32 = vld [vmem:[#allocation13_spill] sm:$0xff]  ;;  %v12365_v40 = vld [vmem:[#allocation14_spill] sm:$0xff] }
 0x232   :  { %v6019_v24 = vmax.f32 %v5731_v0, %v5875_v52  ;;  %v5733_v25 = vadd.f32 %v10954_v10, %v5582_v42  ;;  %v5440_v3 = vmax.f32 %v12359_v2, %v4681_v23  ;;  %7866 = vmatprep.mubr.msk.f32.mxu0 %vm592_vm1, %v292_v28  ;;  %8298 = vmatprep.mubr.msk.f32.mxu1 %vm592_vm1, %v580_v60  ;;  %v12366_v42 = vld [vmem:[#allocation15_spill] sm:$0xff]  ;;  %v12367_v31 = vld [vmem:[#allocation16_spill] sm:$0xff]  ;;  %v297_v60 = vld [vmem:[%s12111_s0 + $0x8d8] sm:$0xff] }
 0x233   :  { %6164 = vst [vmem:[%s12113_s3 + $0xb8] sm:$0xff] %v6020_v11  ;;  %v5878_v5 = vmul.f32 0.1, %v5734_v53  ;;  %v5585_v6 = vmax.f32 %v5297_v55, %v5441_v21  ;;  %v7709_v58 = vpop.f32.mrb[172].mxu0  ;;  %v585_v54 = vld [vmem:[%s12111_s0 + $0x11d8] sm:$0xff]  ;;  %v298_v23 = vld [vmem:[%s12111_s0 + $0x8e0] sm:$0xff] }
 0x234   :  { %6163 = vst [vmem:[%s12113_s3 + $0xb0] sm:$0xff] %v6019_v24  ;;  %v5877_v8 = vmul.f32 0.1, %v5733_v25  ;;  %v5584_v57 = vmax.f32 %v5296_v1, %v5440_v3  ;;  %v8141_v44 = vpop.f32.mrb[172].mxu1  ;;  %v5299_v27 = vmax.f32 %v12360_v48, %v7709_v58  ;;  %v3251_v34 = vpop.f32.mrb[173].mxu0  ;;  %7867 = vmatmul.mubr.msk.f32.gmra.mrb[22].mxu0 %vm592_vm1, %v293_v4  ;;  %v586_v24 = vld [vmem:[%s12111_s0 + $0x11e0] sm:$0xff] }
 0x235   :  { %v6022_v46 = vmax.f32 %v5734_v53, %v5878_v5  ;;  %v5736_v47 = vadd.f32 %v10954_v10, %v5585_v6  ;;  %v5443_v33 = vmax.f32 %v12361_v37, %v8141_v44  ;;  %v4691_v17 = vpop.f32.mrb[173].mxu1  ;;  %v5298_v35 = vmax.f32 %v12362_v20, %v3251_v34  ;;  %8299 = vmatmul.mubr.msk.f32.gmra.mrb[22].mxu1 %vm592_vm1, %v581_v7  ;;  %v12368_v1 = vld [vmem:[#allocation17_spill] sm:$0xff]  ;;  %v12369_v3 = vld [vmem:[#allocation18_spill] sm:$0xff]  ;;  %v12371_v44 = vld [vmem:[#allocation20_spill] sm:$0xff] }
 0x236   :  { %v6021_v18 = vmax.f32 %v5733_v25, %v5877_v8  ;;  %v5735_v19 = vadd.f32 %v10954_v10, %v5584_v57  ;;  %v5442_v38 = vmax.f32 %v12363_v36, %v4691_v17  ;;  %7869 = vmatprep.mubr.msk.f32.mxu0 %vm592_vm1, %v294_v12  ;;  %8301 = vmatprep.mubr.msk.f32.mxu1 %vm592_vm1, %v582_v45  ;;  %v12370_v57 = vld [vmem:[#allocation19_spill] sm:$0xff]  ;;  %v300_v17 = vld [vmem:[%s12111_s0 + $0x8f0] sm:$0xff] }
 0x237   :  { %6166 = vst [vmem:[%s12113_s3 + $0xc8] sm:$0xff] %v6022_v46  ;;  %v5880_v29 = vmul.f32 0.1, %v5736_v47  ;;  %v5587_v30 = vmax.f32 %v5299_v27, %v5443_v33  ;;  %v7712_v14 = vpop.f32.mrb[174].mxu0  ;;  %v299_v45 = vld [vmem:[%s12111_s0 + $0x8e8] sm:$0xff] }
 0x238   :  { %6165 = vst [vmem:[%s12113_s3 + $0xc0] sm:$0xff] %v6021_v18  ;;  %v5879_v62 = vmul.f32 0.1, %v5735_v19  ;;  %v5586_v13 = vmax.f32 %v5298_v35, %v5442_v38  ;;  %v8144_v15 = vpop.f32.mrb[174].mxu1  ;;  %v5301_v39 = vmax.f32 %v12364_v32, %v7712_v14  ;;  %v3261_v41 = vpop.f32.mrb[175].mxu0  ;;  %7870 = vmatmul.mubr.msk.f32.gmra.mrb[24].mxu0 %vm592_vm1, %v295_v9  ;;  %v587_v48 = vld [vmem:[%s12111_s0 + $0x11e8] sm:$0xff] }
 0x239   :  { %v6024_v0 = vmax.f32 %v5736_v47, %v5880_v29  ;;  %v5738_v59 = vadd.f32 %v10954_v10, %v5587_v30  ;;  %v5445_v49 = vmax.f32 %v12365_v40, %v8144_v15  ;;  %v4701_v50 = vpop.f32.mrb[175].mxu1  ;;  %v5300_v26 = vmax.f32 %v12366_v42, %v3261_v41  ;;  %8302 = vmatmul.mubr.msk.f32.gmra.mrb[24].mxu1 %vm592_vm1, %v583_v61  ;;  %v588_v18 = vld [vmem:[%s12111_s0 + $0x11f0] sm:$0xff]  ;;  %v12372_v35 = vld [vmem:[#allocation21_spill] sm:$0xff]  ;;  %v12373_v38 = vld [vmem:[#allocation22_spill] sm:$0xff] }
 0x23a   :  { %v6023_v51 = vmax.f32 %v5735_v19, %v5879_v62  ;;  %v5737_v52 = vadd.f32 %v10954_v10, %v5586_v13  ;;  %v5444_v28 = vmax.f32 %v12367_v31, %v4701_v50  ;;  %7872 = vmatprep.mubr.msk.f32.mxu0 %vm592_vm1, %v296_v16  ;;  %8304 = vmatprep.mubr.msk.f32.mxu1 %vm592_vm1, %v584_v63  ;;  %v12374_v13 = vld [vmem:[#allocation23_spill] sm:$0xff]  ;;  %v12375_v15 = vld [vmem:[#allocation24_spill] sm:$0xff]  ;;  %v301_v63 = vld [vmem:[%s12111_s0 + $0x8f8] sm:$0xff] }
 0x23b   :  { %6168 = vst [vmem:[%s12113_s3 + $0xd8] sm:$0xff] %v6024_v0  ;;  %v5882_v11 = vmul.f32 0.1, %v5738_v59  ;;  %v5589_v53 = vmax.f32 %v5301_v39, %v5445_v49  ;;  %v7715_v21 = vpop.f32.mrb[176].mxu0  ;;  %v589_v32 = vld [vmem:[%s12111_s0 + $0x11f8] sm:$0xff] }
 0x23c   :  { %6167 = vst [vmem:[%s12113_s3 + $0xd0] sm:$0xff] %v6023_v51  ;;  %v5881_v55 = vmul.f32 0.1, %v5737_v52  ;;  %v5588_v56 = vmax.f32 %v5300_v26, %v5444_v28  ;;  %v8147_v22 = vpop.f32.mrb[176].mxu1  ;;  %v5303_v2 = vmax.f32 %v12368_v1, %v7715_v21  ;;  %v3271_v5 = vpop.f32.mrb[177].mxu0  ;;  %7873 = vmatmul.mubr.msk.f32.gmra.mrb[26].mxu0 %vm592_vm1, %v297_v60  ;;  %v12377_v26 = vld [vmem:[#allocation26_spill] sm:$0xff] }
 0x23d   :  { %v6026_v25 = vmax.f32 %v5738_v59, %v5882_v11  ;;  %v5740_v43 = vadd.f32 %v10954_v10, %v5589_v53  ;;  %v5447_v4 = vmax.f32 %v12369_v3, %v8147_v22  ;;  %v4711_v6 = vpop.f32.mrb[177].mxu1  ;;  %v5302_v58 = vmax.f32 %v12370_v57, %v3271_v5  ;;  %8305 = vmatmul.mubr.msk.f32.gmra.mrb[26].mxu1 %vm592_vm1, %v585_v54  ;;  %v12378_v54 = vld [vmem:[#allocation27_spill] sm:$0xff] }
 0x23e   :  { %v6025_v7 = vmax.f32 %v5737_v52, %v5881_v55  ;;  %v5739_v8 = vadd.f32 %v10954_v10, %v5588_v56  ;;  %v5446_v12 = vmax.f32 %v12371_v44, %v4711_v6  ;;  %7875 = vmatprep.mubr.msk.f32.mxu0 %vm592_vm1, %v298_v23  ;;  %8307 = vmatprep.mubr.msk.f32.mxu1 %vm592_vm1, %v586_v24  ;;  %v12376_v52 = vld [vmem:[#allocation25_spill] sm:$0xff]  ;;  %v12379_v56 = vld [vmem:[#allocation28_spill] sm:$0xff]  ;;  %v12381_v6 = vld [vmem:[#allocation30_spill] sm:$0xff] }
 0x23f   :  { %6170 = vst [vmem:[%s12113_s3 + $0xe8] sm:$0xff] %v6026_v25  ;;  %v5884_v46 = vmul.f32 0.1, %v5740_v43  ;;  %v5591_v47 = vmax.f32 %v5303_v2, %v5447_v4  ;;  %v7718_v33 = vpop.f32.mrb[178].mxu0  ;;  %v12380_v4 = vld [vmem:[#allocation29_spill] sm:$0xff] }
 0x240   :  { %6169 = vst [vmem:[%s12113_s3 + $0xe0] sm:$0xff] %v6025_v7  ;;  %v5883_v27 = vmul.f32 0.1, %v5739_v8  ;;  %v5590_v37 = vmax.f32 %v5302_v58, %v5446_v12  ;;  %v8150_v34 = vpop.f32.mrb[178].mxu1  ;;  %v5305_v36 = vmax.f32 %v12372_v35, %v7718_v33  ;;  %v3281_v29 = vpop.f32.mrb[179].mxu0  ;;  %7876 = vmatmul.mubr.msk.f32.gmra.mrb[28].mxu0 %vm592_vm1, %v299_v45  ;;  %v12382_v12 = vld [vmem:[#allocation31_spill] sm:$0xff] }
 0x241   :  { %v6028_v19 = vmax.f32 %v5740_v43, %v5884_v46  ;;  %v5742_v20 = vadd.f32 %v10954_v10, %v5591_v47  ;;  %v5449_v9 = vmax.f32 %v12373_v38, %v8150_v34  ;;  %v4721_v30 = vpop.f32.mrb[179].mxu1  ;;  %v5304_v14 = vmax.f32 %v12374_v13, %v3281_v29  ;;  %8308 = vmatmul.mubr.msk.f32.gmra.mrb[28].mxu1 %vm592_vm1, %v587_v48  ;;  %v12383_v46 = vld [vmem:[#allocation32_spill] sm:$0xff] }
 0x242   :  { %v6027_v61 = vmax.f32 %v5739_v8, %v5883_v27  ;;  %v5741_v62 = vadd.f32 %v10954_v10, %v5590_v37  ;;  %v5448_v16 = vmax.f32 %v12375_v15, %v4721_v30  ;;  %7878 = vmatprep.mubr.msk.f32.mxu0 %vm592_vm1, %v300_v17  ;;  %8310 = vmatprep.mubr.msk.f32.mxu1 %vm592_vm1, %v588_v18 }
 0x243   :  { %6172 = vst [vmem:[%s12113_s3 + $0xf8] sm:$0xff] %v6028_v19  ;;  %v5886_v0 = vmul.f32 0.1, %v5742_v20  ;;  %v5593_v59 = vmax.f32 %v5305_v36, %v5449_v9  ;;  %v7721_v49 = vpop.f32.mrb[180].mxu0  ;;  %v12385_v36 = vld [vmem:[#allocation34_spill] sm:$0xff] }
 0x244   :  { %6171 = vst [vmem:[%s12113_s3 + $0xf0] sm:$0xff] %v6027_v61  ;;  %v5885_v39 = vmul.f32 0.1, %v5741_v62  ;;  %v5592_v40 = vmax.f32 %v5304_v14, %v5448_v16  ;;  %v8153_v41 = vpop.f32.mrb[180].mxu1  ;;  %v5307_v42 = vmax.f32 %v12376_v52, %v7721_v49  ;;  %v3291_v28 = vpop.f32.mrb[181].mxu0  ;;  %7879 = vmatmul.mubr.msk.f32.gmra.mrb[30].mxu0 %vm592_vm1, %v301_v63  ;;  %v12387_v14 = vld [vmem:[#allocation36_spill] sm:$0xff] }
 0x245   :  { %v6030_v50 = vmax.f32 %v5742_v20, %v5886_v0  ;;  %v5744_v51 = vadd.f32 %v10954_v10, %v5593_v59  ;;  %v5451_v31 = vmax.f32 %v12377_v26, %v8153_v41  ;;  %v4731_v60 = vpop.f32.mrb[181].mxu1  ;;  %v5306_v55 = vmax.f32 %v12378_v54, %v3291_v28  ;;  %8311 = vmatmul.mubr.msk.f32.gmra.mrb[30].mxu1 %vm592_vm1, %v589_v32  ;;  %v12384_v20 = vld [vmem:[#allocation33_spill] sm:$0xff]  ;;  %v11480_v28 = vld [vmem:[%s12112_s2] ss:$0 sm:$0xff]  ;;  %v12391_v54 = vld [vmem:[#allocation40_spill] sm:$0xff] }
 0x246   :  { %v6029_v11 = vmax.f32 %v5741_v62, %v5885_v39  ;;  %v5743_v53 = vadd.f32 %v10954_v10, %v5592_v40  ;;  %v5450_v21 = vmax.f32 %v12379_v56, %v4731_v60  ;;  %v12386_v62 = vld [vmem:[#allocation35_spill] sm:$0xff]  ;;  %v12388_v41 = vld [vmem:[#allocation37_spill] sm:$0xff] }
 0x247   :  { %6174 = vst [vmem:[%s12113_s3 + $0x108] sm:$0xff] %v6030_v50  ;;  %v5888_v22 = vmul.f32 0.1, %v5744_v51  ;;  %v5595_v23 = vmax.f32 %v5307_v42, %v5451_v31  ;;  %v7724_v43 = vpop.f32.mrb[182].mxu0 }
 0x248   :  { %6173 = vst [vmem:[%s12113_s3 + $0x100] sm:$0xff] %v6029_v11  ;;  %v5887_v24 = vmul.f32 0.1, %v5743_v53  ;;  %v5594_v25 = vmax.f32 %v5306_v55, %v5450_v21  ;;  %v8156_v1 = vpop.f32.mrb[182].mxu1  ;;  %v5309_v5 = vmax.f32 %v12380_v4, %v7724_v43  ;;  %v3301_v8 = vpop.f32.mrb[183].mxu0  ;;  %v12390_v11 = vld [vmem:[#allocation39_spill] sm:$0xff] }
 0x249   :  { %v6032_v2 = vmax.f32 %v5744_v51, %v5888_v22  ;;  %v5746_v3 = vadd.f32 %v10954_v10, %v5595_v23  ;;  %v5453_v7 = vmax.f32 %v12381_v6, %v8156_v1  ;;  %v4741_v57 = vpop.f32.mrb[183].mxu1  ;;  %v5308_v45 = vmax.f32 %v12382_v12, %v3301_v8  ;;  %v12389_v51 = vld [vmem:[#allocation38_spill] sm:$0xff]  ;;  %v12392_v1 = vld [vmem:[#allocation41_spill] sm:$0xff] }
 0x24a   :  { %v6031_v58 = vmax.f32 %v5743_v53, %v5887_v24  ;;  %v5745_v44 = vadd.f32 %v10954_v10, %v5594_v25  ;;  %v5452_v47 = vmax.f32 %v12383_v46, %v4741_v57  ;;  %v12394_v57 = vld [vmem:[#allocation43_spill] sm:$0xff] }
 0x24b   :  { %6176 = vst [vmem:[%s12113_s3 + $0x118] sm:$0xff] %v6032_v2  ;;  %v5890_v48 = vmul.f32 0.1, %v5746_v3  ;;  %v5597_v27 = vmax.f32 %v5309_v5, %v5453_v7  ;;  %v7727_v34 = vpop.f32.mrb[184].mxu0 }
 0x24c   :  { %6175 = vst [vmem:[%s12113_s3 + $0x110] sm:$0xff] %v6031_v58  ;;  %v5889_v37 = vmul.f32 0.1, %v5745_v44  ;;  %v5596_v33 = vmax.f32 %v5308_v45, %v5452_v47  ;;  %v8159_v17 = vpop.f32.mrb[184].mxu1  ;;  %v5311_v35 = vmax.f32 %v12384_v20, %v7727_v34  ;;  %v3311_v9 = vpop.f32.mrb[185].mxu0 }
 0x24d   :  { %v6034_v18 = vmax.f32 %v5746_v3, %v5890_v48  ;;  %v5748_v19 = vadd.f32 %v10954_v10, %v5597_v27  ;;  %v5455_v38 = vmax.f32 %v12385_v36, %v8159_v17  ;;  %v4751_v29 = vpop.f32.mrb[185].mxu1  ;;  %v5310_v13 = vmax.f32 %v12386_v62, %v3311_v9  ;;  %v12393_v3 = vld [vmem:[#allocation42_spill] sm:$0xff]  ;;  %v12396_v17 = vld [vmem:[#allocation45_spill] sm:$0xff] }
 0x24e   :  { %v6033_v30 = vmax.f32 %v5745_v44, %v5889_v37  ;;  %v5747_v61 = vadd.f32 %v10954_v10, %v5596_v33  ;;  %v5454_v15 = vmax.f32 %v12387_v14, %v4751_v29  ;;  %v12395_v44 = vld [vmem:[#allocation44_spill] sm:$0xff]  ;;  %v12398_v29 = vld [vmem:[#allocation47_spill] sm:$0xff] }
 0x24f   :  { %6178 = vst [vmem:[%s12113_s3 + $0x128] sm:$0xff] %v6034_v18  ;;  %v5892_v16 = vmul.f32 0.1, %v5748_v19  ;;  %v5599_v63 = vmax.f32 %v5311_v35, %v5455_v38  ;;  %v7730_v32 = vpop.f32.mrb[186].mxu0 }
 0x250   :  { %6177 = vst [vmem:[%s12113_s3 + $0x120] sm:$0xff] %v6033_v30  ;;  %v5891_v0 = vmul.f32 0.1, %v5747_v61  ;;  %v5598_v59 = vmax.f32 %v5310_v13, %v5454_v15  ;;  %v8162_v39 = vpop.f32.mrb[186].mxu1  ;;  %v5313_v50 = vmax.f32 %v12388_v41, %v7730_v32  ;;  %v3321_v42 = vpop.f32.mrb[187].mxu0 }
 0x251   :  { %v6036_v40 = vmax.f32 %v5748_v19, %v5892_v16  ;;  %v5750_v49 = vadd.f32 %v10954_v10, %v5599_v63  ;;  %v5457_v52 = vmax.f32 %v12389_v51, %v8162_v39  ;;  %v4761_v26 = vpop.f32.mrb[187].mxu1  ;;  %v5312_v53 = vmax.f32 %v12390_v11, %v3321_v42  ;;  %v12397_v19 = vld [vmem:[#allocation46_spill] sm:$0xff]  ;;  %v12400_v39 = vld [vmem:[#allocation49_spill] sm:$0xff] }
 0x252   :  { %v6035_v31 = vmax.f32 %v5747_v61, %v5891_v0  ;;  %v5749_v60 = vadd.f32 %v11480_v28, %v5598_v59  ;;  %v5456_v55 = vmax.f32 %v12391_v54, %v4761_v26  ;;  %v12399_v61 = vld [vmem:[#allocation48_spill] sm:$0xff]  ;;  %v12402_v26 = vld [vmem:[#allocation51_spill] sm:$0xff] }
 0x253   :  { %6180 = vst [vmem:[%s12113_s3 + $0x138] sm:$0xff] %v6036_v40  ;;  %v5894_v10 = vmul.f32 0.1, %v5750_v49  ;;  %v5601_v56 = vmax.f32 %v5313_v50, %v5457_v52  ;;  %v7733_v23 = vpop.f32.mrb[188].mxu0 }
 0x254   :  { %6179 = vst [vmem:[%s12113_s3 + $0x130] sm:$0xff] %v6035_v31  ;;  %v5893_v21 = vmul.f32 0.1, %v5749_v60  ;;  %v5600_v22 = vmax.f32 %v5312_v53, %v5456_v55  ;;  %v8165_v24 = vpop.f32.mrb[188].mxu1  ;;  %v5315_v2 = vmax.f32 %v12392_v1, %v7733_v23  ;;  %v3331_v5 = vpop.f32.mrb[189].mxu0 }
 0x255   :  { %v6038_v25 = vmax.f32 %v5750_v49, %v5894_v10  ;;  %v5752_v43 = vadd.f32 %v11480_v28, %v5601_v56  ;;  %v5459_v4 = vmax.f32 %v12393_v3, %v8165_v24  ;;  %v4771_v6 = vpop.f32.mrb[189].mxu1  ;;  %v5314_v58 = vmax.f32 %v12394_v57, %v3331_v5  ;;  %v12401_v49 = vld [vmem:[#allocation50_spill] sm:$0xff]  ;;  %v12404_v24 = vld [vmem:[#allocation53_spill] sm:$0xff] }
 0x256   :  { %v6037_v7 = vmax.f32 %v5749_v60, %v5893_v21  ;;  %v5751_v8 = vadd.f32 %v11480_v28, %v5600_v22  ;;  %v5458_v12 = vmax.f32 %v12395_v44, %v4771_v6  ;;  %v12403_v60 = vld [vmem:[#allocation52_spill] sm:$0xff]  ;;  %v12406_v6 = vld [vmem:[#allocation55_spill] sm:$0xff] }
 0x257   :  { %6182 = vst [vmem:[%s12113_s3 + $0x148] sm:$0xff] %v6038_v25  ;;  %v5896_v45 = vmul.f32 0.1, %v5752_v43  ;;  %v5603_v46 = vmax.f32 %v5315_v2, %v5459_v4  ;;  %v7736_v27 = vpop.f32.mrb[190].mxu0 }
 0x258   :  { %6181 = vst [vmem:[%s12113_s3 + $0x140] sm:$0xff] %v6037_v7  ;;  %v5895_v47 = vmul.f32 0.1, %v5751_v8  ;;  %v5602_v48 = vmax.f32 %v5314_v58, %v5458_v12  ;;  %v8168_v37 = vpop.f32.mrb[190].mxu1  ;;  %v5317_v18 = vmax.f32 %v12396_v17, %v7736_v27  ;;  %v3341_v35 = vpop.f32.mrb[191].mxu0 }
 0x259   :  { %v6040_v33 = vmax.f32 %v5752_v43, %v5896_v45  ;;  %v5754_v34 = vadd.f32 %v11480_v28, %v5603_v46  ;;  %v5461_v20 = vmax.f32 %v12397_v19, %v8168_v37  ;;  %v4781_v36 = vpop.f32.mrb[191].mxu1  ;;  %v5316_v30 = vmax.f32 %v12398_v29, %v3341_v35  ;;  %v12405_v43 = vld [vmem:[#allocation54_spill] sm:$0xff]  ;;  %v12408_v37 = vld [vmem:[#allocation57_spill] sm:$0xff] }
 0x25a   :  { %v6039_v38 = vmax.f32 %v5751_v8, %v5895_v47  ;;  %v5753_v9 = vadd.f32 %v11480_v28, %v5602_v48  ;;  %v5460_v62 = vmax.f32 %v12399_v61, %v4781_v36  ;;  %v12407_v8 = vld [vmem:[#allocation56_spill] sm:$0xff]  ;;  %v12410_v36 = vld [vmem:[#allocation59_spill] sm:$0xff] }
 0x25b   :  { %6184 = vst [vmem:[%s12113_s3 + $0x158] sm:$0xff] %v6040_v33  ;;  %v5898_v13 = vmul.f32 0.1, %v5754_v34  ;;  %v5605_v14 = vmax.f32 %v5317_v18, %v5461_v20  ;;  %v7739_v63 = vpop.f32.mrb[192].mxu0 }
 0x25c   :  { %6183 = vst [vmem:[%s12113_s3 + $0x150] sm:$0xff] %v6039_v38  ;;  %v5897_v15 = vmul.f32 0.1, %v5753_v9  ;;  %v5604_v16 = vmax.f32 %v5316_v30, %v5460_v62  ;;  %v8171_v0 = vpop.f32.mrb[192].mxu1  ;;  %v5319_v40 = vmax.f32 %v12400_v39, %v7739_v63  ;;  %v3351_v50 = vpop.f32.mrb[193].mxu0 }
 0x25d   :  { %v6042_v59 = vmax.f32 %v5754_v34, %v5898_v13  ;;  %v5756_v32 = vadd.f32 %v11480_v28, %v5605_v14  ;;  %v5463_v41 = vmax.f32 %v12401_v49, %v8171_v0  ;;  %v4791_v51 = vpop.f32.mrb[193].mxu1  ;;  %v5318_v31 = vmax.f32 %v12402_v26, %v3351_v50  ;;  %v12409_v34 = vld [vmem:[#allocation58_spill] sm:$0xff]  ;;  %v12412_v0 = vld [vmem:[#allocation61_spill] sm:$0xff] }
 0x25e   :  { %v6041_v52 = vmax.f32 %v5753_v9, %v5897_v15  ;;  %v5755_v42 = vadd.f32 %v11480_v28, %v5604_v16  ;;  %v5462_v11 = vmax.f32 %v12403_v60, %v4791_v51  ;;  %v12411_v9 = vld [vmem:[#allocation60_spill] sm:$0xff]  ;;  %v12414_v51 = vld [vmem:[#allocation63_spill] sm:$0xff] }
 0x25f   :  { %6186 = vst [vmem:[%s12113_s3 + $0x168] sm:$0xff] %v6042_v59  ;;  %v5900_v53 = vmul.f32 0.1, %v5756_v32  ;;  %v5607_v54 = vmax.f32 %v5319_v40, %v5463_v41  ;;  %v7742_v56 = vpop.f32.mrb[194].mxu0 }
 0x260   :  { %6185 = vst [vmem:[%s12113_s3 + $0x160] sm:$0xff] %v6041_v52  ;;  %v5899_v55 = vmul.f32 0.1, %v5755_v42  ;;  %v5606_v10 = vmax.f32 %v5318_v31, %v5462_v11  ;;  %v8174_v21 = vpop.f32.mrb[194].mxu1  ;;  %v5321_v25 = vmax.f32 %v12404_v24, %v7742_v56  ;;  %v3361_v2 = vpop.f32.mrb[195].mxu0 }
 0x261   :  { %v6044_v22 = vmax.f32 %v5756_v32, %v5900_v53  ;;  %v5758_v23 = vadd.f32 %v11480_v28, %v5607_v54  ;;  %v5465_v1 = vmax.f32 %v12405_v43, %v8174_v21  ;;  %v4801_v3 = vpop.f32.mrb[195].mxu1  ;;  %v5320_v7 = vmax.f32 %v12406_v6, %v3361_v2  ;;  %v12413_v32 = vld [vmem:[#allocation62_spill] sm:$0xff]  ;;  %v12416_v21 = vld [vmem:[#allocation65_spill] sm:$0xff] }
 0x262   :  { %v6043_v4 = vmax.f32 %v5755_v42, %v5899_v55  ;;  %v5757_v5 = vadd.f32 %v11480_v28, %v5606_v10  ;;  %v5464_v57 = vmax.f32 %v12407_v8, %v4801_v3  ;;  %v12415_v42 = vld [vmem:[#allocation64_spill] sm:$0xff]  ;;  %v12418_v3 = vld [vmem:[#allocation67_spill] sm:$0xff] }
 0x263   :  { %6188 = vst [vmem:[%s12113_s3 + $0x178] sm:$0xff] %v6044_v22  ;;  %v5902_v58 = vmul.f32 0.1, %v5758_v23  ;;  %v5609_v44 = vmax.f32 %v5321_v25, %v5465_v1  ;;  %v7745_v46 = vpop.f32.mrb[196].mxu0 }
 0x264   :  { %6187 = vst [vmem:[%s12113_s3 + $0x170] sm:$0xff] %v6043_v4  ;;  %v5901_v12 = vmul.f32 0.1, %v5757_v5  ;;  %v5608_v45 = vmax.f32 %v5320_v7, %v5464_v57  ;;  %v8177_v47 = vpop.f32.mrb[196].mxu1  ;;  %v5323_v33 = vmax.f32 %v12408_v37, %v7745_v46  ;;  %v3371_v18 = vpop.f32.mrb[197].mxu0 }
 0x265   :  { %v6046_v48 = vmax.f32 %v5758_v23, %v5902_v58  ;;  %v5760_v27 = vadd.f32 %v11480_v28, %v5609_v44  ;;  %v5467_v17 = vmax.f32 %v12409_v34, %v8177_v47  ;;  %v4811_v19 = vpop.f32.mrb[197].mxu1  ;;  %v5322_v38 = vmax.f32 %v12410_v36, %v3371_v18  ;;  %v12417_v23 = vld [vmem:[#allocation66_spill] sm:$0xff]  ;;  %v12420_v47 = vld [vmem:[#allocation69_spill] sm:$0xff] }
 0x266   :  { %v6045_v20 = vmax.f32 %v5757_v5, %v5901_v12  ;;  %v5759_v35 = vadd.f32 %v11480_v28, %v5608_v45  ;;  %v5466_v29 = vmax.f32 %v12411_v9, %v4811_v19  ;;  %v12419_v5 = vld [vmem:[#allocation68_spill] sm:$0xff]  ;;  %v12422_v19 = vld [vmem:[#allocation71_spill] sm:$0xff] }
 0x267   :  { %6190 = vst [vmem:[%s12113_s3 + $0x188] sm:$0xff] %v6046_v48  ;;  %v5904_v30 = vmul.f32 0.1, %v5760_v27  ;;  %v5611_v61 = vmax.f32 %v5323_v33, %v5467_v17  ;;  %v7748_v14 = vpop.f32.mrb[198].mxu0 }
 0x268   :  { %6189 = vst [vmem:[%s12113_s3 + $0x180] sm:$0xff] %v6045_v20  ;;  %v5903_v62 = vmul.f32 0.1, %v5759_v35  ;;  %v5610_v13 = vmax.f32 %v5322_v38, %v5466_v29  ;;  %v8180_v15 = vpop.f32.mrb[198].mxu1  ;;  %v5325_v59 = vmax.f32 %v12412_v0, %v7748_v14  ;;  %v3381_v40 = vpop.f32.mrb[199].mxu0 }
 0x269   :  { %v6048_v16 = vmax.f32 %v5760_v27, %v5904_v30  ;;  %v5762_v63 = vadd.f32 %v11480_v28, %v5611_v61  ;;  %v5469_v39 = vmax.f32 %v12413_v32, %v8180_v15  ;;  %v4821_v49 = vpop.f32.mrb[199].mxu1  ;;  %v5324_v52 = vmax.f32 %v12414_v51, %v3381_v40  ;;  %v12421_v27 = vld [vmem:[#allocation70_spill] sm:$0xff]  ;;  %v12424_v15 = vld [vmem:[#allocation73_spill] sm:$0xff] }
 0x26a   :  { %v6047_v41 = vmax.f32 %v5759_v35, %v5903_v62  ;;  %v5761_v50 = vadd.f32 %v11480_v28, %v5610_v13  ;;  %v5468_v26 = vmax.f32 %v12415_v42, %v4821_v49  ;;  %v12423_v35 = vld [vmem:[#allocation72_spill] sm:$0xff]  ;;  %v12426_v49 = vld [vmem:[#allocation75_spill] sm:$0xff] }
 0x26b   :  { %6192 = vst [vmem:[%s12113_s3 + $0x198] sm:$0xff] %v6048_v16  ;;  %v5906_v31 = vmul.f32 0.1, %v5762_v63  ;;  %v5613_v60 = vmax.f32 %v5325_v59, %v5469_v39  ;;  %v7751_v54 = vpop.f32.mrb[200].mxu0 }
 0x26c   :  { %6191 = vst [vmem:[%s12113_s3 + $0x190] sm:$0xff] %v6047_v41  ;;  %v5905_v11 = vmul.f32 0.1, %v5761_v50  ;;  %v5612_v53 = vmax.f32 %v5324_v52, %v5468_v26  ;;  %v8183_v55 = vpop.f32.mrb[200].mxu1  ;;  %v5327_v22 = vmax.f32 %v12416_v21, %v7751_v54  ;;  %v3391_v25 = vpop.f32.mrb[201].mxu0 }
 0x26d   :  { %v6050_v10 = vmax.f32 %v5762_v63, %v5906_v31  ;;  %v5764_v56 = vadd.f32 %v11480_v28, %v5613_v60  ;;  %v5471_v24 = vmax.f32 %v12417_v23, %v8183_v55  ;;  %v4831_v43 = vpop.f32.mrb[201].mxu1  ;;  %v5326_v4 = vmax.f32 %v12418_v3, %v3391_v25  ;;  %v12425_v63 = vld [vmem:[#allocation74_spill] sm:$0xff]  ;;  %v12428_v55 = vld [vmem:[#allocation77_spill] sm:$0xff] }
 0x26e   :  { %v6049_v1 = vmax.f32 %v5761_v50, %v5905_v11  ;;  %v5763_v2 = vadd.f32 %v11480_v28, %v5612_v53  ;;  %v5470_v6 = vmax.f32 %v12419_v5, %v4831_v43  ;;  %v12427_v50 = vld [vmem:[#allocation76_spill] sm:$0xff]  ;;  %v12430_v43 = vld [vmem:[#allocation79_spill] sm:$0xff] }
 0x26f   :  { %6194 = vst [vmem:[%s12113_s3 + $0x1a8] sm:$0xff] %v6050_v10  ;;  %v5908_v7 = vmul.f32 0.1, %v5764_v56  ;;  %v5615_v8 = vmax.f32 %v5327_v22, %v5471_v24  ;;  %v7754_v44 = vpop.f32.mrb[202].mxu0 }
 0x270   :  { %6193 = vst [vmem:[%s12113_s3 + $0x1a0] sm:$0xff] %v6049_v1  ;;  %v5907_v57 = vmul.f32 0.1, %v5763_v2  ;;  %v5614_v58 = vmax.f32 %v5326_v4, %v5470_v6  ;;  %v8186_v12 = vpop.f32.mrb[202].mxu1  ;;  %v5329_v48 = vmax.f32 %v12420_v47, %v7754_v44  ;;  %v3401_v33 = vpop.f32.mrb[203].mxu0 }
 0x271   :  { %v6052_v45 = vmax.f32 %v5764_v56, %v5908_v7  ;;  %v5766_v46 = vadd.f32 %v11480_v28, %v5615_v8  ;;  %v5473_v37 = vmax.f32 %v12421_v27, %v8186_v12  ;;  %v4841_v34 = vpop.f32.mrb[203].mxu1  ;;  %v5328_v20 = vmax.f32 %v12422_v19, %v3401_v33  ;;  %v12429_v56 = vld [vmem:[#allocation78_spill] sm:$0xff]  ;;  %v12432_v12 = vld [vmem:[#allocation81_spill] sm:$0xff] }
 0x272   :  { %v6051_v17 = vmax.f32 %v5763_v2, %v5907_v57  ;;  %v5765_v18 = vadd.f32 %v11480_v28, %v5614_v58  ;;  %v5472_v36 = vmax.f32 %v12423_v35, %v4841_v34  ;;  %v12431_v2 = vld [vmem:[#allocation80_spill] sm:$0xff]  ;;  %v12434_v34 = vld [vmem:[#allocation83_spill] sm:$0xff] }
 0x273   :  { %6196 = vst [vmem:[%s12113_s3 + $0x1b8] sm:$0xff] %v6052_v45  ;;  %v5910_v38 = vmul.f32 0.1, %v5766_v46  ;;  %v5617_v9 = vmax.f32 %v5329_v48, %v5473_v37  ;;  %v7757_v61 = vpop.f32.mrb[204].mxu0 }
 0x274   :  { %6195 = vst [vmem:[%s12113_s3 + $0x1b0] sm:$0xff] %v6051_v17  ;;  %v5909_v29 = vmul.f32 0.1, %v5765_v18  ;;  %v5616_v30 = vmax.f32 %v5328_v20, %v5472_v36  ;;  %v8189_v62 = vpop.f32.mrb[204].mxu1  ;;  %v5331_v16 = vmax.f32 %v12424_v15, %v7757_v61  ;;  %v3411_v59 = vpop.f32.mrb[205].mxu0 }
 0x275   :  { %v6054_v13 = vmax.f32 %v5766_v46, %v5910_v38  ;;  %v5768_v14 = vadd.f32 %v11480_v28, %v5617_v9  ;;  %v5475_v0 = vmax.f32 %v12425_v63, %v8189_v62  ;;  %v4851_v32 = vpop.f32.mrb[205].mxu1  ;;  %v5330_v41 = vmax.f32 %v12426_v49, %v3411_v59  ;;  %v12433_v46 = vld [vmem:[#allocation82_spill] sm:$0xff]  ;;  %v12436_v62 = vld [vmem:[#allocation85_spill] sm:$0xff] }
 0x276   :  { %v6053_v39 = vmax.f32 %v5765_v18, %v5909_v29  ;;  %v5767_v40 = vadd.f32 %v11480_v28, %v5616_v30  ;;  %v5474_v51 = vmax.f32 %v12427_v50, %v4851_v32  ;;  %v12435_v18 = vld [vmem:[#allocation84_spill] sm:$0xff]  ;;  %v12438_v32 = vld [vmem:[#allocation87_spill] sm:$0xff] }
 0x277   :  { %6198 = vst [vmem:[%s12113_s3 + $0x1c8] sm:$0xff] %v6054_v13  ;;  %v5912_v52 = vmul.f32 0.1, %v5768_v14  ;;  %v5619_v42 = vmax.f32 %v5331_v16, %v5475_v0  ;;  %v7760_v60 = vpop.f32.mrb[206].mxu0 }
 0x278   :  { %6197 = vst [vmem:[%s12113_s3 + $0x1c0] sm:$0xff] %v6053_v39  ;;  %v5911_v26 = vmul.f32 0.1, %v5767_v40  ;;  %v5618_v31 = vmax.f32 %v5330_v41, %v5474_v51  ;;  %v8192_v11 = vpop.f32.mrb[206].mxu1  ;;  %v5333_v10 = vmax.f32 %v12428_v55, %v7760_v60  ;;  %v3421_v22 = vpop.f32.mrb[207].mxu0 }
 0x279   :  { %v6056_v53 = vmax.f32 %v5768_v14, %v5912_v52  ;;  %v5770_v54 = vadd.f32 %v11480_v28, %v5619_v42  ;;  %v5477_v21 = vmax.f32 %v12429_v56, %v8192_v11  ;;  %v4861_v23 = vpop.f32.mrb[207].mxu1  ;;  %v5332_v1 = vmax.f32 %v12430_v43, %v3421_v22  ;;  %v12437_v14 = vld [vmem:[#allocation86_spill] sm:$0xff]  ;;  %v12440_v11 = vld [vmem:[#allocation89_spill] sm:$0xff] }
 0x27a   :  { %v6055_v24 = vmax.f32 %v5767_v40, %v5911_v26  ;;  %v5769_v25 = vadd.f32 %v11480_v28, %v5618_v31  ;;  %v5476_v3 = vmax.f32 %v12431_v2, %v4861_v23  ;;  %v12439_v40 = vld [vmem:[#allocation88_spill] sm:$0xff]  ;;  %v12442_v23 = vld [vmem:[#allocation91_spill] sm:$0xff] }
 0x27b   :  { %6200 = vst [vmem:[%s12113_s3 + $0x1d8] sm:$0xff] %v6056_v53  ;;  %v5914_v4 = vmul.f32 0.1, %v5770_v54  ;;  %v5621_v5 = vmax.f32 %v5333_v10, %v5477_v21  ;;  %v7763_v8 = vpop.f32.mrb[208].mxu0 }
 0x27c   :  { %6199 = vst [vmem:[%s12113_s3 + $0x1d0] sm:$0xff] %v6055_v24  ;;  %v5913_v6 = vmul.f32 0.1, %v5769_v25  ;;  %v5620_v7 = vmax.f32 %v5332_v1, %v5476_v3  ;;  %v8195_v57 = vpop.f32.mrb[208].mxu1  ;;  %v5335_v45 = vmax.f32 %v12432_v12, %v7763_v8  ;;  %v3431_v48 = vpop.f32.mrb[209].mxu0 }
 0x27d   :  { %v6058_v58 = vmax.f32 %v5770_v54, %v5914_v4  ;;  %v5772_v44 = vadd.f32 %v11480_v28, %v5621_v5  ;;  %v5479_v47 = vmax.f32 %v12433_v46, %v8195_v57  ;;  %v4871_v27 = vpop.f32.mrb[209].mxu1  ;;  %v5334_v17 = vmax.f32 %v12434_v34, %v3431_v48  ;;  %v12441_v54 = vld [vmem:[#allocation90_spill] sm:$0xff]  ;;  %v12444_v57 = vld [vmem:[#allocation93_spill] sm:$0xff] }
 0x27e   :  { %v6057_v37 = vmax.f32 %v5769_v25, %v5913_v6  ;;  %v5771_v33 = vadd.f32 %v11480_v28, %v5620_v7  ;;  %v5478_v19 = vmax.f32 %v12435_v18, %v4871_v27  ;;  %v12443_v25 = vld [vmem:[#allocation92_spill] sm:$0xff]  ;;  %v12446_v27 = vld [vmem:[#allocation95_spill] sm:$0xff] }
 0x27f   :  { %6202 = vst [vmem:[%s12113_s3 + $0x1e8] sm:$0xff] %v6058_v58  ;;  %v5916_v20 = vmul.f32 0.1, %v5772_v44  ;;  %v5623_v35 = vmax.f32 %v5335_v45, %v5479_v47  ;;  %v7766_v9 = vpop.f32.mrb[210].mxu0 }
 0x280   :  { %6201 = vst [vmem:[%s12113_s3 + $0x1e0] sm:$0xff] %v6057_v37  ;;  %v5915_v36 = vmul.f32 0.1, %v5771_v33  ;;  %v5622_v38 = vmax.f32 %v5334_v17, %v5478_v19  ;;  %v8198_v29 = vpop.f32.mrb[210].mxu1  ;;  %v5337_v13 = vmax.f32 %v12436_v62, %v7766_v9  ;;  %v3441_v16 = vpop.f32.mrb[211].mxu0 }
 0x281   :  { %v6060_v30 = vmax.f32 %v5772_v44, %v5916_v20  ;;  %v5774_v61 = vadd.f32 %v11480_v28, %v5623_v35  ;;  %v5481_v15 = vmax.f32 %v12437_v14, %v8198_v29  ;;  %v4881_v63 = vpop.f32.mrb[211].mxu1  ;;  %v5336_v39 = vmax.f32 %v12438_v32, %v3441_v16  ;;  %v12445_v44 = vld [vmem:[#allocation94_spill] sm:$0xff]  ;;  %v12448_v29 = vld [vmem:[#allocation97_spill] sm:$0xff] }
 0x282   :  { %v6059_v0 = vmax.f32 %v5771_v33, %v5915_v36  ;;  %v5773_v59 = vadd.f32 %v11480_v28, %v5622_v38  ;;  %v5480_v49 = vmax.f32 %v12439_v40, %v4881_v63  ;;  %v12447_v33 = vld [vmem:[#allocation96_spill] sm:$0xff]  ;;  %v12450_v63 = vld [vmem:[#allocation99_spill] sm:$0xff] }
 0x283   :  { %6204 = vst [vmem:[%s12113_s3 + $0x1f8] sm:$0xff] %v6060_v30  ;;  %v5918_v41 = vmul.f32 0.1, %v5774_v61  ;;  %v5625_v50 = vmax.f32 %v5337_v13, %v5481_v15  ;;  %v7769_v42 = vpop.f32.mrb[212].mxu0 }
 0x284   :  { %6203 = vst [vmem:[%s12113_s3 + $0x1f0] sm:$0xff] %v6059_v0  ;;  %v5917_v51 = vmul.f32 0.1, %v5773_v59  ;;  %v5624_v52 = vmax.f32 %v5336_v39, %v5480_v49  ;;  %v8201_v26 = vpop.f32.mrb[212].mxu1  ;;  %v5339_v53 = vmax.f32 %v12440_v11, %v7769_v42  ;;  %v3451_v10 = vpop.f32.mrb[213].mxu0 }
 0x285   :  { %v6062_v31 = vmax.f32 %v5774_v61, %v5918_v41  ;;  %v5776_v60 = vadd.f32 %v11480_v28, %v5625_v50  ;;  %v5483_v55 = vmax.f32 %v12441_v54, %v8201_v26  ;;  %v4891_v56 = vpop.f32.mrb[213].mxu1  ;;  %v5338_v24 = vmax.f32 %v12442_v23, %v3451_v10  ;;  %v12449_v61 = vld [vmem:[#allocation98_spill] sm:$0xff]  ;;  %v12452_v26 = vld [vmem:[#allocation101_spill] sm:$0xff] }
 0x286   :  { %v6061_v21 = vmax.f32 %v5773_v59, %v5917_v51  ;;  %v5775_v22 = vadd.f32 %v11480_v28, %v5624_v52  ;;  %v5482_v43 = vmax.f32 %v12443_v25, %v4891_v56  ;;  %v12451_v59 = vld [vmem:[#allocation100_spill] sm:$0xff]  ;;  %v12454_v56 = vld [vmem:[#allocation103_spill] sm:$0xff] }
 0x287   :  { %6206 = vst [vmem:[%s12113_s3 + $0x208] sm:$0xff] %v6062_v31  ;;  %v5920_v1 = vmul.f32 0.1, %v5776_v60  ;;  %v5627_v2 = vmax.f32 %v5339_v53, %v5483_v55  ;;  %v7772_v5 = vpop.f32.mrb[214].mxu0 }
 0x288   :  { %6205 = vst [vmem:[%s12113_s3 + $0x200] sm:$0xff] %v6061_v21  ;;  %v5919_v3 = vmul.f32 0.1, %v5775_v22  ;;  %v5626_v4 = vmax.f32 %v5338_v24, %v5482_v43  ;;  %v8204_v6 = vpop.f32.mrb[214].mxu1  ;;  %v5341_v58 = vmax.f32 %v12444_v57, %v7772_v5  ;;  %v3461_v45 = vpop.f32.mrb[215].mxu0 }
 0x289   :  { %v6064_v7 = vmax.f32 %v5776_v60, %v5920_v1  ;;  %v5778_v8 = vadd.f32 %v11480_v28, %v5627_v2  ;;  %v5485_v12 = vmax.f32 %v12445_v44, %v8204_v6  ;;  %v4901_v46 = vpop.f32.mrb[215].mxu1  ;;  %v5340_v37 = vmax.f32 %v12446_v27, %v3461_v45  ;;  %v12453_v60 = vld [vmem:[#allocation102_spill] sm:$0xff]  ;;  %v12456_v6 = vld [vmem:[#allocation105_spill] sm:$0xff] }
 0x28a   :  { %v6063_v47 = vmax.f32 %v5775_v22, %v5919_v3  ;;  %v5777_v48 = vadd.f32 %v11480_v28, %v5626_v4  ;;  %v5484_v34 = vmax.f32 %v12447_v33, %v4901_v46  ;;  %v12455_v22 = vld [vmem:[#allocation104_spill] sm:$0xff]  ;;  %v12458_v46 = vld [vmem:[#allocation107_spill] sm:$0xff] }
 0x28b   :  { %6208 = vst [vmem:[%s12113_s3 + $0x218] sm:$0xff] %v6064_v7  ;;  %v5922_v17 = vmul.f32 0.1, %v5778_v8  ;;  %v5629_v18 = vmax.f32 %v5341_v58, %v5485_v12  ;;  %v7775_v35 = vpop.f32.mrb[216].mxu0 }
 0x28c   :  { %6207 = vst [vmem:[%s12113_s3 + $0x210] sm:$0xff] %v6063_v47  ;;  %v5921_v19 = vmul.f32 0.1, %v5777_v48  ;;  %v5628_v20 = vmax.f32 %v5340_v37, %v5484_v34  ;;  %v8207_v36 = vpop.f32.mrb[216].mxu1  ;;  %v5343_v30 = vmax.f32 %v12448_v29, %v7775_v35  ;;  %v3471_v13 = vpop.f32.mrb[217].mxu0 }
 0x28d   :  { %v6066_v38 = vmax.f32 %v5778_v8, %v5922_v17  ;;  %v5780_v9 = vadd.f32 %v11480_v28, %v5629_v18  ;;  %v5487_v62 = vmax.f32 %v12449_v61, %v8207_v36  ;;  %v4911_v14 = vpop.f32.mrb[217].mxu1  ;;  %v5342_v0 = vmax.f32 %v12450_v63, %v3471_v13  ;;  %v12457_v8 = vld [vmem:[#allocation106_spill] sm:$0xff]  ;;  %v12460_v36 = vld [vmem:[#allocation109_spill] sm:$0xff] }
 0x28e   :  { %v6065_v15 = vmax.f32 %v5777_v48, %v5921_v19  ;;  %v5779_v16 = vadd.f32 %v11480_v28, %v5628_v20  ;;  %v5486_v32 = vmax.f32 %v12451_v59, %v4911_v14  ;;  %v12459_v48 = vld [vmem:[#allocation108_spill] sm:$0xff]  ;;  %v12462_v14 = vld [vmem:[#allocation111_spill] sm:$0xff] }
 0x28f   :  { %6210 = vst [vmem:[%s12113_s3 + $0x228] sm:$0xff] %v6066_v38  ;;  %v5924_v39 = vmul.f32 0.1, %v5780_v9  ;;  %v5631_v40 = vmax.f32 %v5343_v30, %v5487_v62  ;;  %v7778_v50 = vpop.f32.mrb[218].mxu0 }
 0x290   :  { %6209 = vst [vmem:[%s12113_s3 + $0x220] sm:$0xff] %v6065_v15  ;;  %v5923_v49 = vmul.f32 0.1, %v5779_v16  ;;  %v5630_v41 = vmax.f32 %v5342_v0, %v5486_v32  ;;  %v8210_v51 = vpop.f32.mrb[218].mxu1  ;;  %v5345_v31 = vmax.f32 %v12452_v26, %v7778_v50  ;;  %v3481_v53 = vpop.f32.mrb[219].mxu0 }
 0x291   :  { %v6068_v52 = vmax.f32 %v5780_v9, %v5924_v39  ;;  %v5782_v42 = vadd.f32 %v11480_v28, %v5631_v40  ;;  %v5489_v11 = vmax.f32 %v12453_v60, %v8210_v51  ;;  %v4921_v54 = vpop.f32.mrb[219].mxu1  ;;  %v5344_v21 = vmax.f32 %v12454_v56, %v3481_v53  ;;  %v12461_v9 = vld [vmem:[#allocation110_spill] sm:$0xff]  ;;  %v12464_v51 = vld [vmem:[#allocation113_spill] sm:$0xff] }
 0x292   :  { %v6067_v55 = vmax.f32 %v5779_v16, %v5923_v49  ;;  %v5781_v10 = vadd.f32 %v11480_v28, %v5630_v41  ;;  %v5488_v23 = vmax.f32 %v12455_v22, %v4921_v54  ;;  %v12463_v16 = vld [vmem:[#allocation112_spill] sm:$0xff]  ;;  %v12466_v54 = vld [vmem:[#allocation115_spill] sm:$0xff] }
 0x293   :  { %6212 = vst [vmem:[%s12113_s3 + $0x238] sm:$0xff] %v6068_v52  ;;  %v5926_v24 = vmul.f32 0.1, %v5782_v42  ;;  %v5633_v25 = vmax.f32 %v5345_v31, %v5489_v11  ;;  %v7781_v2 = vpop.f32.mrb[220].mxu0 }
 0x294   :  { %6211 = vst [vmem:[%s12113_s3 + $0x230] sm:$0xff] %v6067_v55  ;;  %v5925_v43 = vmul.f32 0.1, %v5781_v10  ;;  %v5632_v1 = vmax.f32 %v5344_v21, %v5488_v23  ;;  %v8213_v3 = vpop.f32.mrb[220].mxu1  ;;  %v5347_v7 = vmax.f32 %v12456_v6, %v7781_v2  ;;  %v3491_v58 = vpop.f32.mrb[221].mxu0 }
 0x295   :  { %v6070_v4 = vmax.f32 %v5782_v42, %v5926_v24  ;;  %v5784_v5 = vadd.f32 %v11480_v28, %v5633_v25  ;;  %v5491_v57 = vmax.f32 %v12457_v8, %v8213_v3  ;;  %v4931_v44 = vpop.f32.mrb[221].mxu1  ;;  %v5346_v47 = vmax.f32 %v12458_v46, %v3491_v58  ;;  %v12465_v42 = vld [vmem:[#allocation114_spill] sm:$0xff]  ;;  %v12468_v3 = vld [vmem:[#allocation117_spill] sm:$0xff] }
 0x296   :  { %v6069_v12 = vmax.f32 %v5781_v10, %v5925_v43  ;;  %v5783_v45 = vadd.f32 %v11480_v28, %v5632_v1  ;;  %v5490_v27 = vmax.f32 %v12459_v48, %v4931_v44  ;;  %v12467_v10 = vld [vmem:[#allocation116_spill] sm:$0xff]  ;;  %v12470_v44 = vld [vmem:[#allocation119_spill] sm:$0xff] }
 0x297   :  { %6214 = vst [vmem:[%s12113_s3 + $0x248] sm:$0xff] %v6070_v4  ;;  %v5928_v37 = vmul.f32 0.1, %v5784_v5  ;;  %v5635_v33 = vmax.f32 %v5347_v7, %v5491_v57  ;;  %v7784_v18 = vpop.f32.mrb[222].mxu0 }
 0x298   :  { %6213 = vst [vmem:[%s12113_s3 + $0x240] sm:$0xff] %v6069_v12  ;;  %v5927_v34 = vmul.f32 0.1, %v5783_v45  ;;  %v5634_v17 = vmax.f32 %v5346_v47, %v5490_v27  ;;  %v8216_v19 = vpop.f32.mrb[222].mxu1  ;;  %v5349_v38 = vmax.f32 %v12460_v36, %v7784_v18  ;;  %v3501_v30 = vpop.f32.mrb[223].mxu0 }
 0x299   :  { %v6072_v20 = vmax.f32 %v5784_v5, %v5928_v37  ;;  %v5786_v35 = vadd.f32 %v11480_v28, %v5635_v33  ;;  %v5493_v29 = vmax.f32 %v12461_v9, %v8216_v19  ;;  %v4941_v61 = vpop.f32.mrb[223].mxu1  ;;  %v5348_v15 = vmax.f32 %v12462_v14, %v3501_v30  ;;  %v12469_v5 = vld [vmem:[#allocation118_spill] sm:$0xff]  ;;  %v12472_v19 = vld [vmem:[#allocation121_spill] sm:$0xff] }
 0x29a   :  { %v6071_v62 = vmax.f32 %v5783_v45, %v5927_v34  ;;  %v5785_v13 = vadd.f32 %v11480_v28, %v5634_v17  ;;  %v5492_v63 = vmax.f32 %v12463_v16, %v4941_v61  ;;  %v12471_v45 = vld [vmem:[#allocation120_spill] sm:$0xff]  ;;  %v12474_v61 = vld [vmem:[#allocation123_spill] sm:$0xff] }
 0x29b   :  { %6216 = vst [vmem:[%s12113_s3 + $0x258] sm:$0xff] %v6072_v20  ;;  %v5930_v0 = vmul.f32 0.1, %v5786_v35  ;;  %v5637_v59 = vmax.f32 %v5349_v38, %v5493_v29  ;;  %v7787_v40 = vpop.f32.mrb[224].mxu0 }
 0x29c   :  { %6215 = vst [vmem:[%s12113_s3 + $0x250] sm:$0xff] %v6071_v62  ;;  %v5929_v32 = vmul.f32 0.1, %v5785_v13  ;;  %v5636_v39 = vmax.f32 %v5348_v15, %v5492_v63  ;;  %v8219_v49 = vpop.f32.mrb[224].mxu1  ;;  %v5351_v52 = vmax.f32 %v12464_v51, %v7787_v40  ;;  %v3511_v31 = vpop.f32.mrb[225].mxu0 }
 0x29d   :  { %v6074_v41 = vmax.f32 %v5786_v35, %v5930_v0  ;;  %v5788_v50 = vadd.f32 %v11480_v28, %v5637_v59  ;;  %v5495_v26 = vmax.f32 %v12465_v42, %v8219_v49  ;;  %v4951_v60 = vpop.f32.mrb[225].mxu1  ;;  %v5350_v55 = vmax.f32 %v12466_v54, %v3511_v31  ;;  %v12473_v35 = vld [vmem:[#allocation122_spill] sm:$0xff]  ;;  %v12476_v49 = vld [vmem:[#allocation125_spill] sm:$0xff] }
 0x29e   :  { %v6073_v11 = vmax.f32 %v5785_v13, %v5929_v32  ;;  %v5787_v53 = vadd.f32 %v11480_v28, %v5636_v39  ;;  %v5494_v56 = vmax.f32 %v12467_v10, %v4951_v60  ;;  %v12475_v13 = vld [vmem:[#allocation124_spill] sm:$0xff]  ;;  %v12478_v60 = vld [vmem:[#allocation127_spill] sm:$0xff] }
 0x29f   :  { %6218 = vst [vmem:[%s12113_s3 + $0x268] sm:$0xff] %v6074_v41  ;;  %v5932_v21 = vmul.f32 0.1, %v5788_v50  ;;  %v5639_v22 = vmax.f32 %v5351_v52, %v5495_v26  ;;  %v7790_v25 = vpop.f32.mrb[226].mxu0 }
 0x2a0   :  { %6217 = vst [vmem:[%s12113_s3 + $0x260] sm:$0xff] %v6073_v11  ;;  %v5931_v23 = vmul.f32 0.1, %v5787_v53  ;;  %v5638_v24 = vmax.f32 %v5350_v55, %v5494_v56  ;;  %v8222_v43 = vpop.f32.mrb[226].mxu1  ;;  %v5353_v4 = vmax.f32 %v12468_v3, %v7790_v25  ;;  %v3521_v7 = vpop.f32.mrb[227].mxu0 }
 0x2a1   :  { %v6076_v1 = vmax.f32 %v5788_v50, %v5932_v21  ;;  %v5790_v2 = vadd.f32 %v11480_v28, %v5639_v22  ;;  %v5497_v6 = vmax.f32 %v12469_v5, %v8222_v43  ;;  %v4961_v8 = vpop.f32.mrb[227].mxu1  ;;  %v5352_v12 = vmax.f32 %v12470_v44, %v3521_v7  ;;  %v12477_v50 = vld [vmem:[#allocation126_spill] sm:$0xff]  ;;  %v12480_v43 = vld [vmem:[#allocation129_spill] sm:$0xff] }
 0x2a2   :  { %v6075_v57 = vmax.f32 %v5787_v53, %v5931_v23  ;;  %v5789_v58 = vadd.f32 %v11480_v28, %v5638_v24  ;;  %v5496_v46 = vmax.f32 %v12471_v45, %v4961_v8  ;;  %v12479_v53 = vld [vmem:[#allocation128_spill] sm:$0xff]  ;;  %v12482_v8 = vld [vmem:[#allocation131_spill] sm:$0xff] }
 0x2a3   :  { %6220 = vst [vmem:[%s12113_s3 + $0x278] sm:$0xff] %v6076_v1  ;;  %v5934_v47 = vmul.f32 0.1, %v5790_v2  ;;  %v5641_v48 = vmax.f32 %v5353_v4, %v5497_v6  ;;  %v7793_v33 = vpop.f32.mrb[228].mxu0 }
 0x2a4   :  { %6219 = vst [vmem:[%s12113_s3 + $0x270] sm:$0xff] %v6075_v57  ;;  %v5933_v27 = vmul.f32 0.1, %v5789_v58  ;;  %v5640_v37 = vmax.f32 %v5352_v12, %v5496_v46  ;;  %v8225_v34 = vpop.f32.mrb[228].mxu1  ;;  %v5355_v20 = vmax.f32 %v12472_v19, %v7793_v33  ;;  %v3531_v38 = vpop.f32.mrb[229].mxu0 }
 0x2a5   :  { %v6078_v17 = vmax.f32 %v5790_v2, %v5934_v47  ;;  %v5792_v18 = vadd.f32 %v11480_v28, %v5641_v48  ;;  %v5499_v36 = vmax.f32 %v12473_v35, %v8225_v34  ;;  %v4971_v9 = vpop.f32.mrb[229].mxu1  ;;  %v5354_v62 = vmax.f32 %v12474_v61, %v3531_v38  ;;  %v12481_v2 = vld [vmem:[#allocation130_spill] sm:$0xff]  ;;  %v12484_v34 = vld [vmem:[#allocation133_spill] sm:$0xff] }
 0x2a6   :  { %v6077_v29 = vmax.f32 %v5789_v58, %v5933_v27  ;;  %v5791_v30 = vadd.f32 %v11480_v28, %v5640_v37  ;;  %v5498_v14 = vmax.f32 %v12475_v13, %v4971_v9  ;;  %v12483_v58 = vld [vmem:[#allocation132_spill] sm:$0xff]  ;;  %v12486_v9 = vld [vmem:[#allocation135_spill] sm:$0xff] }
 0x2a7   :  { %6222 = vst [vmem:[%s12113_s3 + $0x288] sm:$0xff] %v6078_v17  ;;  %v5936_v15 = vmul.f32 0.1, %v5792_v18  ;;  %v5643_v16 = vmax.f32 %v5355_v20, %v5499_v36  ;;  %v7796_v59 = vpop.f32.mrb[230].mxu0 }
 0x2a8   :  { %6221 = vst [vmem:[%s12113_s3 + $0x280] sm:$0xff] %v6077_v29  ;;  %v5935_v63 = vmul.f32 0.1, %v5791_v30  ;;  %v5642_v0 = vmax.f32 %v5354_v62, %v5498_v14  ;;  %v8228_v32 = vpop.f32.mrb[230].mxu1  ;;  %v5357_v41 = vmax.f32 %v12476_v49, %v7796_v59  ;;  %v3541_v52 = vpop.f32.mrb[231].mxu0 }
 0x2a9   :  { %v6080_v39 = vmax.f32 %v5792_v18, %v5936_v15  ;;  %v5794_v40 = vadd.f32 %v11480_v28, %v5643_v16  ;;  %v5501_v51 = vmax.f32 %v12477_v50, %v8228_v32  ;;  %v4981_v42 = vpop.f32.mrb[231].mxu1  ;;  %v5356_v11 = vmax.f32 %v12478_v60, %v3541_v52  ;;  %v12485_v18 = vld [vmem:[#allocation134_spill] sm:$0xff]  ;;  %v12488_v32 = vld [vmem:[#allocation137_spill] sm:$0xff] }
 0x2aa   :  { %v6079_v26 = vmax.f32 %v5791_v30, %v5935_v63  ;;  %v5793_v31 = vadd.f32 %v11480_v28, %v5642_v0  ;;  %v5500_v54 = vmax.f32 %v12479_v53, %v4981_v42  ;;  %v12487_v30 = vld [vmem:[#allocation136_spill] sm:$0xff]  ;;  %v12490_v42 = vld [vmem:[#allocation139_spill] sm:$0xff] }
 0x2ab   :  { %6224 = vst [vmem:[%s12113_s3 + $0x298] sm:$0xff] %v6080_v39  ;;  %v5938_v55 = vmul.f32 0.1, %v5794_v40  ;;  %v5645_v10 = vmax.f32 %v5357_v41, %v5501_v51  ;;  %v7799_v22 = vpop.f32.mrb[232].mxu0 }
 0x2ac   :  { %6223 = vst [vmem:[%s12113_s3 + $0x290] sm:$0xff] %v6079_v26  ;;  %v5937_v56 = vmul.f32 0.1, %v5793_v31  ;;  %v5644_v21 = vmax.f32 %v5356_v11, %v5500_v54  ;;  %v8231_v23 = vpop.f32.mrb[232].mxu1  ;;  %v5359_v1 = vmax.f32 %v12480_v43, %v7799_v22  ;;  %v3551_v4 = vpop.f32.mrb[233].mxu0 }
 0x2ad   :  { %v6082_v24 = vmax.f32 %v5794_v40, %v5938_v55  ;;  %v5796_v25 = vadd.f32 %v11480_v28, %v5645_v10  ;;  %v5503_v3 = vmax.f32 %v12481_v2, %v8231_v23  ;;  %v4991_v5 = vpop.f32.mrb[233].mxu1  ;;  %v5358_v57 = vmax.f32 %v12482_v8, %v3551_v4  ;;  %v12489_v40 = vld [vmem:[#allocation138_spill] sm:$0xff]  ;;  %v12492_v23 = vld [vmem:[#allocation141_spill] sm:$0xff] }
 0x2ae   :  { %v6081_v6 = vmax.f32 %v5793_v31, %v5937_v56  ;;  %v5795_v7 = vadd.f32 %v11480_v28, %v5644_v21  ;;  %v5502_v44 = vmax.f32 %v12483_v58, %v4991_v5  ;;  %v12491_v31 = vld [vmem:[#allocation140_spill] sm:$0xff]  ;;  %v12494_v5 = vld [vmem:[#allocation143_spill] sm:$0xff] }
 0x2af   :  { %6226 = vst [vmem:[%s12113_s3 + $0x2a8] sm:$0xff] %v6082_v24  ;;  %v5940_v12 = vmul.f32 0.1, %v5796_v25  ;;  %v5647_v45 = vmax.f32 %v5359_v1, %v5503_v3  ;;  %v7802_v48 = vpop.f32.mrb[234].mxu0 }
 0x2b0   :  { %6225 = vst [vmem:[%s12113_s3 + $0x2a0] sm:$0xff] %v6081_v6  ;;  %v5939_v46 = vmul.f32 0.1, %v5795_v7  ;;  %v5646_v47 = vmax.f32 %v5358_v57, %v5502_v44  ;;  %v8234_v27 = vpop.f32.mrb[234].mxu1  ;;  %v5361_v17 = vmax.f32 %v12484_v34, %v7802_v48  ;;  %v3561_v20 = vpop.f32.mrb[235].mxu0 }
 0x2b1   :  { %v6084_v37 = vmax.f32 %v5796_v25, %v5940_v12  ;;  %v5798_v33 = vadd.f32 %v11480_v28, %v5647_v45  ;;  %v5505_v19 = vmax.f32 %v12485_v18, %v8234_v27  ;;  %v5001_v35 = vpop.f32.mrb[235].mxu1  ;;  %v5360_v29 = vmax.f32 %v12486_v9, %v3561_v20  ;;  %v12493_v25 = vld [vmem:[#allocation142_spill] sm:$0xff]  ;;  %v12496_v27 = vld [vmem:[#allocation145_spill] sm:$0xff] }
 0x2b2   :  { %v6083_v36 = vmax.f32 %v5795_v7, %v5939_v46  ;;  %v5797_v38 = vadd.f32 %v11480_v28, %v5646_v47  ;;  %v5504_v61 = vmax.f32 %v12487_v30, %v5001_v35  ;;  %v12495_v7 = vld [vmem:[#allocation144_spill] sm:$0xff]  ;;  %v12498_v35 = vld [vmem:[#allocation147_spill] sm:$0xff] }
 0x2b3   :  { %6228 = vst [vmem:[%s12113_s3 + $0x2b8] sm:$0xff] %v6084_v37  ;;  %v5942_v62 = vmul.f32 0.1, %v5798_v33  ;;  %v5649_v13 = vmax.f32 %v5361_v17, %v5505_v19  ;;  %v7805_v16 = vpop.f32.mrb[236].mxu0 }
 0x2b4   :  { %6227 = vst [vmem:[%s12113_s3 + $0x2b0] sm:$0xff] %v6083_v36  ;;  %v5941_v14 = vmul.f32 0.1, %v5797_v38  ;;  %v5648_v15 = vmax.f32 %v5360_v29, %v5504_v61  ;;  %v8237_v63 = vpop.f32.mrb[236].mxu1  ;;  %v5363_v39 = vmax.f32 %v12488_v32, %v7805_v16  ;;  %v3571_v41 = vpop.f32.mrb[237].mxu0 }
 0x2b5   :  { %v6086_v0 = vmax.f32 %v5798_v33, %v5942_v62  ;;  %v5800_v59 = vadd.f32 %v11480_v28, %v5649_v13  ;;  %v5507_v49 = vmax.f32 %v12489_v40, %v8237_v63  ;;  %v5011_v50 = vpop.f32.mrb[237].mxu1  ;;  %v5362_v26 = vmax.f32 %v12490_v42, %v3571_v41  ;;  %v12497_v33 = vld [vmem:[#allocation146_spill] sm:$0xff]  ;;  %v12500_v63 = vld [vmem:[#allocation149_spill] sm:$0xff] }
 0x2b6   :  { %v6085_v51 = vmax.f32 %v5797_v38, %v5941_v14  ;;  %v5799_v52 = vadd.f32 %v11480_v28, %v5648_v15  ;;  %v5506_v60 = vmax.f32 %v12491_v31, %v5011_v50  ;;  %v12499_v38 = vld [vmem:[#allocation148_spill] sm:$0xff]  ;;  %v12502_v50 = vld [vmem:[#allocation151_spill] sm:$0xff] }
 0x2b7   :  { %6230 = vst [vmem:[%s12113_s3 + $0x2c8] sm:$0xff] %v6086_v0  ;;  %v5944_v11 = vmul.f32 0.1, %v5800_v59  ;;  %v5651_v53 = vmax.f32 %v5363_v39, %v5507_v49  ;;  %v7808_v10 = vpop.f32.mrb[238].mxu0 }
 0x2b8   :  { %6229 = vst [vmem:[%s12113_s3 + $0x2c0] sm:$0xff] %v6085_v51  ;;  %v5943_v54 = vmul.f32 0.1, %v5799_v52  ;;  %v5650_v55 = vmax.f32 %v5362_v26, %v5506_v60  ;;  %v8240_v56 = vpop.f32.mrb[238].mxu1  ;;  %v5365_v24 = vmax.f32 %v12492_v23, %v7808_v10  ;;  %v3581_v1 = vpop.f32.mrb[239].mxu0 }
 0x2b9   :  { %v6088_v21 = vmax.f32 %v5800_v59, %v5944_v11  ;;  %v5802_v22 = vadd.f32 %v11480_v28, %v5651_v53  ;;  %v5509_v43 = vmax.f32 %v12493_v25, %v8240_v56  ;;  %v5021_v2 = vpop.f32.mrb[239].mxu1  ;;  %v5364_v6 = vmax.f32 %v12494_v5, %v3581_v1  ;;  %v12501_v59 = vld [vmem:[#allocation150_spill] sm:$0xff]  ;;  %v12504_v56 = vld [vmem:[#allocation153_spill] sm:$0xff] }
 0x2ba   :  { %v6087_v3 = vmax.f32 %v5799_v52, %v5943_v54  ;;  %v5801_v4 = vadd.f32 %v11480_v28, %v5650_v55  ;;  %v5508_v8 = vmax.f32 %v12495_v7, %v5021_v2  ;;  %v12503_v52 = vld [vmem:[#allocation152_spill] sm:$0xff]  ;;  %v12506_v2 = vld [vmem:[#allocation155_spill] sm:$0xff] }
 0x2bb   :  { %6232 = vst [vmem:[%s12113_s3 + $0x2d8] sm:$0xff] %v6088_v21  ;;  %v5946_v57 = vmul.f32 0.1, %v5802_v22  ;;  %v5653_v58 = vmax.f32 %v5365_v24, %v5509_v43  ;;  %v7811_v45 = vpop.f32.mrb[240].mxu0 }
 0x2bc   :  { %6231 = vst [vmem:[%s12113_s3 + $0x2d0] sm:$0xff] %v6087_v3  ;;  %v5945_v44 = vmul.f32 0.1, %v5801_v4  ;;  %v5652_v12 = vmax.f32 %v5364_v6, %v5508_v8  ;;  %v8243_v46 = vpop.f32.mrb[240].mxu1  ;;  %v5367_v37 = vmax.f32 %v12496_v27, %v7811_v45  ;;  %v3591_v17 = vpop.f32.mrb[241].mxu0 }
 0x2bd   :  { %v6090_v47 = vmax.f32 %v5802_v22, %v5946_v57  ;;  %v5804_v48 = vadd.f32 %v11480_v28, %v5653_v58  ;;  %v5511_v34 = vmax.f32 %v12497_v33, %v8243_v46  ;;  %v5031_v18 = vpop.f32.mrb[241].mxu1  ;;  %v5366_v36 = vmax.f32 %v12498_v35, %v3591_v17  ;;  %v12505_v22 = vld [vmem:[#allocation154_spill] sm:$0xff]  ;;  %v12508_v46 = vld [vmem:[#allocation157_spill] sm:$0xff] }
 0x2be   :  { %v6089_v19 = vmax.f32 %v5801_v4, %v5945_v44  ;;  %v5803_v20 = vadd.f32 %v11480_v28, %v5652_v12  ;;  %v5510_v9 = vmax.f32 %v12499_v38, %v5031_v18  ;;  %v12507_v4 = vld [vmem:[#allocation156_spill] sm:$0xff]  ;;  %v12510_v18 = vld [vmem:[#allocation159_spill] sm:$0xff] }
 0x2bf   :  { %6234 = vst [vmem:[%s12113_s3 + $0x2e8] sm:$0xff] %v6090_v47  ;;  %v5948_v29 = vmul.f32 0.1, %v5804_v48  ;;  %v5655_v30 = vmax.f32 %v5367_v37, %v5511_v34  ;;  %v7814_v13 = vpop.f32.mrb[242].mxu0 }
 0x2c0   :  { %6233 = vst [vmem:[%s12113_s3 + $0x2e0] sm:$0xff] %v6089_v19  ;;  %v5947_v61 = vmul.f32 0.1, %v5803_v20  ;;  %v5654_v62 = vmax.f32 %v5366_v36, %v5510_v9  ;;  %v8246_v14 = vpop.f32.mrb[242].mxu1  ;;  %v5369_v0 = vmax.f32 %v12500_v63, %v7814_v13  ;;  %v3601_v39 = vpop.f32.mrb[243].mxu0 }
 0x2c1   :  { %v6092_v15 = vmax.f32 %v5804_v48, %v5948_v29  ;;  %v5806_v16 = vadd.f32 %v11480_v28, %v5655_v30  ;;  %v5513_v32 = vmax.f32 %v12501_v59, %v8246_v14  ;;  %v5041_v40 = vpop.f32.mrb[243].mxu1  ;;  %v5368_v51 = vmax.f32 %v12502_v50, %v3601_v39  ;;  %v12509_v48 = vld [vmem:[#allocation158_spill] sm:$0xff]  ;;  %v12512_v14 = vld [vmem:[#allocation161_spill] sm:$0xff] }
 0x2c2   :  { %v6091_v49 = vmax.f32 %v5803_v20, %v5947_v61  ;;  %v5805_v41 = vadd.f32 %v11480_v28, %v5654_v62  ;;  %v5512_v42 = vmax.f32 %v12503_v52, %v5041_v40  ;;  %v11830_v28 = vld [vmem:[%s12112_s2] ss:$0 sm:$0xff]  ;;  %v12511_v20 = vld [vmem:[#allocation160_spill] sm:$0xff]  ;;  %v12514_v40 = vld [vmem:[#allocation163_spill] sm:$0xff] }
 0x2c3   :  { %6236 = vst [vmem:[%s12113_s3 + $0x2f8] sm:$0xff] %v6092_v15  ;;  %v5950_v26 = vmul.f32 0.1, %v5806_v16  ;;  %v5657_v31 = vmax.f32 %v5369_v0, %v5513_v32  ;;  %v7817_v53 = vpop.f32.mrb[244].mxu0 }
 0x2c4   :  { %6235 = vst [vmem:[%s12113_s3 + $0x2f0] sm:$0xff] %v6091_v49  ;;  %v5949_v60 = vmul.f32 0.1, %v5805_v41  ;;  %v5656_v11 = vmax.f32 %v5368_v51, %v5512_v42  ;;  %v8249_v54 = vpop.f32.mrb[244].mxu1  ;;  %v5371_v21 = vmax.f32 %v12504_v56, %v7817_v53  ;;  %v3611_v24 = vpop.f32.mrb[245].mxu0 }
 0x2c5   :  { %v6094_v55 = vmax.f32 %v5806_v16, %v5950_v26  ;;  %v5808_v10 = vadd.f32 %v11830_v28, %v5657_v31  ;;  %v5515_v23 = vmax.f32 %v12505_v22, %v8249_v54  ;;  %v5051_v25 = vpop.f32.mrb[245].mxu1  ;;  %v5370_v3 = vmax.f32 %v12506_v2, %v3611_v24  ;;  %v12513_v16 = vld [vmem:[#allocation162_spill] sm:$0xff]  ;;  %v12516_v54 = vld [vmem:[#allocation165_spill] sm:$0xff] }
 0x2c6   :  { %v6093_v43 = vmax.f32 %v5805_v41, %v5949_v60  ;;  %v5807_v1 = vadd.f32 %v11830_v28, %v5656_v11  ;;  %v5514_v5 = vmax.f32 %v12507_v4, %v5051_v25  ;;  %v12515_v41 = vld [vmem:[#allocation164_spill] sm:$0xff]  ;;  %v12518_v25 = vld [vmem:[#allocation167_spill] sm:$0xff] }
 0x2c7   :  { %6238 = vst [vmem:[%s12113_s3 + $0x308] sm:$0xff] %v6094_v55  ;;  %v5952_v6 = vmul.f32 0.1, %v5808_v10  ;;  %v5659_v7 = vmax.f32 %v5371_v21, %v5515_v23  ;;  %v7820_v58 = vpop.f32.mrb[246].mxu0 }
 0x2c8   :  { %6237 = vst [vmem:[%s12113_s3 + $0x300] sm:$0xff] %v6093_v43  ;;  %v5951_v8 = vmul.f32 0.1, %v5807_v1  ;;  %v5658_v57 = vmax.f32 %v5370_v3, %v5514_v5  ;;  %v8252_v44 = vpop.f32.mrb[246].mxu1  ;;  %v5373_v47 = vmax.f32 %v12508_v46, %v7820_v58  ;;  %v3621_v37 = vpop.f32.mrb[247].mxu0 }
 0x2c9   :  { %v6096_v12 = vmax.f32 %v5808_v10, %v5952_v6  ;;  %v5810_v45 = vadd.f32 %v11830_v28, %v5659_v7  ;;  %v5517_v27 = vmax.f32 %v12509_v48, %v8252_v44  ;;  %v5061_v33 = vpop.f32.mrb[247].mxu1  ;;  %v5372_v19 = vmax.f32 %v12510_v18, %v3621_v37  ;;  %v12517_v10 = vld [vmem:[#allocation166_spill] sm:$0xff]  ;;  %v12520_v44 = vld [vmem:[#allocation169_spill] sm:$0xff] }
 0x2ca   :  { %v6095_v34 = vmax.f32 %v5807_v1, %v5951_v8  ;;  %v5809_v17 = vadd.f32 %v11830_v28, %v5658_v57  ;;  %v5516_v35 = vmax.f32 %v12511_v20, %v5061_v33  ;;  %v12519_v1 = vld [vmem:[#allocation168_spill] sm:$0xff]  ;;  %v12522_v33 = vld [vmem:[#allocation171_spill] sm:$0xff] }
 0x2cb   :  { %6240 = vst [vmem:[%s12113_s3 + $0x318] sm:$0xff] %v6096_v12  ;;  %v5954_v36 = vmul.f32 0.1, %v5810_v45  ;;  %v5661_v38 = vmax.f32 %v5373_v47, %v5517_v27  ;;  %v7823_v30 = vpop.f32.mrb[248].mxu0 }
 0x2cc   :  { %6239 = vst [vmem:[%s12113_s3 + $0x310] sm:$0xff] %v6095_v34  ;;  %v5953_v9 = vmul.f32 0.1, %v5809_v17  ;;  %v5660_v29 = vmax.f32 %v5372_v19, %v5516_v35  ;;  %v8255_v61 = vpop.f32.mrb[248].mxu1  ;;  %v5375_v15 = vmax.f32 %v12512_v14, %v7823_v30  ;;  %v3631_v0 = vpop.f32.mrb[249].mxu0  ;;  %v12524_v30 = vld [vmem:[#allocation173_spill] sm:$0xff] }
 0x2cd   :  { %v6098_v62 = vmax.f32 %v5810_v45, %v5954_v36  ;;  %v5812_v13 = vadd.f32 %v11830_v28, %v5661_v38  ;;  %v5519_v63 = vmax.f32 %v12513_v16, %v8255_v61  ;;  %v5071_v59 = vpop.f32.mrb[249].mxu1  ;;  %v5374_v49 = vmax.f32 %v12514_v40, %v3631_v0  ;;  %v12521_v45 = vld [vmem:[#allocation170_spill] sm:$0xff]  ;;  %v12526_v0 = vld [vmem:[#allocation175_spill] sm:$0xff]  ;;  %v12527_v40 = vld [vmem:[#allocation176_spill] sm:$0xff] }
 0x2ce   :  { %v6097_v32 = vmax.f32 %v5809_v17, %v5953_v9  ;;  %v5811_v39 = vadd.f32 %v11830_v28, %v5660_v29  ;;  %v5518_v50 = vmax.f32 %v12515_v41, %v5071_v59  ;;  %v12523_v17 = vld [vmem:[#allocation172_spill] sm:$0xff]  ;;  %v12525_v16 = vld [vmem:[#allocation174_spill] sm:$0xff] }
 0x2cf   :  { %6242 = vst [vmem:[%s12113_s3 + $0x328] sm:$0xff] %v6098_v62  ;;  %v5956_v51 = vmul.f32 0.1, %v5812_v13  ;;  %v5663_v52 = vmax.f32 %v5375_v15, %v5519_v63  ;;  %v7826_v31 = vpop.f32.mrb[250].mxu0 }
 0x2d0   :  { %6241 = vst [vmem:[%s12113_s3 + $0x320] sm:$0xff] %v6097_v32  ;;  %v5955_v42 = vmul.f32 0.1, %v5811_v39  ;;  %v5662_v26 = vmax.f32 %v5374_v49, %v5518_v50  ;;  %v8258_v60 = vpop.f32.mrb[250].mxu1  ;;  %v5377_v55 = vmax.f32 %v12516_v54, %v7826_v31  ;;  %v3641_v21 = vpop.f32.mrb[251].mxu0 }
 0x2d1   :  { %v6100_v11 = vmax.f32 %v5812_v13, %v5956_v51  ;;  %v5814_v53 = vadd.f32 %v11830_v28, %v5663_v52  ;;  %v5521_v56 = vmax.f32 %v12517_v10, %v8258_v60  ;;  %v5081_v22 = vpop.f32.mrb[251].mxu1  ;;  %v5376_v43 = vmax.f32 %v12518_v25, %v3641_v21 }
 0x2d2   :  { %v6099_v23 = vmax.f32 %v5811_v39, %v5955_v42  ;;  %v5813_v24 = vadd.f32 %v11830_v28, %v5662_v26  ;;  %v5520_v2 = vmax.f32 %v12519_v1, %v5081_v22  ;;  %v12528_v26 = vld [vmem:[#allocation177_spill] sm:$0xff] }
 0x2d3   :  { %6244 = vst [vmem:[%s12113_s3 + $0x338] sm:$0xff] %v6100_v11  ;;  %v5958_v3 = vmul.f32 0.1, %v5814_v53  ;;  %v5665_v4 = vmax.f32 %v5377_v55, %v5521_v56  ;;  %v7829_v7 = vpop.f32.mrb[252].mxu0  ;;  %v12529_v55 = vld [vmem:[#allocation178_spill] sm:$0xff]  ;;  %v12530_v56 = vld [vmem:[#allocation179_spill] sm:$0xff] }
 0x2d4   :  { %6243 = vst [vmem:[%s12113_s3 + $0x330] sm:$0xff] %v6099_v23  ;;  %v5957_v5 = vmul.f32 0.1, %v5813_v24  ;;  %v5664_v6 = vmax.f32 %v5376_v43, %v5520_v2  ;;  %v8261_v8 = vpop.f32.mrb[252].mxu1  ;;  %v5379_v12 = vmax.f32 %v12520_v44, %v7829_v7  ;;  %v3651_v47 = vpop.f32.mrb[253].mxu0  ;;  %v12533_v44 = vld [vmem:[#allocation182_spill] sm:$0xff] }
 0x2d5   :  { %v6102_v57 = vmax.f32 %v5814_v53, %v5958_v3  ;;  %v5816_v58 = vadd.f32 %v11830_v28, %v5665_v4  ;;  %v5523_v46 = vmax.f32 %v12521_v45, %v8261_v8  ;;  %v5091_v48 = vpop.f32.mrb[253].mxu1  ;;  %v5378_v34 = vmax.f32 %v12522_v33, %v3651_v47  ;;  %v12534_v45 = vld [vmem:[#allocation183_spill] sm:$0xff] }
 0x2d6   :  { %v6101_v27 = vmax.f32 %v5813_v24, %v5957_v5  ;;  %v5815_v37 = vadd.f32 %v11830_v28, %v5664_v6  ;;  %v5522_v18 = vmax.f32 %v12523_v17, %v5091_v48  ;;  %v12531_v24 = vld [vmem:[#allocation180_spill] sm:$0xff]  ;;  %v12532_v5 = vld [vmem:[#allocation181_spill] sm:$0xff] }
 0x2d7   :  { %6246 = vst [vmem:[%s12113_s3 + $0x348] sm:$0xff] %v6102_v57  ;;  %v5960_v19 = vmul.f32 0.1, %v5816_v58  ;;  %v5667_v20 = vmax.f32 %v5379_v12, %v5523_v46  ;;  %v7832_v38 = vpop.f32.mrb[254].mxu0 }
 0x2d8   :  { %6245 = vst [vmem:[%s12113_s3 + $0x340] sm:$0xff] %v6101_v27  ;;  %v5959_v35 = vmul.f32 0.1, %v5815_v37  ;;  %v5666_v36 = vmax.f32 %v5378_v34, %v5522_v18  ;;  %v5381_v61 = vmax.f32 %v12524_v30, %v7832_v38  ;;  %v8264_v62 = vpop.f32.mrb[254].mxu1  ;;  %v3661_v13 = vpop.f32.mrb[255].mxu0 }
 0x2d9   :  { %v6104_v9 = vmax.f32 %v5816_v58, %v5960_v19  ;;  %v5818_v29 = vadd.f32 %v11830_v28, %v5667_v20  ;;  %v5525_v63 = vmax.f32 %v12525_v16, %v8264_v62  ;;  %v5380_v59 = vmax.f32 %v12526_v0, %v3661_v13  ;;  %v5101_v32 = vpop.f32.mrb[255].mxu1  ;;  %v12538_v13 = vld [vmem:[#allocation187_spill] sm:$0xff]  ;;  %v12539_v0 = vld [vmem:[#allocation188_spill] sm:$0xff] }
 0x2da   :  { %v6103_v14 = vmax.f32 %v5815_v37, %v5959_v35  ;;  %v5817_v15 = vadd.f32 %v11830_v28, %v5666_v36  ;;  %v5524_v49 = vmax.f32 %v12527_v40, %v5101_v32  ;;  %v12535_v37 = vld [vmem:[#allocation184_spill] sm:$0xff]  ;;  %v12536_v35 = vld [vmem:[#allocation185_spill] sm:$0xff] }
 0x2db   :  { %6248 = vst [vmem:[%s12113_s3 + $0x358] sm:$0xff] %v6104_v9  ;;  %v5962_v39 = vmul.f32 0.1, %v5818_v29  ;;  %v5669_v50 = vmax.f32 %v5381_v61, %v5525_v63  ;;  %v7835_v51 = vpop.f32.mrb[0].mxu0  ;;  %v12537_v61 = vld [vmem:[#allocation186_spill] sm:$0xff] }
 0x2dc   :  { %6247 = vst [vmem:[%s12113_s3 + $0x350] sm:$0xff] %v6103_v14  ;;  %v5961_v41 = vmul.f32 0.1, %v5817_v15  ;;  %v5668_v42 = vmax.f32 %v5380_v59, %v5524_v49  ;;  %v5383_v31 = vmax.f32 %v12528_v26, %v7835_v51  ;;  %v8267_v60 = vpop.f32.mrb[0].mxu1  ;;  %v3671_v11 = vpop.f32.mrb[1].mxu0 }
 0x2dd   :  { %v6106_v52 = vmax.f32 %v5818_v29, %v5962_v39  ;;  %v5820_v54 = vadd.f32 %v11830_v28, %v5669_v50  ;;  %v5527_v10 = vmax.f32 %v12529_v55, %v8267_v60  ;;  %v5382_v21 = vmax.f32 %v12530_v56, %v3671_v11  ;;  %v5111_v22 = vpop.f32.mrb[1].mxu1  ;;  %v12540_v50 = vld [vmem:[#allocation189_spill] sm:$0xff]  ;;  %v12541_v60 = vld [vmem:[#allocation190_spill] sm:$0xff] }
 0x2de   :  { %v6105_v53 = vmax.f32 %v5817_v15, %v5961_v41  ;;  %v5819_v23 = vadd.f32 %v11830_v28, %v5668_v42  ;;  %v5526_v25 = vmax.f32 %v12531_v24, %v5111_v22 }
 0x2df   :  { %6250 = vst [vmem:[%s12113_s3 + $0x368] sm:$0xff] %v6106_v52  ;;  %v5964_v43 = vmul.f32 0.1, %v5820_v54  ;;  %v5671_v1 = vmax.f32 %v5383_v31, %v5527_v10  ;;  %v7838_v2 = vpop.f32.mrb[2].mxu0 }
 0x2e0   :  { %6249 = vst [vmem:[%s12113_s3 + $0x360] sm:$0xff] %v6105_v53  ;;  %v5963_v3 = vmul.f32 0.1, %v5819_v23  ;;  %v5670_v4 = vmax.f32 %v5382_v21, %v5526_v25  ;;  %v5385_v6 = vmax.f32 %v12532_v5, %v7838_v2  ;;  %v8270_v7 = vpop.f32.mrb[2].mxu1  ;;  %v3681_v8 = vpop.f32.mrb[3].mxu0  ;;  %v12542_v53 = vld [vmem:[#allocation191_spill] sm:$0xff] }
 0x2e1   :  { %v6108_v57 = vmax.f32 %v5820_v54, %v5964_v43  ;;  %v5822_v58 = vadd.f32 %v11830_v28, %v5671_v1  ;;  %v5529_v12 = vmax.f32 %v12533_v44, %v8270_v7  ;;  %v5384_v46 = vmax.f32 %v12534_v45, %v3681_v8  ;;  %v5121_v47 = vpop.f32.mrb[3].mxu1  ;;  %v12543_v21 = vld [vmem:[#allocation192_spill] sm:$0xff]  ;;  %v12544_v2 = vld [vmem:[#allocation193_spill] sm:$0xff]  ;;  %v12545_v8 = vld [vmem:[#allocation194_spill] sm:$0xff] }
 0x2e2   :  { %v6107_v48 = vmax.f32 %v5819_v23, %v5963_v3  ;;  %v5821_v27 = vadd.f32 %v11830_v28, %v5670_v4  ;;  %v5528_v33 = vmax.f32 %v12535_v37, %v5121_v47  ;;  %v12547_v47 = vld [vmem:[#allocation196_spill] sm:$0xff] }
 0x2e3   :  { %6252 = vst [vmem:[%s12113_s3 + $0x378] sm:$0xff] %v6108_v57  ;;  %v5966_v34 = vmul.f32 0.1, %v5822_v58  ;;  %v5673_v17 = vmax.f32 %v5385_v6, %v5529_v12  ;;  %v7841_v18 = vpop.f32.mrb[4].mxu0 }
 0x2e4   :  { %6251 = vst [vmem:[%s12113_s3 + $0x370] sm:$0xff] %v6107_v48  ;;  %v5965_v19 = vmul.f32 0.1, %v5821_v27  ;;  %v5672_v20 = vmax.f32 %v5384_v46, %v5528_v33  ;;  %v5387_v36 = vmax.f32 %v12536_v35, %v7841_v18  ;;  %v8273_v38 = vpop.f32.mrb[4].mxu1  ;;  %v3691_v9 = vpop.f32.mrb[5].mxu0  ;;  %v12548_v18 = vld [vmem:[#allocation197_spill] sm:$0xff] }
 0x2e5   :  { %v6110_v29 = vmax.f32 %v5822_v58, %v5966_v34  ;;  %v5824_v30 = vadd.f32 %v11830_v28, %v5673_v17  ;;  %v5531_v62 = vmax.f32 %v12537_v61, %v8273_v38  ;;  %v5386_v14 = vmax.f32 %v12538_v13, %v3691_v9  ;;  %v5131_v15 = vpop.f32.mrb[5].mxu1  ;;  %v12546_v58 = vld [vmem:[#allocation195_spill] sm:$0xff]  ;;  %v12549_v9 = vld [vmem:[#allocation198_spill] sm:$0xff] }
 0x2e6   :  { %v6109_v16 = vmax.f32 %v5821_v27, %v5965_v19  ;;  %v5823_v63 = vadd.f32 %v11830_v28, %v5672_v20  ;;  %v5530_v59 = vmax.f32 %v12539_v0, %v5131_v15  ;;  %v12551_v15 = vld [vmem:[#allocation200_spill] sm:$0xff] }
 0x2e7   :  { %6254 = vst [vmem:[%s12113_s3 + $0x388] sm:$0xff] %v6110_v29  ;;  %v5968_v32 = vmul.f32 0.1, %v5824_v30  ;;  %v5675_v39 = vmax.f32 %v5387_v36, %v5531_v62  ;;  %v7844_v40 = vpop.f32.mrb[6].mxu0 }
 0x2e8   :  { %6253 = vst [vmem:[%s12113_s3 + $0x380] sm:$0xff] %v6109_v16  ;;  %v5967_v49 = vmul.f32 0.1, %v5823_v63  ;;  %v5674_v41 = vmax.f32 %v5386_v14, %v5530_v59  ;;  %v5389_v51 = vmax.f32 %v12540_v50, %v7844_v40  ;;  %v8276_v52 = vpop.f32.mrb[6].mxu1  ;;  %v3701_v42 = vpop.f32.mrb[7].mxu0  ;;  %v12552_v40 = vld [vmem:[#allocation201_spill] sm:$0xff] }
 0x2e9   :  { %v6112_v26 = vmax.f32 %v5824_v30, %v5968_v32  ;;  %v5826_v31 = vadd.f32 %v11830_v28, %v5675_v39  ;;  %v5533_v11 = vmax.f32 %v12541_v60, %v8276_v52  ;;  %v5388_v54 = vmax.f32 %v12542_v53, %v3701_v42  ;;  %v5141_v55 = vpop.f32.mrb[7].mxu1  ;;  %v12550_v30 = vld [vmem:[#allocation199_spill] sm:$0xff]  ;;  %v12553_v42 = vld [vmem:[#allocation202_spill] sm:$0xff] }
 0x2ea   :  { %v6111_v10 = vmax.f32 %v5823_v63, %v5967_v49  ;;  %v5825_v56 = vadd.f32 %v11830_v28, %v5674_v41  ;;  %v5532_v22 = vmax.f32 %v12543_v21, %v5141_v55  ;;  %v12555_v55 = vld [vmem:[#allocation204_spill] sm:$0xff] }
 0x2eb   :  { %6256 = vst [vmem:[%s12113_s3 + $0x398] sm:$0xff] %v6112_v26  ;;  %v5970_v23 = vmul.f32 0.1, %v5826_v31  ;;  %v5677_v24 = vmax.f32 %v5389_v51, %v5533_v11  ;;  %v7847_v25 = vpop.f32.mrb[8].mxu0 }
 0x2ec   :  { %6255 = vst [vmem:[%s12113_s3 + $0x390] sm:$0xff] %v6111_v10  ;;  %v5969_v43 = vmul.f32 0.1, %v5825_v56  ;;  %v5676_v1 = vmax.f32 %v5388_v54, %v5532_v22  ;;  %v5391_v3 = vmax.f32 %v12544_v2, %v7847_v25  ;;  %v8279_v4 = vpop.f32.mrb[8].mxu1  ;;  %v3711_v5 = vpop.f32.mrb[9].mxu0  ;;  %v12556_v25 = vld [vmem:[#allocation205_spill] sm:$0xff] }
 0x2ed   :  { %v6114_v6 = vmax.f32 %v5826_v31, %v5970_v23  ;;  %v5828_v7 = vadd.f32 %v11830_v28, %v5677_v24  ;;  %v5535_v57 = vmax.f32 %v12545_v8, %v8279_v4  ;;  %v5390_v44 = vmax.f32 %v12546_v58, %v3711_v5  ;;  %v5151_v12 = vpop.f32.mrb[9].mxu1  ;;  %v12554_v31 = vld [vmem:[#allocation203_spill] sm:$0xff]  ;;  %v12557_v5 = vld [vmem:[#allocation206_spill] sm:$0xff] }
 0x2ee   :  { %v6113_v45 = vmax.f32 %v5825_v56, %v5969_v43  ;;  %v5827_v46 = vadd.f32 %v11830_v28, %v5676_v1  ;;  %v5534_v48 = vmax.f32 %v12547_v47, %v5151_v12  ;;  %v12559_v12 = vld [vmem:[#allocation208_spill] sm:$0xff] }
 0x2ef   :  { %6258 = vst [vmem:[%s12113_s3 + $0x3a8] sm:$0xff] %v6114_v6  ;;  %v5972_v27 = vmul.f32 0.1, %v5828_v7  ;;  %v5679_v37 = vmax.f32 %v5391_v3, %v5535_v57  ;;  %v7850_v33 = vpop.f32.mrb[10].mxu0 }
 0x2f0   :  { %6257 = vst [vmem:[%s12113_s3 + $0x3a0] sm:$0xff] %v6113_v45  ;;  %v5971_v34 = vmul.f32 0.1, %v5827_v46  ;;  %v5678_v17 = vmax.f32 %v5390_v44, %v5534_v48  ;;  %v5393_v19 = vmax.f32 %v12548_v18, %v7850_v33  ;;  %v8282_v20 = vpop.f32.mrb[10].mxu1  ;;  %v3721_v35 = vpop.f32.mrb[11].mxu0  ;;  %v12560_v33 = vld [vmem:[#allocation209_spill] sm:$0xff] }
 0x2f1   :  { %v6116_v36 = vmax.f32 %v5828_v7, %v5972_v27  ;;  %v5830_v38 = vadd.f32 %v11830_v28, %v5679_v37  ;;  %v5537_v29 = vmax.f32 %v12549_v9, %v8282_v20  ;;  %v5392_v61 = vmax.f32 %v12550_v30, %v3721_v35  ;;  %v5161_v62 = vpop.f32.mrb[11].mxu1  ;;  %v12558_v7 = vld [vmem:[#allocation207_spill] sm:$0xff]  ;;  %v12561_v35 = vld [vmem:[#allocation210_spill] sm:$0xff] }
 0x2f2   :  { %v6115_v13 = vmax.f32 %v5827_v46, %v5971_v34  ;;  %v5829_v14 = vadd.f32 %v11830_v28, %v5678_v17  ;;  %v5536_v16 = vmax.f32 %v12551_v15, %v5161_v62  ;;  %v12563_v62 = vld [vmem:[#allocation212_spill] sm:$0xff] }
 0x2f3   :  { %6260 = vst [vmem:[%s12113_s3 + $0x3b8] sm:$0xff] %v6116_v36  ;;  %v5974_v63 = vmul.f32 0.1, %v5830_v38  ;;  %v5681_v0 = vmax.f32 %v5393_v19, %v5537_v29  ;;  %v7853_v59 = vpop.f32.mrb[12].mxu0 }
 0x2f4   :  { %6259 = vst [vmem:[%s12113_s3 + $0x3b0] sm:$0xff] %v6115_v13  ;;  %v5973_v32 = vmul.f32 0.1, %v5829_v14  ;;  %v5680_v39 = vmax.f32 %v5392_v61, %v5536_v16  ;;  %v5395_v49 = vmax.f32 %v12552_v40, %v7853_v59  ;;  %v8285_v41 = vpop.f32.mrb[12].mxu1  ;;  %v3731_v50 = vpop.f32.mrb[13].mxu0  ;;  %v12564_v59 = vld [vmem:[#allocation213_spill] sm:$0xff] }
 0x2f5   :  { %v6118_v51 = vmax.f32 %v5830_v38, %v5974_v63  ;;  %v5832_v52 = vadd.f32 %v11830_v28, %v5681_v0  ;;  %v5539_v26 = vmax.f32 %v12553_v42, %v8285_v41  ;;  %v5394_v60 = vmax.f32 %v12554_v31, %v3731_v50  ;;  %v5171_v11 = vpop.f32.mrb[13].mxu1  ;;  %v12562_v38 = vld [vmem:[#allocation211_spill] sm:$0xff]  ;;  %v12565_v50 = vld [vmem:[#allocation214_spill] sm:$0xff] }
 0x2f6   :  { %v6117_v53 = vmax.f32 %v5829_v14, %v5973_v32  ;;  %v5831_v54 = vadd.f32 %v11830_v28, %v5680_v39  ;;  %v5538_v10 = vmax.f32 %v12555_v55, %v5171_v11  ;;  %v12567_v11 = vld [vmem:[#allocation216_spill] sm:$0xff] }
 0x2f7   :  { %6262 = vst [vmem:[%s12113_s3 + $0x3c8] sm:$0xff] %v6118_v51  ;;  %v5976_v56 = vmul.f32 0.1, %v5832_v52  ;;  %v5683_v21 = vmax.f32 %v5395_v49, %v5539_v26  ;;  %v7856_v22 = vpop.f32.mrb[14].mxu0 }
 0x2f8   :  { %6261 = vst [vmem:[%s12113_s3 + $0x3c0] sm:$0xff] %v6117_v53  ;;  %v5975_v23 = vmul.f32 0.1, %v5831_v54  ;;  %v5682_v24 = vmax.f32 %v5394_v60, %v5538_v10  ;;  %v5397_v43 = vmax.f32 %v12556_v25, %v7856_v22  ;;  %v8288_v1 = vpop.f32.mrb[14].mxu1  ;;  %v3741_v2 = vpop.f32.mrb[15].mxu0  ;;  %v12568_v22 = vld [vmem:[#allocation217_spill] sm:$0xff] }
 0x2f9   :  { %v6120_v3 = vmax.f32 %v5832_v52, %v5976_v56  ;;  %v5834_v4 = vadd.f32 %v11830_v28, %v5683_v21  ;;  %v5541_v6 = vmax.f32 %v12557_v5, %v8288_v1  ;;  %v5396_v8 = vmax.f32 %v12558_v7, %v3741_v2  ;;  %v5181_v57 = vpop.f32.mrb[15].mxu1  ;;  %v12566_v52 = vld [vmem:[#allocation215_spill] sm:$0xff]  ;;  %v12569_v2 = vld [vmem:[#allocation218_spill] sm:$0xff] }
 0x2fa   :  { %v6119_v58 = vmax.f32 %v5831_v54, %v5975_v23  ;;  %v5833_v44 = vadd.f32 %v11830_v28, %v5682_v24  ;;  %v5540_v45 = vmax.f32 %v12559_v12, %v5181_v57  ;;  %v12571_v57 = vld [vmem:[#allocation220_spill] sm:$0xff] }
 0x2fb   :  { %6264 = vst [vmem:[%s12113_s3 + $0x3d8] sm:$0xff] %v6120_v3  ;;  %v5978_v46 = vmul.f32 0.1, %v5834_v4  ;;  %v5685_v47 = vmax.f32 %v5397_v43, %v5541_v6  ;;  %v7859_v48 = vpop.f32.mrb[16].mxu0 }
 0x2fc   :  { %6263 = vst [vmem:[%s12113_s3 + $0x3d0] sm:$0xff] %v6119_v58  ;;  %v5977_v27 = vmul.f32 0.1, %v5833_v44  ;;  %v5684_v37 = vmax.f32 %v5396_v8, %v5540_v45  ;;  %v5399_v34 = vmax.f32 %v12560_v33, %v7859_v48  ;;  %v8291_v17 = vpop.f32.mrb[16].mxu1  ;;  %v3751_v18 = vpop.f32.mrb[17].mxu0  ;;  %v12572_v48 = vld [vmem:[#allocation221_spill] sm:$0xff] }
 0x2fd   :  { %v6122_v19 = vmax.f32 %v5834_v4, %v5978_v46  ;;  %v5836_v20 = vadd.f32 %v11830_v28, %v5685_v47  ;;  %v5543_v36 = vmax.f32 %v12561_v35, %v8291_v17  ;;  %v5398_v9 = vmax.f32 %v12562_v38, %v3751_v18  ;;  %v5191_v29 = vpop.f32.mrb[17].mxu1  ;;  %v12570_v4 = vld [vmem:[#allocation219_spill] sm:$0xff]  ;;  %v12573_v18 = vld [vmem:[#allocation222_spill] sm:$0xff] }
 0x2fe   :  { %v6121_v30 = vmax.f32 %v5833_v44, %v5977_v27  ;;  %v5835_v61 = vadd.f32 %v11830_v28, %v5684_v37  ;;  %v5542_v13 = vmax.f32 %v12563_v62, %v5191_v29  ;;  %v12575_v29 = vld [vmem:[#allocation224_spill] sm:$0xff] }
 0x2ff   :  { %6266 = vst [vmem:[%s12113_s3 + $0x3e8] sm:$0xff] %v6122_v19  ;;  %v5980_v14 = vmul.f32 0.1, %v5836_v20  ;;  %v5687_v15 = vmax.f32 %v5399_v34, %v5543_v36  ;;  %v7862_v16 = vpop.f32.mrb[18].mxu0 }
 0x300   :  { %6265 = vst [vmem:[%s12113_s3 + $0x3e0] sm:$0xff] %v6121_v30  ;;  %v5979_v63 = vmul.f32 0.1, %v5835_v61  ;;  %v5686_v0 = vmax.f32 %v5398_v9, %v5542_v13  ;;  %v5401_v32 = vmax.f32 %v12564_v59, %v7862_v16  ;;  %v8294_v39 = vpop.f32.mrb[18].mxu1  ;;  %v3761_v40 = vpop.f32.mrb[19].mxu0  ;;  %v12576_v16 = vld [vmem:[#allocation225_spill] sm:$0xff] }
 0x301   :  { %v6124_v49 = vmax.f32 %v5836_v20, %v5980_v14  ;;  %v5838_v41 = vadd.f32 %v11830_v28, %v5687_v15  ;;  %v5545_v51 = vmax.f32 %v12565_v50, %v8294_v39  ;;  %v5400_v42 = vmax.f32 %v12566_v52, %v3761_v40  ;;  %v5201_v26 = vpop.f32.mrb[19].mxu1  ;;  %v12574_v20 = vld [vmem:[#allocation223_spill] sm:$0xff]  ;;  %v12577_v40 = vld [vmem:[#allocation226_spill] sm:$0xff] }
 0x302   :  { %v6123_v31 = vmax.f32 %v5835_v61, %v5979_v63  ;;  %v5837_v60 = vadd.f32 %v11830_v28, %v5686_v0  ;;  %v5544_v53 = vmax.f32 %v12567_v11, %v5201_v26  ;;  %v12579_v26 = vld [vmem:[#allocation228_spill] sm:$0xff] }
 0x303   :  { %6268 = vst [vmem:[%s12113_s3 + $0x3f8] sm:$0xff] %v6124_v49  ;;  %v5982_v54 = vmul.f32 0.1, %v5838_v41  ;;  %v5689_v55 = vmax.f32 %v5401_v32, %v5545_v51  ;;  %v7865_v10 = vpop.f32.mrb[20].mxu0 }
 0x304   :  { %6267 = vst [vmem:[%s12113_s3 + $0x3f0] sm:$0xff] %v6123_v31  ;;  %v5981_v56 = vmul.f32 0.1, %v5837_v60  ;;  %v5688_v21 = vmax.f32 %v5400_v42, %v5544_v53  ;;  %v5403_v23 = vmax.f32 %v12568_v22, %v7865_v10  ;;  %v8297_v24 = vpop.f32.mrb[20].mxu1  ;;  %v3771_v25 = vpop.f32.mrb[21].mxu0  ;;  %v12580_v10 = vld [vmem:[#allocation229_spill] sm:$0xff] }
 0x305   :  { %v6126_v43 = vmax.f32 %v5838_v41, %v5982_v54  ;;  %v5840_v1 = vadd.f32 %v11830_v28, %v5689_v55  ;;  %v5547_v3 = vmax.f32 %v12569_v2, %v8297_v24  ;;  %v5402_v5 = vmax.f32 %v12570_v4, %v3771_v25  ;;  %v5211_v6 = vpop.f32.mrb[21].mxu1  ;;  %v12578_v41 = vld [vmem:[#allocation227_spill] sm:$0xff]  ;;  %v12581_v25 = vld [vmem:[#allocation230_spill] sm:$0xff] }
 0x306   :  { %v6125_v7 = vmax.f32 %v5837_v60, %v5981_v56  ;;  %v5839_v8 = vadd.f32 %v11830_v28, %v5688_v21  ;;  %v5546_v58 = vmax.f32 %v12571_v57, %v5211_v6  ;;  %v12583_v6 = vld [vmem:[#allocation232_spill] sm:$0xff] }
 0x307   :  { %6270 = vst [vmem:[%s12113_s3 + $0x408] sm:$0xff] %v6126_v43  ;;  %v5984_v44 = vmul.f32 0.1, %v5840_v1  ;;  %v5691_v12 = vmax.f32 %v5403_v23, %v5547_v3  ;;  %v7868_v45 = vpop.f32.mrb[22].mxu0 }
 0x308   :  { %6269 = vst [vmem:[%s12113_s3 + $0x400] sm:$0xff] %v6125_v7  ;;  %v5983_v46 = vmul.f32 0.1, %v5839_v8  ;;  %v5690_v47 = vmax.f32 %v5402_v5, %v5546_v58  ;;  %v5405_v27 = vmax.f32 %v12572_v48, %v7868_v45  ;;  %v8300_v37 = vpop.f32.mrb[22].mxu1  ;;  %v3781_v33 = vpop.f32.mrb[23].mxu0  ;;  %v12584_v45 = vld [vmem:[#allocation233_spill] sm:$0xff] }
 0x309   :  { %v6128_v34 = vmax.f32 %v5840_v1, %v5984_v44  ;;  %v5842_v17 = vadd.f32 %v11830_v28, %v5691_v12  ;;  %v5549_v19 = vmax.f32 %v12573_v18, %v8300_v37  ;;  %v5404_v35 = vmax.f32 %v12574_v20, %v3781_v33  ;;  %v5221_v36 = vpop.f32.mrb[23].mxu1  ;;  %v12582_v1 = vld [vmem:[#allocation231_spill] sm:$0xff]  ;;  %v12585_v33 = vld [vmem:[#allocation234_spill] sm:$0xff] }
 0x30a   :  { %v6127_v38 = vmax.f32 %v5839_v8, %v5983_v46  ;;  %v5841_v9 = vadd.f32 %v11830_v28, %v5690_v47  ;;  %v5548_v30 = vmax.f32 %v12575_v29, %v5221_v36  ;;  %v12587_v36 = vld [vmem:[#allocation236_spill] sm:$0xff] }
 0x30b   :  { %6272 = vst [vmem:[%s12113_s3 + $0x418] sm:$0xff] %v6128_v34  ;;  %v5986_v61 = vmul.f32 0.1, %v5842_v17  ;;  %v5693_v62 = vmax.f32 %v5405_v27, %v5549_v19  ;;  %v7871_v13 = vpop.f32.mrb[24].mxu0 }
 0x30c   :  { %6271 = vst [vmem:[%s12113_s3 + $0x410] sm:$0xff] %v6127_v38  ;;  %v5985_v14 = vmul.f32 0.1, %v5841_v9  ;;  %v5692_v15 = vmax.f32 %v5404_v35, %v5548_v30  ;;  %v5407_v63 = vmax.f32 %v12576_v16, %v7871_v13  ;;  %v8303_v0 = vpop.f32.mrb[24].mxu1  ;;  %v3791_v59 = vpop.f32.mrb[25].mxu0  ;;  %v12588_v13 = vld [vmem:[#allocation237_spill] sm:$0xff] }
 0x30d   :  { %v6130_v32 = vmax.f32 %v5842_v17, %v5986_v61  ;;  %v5844_v39 = vadd.f32 %v11830_v28, %v5693_v62  ;;  %v5551_v49 = vmax.f32 %v12577_v40, %v8303_v0  ;;  %v5406_v50 = vmax.f32 %v12578_v41, %v3791_v59  ;;  %v5231_v51 = vpop.f32.mrb[25].mxu1  ;;  %v12586_v17 = vld [vmem:[#allocation235_spill] sm:$0xff]  ;;  %v12589_v59 = vld [vmem:[#allocation238_spill] sm:$0xff] }
 0x30e   :  { %v6129_v52 = vmax.f32 %v5841_v9, %v5985_v14  ;;  %v5843_v42 = vadd.f32 %v11830_v28, %v5692_v15  ;;  %v5550_v31 = vmax.f32 %v12579_v26, %v5231_v51  ;;  %v12591_v51 = vld [vmem:[#allocation240_spill] sm:$0xff] }
 0x30f   :  { %6274 = vst [vmem:[%s12113_s3 + $0x428] sm:$0xff] %v6130_v32  ;;  %v5988_v60 = vmul.f32 0.1, %v5844_v39  ;;  %v5695_v11 = vmax.f32 %v5407_v63, %v5551_v49  ;;  %v7874_v53 = vpop.f32.mrb[26].mxu0 }
 0x310   :  { %6273 = vst [vmem:[%s12113_s3 + $0x420] sm:$0xff] %v6129_v52  ;;  %v5987_v54 = vmul.f32 0.1, %v5843_v42  ;;  %v5694_v55 = vmax.f32 %v5406_v50, %v5550_v31  ;;  %v5409_v56 = vmax.f32 %v12580_v10, %v7874_v53  ;;  %v8306_v21 = vpop.f32.mrb[26].mxu1  ;;  %v3801_v22 = vpop.f32.mrb[27].mxu0 }
 0x311   :  { %v6132_v23 = vmax.f32 %v5844_v39, %v5988_v60  ;;  %v5846_v24 = vadd.f32 %v11830_v28, %v5695_v11  ;;  %v5553_v43 = vmax.f32 %v12581_v25, %v8306_v21  ;;  %v5408_v2 = vmax.f32 %v12582_v1, %v3801_v22  ;;  %v5241_v3 = vpop.f32.mrb[27].mxu1  ;;  %v12590_v39 = vld [vmem:[#allocation239_spill] sm:$0xff] }
 0x312   :  { %v6131_v4 = vmax.f32 %v5843_v42, %v5987_v54  ;;  %v5845_v5 = vadd.f32 %v11830_v28, %v5694_v55  ;;  %v5552_v7 = vmax.f32 %v12583_v6, %v5241_v3 }
 0x313   :  { %6276 = vst [vmem:[%s12113_s3 + $0x438] sm:$0xff] %v6132_v23  ;;  %v5990_v8 = vmul.f32 0.1, %v5846_v24  ;;  %v5697_v57 = vmax.f32 %v5409_v56, %v5553_v43  ;;  %v7877_v58 = vpop.f32.mrb[28].mxu0 }
 0x314   :  { %6275 = vst [vmem:[%s12113_s3 + $0x430] sm:$0xff] %v6131_v4  ;;  %v5989_v44 = vmul.f32 0.1, %v5845_v5  ;;  %v5696_v12 = vmax.f32 %v5408_v2, %v5552_v7  ;;  %v5411_v46 = vmax.f32 %v12584_v45, %v7877_v58  ;;  %v8309_v47 = vpop.f32.mrb[28].mxu1  ;;  %v3811_v48 = vpop.f32.mrb[29].mxu0 }
 0x315   :  { %v6134_v27 = vmax.f32 %v5846_v24, %v5990_v8  ;;  %v5848_v37 = vadd.f32 %v11830_v28, %v5697_v57  ;;  %v5555_v34 = vmax.f32 %v12585_v33, %v8309_v47  ;;  %v5410_v18 = vmax.f32 %v12586_v17, %v3811_v48  ;;  %v5251_v19 = vpop.f32.mrb[29].mxu1 }
 0x316   :  { %v6133_v20 = vmax.f32 %v5845_v5, %v5989_v44  ;;  %v5847_v35 = vadd.f32 %v11830_v28, %v5696_v12  ;;  %v5554_v38 = vmax.f32 %v12587_v36, %v5251_v19 }
 0x317   :  { %6278 = vst [vmem:[%s12113_s3 + $0x448] sm:$0xff] %v6134_v27  ;;  %v5992_v9 = vmul.f32 0.1, %v5848_v37  ;;  %v5699_v29 = vmax.f32 %v5411_v46, %v5555_v34  ;;  %v7880_v30 = vpop.f32.mrb[30].mxu0 }
 0x318   :  { %6277 = vst [vmem:[%s12113_s3 + $0x440] sm:$0xff] %v6133_v20  ;;  %v5991_v61 = vmul.f32 0.1, %v5847_v35  ;;  %v5698_v62 = vmax.f32 %v5410_v18, %v5554_v38  ;;  %v5413_v14 = vmax.f32 %v12588_v13, %v7880_v30  ;;  %v8312_v15 = vpop.f32.mrb[30].mxu1  ;;  %v3821_v16 = vpop.f32.mrb[31].mxu0 }
 0x319   :  { %v6136_v63 = vmax.f32 %v5848_v37, %v5992_v9  ;;  %v5850_v0 = vadd.f32 %v11830_v28, %v5699_v29  ;;  %v5557_v32 = vmax.f32 %v12589_v59, %v8312_v15  ;;  %v5412_v40 = vmax.f32 %v12590_v39, %v3821_v16  ;;  %v5261_v49 = vpop.f32.mrb[31].mxu1 }
 0x31a   :  { %v6135_v41 = vmax.f32 %v5847_v35, %v5991_v61  ;;  %v5849_v50 = vadd.f32 %v11830_v28, %v5698_v62  ;;  %v5556_v52 = vmax.f32 %v12591_v51, %v5261_v49 }
 0x31b   :  { %6280 = vst [vmem:[%s12113_s3 + $0x458] sm:$0xff] %v6136_v63  ;;  %v5994_v42 = vmul.f32 0.1, %v5850_v0  ;;  %v5701_v26 = vmax.f32 %v5413_v14, %v5557_v32 }
 0x31c   :  { %6279 = vst [vmem:[%s12113_s3 + $0x450] sm:$0xff] %v6135_v41  ;;  %v5993_v31 = vmul.f32 0.1, %v5849_v50  ;;  %v5700_v60 = vmax.f32 %v5412_v40, %v5556_v52 }
 0x31d   :  { %v6138_v11 = vmax.f32 %v5850_v0, %v5994_v42  ;;  %v5852_v53 = vadd.f32 %v11830_v28, %v5701_v26 }
 0x31e   :  { %v6137_v54 = vmax.f32 %v5849_v50, %v5993_v31  ;;  %v5851_v55 = vadd.f32 %v11830_v28, %v5700_v60 }
 0x31f   :  { %6282 = vst [vmem:[%s12113_s3 + $0x468] sm:$0xff] %v6138_v11  ;;  %v5996_v10 = vmul.f32 0.1, %v5852_v53 }
 0x320   :  { %6281 = vst [vmem:[%s12113_s3 + $0x460] sm:$0xff] %v6137_v54  ;;  %v5995_v56 = vmul.f32 0.1, %v5851_v55 }
 0x321   :  { %v6140_v21 = vmax.f32 %v5852_v53, %v5996_v10 }
 0x322   :  { %v6139_v22 = vmax.f32 %v5851_v55, %v5995_v56 }
 0x323   :  { %6284 = vst [vmem:[%s12113_s3 + $0x478] sm:$0xff] %v6140_v21 }
 0x324   :  { %6283 = vst [vmem:[%s12113_s3 + $0x470] sm:$0xff] %v6139_v22 }

// kernel: leaky_relu_cnn_forward.5
= control target key start
LH: loop header
LB: loop body
LE: loop exit
PB: predicated region body
PF: predicated region fallthrough
CT: control target
= control target key end

     0   :  { %v3354_v0 = vmov 0.0|0.0   ;;  %vm482_vm0 = vcmask 261120   ;;  %s5851_s1 = inlined_call_operand.vmem [shape: f32[288,128], index: 1, kind: input, shape index: {}]   ;;  %s5852_s0 = inlined_call_operand.vmem [shape: f32[1152,288], index: 0, kind: input, shape index: {}]   ;;  %s5853_s2 = inlined_call_operand.vmem [shape: f32[1,128], index: 2, kind: input, shape index: {}]   ;;  %s5854_s3 = inlined_call_operand.vmem [shape: f32[288,128], index: 3, kind: output, shape index: {}]  }
   0x1   :  { %3265 = vmatprep.subr.bf16.mxu0 %v3354_v0  ;;  %3321 = vmatprep.subr.bf16.mxu1 %v3354_v0  ;;  %v446_v1 = vld [vmem:[%s5851_s1] sm:$0xff]  ;;  %v447_v2 = vld [vmem:[%s5851_s1 + $0x8] sm:$0xff]  ;;  %v448_v3 = vld [vmem:[%s5851_s1 + $0x10] sm:$0xff] }
   0x2   :  { %v3266_v4 = vpack.c.bf16 %v447_v2, %v446_v1  ;;  %v449_v5 = vld [vmem:[%s5851_s1 + $0x18] sm:$0xff]  ;;  %v450_v7 = vld [vmem:[%s5851_s1 + $0x20] sm:$0xff]  ;;  %v451_v8 = vld [vmem:[%s5851_s1 + $0x28] sm:$0xff] }
   0x3   :  { %v3269_v6 = vpack.c.bf16 %v449_v5, %v448_v3  ;;  %v3272_v9 = vpack.c.bf16 %v451_v8, %v450_v7  ;;  %v452_v10 = vld [vmem:[%s5851_s1 + $0x30] sm:$0xff]  ;;  %v453_v11 = vld [vmem:[%s5851_s1 + $0x38] sm:$0xff]  ;;  %v15_v12 = vld [vmem:[%s5852_s0 + $0x8] sm:$0xff] }
   0x4   :  { %3267 = vmatpush1.bf16.msra.mxu0 %v3266_v4  ;;  %3337 = vmatpush1.bf16.msra.mxu1 %v3266_v4  ;;  %v3275_v13 = vpack.c.bf16 %v453_v11, %v452_v10  ;;  %v339_v14 = vld [vmem:[%s5852_s0 + $0xa28] sm:$0xff]  ;;  %v454_v15 = vld [vmem:[%s5851_s1 + $0x40] sm:$0xff]  ;;  %v456_v18 = vld [vmem:[%s5851_s1 + $0x50] sm:$0xff] }
   0x5   :  { %3268 = vmatprep.subr.bf16.mxu0 %v3354_v0  ;;  %3322 = vmatprep.subr.bf16.mxu1 %v3354_v0  ;;  %v455_v16 = vld [vmem:[%s5851_s1 + $0x48] sm:$0xff]  ;;  %v457_v19 = vld [vmem:[%s5851_s1 + $0x58] sm:$0xff]  ;;  %v458_v21 = vld [vmem:[%s5851_s1 + $0x60] sm:$0xff] }
   0x6   :  { %979 = vmatprep.mubr.f32.mxu0 %v15_v12  ;;  %1519 = vmatprep.mubr.f32.mxu1 %v339_v14  ;;  %v3278_v17 = vpack.c.bf16 %v455_v16, %v454_v15  ;;  %v3281_v20 = vpack.c.bf16 %v457_v19, %v456_v18  ;;  %v459_v22 = vld [vmem:[%s5851_s1 + $0x68] sm:$0xff]  ;;  %v460_v24 = vld [vmem:[%s5851_s1 + $0x70] sm:$0xff]  ;;  %v461_v25 = vld [vmem:[%s5851_s1 + $0x78] sm:$0xff] }
   0x7   :  { %v3284_v23 = vpack.c.bf16 %v459_v22, %v458_v21  ;;  %v3287_v26 = vpack.c.bf16 %v461_v25, %v460_v24  ;;  %v462_v27 = vld [vmem:[%s5851_s1 + $0x80] sm:$0xff]  ;;  %v463_v28 = vld [vmem:[%s5851_s1 + $0x88] sm:$0xff]  ;;  %v464_v30 = vld [vmem:[%s5851_s1 + $0x90] sm:$0xff] }
   0x8   :  { %3270 = vmatpush1.bf16.msra.mxu0 %v3269_v6  ;;  %3338 = vmatpush1.bf16.msra.mxu1 %v3269_v6  ;;  %v3290_v29 = vpack.c.bf16 %v463_v28, %v462_v27  ;;  %v465_v31 = vld [vmem:[%s5851_s1 + $0x98] sm:$0xff]  ;;  %v466_v33 = vld [vmem:[%s5851_s1 + $0xa0] sm:$0xff]  ;;  %v467_v34 = vld [vmem:[%s5851_s1 + $0xa8] sm:$0xff] }
   0x9   :  { %3271 = vmatprep.subr.bf16.mxu0 %v3354_v0  ;;  %3323 = vmatprep.subr.bf16.mxu1 %v3354_v0  ;;  %v3293_v32 = vpack.c.bf16 %v465_v31, %v464_v30  ;;  %v3296_v35 = vpack.c.bf16 %v467_v34, %v466_v33  ;;  %v468_v36 = vld [vmem:[%s5851_s1 + $0xb0] sm:$0xff]  ;;  %v469_v37 = vld [vmem:[%s5851_s1 + $0xb8] sm:$0xff]  ;;  %v470_v39 = vld [vmem:[%s5851_s1 + $0xc0] sm:$0xff] }
   0xa   :  { %v3299_v38 = vpack.c.bf16 %v469_v37, %v468_v36  ;;  %v471_v40 = vld [vmem:[%s5851_s1 + $0xc8] sm:$0xff]  ;;  %v472_v42 = vld [vmem:[%s5851_s1 + $0xd0] sm:$0xff]  ;;  %v473_v43 = vld [vmem:[%s5851_s1 + $0xd8] sm:$0xff] }
   0xb   :  { %v3302_v41 = vpack.c.bf16 %v471_v40, %v470_v39  ;;  %v3305_v44 = vpack.c.bf16 %v473_v43, %v472_v42  ;;  %v474_v45 = vld [vmem:[%s5851_s1 + $0xe0] sm:$0xff]  ;;  %v475_v46 = vld [vmem:[%s5851_s1 + $0xe8] sm:$0xff]  ;;  %v476_v48 = vld [vmem:[%s5851_s1 + $0xf0] sm:$0xff] }
   0xc   :  { %3273 = vmatpush1.bf16.msra.mxu0 %v3272_v9  ;;  %3339 = vmatpush1.bf16.msra.mxu1 %v3272_v9  ;;  %v3308_v47 = vpack.c.bf16 %v475_v46, %v474_v45  ;;  %v477_v49 = vld [vmem:[%s5851_s1 + $0xf8] sm:$0xff]  ;;  %v478_v50 = vld [vmem:[%s5851_s1 + $0x100] sm:$0xff]  ;;  %v479_v51 = vld [vmem:[%s5851_s1 + $0x108] sm:$0xff] }
   0xd   :  { %3274 = vmatprep.subr.bf16.mxu0 %v3354_v0  ;;  %3324 = vmatprep.subr.bf16.mxu1 %v3354_v0  ;;  %v3311_v52 = vpack.c.bf16 %v477_v49, %v476_v48  ;;  %v3313_v53 = vpack.c.bf16 %v479_v51, %v478_v50  ;;  %v480_v54 = vld [vmem:[%s5851_s1 + $0x110] sm:$0xff]  ;;  %v481_v55 = vld [vmem:[%s5851_s1 + $0x118] sm:$0xff]  ;;  %v14_v56 = vld [vmem:[%s5852_s0] sm:$0xff] }
   0xe   :  { %v338_v57 = vld [vmem:[%s5852_s0 + $0xa20] sm:$0xff]  ;;  %v3317_v59 = vpack.c.bf16 %v481_v55, %v480_v54  ;;  %v17_v61 = vld [vmem:[%s5852_s0 + $0x18] sm:$0xff]  ;;  %v20_v1 = vld [vmem:[%s5852_s0 + $0x30] sm:$0xff] }
   0xf   :  { %v18_v58 = vld [vmem:[%s5852_s0 + $0x20] sm:$0xff]  ;;  %v341_v62 = vld [vmem:[%s5852_s0 + $0xa38] sm:$0xff]  ;;  %v344_v2 = vld [vmem:[%s5852_s0 + $0xa50] sm:$0xff] }
  0x10   :  { %3276 = vmatpush1.bf16.msra.mxu0 %v3275_v13  ;;  %3340 = vmatpush1.bf16.msra.mxu1 %v3275_v13  ;;  %v342_v60 = vld [vmem:[%s5852_s0 + $0xa40] sm:$0xff]  ;;  %v21_v63 = vld [vmem:[%s5852_s0 + $0x38] sm:$0xff]  ;;  %v24_v3 = vld [vmem:[%s5852_s0 + $0x50] sm:$0xff] }
  0x11   :  { %3277 = vmatprep.subr.bf16.mxu0 %v3354_v0  ;;  %3325 = vmatprep.subr.bf16.mxu1 %v3354_v0  ;;  %v348_v4 = vld [vmem:[%s5852_s0 + $0xa70] sm:$0xff]  ;;  %v23_v5 = vld [vmem:[%s5852_s0 + $0x48] sm:$0xff]  ;;  %v26_v9 = vld [vmem:[%s5852_s0 + $0x60] sm:$0xff] }
  0x12   :  { %v347_v6 = vld [vmem:[%s5852_s0 + $0xa68] sm:$0xff]  ;;  %v350_v10 = vld [vmem:[%s5852_s0 + $0xa80] sm:$0xff]  ;;  %v29_v13 = vld [vmem:[%s5852_s0 + $0x78] sm:$0xff] }
  0x13   :  { %v27_v7 = vld [vmem:[%s5852_s0 + $0x68] sm:$0xff]  ;;  %v30_v11 = vld [vmem:[%s5852_s0 + $0x80] sm:$0xff]  ;;  %v353_v14 = vld [vmem:[%s5852_s0 + $0xa98] sm:$0xff] }
  0x14   :  { %3279 = vmatpush1.bf16.msra.mxu0 %v3278_v17  ;;  %3341 = vmatpush1.bf16.msra.mxu1 %v3278_v17  ;;  %v351_v8 = vld [vmem:[%s5852_s0 + $0xa88] sm:$0xff]  ;;  %v354_v12 = vld [vmem:[%s5852_s0 + $0xaa0] sm:$0xff]  ;;  %v33_v15 = vld [vmem:[%s5852_s0 + $0x98] sm:$0xff] }
  0x15   :  { %3280 = vmatprep.subr.bf16.mxu0 %v3354_v0  ;;  %3326 = vmatprep.subr.bf16.mxu1 %v3354_v0  ;;  %v357_v16 = vld [vmem:[%s5852_s0 + $0xab8] sm:$0xff]  ;;  %v32_v17 = vld [vmem:[%s5852_s0 + $0x90] sm:$0xff]  ;;  %v35_v21 = vld [vmem:[%s5852_s0 + $0xa8] sm:$0xff] }
  0x16   :  { %v356_v18 = vld [vmem:[%s5852_s0 + $0xab0] sm:$0xff]  ;;  %v359_v22 = vld [vmem:[%s5852_s0 + $0xac8] sm:$0xff]  ;;  %v38_v25 = vld [vmem:[%s5852_s0 + $0xc0] sm:$0xff] }
  0x17   :  { %v36_v19 = vld [vmem:[%s5852_s0 + $0xb0] sm:$0xff]  ;;  %v363_v24 = vld [vmem:[%s5852_s0 + $0xae8] sm:$0xff]  ;;  %v42_v27 = vld [vmem:[%s5852_s0 + $0xe0] sm:$0xff] }
  0x18   :  { %3282 = vmatpush1.bf16.msra.mxu0 %v3281_v20  ;;  %3342 = vmatpush1.bf16.msra.mxu1 %v3281_v20  ;;  %v360_v20 = vld [vmem:[%s5852_s0 + $0xad0] sm:$0xff]  ;;  %v366_v28 = vld [vmem:[%s5852_s0 + $0xb00] sm:$0xff]  ;;  %v365_v30 = vld [vmem:[%s5852_s0 + $0xaf8] sm:$0xff] }
  0x19   :  { %3283 = vmatprep.subr.bf16.mxu0 %v3354_v0  ;;  %3327 = vmatprep.subr.bf16.mxu1 %v3354_v0  ;;  %v45_v31 = vld [vmem:[%s5852_s0 + $0xf8] sm:$0xff]  ;;  %v44_v33 = vld [vmem:[%s5852_s0 + $0xf0] sm:$0xff]  ;;  %v47_v37 = vld [vmem:[%s5852_s0 + $0x108] sm:$0xff] }
  0x1a   :  { %v368_v34 = vld [vmem:[%s5852_s0 + $0xb10] sm:$0xff]  ;;  %v51_v39 = vld [vmem:[%s5852_s0 + $0x128] sm:$0xff]  ;;  %v374_v42 = vld [vmem:[%s5852_s0 + $0xb40] sm:$0xff] }
  0x1b   :  { %v372_v36 = vld [vmem:[%s5852_s0 + $0xb30] sm:$0xff]  ;;  %v375_v40 = vld [vmem:[%s5852_s0 + $0xb48] sm:$0xff]  ;;  %v54_v43 = vld [vmem:[%s5852_s0 + $0x140] sm:$0xff] }
  0x1c   :  { %3285 = vmatpush1.bf16.msra.mxu0 %v3284_v23  ;;  %3343 = vmatpush1.bf16.msra.mxu1 %v3284_v23  ;;  %v39_v23 = vld [vmem:[%s5852_s0 + $0xc8] sm:$0xff]  ;;  %v53_v45 = vld [vmem:[%s5852_s0 + $0x138] sm:$0xff]  ;;  %v56_v49 = vld [vmem:[%s5852_s0 + $0x150] sm:$0xff] }
  0x1d   :  { %3286 = vmatprep.subr.bf16.mxu0 %v3354_v0  ;;  %3328 = vmatprep.subr.bf16.mxu1 %v3354_v0  ;;  %v377_v46 = vld [vmem:[%s5852_s0 + $0xb58] sm:$0xff]  ;;  %v380_v50 = vld [vmem:[%s5852_s0 + $0xb70] sm:$0xff]  ;;  %v383_v54 = vld [vmem:[%s5852_s0 + $0xb88] sm:$0xff] }
  0x1e   :  { %v381_v48 = vld [vmem:[%s5852_s0 + $0xb78] sm:$0xff]  ;;  %v60_v51 = vld [vmem:[%s5852_s0 + $0x170] sm:$0xff]  ;;  %v63_v55 = vld [vmem:[%s5852_s0 + $0x188] sm:$0xff] }
  0x20   :  { %3288 = vmatpush1.bf16.msra.mxu0 %v3287_v26  ;;  %3344 = vmatpush1.bf16.msra.mxu1 %v3287_v26  ;;  %v362_v26 = vld [vmem:[%s5852_s0 + $0xae0] sm:$0xff] }
  0x21   :  { %3289 = vmatprep.subr.bf16.mxu0 %v3354_v0  ;;  %3329 = vmatprep.subr.bf16.mxu1 %v3354_v0 }
  0x24   :  { %3291 = vmatpush1.bf16.msra.mxu0 %v3290_v29  ;;  %3345 = vmatpush1.bf16.msra.mxu1 %v3290_v29  ;;  %v41_v29 = vld [vmem:[%s5852_s0 + $0xd8] sm:$0xff] }
  0x25   :  { %3292 = vmatprep.subr.bf16.mxu0 %v3354_v0  ;;  %3330 = vmatprep.subr.bf16.mxu1 %v3354_v0 }
  0x28   :  { %3294 = vmatpush1.bf16.msra.mxu0 %v3293_v32  ;;  %3346 = vmatpush1.bf16.msra.mxu1 %v3293_v32  ;;  %v369_v32 = vld [vmem:[%s5852_s0 + $0xb18] sm:$0xff] }
  0x29   :  { %3295 = vmatprep.subr.bf16.mxu0 %v3354_v0  ;;  %3331 = vmatprep.subr.bf16.mxu1 %v3354_v0 }
  0x2c   :  { %3297 = vmatpush1.bf16.msra.mxu0 %v3296_v35  ;;  %3347 = vmatpush1.bf16.msra.mxu1 %v3296_v35  ;;  %v48_v35 = vld [vmem:[%s5852_s0 + $0x110] sm:$0xff] }
  0x2d   :  { %3298 = vmatprep.subr.bf16.mxu0 %v3354_v0  ;;  %3332 = vmatprep.subr.bf16.mxu1 %v3354_v0 }
  0x30   :  { %3300 = vmatpush1.bf16.msra.mxu0 %v3299_v38  ;;  %3348 = vmatpush1.bf16.msra.mxu1 %v3299_v38  ;;  %v371_v38 = vld [vmem:[%s5852_s0 + $0xb28] sm:$0xff] }
  0x31   :  { %3301 = vmatprep.subr.bf16.mxu0 %v3354_v0  ;;  %3333 = vmatprep.subr.bf16.mxu1 %v3354_v0 }
  0x34   :  { %3303 = vmatpush1.bf16.msra.mxu0 %v3302_v41  ;;  %3349 = vmatpush1.bf16.msra.mxu1 %v3302_v41  ;;  %v50_v41 = vld [vmem:[%s5852_s0 + $0x120] sm:$0xff] }
  0x35   :  { %3304 = vmatprep.subr.bf16.mxu0 %v3354_v0  ;;  %3334 = vmatprep.subr.bf16.mxu1 %v3354_v0 }
  0x38   :  { %3306 = vmatpush1.bf16.msra.mxu0 %v3305_v44  ;;  %3350 = vmatpush1.bf16.msra.mxu1 %v3305_v44  ;;  %v378_v44 = vld [vmem:[%s5852_s0 + $0xb60] sm:$0xff] }
  0x39   :  { %3307 = vmatprep.subr.bf16.mxu0 %v3354_v0  ;;  %3335 = vmatprep.subr.bf16.mxu1 %v3354_v0 }
  0x3c   :  { %3309 = vmatpush1.bf16.msra.mxu0 %v3308_v47  ;;  %3351 = vmatpush1.bf16.msra.mxu1 %v3308_v47  ;;  %v57_v47 = vld [vmem:[%s5852_s0 + $0x158] sm:$0xff] }
  0x3d   :  { %3310 = vmatprep.subr.bf16.mxu0 %v3354_v0  ;;  %3336 = vmatprep.subr.bf16.mxu1 %v3354_v0  ;;  %v345_v0 = vld [vmem:[%s5852_s0 + $0xa58] sm:$0xff] }
  0x40   :  { %3312 = vmatpush1.bf16.msra.mxu0 %v3311_v52  ;;  %3352 = vmatpush1.bf16.msra.mxu1 %v3311_v52  ;;  %v384_v52 = vld [vmem:[%s5852_s0 + $0xb90] sm:$0xff] }
  0x41   :  { %3314 = vmatprep.subr.bf16.mxu1 %v3313_v53 }
  0x43   :  { %980 = vmatmul.mubr.f32.vlgmr.msra.gmra.mrb[0].mxu0 %v14_v56  ;;  %1520 = vmatmul.mubr.f32.vlgmr.msra.gmra.mrb[0].mxu1 %v338_v57  ;;  %v387_v56 = vld [vmem:[%s5852_s0 + $0xba8] sm:$0xff]  ;;  %v62_v57 = vld [vmem:[%s5852_s0 + $0x180] sm:$0xff] }
  0x44   :  { %3316 = vmatpush3.bf16.msra.mxu1 %v3313_v53  ;;  %984 = vmatprep.mubr.f32.mxu0 %v18_v58  ;;  %v59_v53 = vld [vmem:[%s5852_s0 + $0x168] sm:$0xff]  ;;  %v386_v58 = vld [vmem:[%s5852_s0 + $0xba0] sm:$0xff] }
  0x45   :  { %1524 = vmatprep.mubr.f32.mxu1 %v342_v60  ;;  %3318 = vmatprep.subr.bf16.mxu1 %v3317_v59  ;;  %v390_v60 = vld [vmem:[%s5852_s0 + $0xbc0] sm:$0xff] }
  0x47   :  { %985 = vmatmul.mubr.f32.gmra.mrb[2].mxu0 %v17_v61  ;;  %1525 = vmatmul.mubr.f32.gmra.mrb[2].mxu1 %v341_v62  ;;  %v65_v61 = vld [vmem:[%s5852_s0 + $0x198] sm:$0xff] }
  0x48   :  { %989 = vmatprep.mubr.f32.mxu0 %v21_v63  ;;  %1529 = vmatprep.mubr.f32.mxu1 %v345_v0  ;;  %v389_v62 = vld [vmem:[%s5852_s0 + $0xbb8] sm:$0xff] }
  0x49   :  { %3320 = vmatpush3.bf16.msra.mxu1 %v3317_v59  ;;  %v66_v59 = vld [vmem:[%s5852_s0 + $0x1a0] sm:$0xff]  ;;  %v69_v63 = vld [vmem:[%s5852_s0 + $0x1b8] sm:$0xff] }
  0x4a   :  { %v393_v0 = vld [vmem:[%s5852_s0 + $0xbd8] sm:$0xff] }
  0x4b   :  { %990 = vmatmul.mubr.f32.gmra.mrb[4].mxu0 %v20_v1  ;;  %1530 = vmatmul.mubr.f32.gmra.mrb[4].mxu1 %v344_v2  ;;  %v68_v1 = vld [vmem:[%s5852_s0 + $0x1b0] sm:$0xff] }
  0x4c   :  { %994 = vmatprep.mubr.f32.mxu0 %v24_v3  ;;  %1534 = vmatprep.mubr.f32.mxu1 %v348_v4  ;;  %v392_v2 = vld [vmem:[%s5852_s0 + $0xbd0] sm:$0xff] }
  0x4d   :  { %v72_v3 = vld [vmem:[%s5852_s0 + $0x1d0] sm:$0xff] }
  0x4e   :  { %v396_v4 = vld [vmem:[%s5852_s0 + $0xbf0] sm:$0xff] }
  0x4f   :  { %995 = vmatmul.mubr.f32.gmra.mrb[6].mxu0 %v23_v5  ;;  %1535 = vmatmul.mubr.f32.gmra.mrb[6].mxu1 %v347_v6  ;;  %v71_v5 = vld [vmem:[%s5852_s0 + $0x1c8] sm:$0xff] }
  0x50   :  { %999 = vmatprep.mubr.f32.mxu0 %v27_v7  ;;  %1539 = vmatprep.mubr.f32.mxu1 %v351_v8  ;;  %v395_v6 = vld [vmem:[%s5852_s0 + $0xbe8] sm:$0xff] }
  0x51   :  { %v75_v7 = vld [vmem:[%s5852_s0 + $0x1e8] sm:$0xff] }
  0x52   :  { %v399_v8 = vld [vmem:[%s5852_s0 + $0xc08] sm:$0xff] }
  0x53   :  { %1000 = vmatmul.mubr.f32.gmra.mrb[8].mxu0 %v26_v9  ;;  %1540 = vmatmul.mubr.f32.gmra.mrb[8].mxu1 %v350_v10  ;;  %v74_v9 = vld [vmem:[%s5852_s0 + $0x1e0] sm:$0xff] }
  0x54   :  { %1004 = vmatprep.mubr.f32.mxu0 %v30_v11  ;;  %1544 = vmatprep.mubr.f32.mxu1 %v354_v12  ;;  %v398_v10 = vld [vmem:[%s5852_s0 + $0xc00] sm:$0xff] }
  0x55   :  { %v78_v11 = vld [vmem:[%s5852_s0 + $0x200] sm:$0xff] }
  0x56   :  { %v402_v12 = vld [vmem:[%s5852_s0 + $0xc20] sm:$0xff] }
  0x57   :  { %1005 = vmatmul.mubr.f32.gmra.mrb[10].mxu0 %v29_v13  ;;  %1545 = vmatmul.mubr.f32.gmra.mrb[10].mxu1 %v353_v14  ;;  %v77_v13 = vld [vmem:[%s5852_s0 + $0x1f8] sm:$0xff] }
  0x58   :  { %1009 = vmatprep.mubr.f32.mxu0 %v33_v15  ;;  %1549 = vmatprep.mubr.f32.mxu1 %v357_v16  ;;  %v401_v14 = vld [vmem:[%s5852_s0 + $0xc18] sm:$0xff] }
  0x59   :  { %v81_v15 = vld [vmem:[%s5852_s0 + $0x218] sm:$0xff] }
  0x5a   :  { %v405_v16 = vld [vmem:[%s5852_s0 + $0xc38] sm:$0xff] }
  0x5b   :  { %1010 = vmatmul.mubr.f32.gmra.mrb[12].mxu0 %v32_v17  ;;  %1550 = vmatmul.mubr.f32.gmra.mrb[12].mxu1 %v356_v18  ;;  %v80_v17 = vld [vmem:[%s5852_s0 + $0x210] sm:$0xff] }
  0x5c   :  { %1014 = vmatprep.mubr.f32.mxu0 %v36_v19  ;;  %1554 = vmatprep.mubr.f32.mxu1 %v360_v20  ;;  %v404_v18 = vld [vmem:[%s5852_s0 + $0xc30] sm:$0xff] }
  0x5d   :  { %v84_v19 = vld [vmem:[%s5852_s0 + $0x230] sm:$0xff] }
  0x5e   :  { %v408_v20 = vld [vmem:[%s5852_s0 + $0xc50] sm:$0xff] }
  0x5f   :  { %1015 = vmatmul.mubr.f32.gmra.mrb[14].mxu0 %v35_v21  ;;  %1555 = vmatmul.mubr.f32.gmra.mrb[14].mxu1 %v359_v22  ;;  %v83_v21 = vld [vmem:[%s5852_s0 + $0x228] sm:$0xff] }
  0x60   :  { %1019 = vmatprep.mubr.f32.mxu0 %v39_v23  ;;  %1559 = vmatprep.mubr.f32.mxu1 %v363_v24  ;;  %v407_v22 = vld [vmem:[%s5852_s0 + $0xc48] sm:$0xff] }
  0x61   :  { %v87_v23 = vld [vmem:[%s5852_s0 + $0x248] sm:$0xff] }
  0x62   :  { %v411_v24 = vld [vmem:[%s5852_s0 + $0xc68] sm:$0xff] }
  0x63   :  { %1020 = vmatmul.mubr.f32.gmra.mrb[16].mxu0 %v38_v25  ;;  %1560 = vmatmul.mubr.f32.gmra.mrb[16].mxu1 %v362_v26  ;;  %v86_v25 = vld [vmem:[%s5852_s0 + $0x240] sm:$0xff] }
  0x64   :  { %1024 = vmatprep.mubr.f32.mxu0 %v42_v27  ;;  %1564 = vmatprep.mubr.f32.mxu1 %v366_v28  ;;  %v410_v26 = vld [vmem:[%s5852_s0 + $0xc60] sm:$0xff] }
  0x65   :  { %v90_v27 = vld [vmem:[%s5852_s0 + $0x260] sm:$0xff] }
  0x66   :  { %v414_v28 = vld [vmem:[%s5852_s0 + $0xc80] sm:$0xff] }
  0x67   :  { %1025 = vmatmul.mubr.f32.gmra.mrb[18].mxu0 %v41_v29  ;;  %1565 = vmatmul.mubr.f32.gmra.mrb[18].mxu1 %v365_v30  ;;  %v89_v29 = vld [vmem:[%s5852_s0 + $0x258] sm:$0xff] }
  0x68   :  { %1029 = vmatprep.mubr.f32.mxu0 %v45_v31  ;;  %1569 = vmatprep.mubr.f32.mxu1 %v369_v32  ;;  %v413_v30 = vld [vmem:[%s5852_s0 + $0xc78] sm:$0xff] }
  0x69   :  { %v93_v31 = vld [vmem:[%s5852_s0 + $0x278] sm:$0xff] }
  0x6a   :  { %v417_v32 = vld [vmem:[%s5852_s0 + $0xc98] sm:$0xff] }
  0x6b   :  { %1030 = vmatmul.mubr.f32.gmra.mrb[20].mxu0 %v44_v33  ;;  %1570 = vmatmul.mubr.f32.gmra.mrb[20].mxu1 %v368_v34  ;;  %v92_v33 = vld [vmem:[%s5852_s0 + $0x270] sm:$0xff] }
  0x6c   :  { %1034 = vmatprep.mubr.f32.mxu0 %v48_v35  ;;  %1574 = vmatprep.mubr.f32.mxu1 %v372_v36  ;;  %v416_v34 = vld [vmem:[%s5852_s0 + $0xc90] sm:$0xff] }
  0x6d   :  { %v96_v35 = vld [vmem:[%s5852_s0 + $0x290] sm:$0xff] }
  0x6e   :  { %v420_v36 = vld [vmem:[%s5852_s0 + $0xcb0] sm:$0xff] }
  0x6f   :  { %1035 = vmatmul.mubr.f32.gmra.mrb[22].mxu0 %v47_v37  ;;  %1575 = vmatmul.mubr.f32.gmra.mrb[22].mxu1 %v371_v38  ;;  %v95_v37 = vld [vmem:[%s5852_s0 + $0x288] sm:$0xff] }
  0x70   :  { %1039 = vmatprep.mubr.f32.mxu0 %v51_v39  ;;  %1579 = vmatprep.mubr.f32.mxu1 %v375_v40  ;;  %v419_v38 = vld [vmem:[%s5852_s0 + $0xca8] sm:$0xff] }
  0x71   :  { %v99_v39 = vld [vmem:[%s5852_s0 + $0x2a8] sm:$0xff] }
  0x72   :  { %v423_v40 = vld [vmem:[%s5852_s0 + $0xcc8] sm:$0xff] }
  0x73   :  { %1040 = vmatmul.mubr.f32.gmra.mrb[24].mxu0 %v50_v41  ;;  %1580 = vmatmul.mubr.f32.gmra.mrb[24].mxu1 %v374_v42  ;;  %v98_v41 = vld [vmem:[%s5852_s0 + $0x2a0] sm:$0xff] }
  0x74   :  { %1044 = vmatprep.mubr.f32.mxu0 %v54_v43  ;;  %1584 = vmatprep.mubr.f32.mxu1 %v378_v44  ;;  %v422_v42 = vld [vmem:[%s5852_s0 + $0xcc0] sm:$0xff] }
  0x75   :  { %v102_v43 = vld [vmem:[%s5852_s0 + $0x2c0] sm:$0xff] }
  0x76   :  { %v426_v44 = vld [vmem:[%s5852_s0 + $0xce0] sm:$0xff] }
  0x77   :  { %1045 = vmatmul.mubr.f32.gmra.mrb[26].mxu0 %v53_v45  ;;  %1585 = vmatmul.mubr.f32.gmra.mrb[26].mxu1 %v377_v46  ;;  %v101_v45 = vld [vmem:[%s5852_s0 + $0x2b8] sm:$0xff] }
  0x78   :  { %1049 = vmatprep.mubr.f32.mxu0 %v57_v47  ;;  %1589 = vmatprep.mubr.f32.mxu1 %v381_v48  ;;  %v425_v46 = vld [vmem:[%s5852_s0 + $0xcd8] sm:$0xff] }
  0x79   :  { %v105_v47 = vld [vmem:[%s5852_s0 + $0x2d8] sm:$0xff] }
  0x7a   :  { %v429_v48 = vld [vmem:[%s5852_s0 + $0xcf8] sm:$0xff] }
  0x7b   :  { %1050 = vmatmul.mubr.f32.gmra.mrb[28].mxu0 %v56_v49  ;;  %1590 = vmatmul.mubr.f32.gmra.mrb[28].mxu1 %v380_v50  ;;  %v104_v49 = vld [vmem:[%s5852_s0 + $0x2d0] sm:$0xff] }
  0x7c   :  { %1054 = vmatprep.mubr.f32.mxu0 %v60_v51  ;;  %1594 = vmatprep.mubr.f32.mxu1 %v384_v52  ;;  %v428_v50 = vld [vmem:[%s5852_s0 + $0xcf0] sm:$0xff] }
  0x7d   :  { %v108_v51 = vld [vmem:[%s5852_s0 + $0x2f0] sm:$0xff] }
  0x7e   :  { %v432_v52 = vld [vmem:[%s5852_s0 + $0xd10] sm:$0xff] }
  0x7f   :  { %1055 = vmatmul.mubr.f32.gmra.mrb[30].mxu0 %v59_v53  ;;  %1595 = vmatmul.mubr.f32.gmra.mrb[30].mxu1 %v383_v54  ;;  %v107_v53 = vld [vmem:[%s5852_s0 + $0x2e8] sm:$0xff] }
  0x80   :  { %1059 = vmatprep.mubr.f32.mxu0 %v63_v55  ;;  %1599 = vmatprep.mubr.f32.mxu1 %v387_v56  ;;  %v431_v54 = vld [vmem:[%s5852_s0 + $0xd08] sm:$0xff] }
  0x81   :  { %v111_v55 = vld [vmem:[%s5852_s0 + $0x308] sm:$0xff] }
  0x82   :  { %v435_v56 = vld [vmem:[%s5852_s0 + $0xd28] sm:$0xff] }
  0x83   :  { %1060 = vmatmul.mubr.f32.gmra.mrb[32].mxu0 %v62_v57  ;;  %1600 = vmatmul.mubr.f32.gmra.mrb[32].mxu1 %v386_v58  ;;  %v110_v57 = vld [vmem:[%s5852_s0 + $0x300] sm:$0xff] }
  0x84   :  { %1064 = vmatprep.mubr.f32.mxu0 %v66_v59  ;;  %1604 = vmatprep.mubr.f32.mxu1 %v390_v60  ;;  %v434_v58 = vld [vmem:[%s5852_s0 + $0xd20] sm:$0xff] }
  0x85   :  { %v114_v59 = vld [vmem:[%s5852_s0 + $0x320] sm:$0xff] }
  0x86   :  { %v438_v60 = vld [vmem:[%s5852_s0 + $0xd40] sm:$0xff] }
  0x87   :  { %1065 = vmatmul.mubr.f32.gmra.mrb[34].mxu0 %v65_v61  ;;  %1605 = vmatmul.mubr.f32.gmra.mrb[34].mxu1 %v389_v62  ;;  %v113_v61 = vld [vmem:[%s5852_s0 + $0x318] sm:$0xff] }
  0x88   :  { %1069 = vmatprep.mubr.f32.mxu0 %v69_v63  ;;  %1609 = vmatprep.mubr.f32.mxu1 %v393_v0  ;;  %v437_v62 = vld [vmem:[%s5852_s0 + $0xd38] sm:$0xff] }
  0x89   :  { %v117_v63 = vld [vmem:[%s5852_s0 + $0x338] sm:$0xff] }
  0x8a   :  { %v441_v0 = vld [vmem:[%s5852_s0 + $0xd58] sm:$0xff] }
  0x8b   :  { %1070 = vmatmul.mubr.f32.gmra.mrb[36].mxu0 %v68_v1  ;;  %1610 = vmatmul.mubr.f32.gmra.mrb[36].mxu1 %v392_v2  ;;  %v116_v1 = vld [vmem:[%s5852_s0 + $0x330] sm:$0xff] }
  0x8c   :  { %1074 = vmatprep.mubr.f32.mxu0 %v72_v3  ;;  %1614 = vmatprep.mubr.f32.mxu1 %v396_v4  ;;  %v440_v2 = vld [vmem:[%s5852_s0 + $0xd50] sm:$0xff] }
  0x8d   :  { %v120_v3 = vld [vmem:[%s5852_s0 + $0x350] sm:$0xff] }
  0x8e   :  { %v444_v4 = vld [vmem:[%s5852_s0 + $0xd70] sm:$0xff] }
  0x8f   :  { %1075 = vmatmul.mubr.f32.gmra.mrb[38].mxu0 %v71_v5  ;;  %1615 = vmatmul.mubr.f32.gmra.mrb[38].mxu1 %v395_v6  ;;  %v119_v5 = vld [vmem:[%s5852_s0 + $0x348] sm:$0xff] }
  0x90   :  { %1079 = vmatprep.mubr.f32.mxu0 %v75_v7  ;;  %1619 = vmatprep.mubr.f32.mxu1 %v399_v8  ;;  %v443_v6 = vld [vmem:[%s5852_s0 + $0xd68] sm:$0xff]  ;;  %v16_v8 = vld [vmem:[%s5852_s0 + $0x10] sm:$0xff] }
  0x91   :  { %v123_v7 = vld [vmem:[%s5852_s0 + $0x368] sm:$0xff] }
  0x93   :  { %1080 = vmatmul.mubr.f32.gmra.mrb[40].mxu0 %v74_v9  ;;  %1620 = vmatmul.mubr.f32.gmra.mrb[40].mxu1 %v398_v10  ;;  %v122_v9 = vld [vmem:[%s5852_s0 + $0x360] sm:$0xff]  ;;  %v19_v10 = vld [vmem:[%s5852_s0 + $0x28] sm:$0xff] }
  0x94   :  { %1084 = vmatprep.mubr.f32.mxu0 %v78_v11  ;;  %1624 = vmatprep.mubr.f32.mxu1 %v402_v12  ;;  %v126_v11 = vld [vmem:[%s5852_s0 + $0x380] sm:$0xff] }
  0x95   :  { %v22_v12 = vld [vmem:[%s5852_s0 + $0x40] sm:$0xff] }
  0x97   :  { %1085 = vmatmul.mubr.f32.gmra.mrb[42].mxu0 %v77_v13  ;;  %1625 = vmatmul.mubr.f32.gmra.mrb[42].mxu1 %v401_v14  ;;  %v125_v13 = vld [vmem:[%s5852_s0 + $0x378] sm:$0xff] }
  0x98   :  { %1089 = vmatprep.mubr.f32.mxu0 %v81_v15  ;;  %1629 = vmatprep.mubr.f32.mxu1 %v405_v16  ;;  %v25_v14 = vld [vmem:[%s5852_s0 + $0x58] sm:$0xff]  ;;  %v28_v16 = vld [vmem:[%s5852_s0 + $0x70] sm:$0xff] }
  0x99   :  { %v129_v15 = vld [vmem:[%s5852_s0 + $0x398] sm:$0xff] }
  0x9b   :  { %1090 = vmatmul.mubr.f32.gmra.mrb[44].mxu0 %v80_v17  ;;  %1630 = vmatmul.mubr.f32.gmra.mrb[44].mxu1 %v404_v18  ;;  %v128_v17 = vld [vmem:[%s5852_s0 + $0x390] sm:$0xff]  ;;  %v31_v18 = vld [vmem:[%s5852_s0 + $0x88] sm:$0xff] }
  0x9c   :  { %1094 = vmatprep.mubr.f32.mxu0 %v84_v19  ;;  %1634 = vmatprep.mubr.f32.mxu1 %v408_v20  ;;  %v132_v19 = vld [vmem:[%s5852_s0 + $0x3b0] sm:$0xff]  ;;  %v34_v20 = vld [vmem:[%s5852_s0 + $0xa0] sm:$0xff] }
  0x9f   :  { %1095 = vmatmul.mubr.f32.gmra.mrb[46].mxu0 %v83_v21  ;;  %1635 = vmatmul.mubr.f32.gmra.mrb[46].mxu1 %v407_v22  ;;  %v131_v21 = vld [vmem:[%s5852_s0 + $0x3a8] sm:$0xff]  ;;  %v37_v22 = vld [vmem:[%s5852_s0 + $0xb8] sm:$0xff] }
  0xa0   :  { %1099 = vmatprep.mubr.f32.mxu0 %v87_v23  ;;  %1639 = vmatprep.mubr.f32.mxu1 %v411_v24  ;;  %v135_v23 = vld [vmem:[%s5852_s0 + $0x3c8] sm:$0xff]  ;;  %v40_v24 = vld [vmem:[%s5852_s0 + $0xd0] sm:$0xff] }
  0xa3   :  { %1100 = vmatmul.mubr.f32.gmra.mrb[48].mxu0 %v86_v25  ;;  %1640 = vmatmul.mubr.f32.gmra.mrb[48].mxu1 %v410_v26  ;;  %v134_v25 = vld [vmem:[%s5852_s0 + $0x3c0] sm:$0xff]  ;;  %v43_v26 = vld [vmem:[%s5852_s0 + $0xe8] sm:$0xff] }
  0xa4   :  { %1104 = vmatprep.mubr.f32.mxu0 %v90_v27  ;;  %1644 = vmatprep.mubr.f32.mxu1 %v414_v28  ;;  %v138_v27 = vld [vmem:[%s5852_s0 + $0x3e0] sm:$0xff] }
  0xa5   :  { %v46_v28 = vld [vmem:[%s5852_s0 + $0x100] sm:$0xff] }
  0xa7   :  { %1105 = vmatmul.mubr.f32.gmra.mrb[50].mxu0 %v89_v29  ;;  %1645 = vmatmul.mubr.f32.gmra.mrb[50].mxu1 %v413_v30  ;;  %v137_v29 = vld [vmem:[%s5852_s0 + $0x3d8] sm:$0xff] }
  0xa8   :  { %1109 = vmatprep.mubr.f32.mxu0 %v93_v31  ;;  %1649 = vmatprep.mubr.f32.mxu1 %v417_v32  ;;  %v49_v30 = vld [vmem:[%s5852_s0 + $0x118] sm:$0xff]  ;;  %v52_v32 = vld [vmem:[%s5852_s0 + $0x130] sm:$0xff] }
  0xa9   :  { %v141_v31 = vld [vmem:[%s5852_s0 + $0x3f8] sm:$0xff] }
  0xab   :  { %1110 = vmatmul.mubr.f32.gmra.mrb[52].mxu0 %v92_v33  ;;  %1650 = vmatmul.mubr.f32.gmra.mrb[52].mxu1 %v416_v34  ;;  %v140_v33 = vld [vmem:[%s5852_s0 + $0x3f0] sm:$0xff]  ;;  %v55_v34 = vld [vmem:[%s5852_s0 + $0x148] sm:$0xff] }
  0xac   :  { %1114 = vmatprep.mubr.f32.mxu0 %v96_v35  ;;  %1654 = vmatprep.mubr.f32.mxu1 %v420_v36  ;;  %v144_v35 = vld [vmem:[%s5852_s0 + $0x410] sm:$0xff]  ;;  %v58_v36 = vld [vmem:[%s5852_s0 + $0x160] sm:$0xff] }
  0xaf   :  { %1115 = vmatmul.mubr.f32.gmra.mrb[54].mxu0 %v95_v37  ;;  %1655 = vmatmul.mubr.f32.gmra.mrb[54].mxu1 %v419_v38  ;;  %v143_v37 = vld [vmem:[%s5852_s0 + $0x408] sm:$0xff]  ;;  %v61_v38 = vld [vmem:[%s5852_s0 + $0x178] sm:$0xff] }
  0xb0   :  { %1119 = vmatprep.mubr.f32.mxu0 %v99_v39  ;;  %1659 = vmatprep.mubr.f32.mxu1 %v423_v40  ;;  %v147_v39 = vld [vmem:[%s5852_s0 + $0x428] sm:$0xff]  ;;  %v64_v40 = vld [vmem:[%s5852_s0 + $0x190] sm:$0xff] }
  0xb3   :  { %1120 = vmatmul.mubr.f32.gmra.mrb[56].mxu0 %v98_v41  ;;  %1660 = vmatmul.mubr.f32.gmra.mrb[56].mxu1 %v422_v42  ;;  %v146_v41 = vld [vmem:[%s5852_s0 + $0x420] sm:$0xff]  ;;  %v67_v42 = vld [vmem:[%s5852_s0 + $0x1a8] sm:$0xff] }
  0xb4   :  { %1124 = vmatprep.mubr.f32.mxu0 %v102_v43  ;;  %1664 = vmatprep.mubr.f32.mxu1 %v426_v44  ;;  %v150_v43 = vld [vmem:[%s5852_s0 + $0x440] sm:$0xff] }
  0xb5   :  { %v70_v44 = vld [vmem:[%s5852_s0 + $0x1c0] sm:$0xff] }
  0xb7   :  { %1125 = vmatmul.mubr.f32.gmra.mrb[58].mxu0 %v101_v45  ;;  %1665 = vmatmul.mubr.f32.gmra.mrb[58].mxu1 %v425_v46  ;;  %v149_v45 = vld [vmem:[%s5852_s0 + $0x438] sm:$0xff] }
  0xb8   :  { %1129 = vmatprep.mubr.f32.mxu0 %v105_v47  ;;  %1669 = vmatprep.mubr.f32.mxu1 %v429_v48  ;;  %v73_v46 = vld [vmem:[%s5852_s0 + $0x1d8] sm:$0xff]  ;;  %v76_v48 = vld [vmem:[%s5852_s0 + $0x1f0] sm:$0xff] }
  0xb9   :  { %v153_v47 = vld [vmem:[%s5852_s0 + $0x458] sm:$0xff] }
  0xbb   :  { %1130 = vmatmul.mubr.f32.gmra.mrb[60].mxu0 %v104_v49  ;;  %1670 = vmatmul.mubr.f32.gmra.mrb[60].mxu1 %v428_v50  ;;  %v152_v49 = vld [vmem:[%s5852_s0 + $0x450] sm:$0xff]  ;;  %v79_v50 = vld [vmem:[%s5852_s0 + $0x208] sm:$0xff] }
  0xbc   :  { %1134 = vmatprep.mubr.f32.mxu0 %v108_v51  ;;  %1674 = vmatprep.mubr.f32.mxu1 %v432_v52  ;;  %v156_v51 = vld [vmem:[%s5852_s0 + $0x470] sm:$0xff]  ;;  %v82_v52 = vld [vmem:[%s5852_s0 + $0x220] sm:$0xff] }
  0xbf   :  { %1135 = vmatmul.mubr.f32.gmra.mrb[62].mxu0 %v107_v53  ;;  %1675 = vmatmul.mubr.f32.gmra.mrb[62].mxu1 %v431_v54  ;;  %v155_v53 = vld [vmem:[%s5852_s0 + $0x468] sm:$0xff]  ;;  %v85_v54 = vld [vmem:[%s5852_s0 + $0x238] sm:$0xff] }
  0xc0   :  { %1139 = vmatprep.mubr.f32.mxu0 %v111_v55  ;;  %1679 = vmatprep.mubr.f32.mxu1 %v435_v56  ;;  %v159_v55 = vld [vmem:[%s5852_s0 + $0x488] sm:$0xff]  ;;  %v88_v56 = vld [vmem:[%s5852_s0 + $0x250] sm:$0xff] }
  0xc3   :  { %1140 = vmatmul.mubr.f32.gmra.mrb[64].mxu0 %v110_v57  ;;  %1680 = vmatmul.mubr.f32.gmra.mrb[64].mxu1 %v434_v58  ;;  %v158_v57 = vld [vmem:[%s5852_s0 + $0x480] sm:$0xff]  ;;  %v91_v58 = vld [vmem:[%s5852_s0 + $0x268] sm:$0xff] }
  0xc4   :  { %1144 = vmatprep.mubr.f32.mxu0 %v114_v59  ;;  %1684 = vmatprep.mubr.f32.mxu1 %v438_v60  ;;  %v162_v59 = vld [vmem:[%s5852_s0 + $0x4a0] sm:$0xff] }
  0xc5   :  { %v94_v60 = vld [vmem:[%s5852_s0 + $0x280] sm:$0xff] }
  0xc7   :  { %1145 = vmatmul.mubr.f32.gmra.mrb[66].mxu0 %v113_v61  ;;  %1685 = vmatmul.mubr.f32.gmra.mrb[66].mxu1 %v437_v62  ;;  %v161_v61 = vld [vmem:[%s5852_s0 + $0x498] sm:$0xff] }
  0xc8   :  { %1149 = vmatprep.mubr.f32.mxu0 %v117_v63  ;;  %1689 = vmatprep.mubr.f32.mxu1 %v441_v0  ;;  %v97_v62 = vld [vmem:[%s5852_s0 + $0x298] sm:$0xff]  ;;  %v100_v0 = vld [vmem:[%s5852_s0 + $0x2b0] sm:$0xff] }
  0xc9   :  { %v165_v63 = vld [vmem:[%s5852_s0 + $0x4b8] sm:$0xff] }
  0xcb   :  { %1150 = vmatmul.mubr.f32.gmra.mrb[68].mxu0 %v116_v1  ;;  %1690 = vmatmul.mubr.f32.gmra.mrb[68].mxu1 %v440_v2  ;;  %v164_v1 = vld [vmem:[%s5852_s0 + $0x4b0] sm:$0xff]  ;;  %v103_v2 = vld [vmem:[%s5852_s0 + $0x2c8] sm:$0xff] }
  0xcc   :  { %1154 = vmatprep.mubr.f32.mxu0 %v120_v3  ;;  %1694 = vmatprep.mubr.f32.mxu1 %v444_v4  ;;  %v168_v3 = vld [vmem:[%s5852_s0 + $0x4d0] sm:$0xff]  ;;  %v106_v4 = vld [vmem:[%s5852_s0 + $0x2e0] sm:$0xff] }
  0xcf   :  { %1155 = vmatmul.mubr.f32.gmra.mrb[70].mxu0 %v119_v5  ;;  %1695 = vmatmul.mubr.f32.gmra.mrb[70].mxu1 %v443_v6  ;;  %v167_v5 = vld [vmem:[%s5852_s0 + $0x4c8] sm:$0xff]  ;;  %v109_v6 = vld [vmem:[%s5852_s0 + $0x2f8] sm:$0xff] }
  0xd0   :  { %1159 = vmatprep.mubr.f32.mxu0 %v123_v7  ;;  %3049 = vmatprep.mubr.msk.f32.mxu1 %vm482_vm0, %v16_v8  ;;  %v171_v7 = vld [vmem:[%s5852_s0 + $0x4e8] sm:$0xff]  ;;  %v112_v8 = vld [vmem:[%s5852_s0 + $0x310] sm:$0xff] }
  0xd3   :  { %1160 = vmatmul.mubr.f32.gmra.mrb[72].mxu0 %v122_v9  ;;  %3050 = vmatmul.mubr.msk.f32.vlgmr.msra.gmra.mrb[72].mxu1 %vm482_vm0, %v19_v10  ;;  %v170_v9 = vld [vmem:[%s5852_s0 + $0x4e0] sm:$0xff]  ;;  %v115_v10 = vld [vmem:[%s5852_s0 + $0x328] sm:$0xff] }
  0xd4   :  { %1164 = vmatprep.mubr.f32.mxu0 %v126_v11  ;;  %3052 = vmatprep.mubr.msk.f32.mxu1 %vm482_vm0, %v22_v12  ;;  %v174_v11 = vld [vmem:[%s5852_s0 + $0x500] sm:$0xff] }
  0xd5   :  { %v118_v12 = vld [vmem:[%s5852_s0 + $0x340] sm:$0xff] }
  0xd7   :  { %1165 = vmatmul.mubr.f32.gmra.mrb[74].mxu0 %v125_v13  ;;  %3053 = vmatmul.mubr.msk.f32.gmra.mrb[74].mxu1 %vm482_vm0, %v25_v14  ;;  %v173_v13 = vld [vmem:[%s5852_s0 + $0x4f8] sm:$0xff] }
  0xd8   :  { %1169 = vmatprep.mubr.f32.mxu0 %v129_v15  ;;  %3055 = vmatprep.mubr.msk.f32.mxu1 %vm482_vm0, %v28_v16  ;;  %v121_v14 = vld [vmem:[%s5852_s0 + $0x358] sm:$0xff]  ;;  %v124_v16 = vld [vmem:[%s5852_s0 + $0x370] sm:$0xff] }
  0xd9   :  { %v177_v15 = vld [vmem:[%s5852_s0 + $0x518] sm:$0xff] }
  0xdb   :  { %1170 = vmatmul.mubr.f32.gmra.mrb[76].mxu0 %v128_v17  ;;  %3056 = vmatmul.mubr.msk.f32.gmra.mrb[76].mxu1 %vm482_vm0, %v31_v18 }
  0xdc   :  { %1174 = vmatprep.mubr.f32.mxu0 %v132_v19  ;;  %3058 = vmatprep.mubr.msk.f32.mxu1 %vm482_vm0, %v34_v20 }
  0xdf   :  { %1175 = vmatmul.mubr.f32.gmra.mrb[78].mxu0 %v131_v21  ;;  %3059 = vmatmul.mubr.msk.f32.gmra.mrb[78].mxu1 %vm482_vm0, %v37_v22  ;;  %v176_v21 = vld [vmem:[%s5852_s0 + $0x510] sm:$0xff]  ;;  %v127_v22 = vld [vmem:[%s5852_s0 + $0x388] sm:$0xff] }
  0xe0   :  { %1179 = vmatprep.mubr.f32.mxu0 %v135_v23  ;;  %3061 = vmatprep.mubr.msk.f32.mxu1 %vm482_vm0, %v40_v24  ;;  %v180_v23 = vld [vmem:[%s5852_s0 + $0x530] sm:$0xff]  ;;  %v130_v24 = vld [vmem:[%s5852_s0 + $0x3a0] sm:$0xff] }
  0xe3   :  { %1180 = vmatmul.mubr.f32.gmra.mrb[80].mxu0 %v134_v25  ;;  %3062 = vmatmul.mubr.msk.f32.gmra.mrb[80].mxu1 %vm482_vm0, %v43_v26 }
  0xe4   :  { %1184 = vmatprep.mubr.f32.mxu0 %v138_v27  ;;  %3064 = vmatprep.mubr.msk.f32.mxu1 %vm482_vm0, %v46_v28 }
  0xe7   :  { %1185 = vmatmul.mubr.f32.gmra.mrb[82].mxu0 %v137_v29  ;;  %3065 = vmatmul.mubr.msk.f32.gmra.mrb[82].mxu1 %vm482_vm0, %v49_v30  ;;  %v179_v29 = vld [vmem:[%s5852_s0 + $0x528] sm:$0xff]  ;;  %v133_v30 = vld [vmem:[%s5852_s0 + $0x3b8] sm:$0xff] }
  0xe8   :  { %1189 = vmatprep.mubr.f32.mxu0 %v141_v31  ;;  %3067 = vmatprep.mubr.msk.f32.mxu1 %vm482_vm0, %v52_v32  ;;  %v183_v31 = vld [vmem:[%s5852_s0 + $0x548] sm:$0xff]  ;;  %v136_v32 = vld [vmem:[%s5852_s0 + $0x3d0] sm:$0xff] }
  0xeb   :  { %1190 = vmatmul.mubr.f32.gmra.mrb[84].mxu0 %v140_v33  ;;  %3068 = vmatmul.mubr.msk.f32.gmra.mrb[84].mxu1 %vm482_vm0, %v55_v34 }
  0xec   :  { %1194 = vmatprep.mubr.f32.mxu0 %v144_v35  ;;  %3070 = vmatprep.mubr.msk.f32.mxu1 %vm482_vm0, %v58_v36 }
  0xef   :  { %1195 = vmatmul.mubr.f32.gmra.mrb[86].mxu0 %v143_v37  ;;  %3071 = vmatmul.mubr.msk.f32.gmra.mrb[86].mxu1 %vm482_vm0, %v61_v38  ;;  %v182_v37 = vld [vmem:[%s5852_s0 + $0x540] sm:$0xff]  ;;  %v139_v38 = vld [vmem:[%s5852_s0 + $0x3e8] sm:$0xff] }
  0xf0   :  { %1199 = vmatprep.mubr.f32.mxu0 %v147_v39  ;;  %3073 = vmatprep.mubr.msk.f32.mxu1 %vm482_vm0, %v64_v40  ;;  %v186_v39 = vld [vmem:[%s5852_s0 + $0x560] sm:$0xff] }
  0xf1   :  { %v142_v40 = vld [vmem:[%s5852_s0 + $0x400] sm:$0xff] }
  0xf3   :  { %1200 = vmatmul.mubr.f32.gmra.mrb[88].mxu0 %v146_v41  ;;  %3074 = vmatmul.mubr.msk.f32.gmra.mrb[88].mxu1 %vm482_vm0, %v67_v42 }
  0xf4   :  { %1204 = vmatprep.mubr.f32.mxu0 %v150_v43  ;;  %3076 = vmatprep.mubr.msk.f32.mxu1 %vm482_vm0, %v70_v44 }
  0xf7   :  { %1205 = vmatmul.mubr.f32.gmra.mrb[90].mxu0 %v149_v45  ;;  %3077 = vmatmul.mubr.msk.f32.gmra.mrb[90].mxu1 %vm482_vm0, %v73_v46  ;;  %v185_v45 = vld [vmem:[%s5852_s0 + $0x558] sm:$0xff] }
  0xf8   :  { %1209 = vmatprep.mubr.f32.mxu0 %v153_v47  ;;  %3079 = vmatprep.mubr.msk.f32.mxu1 %vm482_vm0, %v76_v48  ;;  %v145_v46 = vld [vmem:[%s5852_s0 + $0x418] sm:$0xff]  ;;  %v148_v48 = vld [vmem:[%s5852_s0 + $0x430] sm:$0xff] }
  0xf9   :  { %v189_v47 = vld [vmem:[%s5852_s0 + $0x578] sm:$0xff] }
  0xfb   :  { %1210 = vmatmul.mubr.f32.gmra.mrb[92].mxu0 %v152_v49  ;;  %3080 = vmatmul.mubr.msk.f32.gmra.mrb[92].mxu1 %vm482_vm0, %v79_v50 }
  0xfc   :  { %1214 = vmatprep.mubr.f32.mxu0 %v156_v51  ;;  %3082 = vmatprep.mubr.msk.f32.mxu1 %vm482_vm0, %v82_v52 }
  0xff   :  { %1215 = vmatmul.mubr.f32.gmra.mrb[94].mxu0 %v155_v53  ;;  %3083 = vmatmul.mubr.msk.f32.gmra.mrb[94].mxu1 %vm482_vm0, %v85_v54  ;;  %v188_v53 = vld [vmem:[%s5852_s0 + $0x570] sm:$0xff]  ;;  %v151_v54 = vld [vmem:[%s5852_s0 + $0x448] sm:$0xff] }
 0x100   :  { %1219 = vmatprep.mubr.f32.mxu0 %v159_v55  ;;  %3085 = vmatprep.mubr.msk.f32.mxu1 %vm482_vm0, %v88_v56  ;;  %v192_v55 = vld [vmem:[%s5852_s0 + $0x590] sm:$0xff]  ;;  %v154_v56 = vld [vmem:[%s5852_s0 + $0x460] sm:$0xff] }
 0x103   :  { %1220 = vmatmul.mubr.f32.gmra.mrb[96].mxu0 %v158_v57  ;;  %3086 = vmatmul.mubr.msk.f32.gmra.mrb[96].mxu1 %vm482_vm0, %v91_v58 }
 0x104   :  { %1224 = vmatprep.mubr.f32.mxu0 %v162_v59  ;;  %3088 = vmatprep.mubr.msk.f32.mxu1 %vm482_vm0, %v94_v60 }
 0x107   :  { %1225 = vmatmul.mubr.f32.gmra.mrb[98].mxu0 %v161_v61  ;;  %3089 = vmatmul.mubr.msk.f32.gmra.mrb[98].mxu1 %vm482_vm0, %v97_v62  ;;  %v191_v61 = vld [vmem:[%s5852_s0 + $0x588] sm:$0xff]  ;;  %v157_v62 = vld [vmem:[%s5852_s0 + $0x478] sm:$0xff] }
 0x108   :  { %1229 = vmatprep.mubr.f32.mxu0 %v165_v63  ;;  %3091 = vmatprep.mubr.msk.f32.mxu1 %vm482_vm0, %v100_v0  ;;  %v195_v63 = vld [vmem:[%s5852_s0 + $0x5a8] sm:$0xff]  ;;  %v160_v0 = vld [vmem:[%s5852_s0 + $0x490] sm:$0xff] }
 0x10b   :  { %1230 = vmatmul.mubr.f32.gmra.mrb[100].mxu0 %v164_v1  ;;  %3092 = vmatmul.mubr.msk.f32.gmra.mrb[100].mxu1 %vm482_vm0, %v103_v2 }
 0x10c   :  { %1234 = vmatprep.mubr.f32.mxu0 %v168_v3  ;;  %3094 = vmatprep.mubr.msk.f32.mxu1 %vm482_vm0, %v106_v4 }
 0x10f   :  { %1235 = vmatmul.mubr.f32.gmra.mrb[102].mxu0 %v167_v5  ;;  %3095 = vmatmul.mubr.msk.f32.gmra.mrb[102].mxu1 %vm482_vm0, %v109_v6  ;;  %v194_v5 = vld [vmem:[%s5852_s0 + $0x5a0] sm:$0xff]  ;;  %v163_v6 = vld [vmem:[%s5852_s0 + $0x4a8] sm:$0xff] }
 0x110   :  { %1239 = vmatprep.mubr.f32.mxu0 %v171_v7  ;;  %3097 = vmatprep.mubr.msk.f32.mxu1 %vm482_vm0, %v112_v8  ;;  %v198_v7 = vld [vmem:[%s5852_s0 + $0x5c0] sm:$0xff] }
 0x111   :  { %v166_v8 = vld [vmem:[%s5852_s0 + $0x4c0] sm:$0xff] }
 0x113   :  { %1240 = vmatmul.mubr.f32.gmra.mrb[104].mxu0 %v170_v9  ;;  %3098 = vmatmul.mubr.msk.f32.gmra.mrb[104].mxu1 %vm482_vm0, %v115_v10 }
 0x114   :  { %1244 = vmatprep.mubr.f32.mxu0 %v174_v11  ;;  %3100 = vmatprep.mubr.msk.f32.mxu1 %vm482_vm0, %v118_v12 }
 0x116   :  { %v4204_v17 = vpop.f32.mrb[0].mxu1  ;;  %v4206_v18 = vpop.f32.mrb[0].mxu0 }
 0x117   :  { %5905 = vst [vmem:[#allocation2_spill] sm:$0xff] %v4204_v17  ;;  %1245 = vmatmul.mubr.f32.gmra.mrb[106].mxu0 %v173_v13  ;;  %v1523_v19 = vpop.f32.mrb[1].mxu1  ;;  %3101 = vmatmul.mubr.msk.f32.gmra.mrb[106].mxu1 %vm482_vm0, %v121_v14  ;;  %v983_v20 = vpop.f32.mrb[1].mxu0  ;;  %v197_v13 = vld [vmem:[%s5852_s0 + $0x5b8] sm:$0xff]  ;;  %v332_v17 = vld [vmem:[%s5852_s0 + $0x9f0] sm:$0xff] }
 0x118   :  { %1249 = vmatprep.mubr.f32.mxu0 %v177_v15  ;;  %3103 = vmatprep.mubr.msk.f32.mxu1 %vm482_vm0, %v124_v16  ;;  %v169_v14 = vld [vmem:[%s5852_s0 + $0x4d8] sm:$0xff]  ;;  %v172_v16 = vld [vmem:[%s5852_s0 + $0x4f0] sm:$0xff] }
 0x119   :  { %v201_v15 = vld [vmem:[%s5852_s0 + $0x5d8] sm:$0xff] }
 0x11a   :  { %v4222_v25 = vpop.f32.mrb[2].mxu1  ;;  %v4224_v26 = vpop.f32.mrb[2].mxu0 }
 0x11b   :  { %5906 = vst [vmem:[#allocation3_spill] sm:$0xff] %v4222_v25  ;;  %1250 = vmatmul.mubr.f32.gmra.mrb[108].mxu0 %v176_v21  ;;  %v1528_v27 = vpop.f32.mrb[3].mxu1  ;;  %3104 = vmatmul.mubr.msk.f32.gmra.mrb[108].mxu1 %vm482_vm0, %v127_v22  ;;  %v988_v28 = vpop.f32.mrb[3].mxu0  ;;  %v335_v25 = vld [vmem:[%s5852_s0 + $0xa08] sm:$0xff] }
 0x11c   :  { %1254 = vmatprep.mubr.f32.mxu0 %v180_v23  ;;  %3106 = vmatprep.mubr.msk.f32.mxu1 %vm482_vm0, %v130_v24  ;;  %v200_v23 = vld [vmem:[%s5852_s0 + $0x5d0] sm:$0xff]  ;;  %v175_v24 = vld [vmem:[%s5852_s0 + $0x508] sm:$0xff]  ;;  %v178_v28 = vld [vmem:[%s5852_s0 + $0x520] sm:$0xff] }
 0x11d   :  { %v204_v27 = vld [vmem:[%s5852_s0 + $0x5f0] sm:$0xff] }
 0x11e   :  { %v4240_v33 = vpop.f32.mrb[4].mxu1  ;;  %v4242_v34 = vpop.f32.mrb[4].mxu0 }
 0x11f   :  { %5907 = vst [vmem:[#allocation4_spill] sm:$0xff] %v4240_v33  ;;  %1255 = vmatmul.mubr.f32.gmra.mrb[110].mxu0 %v179_v29  ;;  %v1533_v35 = vpop.f32.mrb[5].mxu1  ;;  %3107 = vmatmul.mubr.msk.f32.gmra.mrb[110].mxu1 %vm482_vm0, %v133_v30  ;;  %v993_v36 = vpop.f32.mrb[5].mxu0  ;;  %v326_v33 = vld [vmem:[%s5852_s0 + $0x9c0] sm:$0xff] }
 0x120   :  { %1259 = vmatprep.mubr.f32.mxu0 %v183_v31  ;;  %3109 = vmatprep.mubr.msk.f32.mxu1 %vm482_vm0, %v136_v32  ;;  %v203_v35 = vld [vmem:[%s5852_s0 + $0x5e8] sm:$0xff]  ;;  %v181_v36 = vld [vmem:[%s5852_s0 + $0x538] sm:$0xff] }
 0x122   :  { %v4258_v41 = vpop.f32.mrb[6].mxu1  ;;  %v4260_v42 = vpop.f32.mrb[6].mxu0 }
 0x123   :  { %5908 = vst [vmem:[#allocation5_spill] sm:$0xff] %v4258_v41  ;;  %1260 = vmatmul.mubr.f32.gmra.mrb[112].mxu0 %v182_v37  ;;  %v1538_v43 = vpop.f32.mrb[7].mxu1  ;;  %3110 = vmatmul.mubr.msk.f32.gmra.mrb[112].mxu1 %vm482_vm0, %v139_v38  ;;  %v998_v44 = vpop.f32.mrb[7].mxu0  ;;  %v207_v37 = vld [vmem:[%s5852_s0 + $0x608] sm:$0xff]  ;;  %v184_v38 = vld [vmem:[%s5852_s0 + $0x550] sm:$0xff]  ;;  %v329_v41 = vld [vmem:[%s5852_s0 + $0x9d8] sm:$0xff] }
 0x124   :  { %1264 = vmatprep.mubr.f32.mxu0 %v186_v39  ;;  %3112 = vmatprep.mubr.msk.f32.mxu1 %vm482_vm0, %v142_v40 }
 0x126   :  { %v4276_v49 = vpop.f32.mrb[8].mxu1  ;;  %v4278_v50 = vpop.f32.mrb[8].mxu0 }
 0x127   :  { %5909 = vst [vmem:[#allocation6_spill] sm:$0xff] %v4276_v49  ;;  %1265 = vmatmul.mubr.f32.gmra.mrb[114].mxu0 %v185_v45  ;;  %v1543_v51 = vpop.f32.mrb[9].mxu1  ;;  %3113 = vmatmul.mubr.msk.f32.gmra.mrb[114].mxu1 %vm482_vm0, %v145_v46  ;;  %v1003_v52 = vpop.f32.mrb[9].mxu0  ;;  %v206_v45 = vld [vmem:[%s5852_s0 + $0x600] sm:$0xff]  ;;  %v187_v46 = vld [vmem:[%s5852_s0 + $0x568] sm:$0xff]  ;;  %v320_v49 = vld [vmem:[%s5852_s0 + $0x990] sm:$0xff] }
 0x128   :  { %1269 = vmatprep.mubr.f32.mxu0 %v189_v47  ;;  %3115 = vmatprep.mubr.msk.f32.mxu1 %vm482_vm0, %v148_v48  ;;  %v210_v47 = vld [vmem:[%s5852_s0 + $0x620] sm:$0xff] }
 0x129   :  { %v190_v48 = vld [vmem:[%s5852_s0 + $0x580] sm:$0xff] }
 0x12a   :  { %v4294_v57 = vpop.f32.mrb[10].mxu1  ;;  %v4296_v58 = vpop.f32.mrb[10].mxu0 }
 0x12b   :  { %5910 = vst [vmem:[#allocation7_spill] sm:$0xff] %v4294_v57  ;;  %1270 = vmatmul.mubr.f32.gmra.mrb[116].mxu0 %v188_v53  ;;  %v1548_v59 = vpop.f32.mrb[11].mxu1  ;;  %3116 = vmatmul.mubr.msk.f32.gmra.mrb[116].mxu1 %vm482_vm0, %v151_v54  ;;  %v1008_v60 = vpop.f32.mrb[11].mxu0  ;;  %v323_v57 = vld [vmem:[%s5852_s0 + $0x9a8] sm:$0xff] }
 0x12c   :  { %1274 = vmatprep.mubr.f32.mxu0 %v192_v55  ;;  %3118 = vmatprep.mubr.msk.f32.mxu1 %vm482_vm0, %v154_v56  ;;  %v209_v55 = vld [vmem:[%s5852_s0 + $0x618] sm:$0xff]  ;;  %v196_v60 = vld [vmem:[%s5852_s0 + $0x5b0] sm:$0xff] }
 0x12d   :  { %v193_v56 = vld [vmem:[%s5852_s0 + $0x598] sm:$0xff] }
 0x12e   :  { %v4312_v1 = vpop.f32.mrb[12].mxu1  ;;  %v4314_v2 = vpop.f32.mrb[12].mxu0  ;;  %v213_v59 = vld [vmem:[%s5852_s0 + $0x638] sm:$0xff] }
 0x12f   :  { %5911 = vst [vmem:[#allocation8_spill] sm:$0xff] %v4312_v1  ;;  %1275 = vmatmul.mubr.f32.gmra.mrb[118].mxu0 %v191_v61  ;;  %v1553_v3 = vpop.f32.mrb[13].mxu1  ;;  %3119 = vmatmul.mubr.msk.f32.gmra.mrb[118].mxu1 %vm482_vm0, %v157_v62  ;;  %v1013_v4 = vpop.f32.mrb[13].mxu0  ;;  %v314_v1 = vld [vmem:[%s5852_s0 + $0x960] sm:$0xff] }
 0x130   :  { %1279 = vmatprep.mubr.f32.mxu0 %v195_v63  ;;  %3121 = vmatprep.mubr.msk.f32.mxu1 %vm482_vm0, %v160_v0  ;;  %v212_v3 = vld [vmem:[%s5852_s0 + $0x630] sm:$0xff]  ;;  %v199_v4 = vld [vmem:[%s5852_s0 + $0x5c8] sm:$0xff] }
 0x132   :  { %v4330_v9 = vpop.f32.mrb[14].mxu1  ;;  %v4332_v10 = vpop.f32.mrb[14].mxu0 }
 0x133   :  { %5912 = vst [vmem:[#allocation9_spill] sm:$0xff] %v4330_v9  ;;  %1280 = vmatmul.mubr.f32.gmra.mrb[120].mxu0 %v194_v5  ;;  %v1558_v11 = vpop.f32.mrb[15].mxu1  ;;  %3122 = vmatmul.mubr.msk.f32.gmra.mrb[120].mxu1 %vm482_vm0, %v163_v6  ;;  %v1018_v12 = vpop.f32.mrb[15].mxu0  ;;  %v216_v5 = vld [vmem:[%s5852_s0 + $0x650] sm:$0xff]  ;;  %v202_v6 = vld [vmem:[%s5852_s0 + $0x5e0] sm:$0xff]  ;;  %v317_v9 = vld [vmem:[%s5852_s0 + $0x978] sm:$0xff] }
 0x134   :  { %1284 = vmatprep.mubr.f32.mxu0 %v198_v7  ;;  %3124 = vmatprep.mubr.msk.f32.mxu1 %vm482_vm0, %v166_v8 }
 0x136   :  { %v4348_v19 = vpop.f32.mrb[16].mxu1  ;;  %v4350_v20 = vpop.f32.mrb[16].mxu0 }
 0x137   :  { %5913 = vst [vmem:[#allocation10_spill] sm:$0xff] %v4348_v19  ;;  %1285 = vmatmul.mubr.f32.gmra.mrb[122].mxu0 %v197_v13  ;;  %v1563_v21 = vpop.f32.mrb[17].mxu1  ;;  %3125 = vmatmul.mubr.msk.f32.gmra.mrb[122].mxu1 %vm482_vm0, %v169_v14  ;;  %v1023_v22 = vpop.f32.mrb[17].mxu0  ;;  %v215_v13 = vld [vmem:[%s5852_s0 + $0x648] sm:$0xff]  ;;  %v205_v14 = vld [vmem:[%s5852_s0 + $0x5f8] sm:$0xff]  ;;  %v308_v19 = vld [vmem:[%s5852_s0 + $0x930] sm:$0xff] }
 0x138   :  { %1289 = vmatprep.mubr.f32.mxu0 %v201_v15  ;;  %3127 = vmatprep.mubr.msk.f32.mxu1 %vm482_vm0, %v172_v16  ;;  %v219_v15 = vld [vmem:[%s5852_s0 + $0x668] sm:$0xff]  ;;  %v208_v16 = vld [vmem:[%s5852_s0 + $0x610] sm:$0xff] }
 0x13a   :  { %v4366_v29 = vpop.f32.mrb[18].mxu1  ;;  %v4368_v30 = vpop.f32.mrb[18].mxu0 }
 0x13b   :  { %5914 = vst [vmem:[#allocation11_spill] sm:$0xff] %v4366_v29  ;;  %1290 = vmatmul.mubr.f32.gmra.mrb[124].mxu0 %v200_v23  ;;  %v1568_v31 = vpop.f32.mrb[19].mxu1  ;;  %3128 = vmatmul.mubr.msk.f32.gmra.mrb[124].mxu1 %vm482_vm0, %v175_v24  ;;  %v1028_v32 = vpop.f32.mrb[19].mxu0  ;;  %v311_v29 = vld [vmem:[%s5852_s0 + $0x948] sm:$0xff] }
 0x13c   :  { %1294 = vmatprep.mubr.f32.mxu0 %v204_v27  ;;  %3130 = vmatprep.mubr.msk.f32.mxu1 %vm482_vm0, %v178_v28  ;;  %v218_v27 = vld [vmem:[%s5852_s0 + $0x660] sm:$0xff]  ;;  %v211_v28 = vld [vmem:[%s5852_s0 + $0x628] sm:$0xff] }
 0x13d   :  { %v222_v31 = vld [vmem:[%s5852_s0 + $0x680] sm:$0xff] }
 0x13e   :  { %v4384_v39 = vpop.f32.mrb[20].mxu1  ;;  %v4386_v40 = vpop.f32.mrb[20].mxu0  ;;  %v214_v32 = vld [vmem:[%s5852_s0 + $0x640] sm:$0xff] }
 0x13f   :  { %5915 = vst [vmem:[#allocation12_spill] sm:$0xff] %v4384_v39  ;;  %1295 = vmatmul.mubr.f32.gmra.mrb[126].mxu0 %v203_v35  ;;  %v1573_v43 = vpop.f32.mrb[21].mxu1  ;;  %3131 = vmatmul.mubr.msk.f32.gmra.mrb[126].mxu1 %vm482_vm0, %v181_v36  ;;  %v1033_v44 = vpop.f32.mrb[21].mxu0  ;;  %v302_v39 = vld [vmem:[%s5852_s0 + $0x900] sm:$0xff] }
 0x140   :  { %1299 = vmatprep.mubr.f32.mxu0 %v207_v37  ;;  %3133 = vmatprep.mubr.msk.f32.mxu1 %vm482_vm0, %v184_v38  ;;  %v221_v43 = vld [vmem:[%s5852_s0 + $0x678] sm:$0xff] }
 0x141   :  { %v217_v44 = vld [vmem:[%s5852_s0 + $0x658] sm:$0xff] }
 0x142   :  { %v4402_v51 = vpop.f32.mrb[22].mxu1  ;;  %v4404_v52 = vpop.f32.mrb[22].mxu0 }
 0x143   :  { %5916 = vst [vmem:[#allocation13_spill] sm:$0xff] %v4402_v51  ;;  %1300 = vmatmul.mubr.f32.gmra.mrb[128].mxu0 %v206_v45  ;;  %v1578_v53 = vpop.f32.mrb[23].mxu1  ;;  %3134 = vmatmul.mubr.msk.f32.gmra.mrb[128].mxu1 %vm482_vm0, %v187_v46  ;;  %v1038_v54 = vpop.f32.mrb[23].mxu0  ;;  %v225_v45 = vld [vmem:[%s5852_s0 + $0x698] sm:$0xff]  ;;  %v220_v46 = vld [vmem:[%s5852_s0 + $0x670] sm:$0xff] }
 0x144   :  { %1304 = vmatprep.mubr.f32.mxu0 %v210_v47  ;;  %3136 = vmatprep.mubr.msk.f32.mxu1 %vm482_vm0, %v190_v48  ;;  %v305_v51 = vld [vmem:[%s5852_s0 + $0x918] sm:$0xff] }
 0x146   :  { %v4420_v61 = vpop.f32.mrb[24].mxu1  ;;  %v4422_v62 = vpop.f32.mrb[24].mxu0 }
 0x147   :  { %5917 = vst [vmem:[#allocation14_spill] sm:$0xff] %v4420_v61  ;;  %1305 = vmatmul.mubr.f32.gmra.mrb[130].mxu0 %v209_v55  ;;  %v1583_v63 = vpop.f32.mrb[25].mxu1  ;;  %3137 = vmatmul.mubr.msk.f32.gmra.mrb[130].mxu1 %vm482_vm0, %v193_v56  ;;  %v1043_v0 = vpop.f32.mrb[25].mxu0  ;;  %v224_v55 = vld [vmem:[%s5852_s0 + $0x690] sm:$0xff]  ;;  %v223_v56 = vld [vmem:[%s5852_s0 + $0x688] sm:$0xff] }
 0x148   :  { %1309 = vmatprep.mubr.f32.mxu0 %v213_v59  ;;  %3139 = vmatprep.mubr.msk.f32.mxu1 %vm482_vm0, %v196_v60  ;;  %v228_v59 = vld [vmem:[%s5852_s0 + $0x6b0] sm:$0xff]  ;;  %v226_v60 = vld [vmem:[%s5852_s0 + $0x6a0] sm:$0xff] }
 0x149   :  { %v296_v61 = vld [vmem:[%s5852_s0 + $0x8d0] sm:$0xff] }
 0x14a   :  { %v4438_v7 = vpop.f32.mrb[26].mxu1  ;;  %v4440_v8 = vpop.f32.mrb[26].mxu0 }
 0x14b   :  { %5918 = vst [vmem:[#allocation15_spill] sm:$0xff] %v4438_v7  ;;  %1310 = vmatmul.mubr.f32.gmra.mrb[132].mxu0 %v212_v3  ;;  %v1588_v11 = vpop.f32.mrb[27].mxu1  ;;  %3140 = vmatmul.mubr.msk.f32.gmra.mrb[132].mxu1 %vm482_vm0, %v199_v4  ;;  %v1048_v12 = vpop.f32.mrb[27].mxu0  ;;  %v299_v7 = vld [vmem:[%s5852_s0 + $0x8e8] sm:$0xff] }
 0x14c   :  { %1314 = vmatprep.mubr.f32.mxu0 %v216_v5  ;;  %3142 = vmatprep.mubr.msk.f32.mxu1 %vm482_vm0, %v202_v6  ;;  %v227_v5 = vld [vmem:[%s5852_s0 + $0x6a8] sm:$0xff]  ;;  %v229_v6 = vld [vmem:[%s5852_s0 + $0x6b8] sm:$0xff]  ;;  %v232_v12 = vld [vmem:[%s5852_s0 + $0x6d0] sm:$0xff] }
 0x14d   :  { %v231_v11 = vld [vmem:[%s5852_s0 + $0x6c8] sm:$0xff] }
 0x14e   :  { %v4456_v21 = vpop.f32.mrb[28].mxu1  ;;  %v4458_v22 = vpop.f32.mrb[28].mxu0 }
 0x14f   :  { %5919 = vst [vmem:[#allocation16_spill] sm:$0xff] %v4456_v21  ;;  %1315 = vmatmul.mubr.f32.gmra.mrb[134].mxu0 %v215_v13  ;;  %v1593_v23 = vpop.f32.mrb[29].mxu1  ;;  %3143 = vmatmul.mubr.msk.f32.gmra.mrb[134].mxu1 %vm482_vm0, %v205_v14  ;;  %v1053_v24 = vpop.f32.mrb[29].mxu0  ;;  %v290_v21 = vld [vmem:[%s5852_s0 + $0x8a0] sm:$0xff] }
 0x150   :  { %1319 = vmatprep.mubr.f32.mxu0 %v219_v15  ;;  %3145 = vmatprep.mubr.msk.f32.mxu1 %vm482_vm0, %v208_v16  ;;  %v230_v23 = vld [vmem:[%s5852_s0 + $0x6c0] sm:$0xff]  ;;  %v235_v24 = vld [vmem:[%s5852_s0 + $0x6e8] sm:$0xff] }
 0x152   :  { %v4474_v35 = vpop.f32.mrb[30].mxu1  ;;  %v4476_v36 = vpop.f32.mrb[30].mxu0 }
 0x153   :  { %5920 = vst [vmem:[#allocation17_spill] sm:$0xff] %v4474_v35  ;;  %1320 = vmatmul.mubr.f32.gmra.mrb[136].mxu0 %v218_v27  ;;  %v1598_v37 = vpop.f32.mrb[31].mxu1  ;;  %3146 = vmatmul.mubr.msk.f32.gmra.mrb[136].mxu1 %vm482_vm0, %v211_v28  ;;  %v1058_v38 = vpop.f32.mrb[31].mxu0  ;;  %v234_v27 = vld [vmem:[%s5852_s0 + $0x6e0] sm:$0xff]  ;;  %v293_v35 = vld [vmem:[%s5852_s0 + $0x8b8] sm:$0xff] }
 0x154   :  { %1324 = vmatprep.mubr.f32.mxu0 %v222_v31  ;;  %3148 = vmatprep.mubr.msk.f32.mxu1 %vm482_vm0, %v214_v32  ;;  %v238_v28 = vld [vmem:[%s5852_s0 + $0x700] sm:$0xff] }
 0x156   :  { %v4492_v47 = vpop.f32.mrb[32].mxu1  ;;  %v4494_v48 = vpop.f32.mrb[32].mxu0 }
 0x157   :  { %5921 = vst [vmem:[#allocation18_spill] sm:$0xff] %v4492_v47  ;;  %1325 = vmatmul.mubr.f32.gmra.mrb[138].mxu0 %v221_v43  ;;  %v1603_v53 = vpop.f32.mrb[33].mxu1  ;;  %3149 = vmatmul.mubr.msk.f32.gmra.mrb[138].mxu1 %vm482_vm0, %v217_v44  ;;  %v1063_v54 = vpop.f32.mrb[33].mxu0  ;;  %v233_v43 = vld [vmem:[%s5852_s0 + $0x6d8] sm:$0xff]  ;;  %v284_v47 = vld [vmem:[%s5852_s0 + $0x870] sm:$0xff] }
 0x158   :  { %1329 = vmatprep.mubr.f32.mxu0 %v225_v45  ;;  %3151 = vmatprep.mubr.msk.f32.mxu1 %vm482_vm0, %v220_v46  ;;  %v241_v44 = vld [vmem:[%s5852_s0 + $0x718] sm:$0xff]  ;;  %v244_v46 = vld [vmem:[%s5852_s0 + $0x730] sm:$0xff] }
 0x159   :  { %v237_v45 = vld [vmem:[%s5852_s0 + $0x6f8] sm:$0xff] }
 0x15a   :  { %v4510_v63 = vpop.f32.mrb[34].mxu1  ;;  %v4512_v0 = vpop.f32.mrb[34].mxu0 }
 0x15b   :  { %5922 = vst [vmem:[#allocation19_spill] sm:$0xff] %v4510_v63  ;;  %1330 = vmatmul.mubr.f32.gmra.mrb[140].mxu0 %v224_v55  ;;  %v1608_v3 = vpop.f32.mrb[35].mxu1  ;;  %3152 = vmatmul.mubr.msk.f32.gmra.mrb[140].mxu1 %vm482_vm0, %v223_v56  ;;  %v1068_v4 = vpop.f32.mrb[35].mxu0  ;;  %v287_v63 = vld [vmem:[%s5852_s0 + $0x888] sm:$0xff] }
 0x15c   :  { %1334 = vmatprep.mubr.f32.mxu0 %v228_v59  ;;  %3154 = vmatprep.mubr.msk.f32.mxu1 %vm482_vm0, %v226_v60  ;;  %v236_v59 = vld [vmem:[%s5852_s0 + $0x6f0] sm:$0xff]  ;;  %v247_v60 = vld [vmem:[%s5852_s0 + $0x748] sm:$0xff]  ;;  %v250_v4 = vld [vmem:[%s5852_s0 + $0x760] sm:$0xff] }
 0x15d   :  { %v240_v3 = vld [vmem:[%s5852_s0 + $0x710] sm:$0xff] }
 0x15e   :  { %v4528_v13 = vpop.f32.mrb[36].mxu1  ;;  %v4530_v14 = vpop.f32.mrb[36].mxu0 }
 0x15f   :  { %5923 = vst [vmem:[#allocation20_spill] sm:$0xff] %v4528_v13  ;;  %1335 = vmatmul.mubr.f32.gmra.mrb[142].mxu0 %v227_v5  ;;  %v1613_v15 = vpop.f32.mrb[37].mxu1  ;;  %3155 = vmatmul.mubr.msk.f32.gmra.mrb[142].mxu1 %vm482_vm0, %v229_v6  ;;  %v1073_v16 = vpop.f32.mrb[37].mxu0  ;;  %v337_v13 = vld [vmem:[%s5852_s0 + $0xa18] sm:$0xff] }
 0x160   :  { %1339 = vmatprep.mubr.f32.mxu0 %v231_v11  ;;  %3157 = vmatprep.mubr.msk.f32.mxu1 %vm482_vm0, %v232_v12  ;;  %v239_v15 = vld [vmem:[%s5852_s0 + $0x708] sm:$0xff]  ;;  %v253_v16 = vld [vmem:[%s5852_s0 + $0x778] sm:$0xff] }
 0x162   :  { %v4546_v31 = vpop.f32.mrb[38].mxu1  ;;  %v4548_v32 = vpop.f32.mrb[38].mxu0 }
 0x163   :  { %5924 = vst [vmem:[#allocation21_spill] sm:$0xff] %v4546_v31  ;;  %1340 = vmatmul.mubr.f32.gmra.mrb[144].mxu0 %v230_v23  ;;  %v1618_v37 = vpop.f32.mrb[39].mxu1  ;;  %3158 = vmatmul.mubr.msk.f32.gmra.mrb[144].mxu1 %vm482_vm0, %v235_v24  ;;  %v1078_v38 = vpop.f32.mrb[39].mxu0  ;;  %v243_v23 = vld [vmem:[%s5852_s0 + $0x728] sm:$0xff]  ;;  %v256_v24 = vld [vmem:[%s5852_s0 + $0x790] sm:$0xff] }
 0x164   :  { %1344 = vmatprep.mubr.f32.mxu0 %v234_v27  ;;  %3160 = vmatprep.mubr.msk.f32.mxu1 %vm482_vm0, %v238_v28 }
 0x166   :  { %v4564_v53 = vpop.f32.mrb[40].mxu1  ;;  %v4566_v54 = vpop.f32.mrb[40].mxu0 }
 0x167   :  { %5925 = vst [vmem:[#allocation22_spill] sm:$0xff] %v4564_v53  ;;  %1345 = vmatmul.mubr.f32.gmra.mrb[146].mxu0 %v233_v43  ;;  %v1623_v55 = vpop.f32.mrb[41].mxu1  ;;  %3161 = vmatmul.mubr.msk.f32.gmra.mrb[146].mxu1 %vm482_vm0, %v241_v44  ;;  %v1083_v56 = vpop.f32.mrb[41].mxu0  ;;  %v242_v43 = vld [vmem:[%s5852_s0 + $0x720] sm:$0xff]  ;;  %v259_v44 = vld [vmem:[%s5852_s0 + $0x7a8] sm:$0xff]  ;;  %v325_v53 = vld [vmem:[%s5852_s0 + $0x9b8] sm:$0xff] }
 0x168   :  { %1349 = vmatprep.mubr.f32.mxu0 %v237_v45  ;;  %3163 = vmatprep.mubr.msk.f32.mxu1 %vm482_vm0, %v244_v46  ;;  %v246_v45 = vld [vmem:[%s5852_s0 + $0x740] sm:$0xff] }
 0x169   :  { %v262_v46 = vld [vmem:[%s5852_s0 + $0x7c0] sm:$0xff] }
 0x16a   :  { %v4582_v5 = vpop.f32.mrb[42].mxu1  ;;  %v4584_v6 = vpop.f32.mrb[42].mxu0 }
 0x16b   :  { %5926 = vst [vmem:[#allocation23_spill] sm:$0xff] %v4582_v5  ;;  %1350 = vmatmul.mubr.f32.gmra.mrb[148].mxu0 %v236_v59  ;;  %v1628_v11 = vpop.f32.mrb[43].mxu1  ;;  %3164 = vmatmul.mubr.msk.f32.gmra.mrb[148].mxu1 %vm482_vm0, %v247_v60  ;;  %v1088_v12 = vpop.f32.mrb[43].mxu0  ;;  %v331_v5 = vld [vmem:[%s5852_s0 + $0x9e8] sm:$0xff] }
 0x16c   :  { %1354 = vmatprep.mubr.f32.mxu0 %v240_v3  ;;  %3166 = vmatprep.mubr.msk.f32.mxu1 %vm482_vm0, %v250_v4  ;;  %v245_v3 = vld [vmem:[%s5852_s0 + $0x738] sm:$0xff]  ;;  %v268_v12 = vld [vmem:[%s5852_s0 + $0x7f0] sm:$0xff] }
 0x16d   :  { %v265_v4 = vld [vmem:[%s5852_s0 + $0x7d8] sm:$0xff] }
 0x16e   :  { %v4600_v27 = vpop.f32.mrb[44].mxu1  ;;  %v4602_v28 = vpop.f32.mrb[44].mxu0  ;;  %v249_v11 = vld [vmem:[%s5852_s0 + $0x758] sm:$0xff] }
 0x16f   :  { %5927 = vst [vmem:[#allocation24_spill] sm:$0xff] %v4600_v27  ;;  %1355 = vmatmul.mubr.f32.gmra.mrb[150].mxu0 %v239_v15  ;;  %v1633_v37 = vpop.f32.mrb[45].mxu1  ;;  %3167 = vmatmul.mubr.msk.f32.gmra.mrb[150].mxu1 %vm482_vm0, %v253_v16  ;;  %v1093_v38 = vpop.f32.mrb[45].mxu0  ;;  %v313_v27 = vld [vmem:[%s5852_s0 + $0x958] sm:$0xff] }
 0x170   :  { %1359 = vmatprep.mubr.f32.mxu0 %v243_v23  ;;  %3169 = vmatprep.mubr.msk.f32.mxu1 %vm482_vm0, %v256_v24  ;;  %v248_v37 = vld [vmem:[%s5852_s0 + $0x750] sm:$0xff]  ;;  %v271_v38 = vld [vmem:[%s5852_s0 + $0x808] sm:$0xff] }
 0x172   :  { %v4618_v55 = vpop.f32.mrb[46].mxu1  ;;  %v4620_v56 = vpop.f32.mrb[46].mxu0 }
 0x173   :  { %5928 = vst [vmem:[#allocation25_spill] sm:$0xff] %v4618_v55  ;;  %1360 = vmatmul.mubr.f32.gmra.mrb[152].mxu0 %v242_v43  ;;  %v1638_v59 = vpop.f32.mrb[47].mxu1  ;;  %3170 = vmatmul.mubr.msk.f32.gmra.mrb[152].mxu1 %vm482_vm0, %v259_v44  ;;  %v1098_v60 = vpop.f32.mrb[47].mxu0  ;;  %v252_v43 = vld [vmem:[%s5852_s0 + $0x770] sm:$0xff]  ;;  %v274_v44 = vld [vmem:[%s5852_s0 + $0x820] sm:$0xff]  ;;  %v319_v55 = vld [vmem:[%s5852_s0 + $0x988] sm:$0xff] }
 0x174   :  { %1364 = vmatprep.mubr.f32.mxu0 %v246_v45  ;;  %3172 = vmatprep.mubr.msk.f32.mxu1 %vm482_vm0, %v262_v46 }
 0x176   :  { %v4636_v15 = vpop.f32.mrb[48].mxu1  ;;  %v4638_v16 = vpop.f32.mrb[48].mxu0 }
 0x177   :  { %5929 = vst [vmem:[#allocation26_spill] sm:$0xff] %v4636_v15  ;;  %1365 = vmatmul.mubr.f32.gmra.mrb[154].mxu0 %v245_v3  ;;  %v1643_v23 = vpop.f32.mrb[49].mxu1  ;;  %3173 = vmatmul.mubr.msk.f32.gmra.mrb[154].mxu1 %vm482_vm0, %v265_v4  ;;  %v1103_v24 = vpop.f32.mrb[49].mxu0  ;;  %v251_v3 = vld [vmem:[%s5852_s0 + $0x768] sm:$0xff]  ;;  %v277_v4 = vld [vmem:[%s5852_s0 + $0x838] sm:$0xff] }
 0x178   :  { %1369 = vmatprep.mubr.f32.mxu0 %v249_v11  ;;  %3175 = vmatprep.mubr.msk.f32.mxu1 %vm482_vm0, %v268_v12  ;;  %v255_v11 = vld [vmem:[%s5852_s0 + $0x788] sm:$0xff]  ;;  %v280_v12 = vld [vmem:[%s5852_s0 + $0x850] sm:$0xff]  ;;  %v301_v15 = vld [vmem:[%s5852_s0 + $0x8f8] sm:$0xff] }
 0x17a   :  { %v4654_v45 = vpop.f32.mrb[50].mxu1  ;;  %v4656_v46 = vpop.f32.mrb[50].mxu0 }
 0x17b   :  { %5930 = vst [vmem:[#allocation27_spill] sm:$0xff] %v4654_v45  ;;  %1370 = vmatmul.mubr.f32.gmra.mrb[156].mxu0 %v248_v37  ;;  %v1648_v59 = vpop.f32.mrb[51].mxu1  ;;  %3176 = vmatmul.mubr.msk.f32.gmra.mrb[156].mxu1 %vm482_vm0, %v271_v38  ;;  %v1108_v60 = vpop.f32.mrb[51].mxu0  ;;  %v307_v45 = vld [vmem:[%s5852_s0 + $0x928] sm:$0xff] }
 0x17c   :  { %1374 = vmatprep.mubr.f32.mxu0 %v252_v43  ;;  %3178 = vmatprep.mubr.msk.f32.mxu1 %vm482_vm0, %v274_v44  ;;  %v254_v43 = vld [vmem:[%s5852_s0 + $0x780] sm:$0xff]  ;;  %v283_v44 = vld [vmem:[%s5852_s0 + $0x868] sm:$0xff] }
 0x17d   :  { %v258_v59 = vld [vmem:[%s5852_s0 + $0x7a0] sm:$0xff] }
 0x17e   :  { %v4672_v23 = vpop.f32.mrb[52].mxu1  ;;  %v4674_v24 = vpop.f32.mrb[52].mxu0  ;;  %v286_v60 = vld [vmem:[%s5852_s0 + $0x880] sm:$0xff] }
 0x17f   :  { %5931 = vst [vmem:[#allocation28_spill] sm:$0xff] %v4672_v23  ;;  %1375 = vmatmul.mubr.f32.gmra.mrb[158].mxu0 %v251_v3  ;;  %v1653_v37 = vpop.f32.mrb[53].mxu1  ;;  %3179 = vmatmul.mubr.msk.f32.gmra.mrb[158].mxu1 %vm482_vm0, %v277_v4  ;;  %v1113_v38 = vpop.f32.mrb[53].mxu0  ;;  %v261_v23 = vld [vmem:[%s5852_s0 + $0x7b8] sm:$0xff] }
 0x180   :  { %1379 = vmatprep.mubr.f32.mxu0 %v255_v11  ;;  %3181 = vmatprep.mubr.msk.f32.mxu1 %vm482_vm0, %v280_v12  ;;  %v257_v37 = vld [vmem:[%s5852_s0 + $0x798] sm:$0xff] }
 0x181   :  { %v289_v38 = vld [vmem:[%s5852_s0 + $0x898] sm:$0xff] }
 0x182   :  { %v4690_v3 = vpop.f32.mrb[54].mxu1  ;;  %v4692_v4 = vpop.f32.mrb[54].mxu0 }
 0x183   :  { %5932 = vst [vmem:[#allocation29_spill] sm:$0xff] %v4690_v3  ;;  %1380 = vmatmul.mubr.f32.gmra.mrb[160].mxu0 %v254_v43  ;;  %v1658_v11 = vpop.f32.mrb[55].mxu1  ;;  %3182 = vmatmul.mubr.msk.f32.gmra.mrb[160].mxu1 %vm482_vm0, %v283_v44  ;;  %v1118_v12 = vpop.f32.mrb[55].mxu0  ;;  %v292_v43 = vld [vmem:[%s5852_s0 + $0x8b0] sm:$0xff]  ;;  %v295_v3 = vld [vmem:[%s5852_s0 + $0x8c8] sm:$0xff] }
 0x184   :  { %1384 = vmatprep.mubr.f32.mxu0 %v258_v59  ;;  %3184 = vmatprep.mubr.msk.f32.mxu1 %vm482_vm0, %v286_v60  ;;  %v260_v12 = vld [vmem:[%s5852_s0 + $0x7b0] sm:$0xff] }
 0x186   :  { %v4708_v44 = vpop.f32.mrb[56].mxu1  ;;  %v4710_v59 = vpop.f32.mrb[56].mxu0 }
 0x187   :  { %5933 = vst [vmem:[#allocation30_spill] sm:$0xff] %v4708_v44  ;;  %1385 = vmatmul.mubr.f32.gmra.mrb[162].mxu0 %v257_v37  ;;  %v1663_v60 = vpop.f32.mrb[57].mxu1  ;;  %3185 = vmatmul.mubr.msk.f32.gmra.mrb[162].mxu1 %vm482_vm0, %v289_v38  ;;  %v1123_v11 = vpop.f32.mrb[57].mxu0  ;;  %v264_v44 = vld [vmem:[%s5852_s0 + $0x7d0] sm:$0xff]  ;;  %v298_v37 = vld [vmem:[%s5852_s0 + $0x8e0] sm:$0xff] }
 0x188   :  { %1389 = vmatprep.mubr.f32.mxu0 %v261_v23  ;;  %3187 = vmatprep.mubr.msk.f32.mxu1 %vm482_vm0, %v292_v43  ;;  %v263_v11 = vld [vmem:[%s5852_s0 + $0x7c8] sm:$0xff] }
 0x18a   :  { %v4726_v38 = vpop.f32.mrb[58].mxu1  ;;  %v4728_v23 = vpop.f32.mrb[58].mxu0 }
 0x18b   :  { %5934 = vst [vmem:[#allocation31_spill] sm:$0xff] %v4726_v38  ;;  %1390 = vmatmul.mubr.f32.gmra.mrb[164].mxu0 %v260_v12  ;;  %v1668_v43 = vpop.f32.mrb[59].mxu1  ;;  %3188 = vmatmul.mubr.msk.f32.gmra.mrb[164].mxu1 %vm482_vm0, %v295_v3  ;;  %v1128_v60 = vpop.f32.mrb[59].mxu0  ;;  %v267_v38 = vld [vmem:[%s5852_s0 + $0x7e8] sm:$0xff]  ;;  %v304_v3 = vld [vmem:[%s5852_s0 + $0x910] sm:$0xff] }
 0x18c   :  { %1394 = vmatprep.mubr.f32.mxu0 %v264_v44  ;;  %3190 = vmatprep.mubr.msk.f32.mxu1 %vm482_vm0, %v298_v37  ;;  %v266_v60 = vld [vmem:[%s5852_s0 + $0x7e0] sm:$0xff] }
 0x18e   :  { %v4744_v12 = vpop.f32.mrb[60].mxu1  ;;  %v4746_v44 = vpop.f32.mrb[60].mxu0 }
 0x18f   :  { %5935 = vst [vmem:[#allocation32_spill] sm:$0xff] %v4744_v12  ;;  %1395 = vmatmul.mubr.f32.gmra.mrb[166].mxu0 %v263_v11  ;;  %v1673_v37 = vpop.f32.mrb[61].mxu1  ;;  %3191 = vmatmul.mubr.msk.f32.gmra.mrb[166].mxu1 %vm482_vm0, %v301_v15  ;;  %v1133_v43 = vpop.f32.mrb[61].mxu0  ;;  %v270_v12 = vld [vmem:[%s5852_s0 + $0x800] sm:$0xff] }
 0x190   :  { %1399 = vmatprep.mubr.f32.mxu0 %v267_v38  ;;  %3193 = vmatprep.mubr.msk.f32.mxu1 %vm482_vm0, %v304_v3  ;;  %v310_v15 = vld [vmem:[%s5852_s0 + $0x940] sm:$0xff]  ;;  %v269_v43 = vld [vmem:[%s5852_s0 + $0x7f8] sm:$0xff] }
 0x192   :  { %v4762_v11 = vpop.f32.mrb[62].mxu1  ;;  %v4764_v38 = vpop.f32.mrb[62].mxu0 }
 0x193   :  { %5936 = vst [vmem:[#allocation33_spill] sm:$0xff] %v4762_v11  ;;  %1400 = vmatmul.mubr.f32.gmra.mrb[168].mxu0 %v266_v60  ;;  %v1678_v3 = vpop.f32.mrb[63].mxu1  ;;  %3194 = vmatmul.mubr.msk.f32.gmra.mrb[168].mxu1 %vm482_vm0, %v307_v45  ;;  %v1138_v37 = vpop.f32.mrb[63].mxu0  ;;  %v273_v11 = vld [vmem:[%s5852_s0 + $0x818] sm:$0xff]  ;;  %v316_v45 = vld [vmem:[%s5852_s0 + $0x970] sm:$0xff] }
 0x194   :  { %1404 = vmatprep.mubr.f32.mxu0 %v270_v12  ;;  %3196 = vmatprep.mubr.msk.f32.mxu1 %vm482_vm0, %v310_v15  ;;  %v272_v37 = vld [vmem:[%s5852_s0 + $0x810] sm:$0xff] }
 0x196   :  { %v4780_v60 = vpop.f32.mrb[64].mxu1  ;;  %v4782_v12 = vpop.f32.mrb[64].mxu0 }
 0x197   :  { %5937 = vst [vmem:[#allocation34_spill] sm:$0xff] %v4780_v60  ;;  %1405 = vmatmul.mubr.f32.gmra.mrb[170].mxu0 %v269_v43  ;;  %v1683_v15 = vpop.f32.mrb[65].mxu1  ;;  %3197 = vmatmul.mubr.msk.f32.gmra.mrb[170].mxu1 %vm482_vm0, %v313_v27  ;;  %v1143_v3 = vpop.f32.mrb[65].mxu0  ;;  %v276_v60 = vld [vmem:[%s5852_s0 + $0x830] sm:$0xff]  ;;  %v322_v27 = vld [vmem:[%s5852_s0 + $0x9a0] sm:$0xff] }
 0x198   :  { %1409 = vmatprep.mubr.f32.mxu0 %v273_v11  ;;  %3199 = vmatprep.mubr.msk.f32.mxu1 %vm482_vm0, %v316_v45  ;;  %v275_v3 = vld [vmem:[%s5852_s0 + $0x828] sm:$0xff] }
 0x19a   :  { %v4798_v43 = vpop.f32.mrb[66].mxu1  ;;  %v4800_v11 = vpop.f32.mrb[66].mxu0 }
 0x19b   :  { %5938 = vst [vmem:[#allocation35_spill] sm:$0xff] %v4798_v43  ;;  %1410 = vmatmul.mubr.f32.gmra.mrb[172].mxu0 %v272_v37  ;;  %v1688_v45 = vpop.f32.mrb[67].mxu1  ;;  %3200 = vmatmul.mubr.msk.f32.gmra.mrb[172].mxu1 %vm482_vm0, %v319_v55  ;;  %v1148_v15 = vpop.f32.mrb[67].mxu0  ;;  %v279_v43 = vld [vmem:[%s5852_s0 + $0x848] sm:$0xff]  ;;  %v328_v55 = vld [vmem:[%s5852_s0 + $0x9d0] sm:$0xff] }
 0x19c   :  { %1414 = vmatprep.mubr.f32.mxu0 %v276_v60  ;;  %3202 = vmatprep.mubr.msk.f32.mxu1 %vm482_vm0, %v322_v27  ;;  %v278_v15 = vld [vmem:[%s5852_s0 + $0x840] sm:$0xff] }
 0x19e   :  { %v4816_v37 = vpop.f32.mrb[68].mxu1  ;;  %v4818_v60 = vpop.f32.mrb[68].mxu0 }
 0x19f   :  { %5939 = vst [vmem:[#allocation36_spill] sm:$0xff] %v4816_v37  ;;  %1415 = vmatmul.mubr.f32.gmra.mrb[174].mxu0 %v275_v3  ;;  %v1693_v27 = vpop.f32.mrb[69].mxu1  ;;  %3203 = vmatmul.mubr.msk.f32.gmra.mrb[174].mxu1 %vm482_vm0, %v325_v53  ;;  %v1153_v45 = vpop.f32.mrb[69].mxu0  ;;  %v282_v37 = vld [vmem:[%s5852_s0 + $0x860] sm:$0xff] }
 0x1a0   :  { %1419 = vmatprep.mubr.f32.mxu0 %v279_v43  ;;  %3205 = vmatprep.mubr.msk.f32.mxu1 %vm482_vm0, %v328_v55  ;;  %v334_v53 = vld [vmem:[%s5852_s0 + $0xa00] sm:$0xff]  ;;  %v281_v45 = vld [vmem:[%s5852_s0 + $0x858] sm:$0xff] }
 0x1a2   :  { %v4834_v3 = vpop.f32.mrb[70].mxu1  ;;  %v4836_v43 = vpop.f32.mrb[70].mxu0 }
 0x1a3   :  { %5940 = vst [vmem:[#allocation37_spill] sm:$0xff] %v4834_v3  ;;  %1420 = vmatmul.mubr.f32.gmra.mrb[176].mxu0 %v278_v15  ;;  %v1698_v55 = vpop.f32.mrb[71].mxu1  ;;  %3206 = vmatmul.mubr.msk.f32.gmra.mrb[176].mxu1 %vm482_vm0, %v331_v5  ;;  %v1158_v27 = vpop.f32.mrb[71].mxu0  ;;  %v285_v3 = vld [vmem:[%s5852_s0 + $0x878] sm:$0xff]  ;;  %v340_v5 = vld [vmem:[%s5852_s0 + $0xa30] sm:$0xff] }
 0x1a4   :  { %1424 = vmatprep.mubr.f32.mxu0 %v282_v37  ;;  %3208 = vmatprep.mubr.msk.f32.mxu1 %vm482_vm0, %v334_v53 }
 0x1a6   :  { %v3051_v15 = vpop.f32.mrb[72].mxu1  ;;  %v4852_v37 = vpop.f32.mrb[72].mxu0 }
 0x1a7   :  { %v4855_v53 = vadd.f32 %v3051_v15, %v4224_v26  ;;  %1425 = vmatmul.mubr.f32.gmra.mrb[178].mxu0 %v281_v45  ;;  %v1766_v55 = vpop.f32.mrb[73].mxu1  ;;  %3209 = vmatmul.mubr.msk.f32.gmra.mrb[178].mxu1 %vm482_vm0, %v337_v13  ;;  %v1163_v27 = vpop.f32.mrb[73].mxu0  ;;  %v343_v26 = vld [vmem:[%s5852_s0 + $0xa48] sm:$0xff]  ;;  %v288_v45 = vld [vmem:[%s5852_s0 + $0x890] sm:$0xff] }
 0x1a8   :  { %v4859_v31 = vadd.f32 %v1766_v55, %v4206_v18  ;;  %1429 = vmatprep.mubr.f32.mxu0 %v285_v3  ;;  %3211 = vmatprep.mubr.msk.f32.mxu1 %vm482_vm0, %v340_v5  ;;  %v346_v18 = vld [vmem:[%s5852_s0 + $0xa60] sm:$0xff] }
 0x1aa   :  { %v3054_v13 = vpop.f32.mrb[74].mxu1  ;;  %v4874_v3 = vpop.f32.mrb[74].mxu0 }
 0x1ab   :  { %v4877_v5 = vadd.f32 %v3054_v13, %v4260_v42  ;;  %1430 = vmatmul.mubr.f32.gmra.mrb[180].mxu0 %v284_v47  ;;  %v1776_v15 = vpop.f32.mrb[75].mxu1  ;;  %3212 = vmatmul.mubr.msk.f32.gmra.mrb[180].mxu1 %vm482_vm0, %v343_v26  ;;  %v1168_v55 = vpop.f32.mrb[75].mxu0  ;;  %v349_v42 = vld [vmem:[%s5852_s0 + $0xa78] sm:$0xff]  ;;  %v291_v47 = vld [vmem:[%s5852_s0 + $0x8a8] sm:$0xff] }
 0x1ac   :  { %v4881_v27 = vadd.f32 %v1776_v15, %v4242_v34  ;;  %1434 = vmatprep.mubr.f32.mxu0 %v288_v45  ;;  %3214 = vmatprep.mubr.msk.f32.mxu1 %vm482_vm0, %v346_v18  ;;  %v352_v34 = vld [vmem:[%s5852_s0 + $0xa90] sm:$0xff] }
 0x1ae   :  { %5941 = vst [vmem:[#allocation38_spill] sm:$0xff] %v4881_v27  ;;  %v3057_v26 = vpop.f32.mrb[76].mxu1  ;;  %v4896_v45 = vpop.f32.mrb[76].mxu0 }
 0x1af   :  { %v4899_v18 = vadd.f32 %v3057_v26, %v4296_v58  ;;  %1435 = vmatmul.mubr.f32.gmra.mrb[182].mxu0 %v287_v63  ;;  %v1786_v13 = vpop.f32.mrb[77].mxu1  ;;  %3215 = vmatmul.mubr.msk.f32.gmra.mrb[182].mxu1 %vm482_vm0, %v349_v42  ;;  %v1173_v15 = vpop.f32.mrb[77].mxu0  ;;  %v355_v58 = vld [vmem:[%s5852_s0 + $0xaa8] sm:$0xff]  ;;  %v294_v63 = vld [vmem:[%s5852_s0 + $0x8c0] sm:$0xff] }
 0x1b0   :  { %v4903_v55 = vadd.f32 %v1786_v13, %v4278_v50  ;;  %1439 = vmatprep.mubr.f32.mxu0 %v291_v47  ;;  %3217 = vmatprep.mubr.msk.f32.mxu1 %vm482_vm0, %v352_v34  ;;  %v358_v50 = vld [vmem:[%s5852_s0 + $0xac0] sm:$0xff] }
 0x1b2   :  { %v3060_v42 = vpop.f32.mrb[78].mxu1  ;;  %v4918_v47 = vpop.f32.mrb[78].mxu0 }
 0x1b3   :  { %v4921_v34 = vadd.f32 %v3060_v42, %v4332_v10  ;;  %1440 = vmatmul.mubr.f32.gmra.mrb[184].mxu0 %v290_v21  ;;  %v1796_v26 = vpop.f32.mrb[79].mxu1  ;;  %3218 = vmatmul.mubr.msk.f32.gmra.mrb[184].mxu1 %vm482_vm0, %v355_v58  ;;  %v1178_v13 = vpop.f32.mrb[79].mxu0  ;;  %v361_v10 = vld [vmem:[%s5852_s0 + $0xad8] sm:$0xff] }
 0x1b4   :  { %v4925_v15 = vadd.f32 %v1796_v26, %v4314_v2  ;;  %1444 = vmatprep.mubr.f32.mxu0 %v294_v63  ;;  %3220 = vmatprep.mubr.msk.f32.mxu1 %vm482_vm0, %v358_v50  ;;  %v297_v21 = vld [vmem:[%s5852_s0 + $0x8d8] sm:$0xff]  ;;  %v364_v2 = vld [vmem:[%s5852_s0 + $0xaf0] sm:$0xff] }
 0x1b6   :  { %v3063_v58 = vpop.f32.mrb[80].mxu1  ;;  %v4940_v63 = vpop.f32.mrb[80].mxu0 }
 0x1b7   :  { %v4943_v50 = vadd.f32 %v3063_v58, %v4368_v30  ;;  %1445 = vmatmul.mubr.f32.gmra.mrb[186].mxu0 %v293_v35  ;;  %v1806_v42 = vpop.f32.mrb[81].mxu1  ;;  %3221 = vmatmul.mubr.msk.f32.gmra.mrb[186].mxu1 %vm482_vm0, %v361_v10  ;;  %v1183_v26 = vpop.f32.mrb[81].mxu0  ;;  %v367_v30 = vld [vmem:[%s5852_s0 + $0xb08] sm:$0xff]  ;;  %v300_v35 = vld [vmem:[%s5852_s0 + $0x8f0] sm:$0xff] }
 0x1b8   :  { %v4947_v13 = vadd.f32 %v1806_v42, %v4350_v20  ;;  %1449 = vmatprep.mubr.f32.mxu0 %v297_v21  ;;  %3223 = vmatprep.mubr.msk.f32.mxu1 %vm482_vm0, %v364_v2  ;;  %v370_v20 = vld [vmem:[%s5852_s0 + $0xb20] sm:$0xff] }
 0x1ba   :  { %v3066_v10 = vpop.f32.mrb[82].mxu1  ;;  %v4962_v21 = vpop.f32.mrb[82].mxu0 }
 0x1bb   :  { %v4965_v2 = vadd.f32 %v3066_v10, %v4404_v52  ;;  %1450 = vmatmul.mubr.f32.gmra.mrb[188].mxu0 %v296_v61  ;;  %v1816_v58 = vpop.f32.mrb[83].mxu1  ;;  %3224 = vmatmul.mubr.msk.f32.gmra.mrb[188].mxu1 %vm482_vm0, %v367_v30  ;;  %v1188_v42 = vpop.f32.mrb[83].mxu0  ;;  %v373_v52 = vld [vmem:[%s5852_s0 + $0xb38] sm:$0xff]  ;;  %v303_v61 = vld [vmem:[%s5852_s0 + $0x908] sm:$0xff] }
 0x1bc   :  { %v4969_v26 = vadd.f32 %v1816_v58, %v4386_v40  ;;  %1454 = vmatprep.mubr.f32.mxu0 %v300_v35  ;;  %3226 = vmatprep.mubr.msk.f32.mxu1 %vm482_vm0, %v370_v20  ;;  %v376_v40 = vld [vmem:[%s5852_s0 + $0xb50] sm:$0xff] }
 0x1be   :  { %v3069_v30 = vpop.f32.mrb[84].mxu1  ;;  %v4984_v35 = vpop.f32.mrb[84].mxu0 }
 0x1bf   :  { %v4987_v20 = vadd.f32 %v3069_v30, %v4440_v8  ;;  %1455 = vmatmul.mubr.f32.gmra.mrb[190].mxu0 %v299_v7  ;;  %v1826_v10 = vpop.f32.mrb[85].mxu1  ;;  %3227 = vmatmul.mubr.msk.f32.gmra.mrb[190].mxu1 %vm482_vm0, %v373_v52  ;;  %v1193_v58 = vpop.f32.mrb[85].mxu0  ;;  %v379_v8 = vld [vmem:[%s5852_s0 + $0xb68] sm:$0xff]  ;;  %v306_v7 = vld [vmem:[%s5852_s0 + $0x920] sm:$0xff] }
 0x1c0   :  { %v4991_v42 = vadd.f32 %v1826_v10, %v4422_v62  ;;  %1459 = vmatprep.mubr.f32.mxu0 %v303_v61  ;;  %3229 = vmatprep.mubr.msk.f32.mxu1 %vm482_vm0, %v376_v40  ;;  %v382_v62 = vld [vmem:[%s5852_s0 + $0xb80] sm:$0xff] }
 0x1c2   :  { %v3072_v52 = vpop.f32.mrb[86].mxu1  ;;  %v5006_v61 = vpop.f32.mrb[86].mxu0 }
 0x1c3   :  { %v5009_v40 = vadd.f32 %v3072_v52, %v4476_v36  ;;  %1460 = vmatmul.mubr.f32.gmra.mrb[192].mxu0 %v302_v39  ;;  %v1836_v30 = vpop.f32.mrb[87].mxu1  ;;  %3230 = vmatmul.mubr.msk.f32.gmra.mrb[192].mxu1 %vm482_vm0, %v379_v8  ;;  %v1198_v10 = vpop.f32.mrb[87].mxu0  ;;  %v385_v36 = vld [vmem:[%s5852_s0 + $0xb98] sm:$0xff] }
 0x1c4   :  { %v5013_v58 = vadd.f32 %v1836_v30, %v4458_v22  ;;  %1464 = vmatprep.mubr.f32.mxu0 %v306_v7  ;;  %3232 = vmatprep.mubr.msk.f32.mxu1 %vm482_vm0, %v382_v62  ;;  %v309_v39 = vld [vmem:[%s5852_s0 + $0x938] sm:$0xff]  ;;  %v388_v22 = vld [vmem:[%s5852_s0 + $0xbb0] sm:$0xff] }
 0x1c6   :  { %5942 = vst [vmem:[#allocation39_spill] sm:$0xff] %v5013_v58  ;;  %v3075_v8 = vpop.f32.mrb[88].mxu1  ;;  %v5028_v7 = vpop.f32.mrb[88].mxu0 }
 0x1c7   :  { %v5031_v62 = vadd.f32 %v3075_v8, %v4512_v0  ;;  %1465 = vmatmul.mubr.f32.gmra.mrb[194].mxu0 %v305_v51  ;;  %v1846_v52 = vpop.f32.mrb[89].mxu1  ;;  %3233 = vmatmul.mubr.msk.f32.gmra.mrb[194].mxu1 %vm482_vm0, %v385_v36  ;;  %v1203_v30 = vpop.f32.mrb[89].mxu0  ;;  %v391_v0 = vld [vmem:[%s5852_s0 + $0xbc8] sm:$0xff]  ;;  %v312_v51 = vld [vmem:[%s5852_s0 + $0x950] sm:$0xff] }
 0x1c8   :  { %v5035_v10 = vadd.f32 %v1846_v52, %v4494_v48  ;;  %1469 = vmatprep.mubr.f32.mxu0 %v309_v39  ;;  %3235 = vmatprep.mubr.msk.f32.mxu1 %vm482_vm0, %v388_v22  ;;  %v394_v48 = vld [vmem:[%s5852_s0 + $0xbe0] sm:$0xff] }
 0x1c9   :  { %5943 = vst [vmem:[#allocation40_spill] sm:$0xff] %v5031_v62 }
 0x1ca   :  { %5944 = vst [vmem:[#allocation41_spill] sm:$0xff] %v5035_v10  ;;  %v3078_v36 = vpop.f32.mrb[90].mxu1  ;;  %v5050_v39 = vpop.f32.mrb[90].mxu0 }
 0x1cb   :  { %v5053_v22 = vadd.f32 %v3078_v36, %v4548_v32  ;;  %1470 = vmatmul.mubr.f32.gmra.mrb[196].mxu0 %v308_v19  ;;  %v1856_v8 = vpop.f32.mrb[91].mxu1  ;;  %3236 = vmatmul.mubr.msk.f32.gmra.mrb[196].mxu1 %vm482_vm0, %v391_v0  ;;  %v1208_v52 = vpop.f32.mrb[91].mxu0  ;;  %v397_v32 = vld [vmem:[%s5852_s0 + $0xbf8] sm:$0xff]  ;;  %v315_v19 = vld [vmem:[%s5852_s0 + $0x968] sm:$0xff] }
 0x1cc   :  { %v5057_v30 = vadd.f32 %v1856_v8, %v4530_v14  ;;  %1474 = vmatprep.mubr.f32.mxu0 %v312_v51  ;;  %3238 = vmatprep.mubr.msk.f32.mxu1 %vm482_vm0, %v394_v48  ;;  %v400_v14 = vld [vmem:[%s5852_s0 + $0xc10] sm:$0xff] }
 0x1cd   :  { %5945 = vst [vmem:[#allocation42_spill] sm:$0xff] %v5053_v22 }
 0x1ce   :  { %5946 = vst [vmem:[#allocation43_spill] sm:$0xff] %v5057_v30  ;;  %v3081_v0 = vpop.f32.mrb[92].mxu1  ;;  %v5072_v51 = vpop.f32.mrb[92].mxu0 }
 0x1cf   :  { %v5075_v48 = vadd.f32 %v3081_v0, %v4584_v6  ;;  %1475 = vmatmul.mubr.f32.gmra.mrb[198].mxu0 %v311_v29  ;;  %v1866_v36 = vpop.f32.mrb[93].mxu1  ;;  %3239 = vmatmul.mubr.msk.f32.gmra.mrb[198].mxu1 %vm482_vm0, %v397_v32  ;;  %v1213_v8 = vpop.f32.mrb[93].mxu0  ;;  %v403_v6 = vld [vmem:[%s5852_s0 + $0xc28] sm:$0xff]  ;;  %v318_v29 = vld [vmem:[%s5852_s0 + $0x980] sm:$0xff] }
 0x1d0   :  { %v5079_v52 = vadd.f32 %v1866_v36, %v4566_v54  ;;  %1479 = vmatprep.mubr.f32.mxu0 %v315_v19  ;;  %3241 = vmatprep.mubr.msk.f32.mxu1 %vm482_vm0, %v400_v14  ;;  %v406_v54 = vld [vmem:[%s5852_s0 + $0xc40] sm:$0xff] }
 0x1d1   :  { %5947 = vst [vmem:[#allocation44_spill] sm:$0xff] %v5075_v48 }
 0x1d2   :  { %5948 = vst [vmem:[#allocation45_spill] sm:$0xff] %v5079_v52  ;;  %v3084_v32 = vpop.f32.mrb[94].mxu1  ;;  %v5094_v19 = vpop.f32.mrb[94].mxu0 }
 0x1d3   :  { %v5097_v14 = vadd.f32 %v3084_v32, %v4620_v56  ;;  %1480 = vmatmul.mubr.f32.gmra.mrb[200].mxu0 %v314_v1  ;;  %v1876_v0 = vpop.f32.mrb[95].mxu1  ;;  %3242 = vmatmul.mubr.msk.f32.gmra.mrb[200].mxu1 %vm482_vm0, %v403_v6  ;;  %v1218_v36 = vpop.f32.mrb[95].mxu0  ;;  %v409_v56 = vld [vmem:[%s5852_s0 + $0xc58] sm:$0xff] }
 0x1d4   :  { %v5101_v8 = vadd.f32 %v1876_v0, %v4602_v28  ;;  %1484 = vmatprep.mubr.f32.mxu0 %v318_v29  ;;  %3244 = vmatprep.mubr.msk.f32.mxu1 %vm482_vm0, %v406_v54  ;;  %v321_v1 = vld [vmem:[%s5852_s0 + $0x998] sm:$0xff]  ;;  %v412_v28 = vld [vmem:[%s5852_s0 + $0xc70] sm:$0xff] }
 0x1d5   :  { %5949 = vst [vmem:[#allocation46_spill] sm:$0xff] %v5097_v14 }
 0x1d6   :  { %5950 = vst [vmem:[#allocation47_spill] sm:$0xff] %v5101_v8  ;;  %v3087_v6 = vpop.f32.mrb[96].mxu1  ;;  %v5116_v29 = vpop.f32.mrb[96].mxu0 }
 0x1d7   :  { %v5119_v54 = vadd.f32 %v3087_v6, %v4656_v46  ;;  %1485 = vmatmul.mubr.f32.gmra.mrb[202].mxu0 %v317_v9  ;;  %v1886_v32 = vpop.f32.mrb[97].mxu1  ;;  %3245 = vmatmul.mubr.msk.f32.gmra.mrb[202].mxu1 %vm482_vm0, %v409_v56  ;;  %v1223_v0 = vpop.f32.mrb[97].mxu0  ;;  %v415_v46 = vld [vmem:[%s5852_s0 + $0xc88] sm:$0xff]  ;;  %v324_v9 = vld [vmem:[%s5852_s0 + $0x9b0] sm:$0xff] }
 0x1d8   :  { %v5123_v36 = vadd.f32 %v1886_v32, %v4638_v16  ;;  %1489 = vmatprep.mubr.f32.mxu0 %v321_v1  ;;  %3247 = vmatprep.mubr.msk.f32.mxu1 %vm482_vm0, %v412_v28  ;;  %v418_v16 = vld [vmem:[%s5852_s0 + $0xca0] sm:$0xff] }
 0x1d9   :  { %5951 = vst [vmem:[#allocation48_spill] sm:$0xff] %v5119_v54 }
 0x1da   :  { %5952 = vst [vmem:[#allocation49_spill] sm:$0xff] %v5123_v36  ;;  %v3090_v56 = vpop.f32.mrb[98].mxu1  ;;  %v5138_v1 = vpop.f32.mrb[98].mxu0 }
 0x1db   :  { %v5141_v28 = vadd.f32 %v3090_v56, %v4692_v4  ;;  %1490 = vmatmul.mubr.f32.gmra.mrb[204].mxu0 %v320_v49  ;;  %v1896_v6 = vpop.f32.mrb[99].mxu1  ;;  %3248 = vmatmul.mubr.msk.f32.gmra.mrb[204].mxu1 %vm482_vm0, %v415_v46  ;;  %v1228_v32 = vpop.f32.mrb[99].mxu0  ;;  %v421_v4 = vld [vmem:[%s5852_s0 + $0xcb8] sm:$0xff]  ;;  %v327_v49 = vld [vmem:[%s5852_s0 + $0x9c8] sm:$0xff] }
 0x1dc   :  { %v5145_v0 = vadd.f32 %v1896_v6, %v4674_v24  ;;  %1494 = vmatprep.mubr.f32.mxu0 %v324_v9  ;;  %3250 = vmatprep.mubr.msk.f32.mxu1 %vm482_vm0, %v418_v16  ;;  %v424_v24 = vld [vmem:[%s5852_s0 + $0xcd0] sm:$0xff] }
 0x1dd   :  { %5953 = vst [vmem:[#allocation50_spill] sm:$0xff] %v5141_v28 }
 0x1de   :  { %5954 = vst [vmem:[#allocation51_spill] sm:$0xff] %v5145_v0  ;;  %v3093_v46 = vpop.f32.mrb[100].mxu1  ;;  %v5160_v9 = vpop.f32.mrb[100].mxu0 }
 0x1df   :  { %v5163_v16 = vadd.f32 %v3093_v46, %v4728_v23  ;;  %1495 = vmatmul.mubr.f32.gmra.mrb[206].mxu0 %v323_v57  ;;  %v1906_v56 = vpop.f32.mrb[101].mxu1  ;;  %3251 = vmatmul.mubr.msk.f32.gmra.mrb[206].mxu1 %vm482_vm0, %v421_v4  ;;  %v1233_v6 = vpop.f32.mrb[101].mxu0  ;;  %v427_v23 = vld [vmem:[%s5852_s0 + $0xce8] sm:$0xff]  ;;  %v330_v57 = vld [vmem:[%s5852_s0 + $0x9e0] sm:$0xff] }
 0x1e0   :  { %v5167_v32 = vadd.f32 %v1906_v56, %v4710_v59  ;;  %1499 = vmatprep.mubr.f32.mxu0 %v327_v49  ;;  %3253 = vmatprep.mubr.msk.f32.mxu1 %vm482_vm0, %v424_v24  ;;  %v430_v59 = vld [vmem:[%s5852_s0 + $0xd00] sm:$0xff] }
 0x1e1   :  { %5955 = vst [vmem:[#allocation52_spill] sm:$0xff] %v5163_v16 }
 0x1e2   :  { %5956 = vst [vmem:[#allocation53_spill] sm:$0xff] %v5167_v32  ;;  %v3096_v4 = vpop.f32.mrb[102].mxu1  ;;  %v5182_v49 = vpop.f32.mrb[102].mxu0 }
 0x1e3   :  { %v5185_v24 = vadd.f32 %v3096_v4, %v4764_v38  ;;  %1500 = vmatmul.mubr.f32.gmra.mrb[208].mxu0 %v326_v33  ;;  %v1916_v46 = vpop.f32.mrb[103].mxu1  ;;  %3254 = vmatmul.mubr.msk.f32.gmra.mrb[208].mxu1 %vm482_vm0, %v427_v23  ;;  %v1238_v56 = vpop.f32.mrb[103].mxu0  ;;  %v433_v38 = vld [vmem:[%s5852_s0 + $0xd18] sm:$0xff] }
 0x1e4   :  { %v5189_v6 = vadd.f32 %v1916_v46, %v4746_v44  ;;  %1504 = vmatprep.mubr.f32.mxu0 %v330_v57  ;;  %3256 = vmatprep.mubr.msk.f32.mxu1 %vm482_vm0, %v430_v59  ;;  %v333_v33 = vld [vmem:[%s5852_s0 + $0x9f8] sm:$0xff]  ;;  %v436_v44 = vld [vmem:[%s5852_s0 + $0xd30] sm:$0xff] }
 0x1e5   :  { %5957 = vst [vmem:[#allocation54_spill] sm:$0xff] %v5185_v24 }
 0x1e6   :  { %5958 = vst [vmem:[#allocation55_spill] sm:$0xff] %v5189_v6  ;;  %v3099_v23 = vpop.f32.mrb[104].mxu1  ;;  %v5204_v57 = vpop.f32.mrb[104].mxu0 }
 0x1e7   :  { %v5207_v59 = vadd.f32 %v3099_v23, %v4800_v11  ;;  %1505 = vmatmul.mubr.f32.gmra.mrb[210].mxu0 %v329_v41  ;;  %v1926_v4 = vpop.f32.mrb[105].mxu1  ;;  %3257 = vmatmul.mubr.msk.f32.gmra.mrb[210].mxu1 %vm482_vm0, %v433_v38  ;;  %v1243_v46 = vpop.f32.mrb[105].mxu0  ;;  %v439_v11 = vld [vmem:[%s5852_s0 + $0xd48] sm:$0xff]  ;;  %v336_v41 = vld [vmem:[%s5852_s0 + $0xa10] sm:$0xff] }
 0x1e8   :  { %v5211_v56 = vadd.f32 %v1926_v4, %v4782_v12  ;;  %1509 = vmatprep.mubr.f32.mxu0 %v333_v33  ;;  %3259 = vmatprep.mubr.msk.f32.mxu1 %vm482_vm0, %v436_v44  ;;  %v442_v12 = vld [vmem:[%s5852_s0 + $0xd60] sm:$0xff] }
 0x1e9   :  { %5959 = vst [vmem:[#allocation56_spill] sm:$0xff] %v5207_v59 }
 0x1ea   :  { %5960 = vst [vmem:[#allocation57_spill] sm:$0xff] %v5211_v56  ;;  %v3102_v38 = vpop.f32.mrb[106].mxu1  ;;  %v5226_v33 = vpop.f32.mrb[106].mxu0 }
 0x1eb   :  { %v5229_v44 = vadd.f32 %v3102_v38, %v4836_v43  ;;  %1510 = vmatmul.mubr.f32.gmra.mrb[212].mxu0 %v332_v17  ;;  %v1936_v23 = vpop.f32.mrb[107].mxu1  ;;  %3260 = vmatmul.mubr.msk.f32.gmra.mrb[212].mxu1 %vm482_vm0, %v439_v11  ;;  %v1248_v4 = vpop.f32.mrb[107].mxu0  ;;  %v445_v43 = vld [vmem:[%s5852_s0 + $0xd78] sm:$0xff] }
 0x1ec   :  { %v5233_v46 = vadd.f32 %v1936_v23, %v4818_v60  ;;  %1514 = vmatprep.mubr.f32.mxu0 %v336_v41  ;;  %3262 = vmatprep.mubr.msk.f32.mxu1 %vm482_vm0, %v442_v12 }
 0x1ed   :  { %5961 = vst [vmem:[#allocation58_spill] sm:$0xff] %v5229_v44 }
 0x1ee   :  { %5962 = vst [vmem:[#allocation59_spill] sm:$0xff] %v5233_v46  ;;  %v3105_v38 = vpop.f32.mrb[108].mxu1  ;;  %v5242_v17 = vpop.f32.mrb[108].mxu0 }
 0x1ef   :  { %v5245_v11 = vadd.f32 %v3105_v38, %v4874_v3  ;;  %1515 = vmatmul.mubr.f32.gmra.mrb[214].mxu0 %v335_v25  ;;  %v1946_v60 = vpop.f32.mrb[109].mxu1  ;;  %3263 = vmatmul.mubr.msk.f32.gmra.mrb[214].mxu1 %vm482_vm0, %v445_v43  ;;  %v1253_v41 = vpop.f32.mrb[109].mxu0 }
 0x1f0   :  { %v5249_v12 = vadd.f32 %v1946_v60, %v4852_v37 }
 0x1f2   :  { %5963 = vst [vmem:[#allocation60_spill] sm:$0xff] %v5249_v12  ;;  %v3108_v46 = vpop.f32.mrb[110].mxu1  ;;  %v5255_v44 = vpop.f32.mrb[110].mxu0 }
 0x1f3   :  { %v5258_v3 = vadd.f32 %v3108_v46, %v4918_v47  ;;  %v1956_v25 = vpop.f32.mrb[111].mxu1  ;;  %v1258_v38 = vpop.f32.mrb[111].mxu0 }
 0x1f4   :  { %v5261_v43 = vadd.f32 %v1956_v25, %v4896_v45 }
 0x1f6   :  { %5964 = vst [vmem:[#allocation61_spill] sm:$0xff] %v5261_v43  ;;  %v3111_v41 = vpop.f32.mrb[112].mxu1  ;;  %v5267_v23 = vpop.f32.mrb[112].mxu0 }
 0x1f7   :  { %v5270_v4 = vadd.f32 %v3111_v41, %v4962_v21  ;;  %v1966_v12 = vpop.f32.mrb[113].mxu1  ;;  %v1263_v47 = vpop.f32.mrb[113].mxu0 }
 0x1f8   :  { %v5273_v46 = vadd.f32 %v1966_v12, %v4940_v63 }
 0x1fa   :  { %5965 = vst [vmem:[#allocation62_spill] sm:$0xff] %v5273_v46  ;;  %v3114_v38 = vpop.f32.mrb[114].mxu1  ;;  %v1266_v37 = vpop.f32.mrb[114].mxu0 }
 0x1fb   :  { %v5280_v60 = vadd.f32 %v3114_v38, %v5006_v61  ;;  %v1976_v43 = vpop.f32.mrb[115].mxu1  ;;  %v1268_v27 = vpop.f32.mrb[115].mxu0 }
 0x1fc   :  { %v5283_v21 = vadd.f32 %v1976_v43, %v4984_v35 }
 0x1fe   :  { %5966 = vst [vmem:[#allocation63_spill] sm:$0xff] %v5283_v21  ;;  %v3117_v41 = vpop.f32.mrb[116].mxu1  ;;  %v1271_v47 = vpop.f32.mrb[116].mxu0 }
 0x1ff   :  { %v5290_v25 = vadd.f32 %v3117_v41, %v5050_v39  ;;  %v1986_v45 = vpop.f32.mrb[117].mxu1  ;;  %v1273_v46 = vpop.f32.mrb[117].mxu0 }
 0x200   :  { %v5293_v61 = vadd.f32 %v1986_v45, %v5028_v7 }
 0x202   :  { %5967 = vst [vmem:[#allocation64_spill] sm:$0xff] %v5293_v61  ;;  %v3120_v43 = vpop.f32.mrb[118].mxu1  ;;  %v1276_v38 = vpop.f32.mrb[118].mxu0 }
 0x203   :  { %v5300_v12 = vadd.f32 %v3120_v43, %v5094_v19  ;;  %v1996_v63 = vpop.f32.mrb[119].mxu1  ;;  %v1278_v21 = vpop.f32.mrb[119].mxu0 }
 0x204   :  { %v5303_v39 = vadd.f32 %v1996_v63, %v5072_v51 }
 0x206   :  { %5968 = vst [vmem:[#allocation65_spill] sm:$0xff] %v5303_v39  ;;  %v3123_v45 = vpop.f32.mrb[120].mxu1  ;;  %v1281_v41 = vpop.f32.mrb[120].mxu0 }
 0x207   :  { %v5310_v35 = vadd.f32 %v3123_v45, %v5138_v1  ;;  %v2006_v27 = vpop.f32.mrb[121].mxu1  ;;  %v1283_v61 = vpop.f32.mrb[121].mxu0 }
 0x208   :  { %v5313_v19 = vadd.f32 %v2006_v27, %v5116_v29 }
 0x20a   :  { %5969 = vst [vmem:[#allocation66_spill] sm:$0xff] %v5313_v19  ;;  %v3126_v63 = vpop.f32.mrb[122].mxu1  ;;  %v1286_v43 = vpop.f32.mrb[122].mxu0 }
 0x20b   :  { %v5320_v46 = vadd.f32 %v3126_v63, %v5182_v49  ;;  %v2016_v7 = vpop.f32.mrb[123].mxu1  ;;  %v1288_v39 = vpop.f32.mrb[123].mxu0 }
 0x20c   :  { %v5323_v1 = vadd.f32 %v2016_v7, %v5160_v9 }
 0x20e   :  { %5970 = vst [vmem:[#allocation67_spill] sm:$0xff] %v5323_v1  ;;  %v3129_v27 = vpop.f32.mrb[124].mxu1  ;;  %v1291_v45 = vpop.f32.mrb[124].mxu0 }
 0x20f   :  { %v5330_v21 = vadd.f32 %v3129_v27, %v5226_v33  ;;  %v2026_v51 = vpop.f32.mrb[125].mxu1  ;;  %v1293_v19 = vpop.f32.mrb[125].mxu0 }
 0x210   :  { %v5333_v49 = vadd.f32 %v2026_v51, %v5204_v57 }
 0x211   :  { %5971 = vst [vmem:[#allocation68_spill] sm:$0xff] %v5330_v21 }
 0x212   :  { %5972 = vst [vmem:[#allocation69_spill] sm:$0xff] %v5333_v49  ;;  %v3132_v7 = vpop.f32.mrb[126].mxu1  ;;  %v1296_v63 = vpop.f32.mrb[126].mxu0 }
 0x213   :  { %v5340_v61 = vadd.f32 %v3132_v7, %v5255_v44  ;;  %v2036_v29 = vpop.f32.mrb[127].mxu1  ;;  %v1298_v1 = vpop.f32.mrb[127].mxu0 }
 0x214   :  { %v5343_v33 = vadd.f32 %v2036_v29, %v5242_v17 }
 0x215   :  { %5973 = vst [vmem:[#allocation70_spill] sm:$0xff] %v5340_v61 }
 0x216   :  { %5974 = vst [vmem:[#allocation71_spill] sm:$0xff] %v5343_v33  ;;  %v3135_v51 = vpop.f32.mrb[128].mxu1  ;;  %v1301_v27 = vpop.f32.mrb[128].mxu0 }
 0x217   :  { %v5349_v9 = vadd.f32 %v3135_v51, %v1266_v37  ;;  %v2046_v39 = vpop.f32.mrb[129].mxu1  ;;  %v1303_v49 = vpop.f32.mrb[129].mxu0 }
 0x218   :  { %v5352_v44 = vadd.f32 %v2046_v39, %v5267_v23 }
 0x219   :  { %5975 = vst [vmem:[#allocation72_spill] sm:$0xff] %v5349_v9 }
 0x21a   :  { %5976 = vst [vmem:[#allocation73_spill] sm:$0xff] %v5352_v44  ;;  %v3138_v29 = vpop.f32.mrb[130].mxu1  ;;  %v1306_v7 = vpop.f32.mrb[130].mxu0 }
 0x21b   :  { %v5358_v57 = vadd.f32 %v3138_v29, %v1276_v38  ;;  %v2056_v19 = vpop.f32.mrb[131].mxu1  ;;  %v1308_v33 = vpop.f32.mrb[131].mxu0 }
 0x21c   :  { %v5360_v30 = vadd.f32 %v2056_v19, %v1271_v47 }
 0x21d   :  { %5977 = vst [vmem:[#allocation74_spill] sm:$0xff] %v5358_v57 }
 0x21e   :  { %5978 = vst [vmem:[#allocation75_spill] sm:$0xff] %v5360_v30  ;;  %v3141_v49 = vpop.f32.mrb[132].mxu1  ;;  %v1311_v39 = vpop.f32.mrb[132].mxu0 }
 0x21f   :  { %v5366_v51 = vadd.f32 %v3141_v49, %v1286_v43  ;;  %v2066_v1 = vpop.f32.mrb[133].mxu1  ;;  %v1313_v17 = vpop.f32.mrb[133].mxu0 }
 0x220   :  { %v5368_v44 = vadd.f32 %v2066_v1, %v1281_v41 }
 0x221   :  { %5979 = vst [vmem:[#allocation76_spill] sm:$0xff] %v5366_v51 }
 0x222   :  { %5980 = vst [vmem:[#allocation77_spill] sm:$0xff] %v5368_v44  ;;  %v3144_v33 = vpop.f32.mrb[134].mxu1  ;;  %v1316_v19 = vpop.f32.mrb[134].mxu0 }
 0x223   :  { %v5374_v29 = vadd.f32 %v3144_v33, %v1296_v63  ;;  %v2076_v37 = vpop.f32.mrb[135].mxu1  ;;  %v1318_v23 = vpop.f32.mrb[135].mxu0 }
 0x224   :  { %v5376_v30 = vadd.f32 %v2076_v37, %v1291_v45 }
 0x225   :  { %5981 = vst [vmem:[#allocation78_spill] sm:$0xff] %v5374_v29 }
 0x226   :  { %5982 = vst [vmem:[#allocation79_spill] sm:$0xff] %v5376_v30  ;;  %v3147_v1 = vpop.f32.mrb[136].mxu1  ;;  %v1321_v17 = vpop.f32.mrb[136].mxu0 }
 0x227   :  { %v5382_v49 = vadd.f32 %v3147_v1, %v1306_v7  ;;  %v2086_v38 = vpop.f32.mrb[137].mxu1  ;;  %v1323_v47 = vpop.f32.mrb[137].mxu0 }
 0x228   :  { %v5384_v44 = vadd.f32 %v2086_v38, %v1301_v27 }
 0x229   :  { %5983 = vst [vmem:[#allocation80_spill] sm:$0xff] %v5382_v49 }
 0x22a   :  { %5984 = vst [vmem:[#allocation81_spill] sm:$0xff] %v5384_v44  ;;  %v3150_v37 = vpop.f32.mrb[138].mxu1  ;;  %v1326_v23 = vpop.f32.mrb[138].mxu0 }
 0x22b   :  { %v5390_v33 = vadd.f32 %v3150_v37, %v1316_v19  ;;  %v2096_v43 = vpop.f32.mrb[139].mxu1  ;;  %v1328_v41 = vpop.f32.mrb[139].mxu0 }
 0x22c   :  { %v5392_v30 = vadd.f32 %v2096_v43, %v1311_v39 }
 0x22d   :  { %5985 = vst [vmem:[#allocation82_spill] sm:$0xff] %v5390_v33 }
 0x22e   :  { %5986 = vst [vmem:[#allocation83_spill] sm:$0xff] %v5392_v30  ;;  %v3153_v38 = vpop.f32.mrb[140].mxu1  ;;  %v1331_v47 = vpop.f32.mrb[140].mxu0 }
 0x22f   :  { %v5398_v1 = vadd.f32 %v3153_v38, %v1326_v23  ;;  %v2106_v63 = vpop.f32.mrb[141].mxu1  ;;  %v1333_v45 = vpop.f32.mrb[141].mxu0 }
 0x230   :  { %v5400_v44 = vadd.f32 %v2106_v63, %v1321_v17 }
 0x231   :  { %5987 = vst [vmem:[#allocation84_spill] sm:$0xff] %v5398_v1 }
 0x232   :  { %5988 = vst [vmem:[#allocation85_spill] sm:$0xff] %v5400_v44  ;;  %v1336_v43 = vpop.f32.mrb[142].mxu0  ;;  %v3156_v41 = vpop.f32.mrb[142].mxu1 }
 0x233   :  { %v5406_v37 = vadd.f32 %v3156_v41, %v1336_v43  ;;  %v2116_v7 = vpop.f32.mrb[143].mxu1  ;;  %v1338_v27 = vpop.f32.mrb[143].mxu0 }
 0x234   :  { %v5408_v30 = vadd.f32 %v2116_v7, %v1331_v47 }
 0x235   :  { %5989 = vst [vmem:[#allocation86_spill] sm:$0xff] %v5406_v37 }
 0x236   :  { %5990 = vst [vmem:[#allocation87_spill] sm:$0xff] %v5408_v30  ;;  %v3159_v45 = vpop.f32.mrb[144].mxu1  ;;  %v1341_v6 = vpop.f32.mrb[144].mxu0 }
 0x237   :  { %v2126_v19 = vpop.f32.mrb[145].mxu1  ;;  %v1343_v1 = vpop.f32.mrb[145].mxu0 }
 0x238   :  { %v5414_v59 = vadd.f32 %v2126_v19, %v1341_v6 }
 0x23a   :  { %v1346_v39 = vpop.f32.mrb[146].mxu0  ;;  %v3162_v44 = vpop.f32.mrb[146].mxu1 }
 0x23b   :  { %v5416_v43 = vadd.f32 %v3159_v45, %v1346_v39  ;;  %v2136_v41 = vpop.f32.mrb[147].mxu1  ;;  %v1348_v27 = vpop.f32.mrb[147].mxu0 }
 0x23e   :  { %v1351_v7 = vpop.f32.mrb[148].mxu0  ;;  %v3165_v47 = vpop.f32.mrb[148].mxu1 }
 0x23f   :  { %v5418_v56 = vadd.f32 %v2136_v41, %v1351_v7  ;;  %v2146_v38 = vpop.f32.mrb[149].mxu1  ;;  %v1353_v37 = vpop.f32.mrb[149].mxu0 }
 0x242   :  { %v1356_v23 = vpop.f32.mrb[150].mxu0  ;;  %v3168_v63 = vpop.f32.mrb[150].mxu1 }
 0x243   :  { %v5420_v30 = vadd.f32 %v3162_v44, %v1356_v23  ;;  %v2156_v17 = vpop.f32.mrb[151].mxu1  ;;  %v1358_v1 = vpop.f32.mrb[151].mxu0 }
 0x246   :  { %v1361_v6 = vpop.f32.mrb[152].mxu0  ;;  %v3171_v19 = vpop.f32.mrb[152].mxu1 }
 0x247   :  { %v5422_v33 = vadd.f32 %v2146_v38, %v1361_v6  ;;  %v2166_v39 = vpop.f32.mrb[153].mxu1  ;;  %v1363_v45 = vpop.f32.mrb[153].mxu0 }
 0x24a   :  { %v1366_v24 = vpop.f32.mrb[154].mxu0  ;;  %v3174_v27 = vpop.f32.mrb[154].mxu1 }
 0x24b   :  { %v5424_v32 = vadd.f32 %v3165_v47, %v1366_v24  ;;  %v2176_v41 = vpop.f32.mrb[155].mxu1  ;;  %v1368_v7 = vpop.f32.mrb[155].mxu0 }
 0x24e   :  { %v1371_v49 = vpop.f32.mrb[156].mxu0  ;;  %v3177_v37 = vpop.f32.mrb[156].mxu1 }
 0x24f   :  { %v5426_v16 = vadd.f32 %v2156_v17, %v1371_v49  ;;  %v2186_v44 = vpop.f32.mrb[157].mxu1  ;;  %v1373_v23 = vpop.f32.mrb[157].mxu0 }
 0x252   :  { %v1376_v0 = vpop.f32.mrb[158].mxu0  ;;  %v3180_v1 = vpop.f32.mrb[158].mxu1 }
 0x253   :  { %v5428_v29 = vadd.f32 %v3168_v63, %v1376_v0  ;;  %v2196_v38 = vpop.f32.mrb[159].mxu1  ;;  %v1378_v6 = vpop.f32.mrb[159].mxu0 }
 0x256   :  { %v1381_v28 = vpop.f32.mrb[160].mxu0  ;;  %v3183_v45 = vpop.f32.mrb[160].mxu1 }
 0x257   :  { %v5430_v36 = vadd.f32 %v2166_v39, %v1381_v28  ;;  %v2206_v24 = vpop.f32.mrb[161].mxu1  ;;  %v1383_v47 = vpop.f32.mrb[161].mxu0 }
 0x25a   :  { %v1386_v51 = vpop.f32.mrb[162].mxu0  ;;  %v3186_v7 = vpop.f32.mrb[162].mxu1 }
 0x25b   :  { %v5432_v54 = vadd.f32 %v3171_v19, %v1386_v51  ;;  %v2216_v49 = vpop.f32.mrb[163].mxu1  ;;  %v1388_v17 = vpop.f32.mrb[163].mxu0 }
 0x25e   :  { %v1391_v8 = vpop.f32.mrb[164].mxu0  ;;  %v5434_v23 = vpop.f32.mrb[164].mxu1 }
 0x25f   :  { %v5436_v57 = vadd.f32 %v2176_v41, %v1391_v8  ;;  %v5438_v0 = vpop.f32.mrb[165].mxu1  ;;  %v1393_v63 = vpop.f32.mrb[165].mxu0 }
 0x262   :  { %v1396_v6 = vpop.f32.mrb[166].mxu0  ;;  %v5440_v14 = vpop.f32.mrb[166].mxu1 }
 0x263   :  { %v5442_v28 = vadd.f32 %v3174_v27, %v1396_v6  ;;  %v5444_v39 = vpop.f32.mrb[167].mxu1  ;;  %v1398_v47 = vpop.f32.mrb[167].mxu0 }
 0x266   :  { %v1401_v51 = vpop.f32.mrb[168].mxu0  ;;  %v5446_v19 = vpop.f32.mrb[168].mxu1 }
 0x267   :  { %v5448_v17 = vadd.f32 %v2186_v44, %v1401_v51  ;;  %v5450_v52 = vpop.f32.mrb[169].mxu1  ;;  %v1403_v8 = vpop.f32.mrb[169].mxu0 }
 0x26a   :  { %v1406_v41 = vpop.f32.mrb[170].mxu0  ;;  %v5452_v9 = vpop.f32.mrb[170].mxu1 }
 0x26b   :  { %5993 = vst [vmem:[#allocation88_spill] sm:$0xff] %v5452_v9  ;;  %v5454_v63 = vadd.f32 %v3177_v37, %v1406_v41  ;;  %v5456_v48 = vpop.f32.mrb[171].mxu1  ;;  %v1408_v27 = vpop.f32.mrb[171].mxu0 }
 0x26e   :  { %v1411_v6 = vpop.f32.mrb[172].mxu0  ;;  %v5458_v61 = vpop.f32.mrb[172].mxu1 }
 0x26f   :  { %5994 = vst [vmem:[#allocation89_spill] sm:$0xff] %v5458_v61  ;;  %v5460_v47 = vadd.f32 %v2196_v38, %v1411_v6  ;;  %v5462_v22 = vpop.f32.mrb[173].mxu1  ;;  %v1413_v44 = vpop.f32.mrb[173].mxu0 }
 0x270   :  { %5995 = vst [vmem:[#allocation90_spill] sm:$0xff] %v5462_v22 }
 0x272   :  { %v1416_v51 = vpop.f32.mrb[174].mxu0  ;;  %v5464_v10 = vpop.f32.mrb[174].mxu1 }
 0x273   :  { %5996 = vst [vmem:[#allocation91_spill] sm:$0xff] %v5464_v10  ;;  %v5466_v8 = vadd.f32 %v3180_v1, %v1416_v51  ;;  %v5468_v21 = vpop.f32.mrb[175].mxu1  ;;  %v1418_v37 = vpop.f32.mrb[175].mxu0 }
 0x274   :  { %5997 = vst [vmem:[#allocation92_spill] sm:$0xff] %v5468_v21  ;;  %v6005_v37 = vld [vmem:[#allocation3_spill] sm:$0xff] }
 0x276   :  { %v1421_v41 = vpop.f32.mrb[176].mxu0  ;;  %v5470_v9 = vpop.f32.mrb[176].mxu1 }
 0x277   :  { %5998 = vst [vmem:[#allocation93_spill] sm:$0xff] %v5470_v9  ;;  %v5472_v27 = vadd.f32 %v2206_v24, %v1421_v41  ;;  %v5474_v62 = vpop.f32.mrb[177].mxu1  ;;  %v1423_v38 = vpop.f32.mrb[177].mxu0  ;;  %v6006_v41 = vld [vmem:[#allocation2_spill] sm:$0xff] }
 0x278   :  { %6000 = vst [vmem:[#allocation95_spill] sm:$0xff] %v5474_v62  ;;  %v6011_v62 = vld [vmem:[#allocation4_spill] sm:$0xff] }
 0x279   :  { %5999 = vst [vmem:[#allocation94_spill] sm:$0xff] %v5472_v27 }
 0x27a   :  { %v1426_v6 = vpop.f32.mrb[178].mxu0  ;;  %v5476_v61 = vpop.f32.mrb[178].mxu1 }
 0x27b   :  { %6001 = vst [vmem:[#allocation96_spill] sm:$0xff] %v5476_v61  ;;  %v5478_v44 = vadd.f32 %v3183_v45, %v1426_v6  ;;  %v5480_v22 = vpop.f32.mrb[179].mxu1  ;;  %v1428_v1 = vpop.f32.mrb[179].mxu0  ;;  %v5490_v45 = vld [vmem:[%s5853_s2] ss:$0 sm:$0xff] }
 0x27c   :  { %6003 = vst [vmem:[#allocation98_spill] sm:$0xff] %v5480_v22 }
 0x27d   :  { %6002 = vst [vmem:[#allocation97_spill] sm:$0xff] %v5478_v44 }
 0x27e   :  { %v1431_v51 = vpop.f32.mrb[180].mxu0  ;;  %v3213_v10 = vpop.f32.mrb[180].mxu1 }
 0x27f   :  { %v5482_v21 = vadd.f32 %v2216_v49, %v1431_v51  ;;  %v2312_v58 = vadd.f32 %v3213_v10, %v6005_v37  ;;  %v2306_v9 = vpop.f32.mrb[181].mxu1  ;;  %v1433_v24 = vpop.f32.mrb[181].mxu0  ;;  %v6007_v49 = vmax.f32 %v4855_v53, %v5245_v11  ;;  %v6008_v37 = vld [vmem:[#allocation5_spill] sm:$0xff] }
 0x280   :  { %v2307_v27 = vadd.f32 %v2306_v9, %v6006_v41 }
 0x281   :  { %6004 = vst [vmem:[#allocation99_spill] sm:$0xff] %v5482_v21  ;;  %v2522_v38 = vmax.f32 %v5416_v43, %v2312_v58  ;;  %v6009_v58 = vld [vmem:[#allocation60_spill] sm:$0xff] }
 0x282   :  { %v2521_v6 = vmax.f32 %v5414_v59, %v2307_v27  ;;  %v1436_v1 = vpop.f32.mrb[182].mxu0  ;;  %v3216_v61 = vpop.f32.mrb[182].mxu1  ;;  %v6010_v43 = vmax.f32 %v4859_v31, %v6009_v58 }
 0x283   :  { %v2558_v51 = vmax.f32 %v6007_v49, %v2522_v38  ;;  %v5496_v10 = vadd.f32 %v3186_v7, %v1436_v1  ;;  %v2322_v24 = vadd.f32 %v3216_v61, %v6008_v37  ;;  %v2316_v9 = vpop.f32.mrb[183].mxu1  ;;  %v1438_v41 = vpop.f32.mrb[183].mxu0  ;;  %v6012_v61 = vmax.f32 %v4877_v5, %v5258_v3 }
 0x284   :  { %v2557_v22 = vmax.f32 %v6010_v43, %v2521_v6  ;;  %v2317_v21 = vadd.f32 %v2316_v9, %v6011_v62  ;;  %v6013_v6 = vld [vmem:[#allocation7_spill] sm:$0xff] }
 0x285   :  { %v2601_v59 = vadd.f32 %v5490_v45, %v2558_v51  ;;  %v2524_v27 = vmax.f32 %v5420_v30, %v2322_v24  ;;  %v6014_v30 = vld [vmem:[#allocation38_spill] sm:$0xff]  ;;  %v6015_v24 = vld [vmem:[#allocation61_spill] sm:$0xff] }
 0x286   :  { %v2600_v44 = vadd.f32 %v5490_v45, %v2557_v22  ;;  %v2523_v53 = vmax.f32 %v5418_v56, %v2317_v21  ;;  %v1441_v11 = vpop.f32.mrb[184].mxu0  ;;  %v3219_v7 = vpop.f32.mrb[184].mxu1  ;;  %v6016_v22 = vmax.f32 %v6014_v30, %v6015_v24  ;;  %v6017_v56 = vld [vmem:[#allocation6_spill] sm:$0xff] }
 0x287   :  { %v2637_v38 = vmul.f32 0.1, %v2601_v59  ;;  %v2560_v1 = vmax.f32 %v6012_v61, %v2524_v27  ;;  %v5511_v31 = vadd.f32 %v5438_v0, %v1441_v11  ;;  %v2332_v62 = vadd.f32 %v3219_v7, %v6013_v6  ;;  %v2326_v49 = vpop.f32.mrb[185].mxu1  ;;  %v1443_v51 = vpop.f32.mrb[185].mxu0  ;;  %v6020_v6 = vld [vmem:[#allocation62_spill] sm:$0xff] }
 0x288   :  { %v2636_v37 = vmul.f32 0.1, %v2600_v44  ;;  %v2559_v9 = vmax.f32 %v6016_v22, %v2523_v53  ;;  %v2327_v21 = vadd.f32 %v2326_v49, %v6017_v56  ;;  %v6018_v53 = vmax.f32 %v4899_v18, %v5270_v4  ;;  %v6022_v51 = vld [vmem:[#allocation8_spill] sm:$0xff] }
 0x289   :  { %v2673_v41 = vmax.f32 %v2601_v59, %v2637_v38  ;;  %v2603_v58 = vadd.f32 %v5490_v45, %v2560_v1  ;;  %v2526_v5 = vmax.f32 %v5424_v32, %v2332_v62  ;;  %v6019_v32 = vld [vmem:[#allocation9_spill] sm:$0xff]  ;;  %v6021_v62 = vmax.f32 %v4903_v55, %v6020_v6 }
 0x28a   :  { %v2672_v3 = vmax.f32 %v2600_v44, %v2636_v37  ;;  %v2602_v0 = vadd.f32 %v5490_v45, %v2559_v9  ;;  %v2525_v43 = vmax.f32 %v5422_v33, %v2327_v21  ;;  %v1446_v27 = vpop.f32.mrb[186].mxu0  ;;  %v3222_v11 = vpop.f32.mrb[186].mxu1  ;;  %v6023_v21 = vmax.f32 %v4921_v34, %v5280_v60 }
 0x28b   :  { %2709 = vst [vmem:[%s5854_s3 + $0x8] sm:$0xff] %v2673_v41  ;;  %v2639_v7 = vmul.f32 0.1, %v2603_v58  ;;  %v2562_v59 = vmax.f32 %v6018_v53, %v2526_v5  ;;  %v5529_v38 = vadd.f32 %v5434_v23, %v1446_v27  ;;  %v2342_v44 = vadd.f32 %v3222_v11, %v6019_v32  ;;  %v2336_v61 = vpop.f32.mrb[187].mxu1  ;;  %v1448_v1 = vpop.f32.mrb[187].mxu0 }
 0x28c   :  { %2708 = vst [vmem:[%s5854_s3] sm:$0xff] %v2672_v3  ;;  %v2638_v33 = vmul.f32 0.1, %v2602_v0  ;;  %v2561_v49 = vmax.f32 %v6021_v62, %v2525_v43  ;;  %v2337_v37 = vadd.f32 %v2336_v61, %v6022_v51  ;;  %v6025_v43 = vld [vmem:[#allocation63_spill] sm:$0xff] }
 0x28d   :  { %v2675_v18 = vmax.f32 %v2603_v58, %v2639_v7  ;;  %v2605_v4 = vadd.f32 %v5490_v45, %v2562_v59  ;;  %v2528_v23 = vmax.f32 %v5428_v29, %v2342_v44  ;;  %v6024_v29 = vld [vmem:[#allocation11_spill] sm:$0xff]  ;;  %v6026_v27 = vmax.f32 %v4925_v15, %v6025_v43  ;;  %v6027_v7 = vld [vmem:[#allocation10_spill] sm:$0xff]  ;;  %v6035_v43 = vld [vmem:[#allocation65_spill] sm:$0xff] }
 0x28e   :  { %v2674_v30 = vmax.f32 %v2602_v0, %v2638_v33  ;;  %v2604_v24 = vadd.f32 %v5490_v45, %v2561_v49  ;;  %v2527_v22 = vmax.f32 %v5426_v16, %v2337_v37  ;;  %v1451_v9 = vpop.f32.mrb[188].mxu0  ;;  %v3225_v56 = vpop.f32.mrb[188].mxu1  ;;  %v6028_v33 = vmax.f32 %v4943_v50, %v5290_v25 }
 0x28f   :  { %2711 = vst [vmem:[%s5854_s3 + $0x18] sm:$0xff] %v2675_v18  ;;  %v2641_v55 = vmul.f32 0.1, %v2605_v4  ;;  %v2564_v41 = vmax.f32 %v6023_v21, %v2528_v23  ;;  %v5550_v58 = vadd.f32 %v5444_v39, %v1451_v9  ;;  %v2352_v5 = vadd.f32 %v3225_v56, %v6024_v29  ;;  %v2346_v3 = vpop.f32.mrb[189].mxu1  ;;  %v1453_v0 = vpop.f32.mrb[189].mxu0  ;;  %v6030_v18 = vld [vmem:[#allocation64_spill] sm:$0xff] }
 0x290   :  { %2710 = vst [vmem:[%s5854_s3 + $0x10] sm:$0xff] %v2674_v30  ;;  %v2640_v16 = vmul.f32 0.1, %v2604_v24  ;;  %v2563_v11 = vmax.f32 %v6026_v27, %v2527_v22  ;;  %v2347_v53 = vadd.f32 %v2346_v3, %v6027_v7  ;;  %v6032_v30 = vld [vmem:[#allocation12_spill] sm:$0xff]  ;;  %v6036_v27 = vmax.f32 %v4969_v26, %v6035_v43  ;;  %v6037_v7 = vld [vmem:[#allocation14_spill] sm:$0xff] }
 0x291   :  { %v2677_v34 = vmax.f32 %v2605_v4, %v2641_v55  ;;  %v2607_v60 = vadd.f32 %v5490_v45, %v2564_v41  ;;  %v2530_v39 = vmax.f32 %v5432_v54, %v2352_v5  ;;  %v6029_v54 = vld [vmem:[#allocation13_spill] sm:$0xff]  ;;  %v6031_v4 = vmax.f32 %v4947_v13, %v6030_v18 }
 0x292   :  { %v2676_v59 = vmax.f32 %v2604_v24, %v2640_v16  ;;  %v2606_v32 = vadd.f32 %v5490_v45, %v2563_v11  ;;  %v2529_v44 = vmax.f32 %v5430_v36, %v2347_v53  ;;  %v1456_v61 = vpop.f32.mrb[190].mxu0  ;;  %v3228_v1 = vpop.f32.mrb[190].mxu1  ;;  %v6033_v41 = vmax.f32 %v4965_v2, %v5300_v12 }
 0x293   :  { %2713 = vst [vmem:[%s5854_s3 + $0x28] sm:$0xff] %v2677_v34  ;;  %v2643_v15 = vmul.f32 0.1, %v2607_v60  ;;  %v2566_v6 = vmax.f32 %v6028_v33, %v2530_v39  ;;  %v5571_v62 = vadd.f32 %v5440_v14, %v1456_v61  ;;  %v2362_v49 = vadd.f32 %v3228_v1, %v6029_v54  ;;  %v2356_v51 = vpop.f32.mrb[191].mxu1  ;;  %v1458_v37 = vpop.f32.mrb[191].mxu0  ;;  %v6040_v54 = vld [vmem:[#allocation66_spill] sm:$0xff] }
 0x294   :  { %2712 = vst [vmem:[%s5854_s3 + $0x20] sm:$0xff] %v2676_v59  ;;  %v2642_v36 = vmul.f32 0.1, %v2606_v32  ;;  %v2565_v23 = vmax.f32 %v6031_v4, %v2529_v44  ;;  %v2357_v24 = vadd.f32 %v2356_v51, %v6032_v30  ;;  %v6038_v44 = vmax.f32 %v4987_v20, %v5310_v35  ;;  %v6042_v37 = vld [vmem:[#allocation16_spill] sm:$0xff] }
 0x295   :  { %v2679_v50 = vmax.f32 %v2607_v60, %v2643_v15  ;;  %v2609_v25 = vadd.f32 %v5490_v45, %v2566_v6  ;;  %v2532_v14 = vmax.f32 %v5442_v28, %v2362_v49  ;;  %v6034_v28 = vld [vmem:[#allocation15_spill] sm:$0xff]  ;;  %v6041_v49 = vmax.f32 %v4991_v42, %v6040_v54 }
 0x296   :  { %v2678_v22 = vmax.f32 %v2606_v32, %v2642_v36  ;;  %v2608_v9 = vadd.f32 %v5490_v45, %v2565_v23  ;;  %v2531_v56 = vmax.f32 %v5436_v57, %v2357_v24  ;;  %v1461_v55 = vpop.f32.mrb[192].mxu0  ;;  %v3231_v21 = vpop.f32.mrb[192].mxu1 }
 0x297   :  { %2715 = vst [vmem:[%s5854_s3 + $0x38] sm:$0xff] %v2679_v50  ;;  %v2645_v13 = vmul.f32 0.1, %v2609_v25  ;;  %v2568_v29 = vmax.f32 %v6033_v41, %v2532_v14  ;;  %v5592_v5 = vadd.f32 %v5450_v52, %v1461_v55  ;;  %v2372_v3 = vadd.f32 %v3231_v21, %v6034_v28  ;;  %v2366_v0 = vpop.f32.mrb[193].mxu1  ;;  %v1463_v16 = vpop.f32.mrb[193].mxu0  ;;  %v6045_v55 = vld [vmem:[#allocation39_spill] sm:$0xff] }
 0x298   :  { %2714 = vst [vmem:[%s5854_s3 + $0x30] sm:$0xff] %v2678_v22  ;;  %v2644_v57 = vmul.f32 0.1, %v2608_v9  ;;  %v2567_v11 = vmax.f32 %v6036_v27, %v2531_v56  ;;  %v2367_v53 = vadd.f32 %v2366_v0, %v6037_v7  ;;  %v6043_v50 = vmax.f32 %v5009_v40, %v5320_v46  ;;  %v6046_v21 = vld [vmem:[#allocation67_spill] sm:$0xff] }
 0x299   :  { %v2681_v2 = vmax.f32 %v2609_v25, %v2645_v13  ;;  %v2611_v12 = vadd.f32 %v5490_v45, %v2568_v29  ;;  %v2534_v52 = vmax.f32 %v5454_v63, %v2372_v3  ;;  %v6039_v63 = vld [vmem:[#allocation17_spill] sm:$0xff]  ;;  %v6047_v13 = vmax.f32 %v6045_v55, %v6046_v21  ;;  %v6048_v29 = vld [vmem:[#allocation18_spill] sm:$0xff]  ;;  %v6067_v55 = vld [vmem:[#allocation71_spill] sm:$0xff] }
 0x29a   :  { %v2680_v34 = vmax.f32 %v2608_v9, %v2644_v57  ;;  %v2610_v60 = vadd.f32 %v5490_v45, %v2567_v11  ;;  %v2533_v39 = vmax.f32 %v5448_v17, %v2367_v53  ;;  %v1466_v59 = vpop.f32.mrb[194].mxu0  ;;  %v3234_v32 = vpop.f32.mrb[194].mxu1  ;;  %v6050_v57 = vld [vmem:[#allocation94_spill] sm:$0xff]  ;;  %v6051_v53 = vld [vmem:[#allocation40_spill] sm:$0xff] }
 0x29b   :  { %2717 = vst [vmem:[%s5854_s3 + $0x48] sm:$0xff] %v2681_v2  ;;  %v2647_v26 = vmul.f32 0.1, %v2611_v12  ;;  %v2570_v61 = vmax.f32 %v6038_v44, %v2534_v52  ;;  %v5613_v1 = vadd.f32 %v5446_v19, %v1466_v59  ;;  %v2382_v15 = vadd.f32 %v3234_v32, %v6039_v63  ;;  %v2376_v33 = vpop.f32.mrb[195].mxu1  ;;  %v1468_v6 = vpop.f32.mrb[195].mxu0  ;;  %v6052_v2 = vld [vmem:[#allocation68_spill] sm:$0xff] }
 0x29c   :  { %2716 = vst [vmem:[%s5854_s3 + $0x40] sm:$0xff] %v2680_v34  ;;  %v2646_v17 = vmul.f32 0.1, %v2610_v60  ;;  %v2569_v51 = vmax.f32 %v6041_v49, %v2533_v39  ;;  %v2377_v36 = vadd.f32 %v2376_v33, %v6042_v37  ;;  %v6054_v34 = vld [vmem:[#allocation88_spill] sm:$0xff]  ;;  %v6055_v39 = vld [vmem:[#allocation21_spill] sm:$0xff] }
 0x29d   :  { %v2683_v20 = vmax.f32 %v2611_v12, %v2647_v26  ;;  %v2613_v35 = vadd.f32 %v5490_v45, %v2570_v61  ;;  %v2536_v19 = vmax.f32 %v5466_v8, %v2382_v15  ;;  %v6044_v8 = vld [vmem:[#allocation19_spill] sm:$0xff]  ;;  %v6053_v12 = vmax.f32 %v6051_v53, %v6052_v2  ;;  %v6056_v61 = vld [vmem:[#allocation41_spill] sm:$0xff]  ;;  %v6059_v6 = vld [vmem:[#allocation20_spill] sm:$0xff] }
 0x29e   :  { %v2682_v18 = vmax.f32 %v2610_v60, %v2646_v17  ;;  %v2612_v4 = vadd.f32 %v5490_v45, %v2569_v51  ;;  %v2535_v23 = vmax.f32 %v5460_v47, %v2377_v36  ;;  %v1471_v30 = vpop.f32.mrb[196].mxu0  ;;  %v3237_v24 = vpop.f32.mrb[196].mxu1  ;;  %v6057_v63 = vld [vmem:[#allocation69_spill] sm:$0xff] }
 0x29f   :  { %2719 = vst [vmem:[%s5854_s3 + $0x58] sm:$0xff] %v2683_v20  ;;  %v2649_v42 = vmul.f32 0.1, %v2613_v35  ;;  %v2572_v25 = vmax.f32 %v6043_v50, %v2536_v19  ;;  %v5634_v14 = vadd.f32 %v5456_v48, %v1471_v30  ;;  %v2392_v22 = vadd.f32 %v3237_v24, %v6044_v8  ;;  %v2386_v9 = vpop.f32.mrb[197].mxu1  ;;  %v1473_v56 = vpop.f32.mrb[197].mxu0  ;;  %v6049_v48 = vld [vmem:[#allocation97_spill] sm:$0xff] }
 0x2a0   :  { %2718 = vst [vmem:[%s5854_s3 + $0x50] sm:$0xff] %v2682_v18  ;;  %v2648_v47 = vmul.f32 0.1, %v2612_v4  ;;  %v2571_v41 = vmax.f32 %v6047_v13, %v2535_v23  ;;  %v2387_v28 = vadd.f32 %v2386_v9, %v6048_v29  ;;  %v6058_v15 = vmax.f32 %v6056_v61, %v6057_v63  ;;  %v6060_v20 = vld [vmem:[#allocation99_spill] sm:$0xff]  ;;  %v6061_v23 = vld [vmem:[#allocation42_spill] sm:$0xff]  ;;  %v6073_v2 = vld [vmem:[#allocation89_spill] sm:$0xff] }
 0x2a1   :  { %v2685_v40 = vmax.f32 %v2613_v35, %v2649_v42  ;;  %v2615_v46 = vadd.f32 %v5490_v45, %v2572_v25  ;;  %v2538_v3 = vmax.f32 %v6049_v48, %v2392_v22  ;;  %v6062_v30 = vld [vmem:[#allocation70_spill] sm:$0xff]  ;;  %v6078_v61 = vld [vmem:[#allocation24_spill] sm:$0xff] }
 0x2a2   :  { %v2684_v0 = vmax.f32 %v2612_v4, %v2648_v47  ;;  %v2614_v16 = vadd.f32 %v5490_v45, %v2571_v41  ;;  %v2537_v43 = vmax.f32 %v6050_v57, %v2387_v28  ;;  %v1476_v27 = vpop.f32.mrb[198].mxu0  ;;  %v3240_v11 = vpop.f32.mrb[198].mxu1  ;;  %v6063_v24 = vmax.f32 %v6061_v23, %v6062_v30  ;;  %v6064_v50 = vld [vmem:[#allocation90_spill] sm:$0xff]  ;;  %v6066_v47 = vld [vmem:[#allocation43_spill] sm:$0xff] }
 0x2a3   :  { %2721 = vst [vmem:[%s5854_s3 + $0x68] sm:$0xff] %v2685_v40  ;;  %v2651_v7 = vmul.f32 0.1, %v2615_v46  ;;  %v2574_v52 = vmax.f32 %v6053_v12, %v2538_v3  ;;  %v5655_v60 = vadd.f32 %v6054_v34, %v1476_v27  ;;  %v2402_v59 = vadd.f32 %v3240_v11, %v6055_v39  ;;  %v2396_v32 = vpop.f32.mrb[199].mxu1  ;;  %v1478_v26 = vpop.f32.mrb[199].mxu0  ;;  %v6069_v41 = vld [vmem:[#allocation22_spill] sm:$0xff] }
 0x2a4   :  { %2720 = vst [vmem:[%s5854_s3 + $0x60] sm:$0xff] %v2684_v0  ;;  %v2650_v44 = vmul.f32 0.1, %v2614_v16  ;;  %v2573_v33 = vmax.f32 %v6058_v15, %v2537_v43  ;;  %v2397_v17 = vadd.f32 %v2396_v32, %v6059_v6  ;;  %v6068_v21 = vmax.f32 %v6066_v47, %v6067_v55  ;;  %v6070_v27 = vld [vmem:[#allocation44_spill] sm:$0xff]  ;;  %v6076_v32 = vld [vmem:[#allocation73_spill] sm:$0xff] }
 0x2a5   :  { %v2687_v54 = vmax.f32 %v2615_v46, %v2651_v7  ;;  %v2617_v49 = vadd.f32 %v5490_v45, %v2574_v52  ;;  %v2540_v51 = vmax.f32 %v5496_v10, %v2402_v59  ;;  %v6065_v10 = vld [vmem:[#allocation23_spill] sm:$0xff]  ;;  %v6071_v11 = vld [vmem:[#allocation72_spill] sm:$0xff]  ;;  %v6075_v59 = vld [vmem:[#allocation45_spill] sm:$0xff] }
 0x2a6   :  { %v2686_v37 = vmax.f32 %v2614_v16, %v2650_v44  ;;  %v2616_v36 = vadd.f32 %v5490_v45, %v2573_v33  ;;  %v2539_v35 = vmax.f32 %v6060_v20, %v2397_v17  ;;  %v1481_v19 = vpop.f32.mrb[200].mxu0  ;;  %v3243_v18 = vpop.f32.mrb[200].mxu1  ;;  %v6072_v7 = vmax.f32 %v6070_v27, %v6071_v11  ;;  %v6079_v20 = vld [vmem:[#allocation46_spill] sm:$0xff]  ;;  %v6092_v27 = vld [vmem:[#allocation29_spill] sm:$0xff] }
 0x2a7   :  { %2723 = vst [vmem:[%s5854_s3 + $0x78] sm:$0xff] %v2687_v54  ;;  %v2653_v4 = vmul.f32 0.1, %v2617_v49  ;;  %v2576_v42 = vmax.f32 %v6063_v24, %v2540_v51  ;;  %v5676_v25 = vadd.f32 %v6064_v50, %v1481_v19  ;;  %v2412_v8 = vadd.f32 %v3243_v18, %v6065_v10  ;;  %v2406_v22 = vpop.f32.mrb[201].mxu1  ;;  %v1483_v9 = vpop.f32.mrb[201].mxu0  ;;  %v6084_v50 = vld [vmem:[#allocation47_spill] sm:$0xff] }
 0x2a8   :  { %2722 = vst [vmem:[%s5854_s3 + $0x70] sm:$0xff] %v2686_v37  ;;  %v2652_v56 = vmul.f32 0.1, %v2616_v36  ;;  %v2575_v13 = vmax.f32 %v6068_v21, %v2539_v35  ;;  %v2407_v29 = vadd.f32 %v2406_v22, %v6069_v41  ;;  %v6077_v26 = vmax.f32 %v6075_v59, %v6076_v32  ;;  %v6080_v35 = vld [vmem:[#allocation74_spill] sm:$0xff]  ;;  %v6085_v10 = vld [vmem:[#allocation75_spill] sm:$0xff] }
 0x2a9   :  { %v2689_v28 = vmax.f32 %v2617_v49, %v2653_v4  ;;  %v2619_v40 = vadd.f32 %v5490_v45, %v2576_v42  ;;  %v2542_v46 = vmax.f32 %v5529_v38, %v2412_v8  ;;  %v6074_v38 = vld [vmem:[#allocation25_spill] sm:$0xff]  ;;  %v6081_v19 = vmax.f32 %v6079_v20, %v6080_v35  ;;  %v6082_v4 = vld [vmem:[#allocation92_spill] sm:$0xff]  ;;  %v6087_v9 = vld [vmem:[#allocation26_spill] sm:$0xff] }
 0x2aa   :  { %v2688_v48 = vmax.f32 %v2616_v36, %v2652_v56  ;;  %v2618_v3 = vadd.f32 %v5490_v45, %v2575_v13  ;;  %v2541_v0 = vmax.f32 %v5511_v31, %v2407_v29  ;;  %v1486_v16 = vpop.f32.mrb[202].mxu0  ;;  %v3246_v57 = vpop.f32.mrb[202].mxu1  ;;  %v6086_v8 = vmax.f32 %v6084_v50, %v6085_v10 }
 0x2ab   :  { %2725 = vst [vmem:[%s5854_s3 + $0x88] sm:$0xff] %v2689_v28  ;;  %v2655_v43 = vmul.f32 0.1, %v2619_v40  ;;  %v2578_v53 = vmax.f32 %v6072_v7, %v2542_v46  ;;  %v5697_v12 = vadd.f32 %v6073_v2, %v1486_v16  ;;  %v2422_v52 = vadd.f32 %v3246_v57, %v6074_v38  ;;  %v2416_v34 = vpop.f32.mrb[203].mxu1  ;;  %v1488_v39 = vpop.f32.mrb[203].mxu0  ;;  %v6091_v57 = vld [vmem:[#allocation91_spill] sm:$0xff] }
 0x2ac   :  { %2724 = vst [vmem:[%s5854_s3 + $0x80] sm:$0xff] %v2688_v48  ;;  %v2654_v31 = vmul.f32 0.1, %v2618_v3  ;;  %v2577_v44 = vmax.f32 %v6077_v26, %v2541_v0  ;;  %v2417_v63 = vadd.f32 %v2416_v34, %v6078_v61  ;;  %v6088_v48 = vld [vmem:[#allocation48_spill] sm:$0xff]  ;;  %v6094_v2 = vld [vmem:[#allocation77_spill] sm:$0xff] }
 0x2ad   :  { %v2691_v15 = vmax.f32 %v2619_v40, %v2655_v43  ;;  %v2621_v33 = vadd.f32 %v5490_v45, %v2578_v53  ;;  %v2544_v6 = vmax.f32 %v5571_v62, %v2422_v52  ;;  %v6083_v62 = vld [vmem:[#allocation27_spill] sm:$0xff]  ;;  %v6093_v53 = vld [vmem:[#allocation49_spill] sm:$0xff]  ;;  %v6096_v34 = vld [vmem:[#allocation28_spill] sm:$0xff] }
 0x2ae   :  { %v2690_v17 = vmax.f32 %v2618_v3, %v2654_v31  ;;  %v2620_v54 = vadd.f32 %v5490_v45, %v2577_v44  ;;  %v2543_v49 = vmax.f32 %v5550_v58, %v2417_v63  ;;  %v1491_v51 = vpop.f32.mrb[204].mxu0  ;;  %v3249_v37 = vpop.f32.mrb[204].mxu1  ;;  %v6089_v3 = vld [vmem:[#allocation76_spill] sm:$0xff]  ;;  %v6095_v38 = vmax.f32 %v6093_v53, %v6094_v2 }
 0x2af   :  { %2727 = vst [vmem:[%s5854_s3 + $0x98] sm:$0xff] %v2691_v15  ;;  %v2657_v36 = vmul.f32 0.1, %v2621_v33  ;;  %v2580_v18 = vmax.f32 %v6081_v19, %v2544_v6  ;;  %v5718_v23 = vadd.f32 %v6082_v4, %v1491_v51  ;;  %v2432_v30 = vadd.f32 %v3249_v37, %v6083_v62  ;;  %v2426_v24 = vpop.f32.mrb[205].mxu1  ;;  %v1493_v42 = vpop.f32.mrb[205].mxu0  ;;  %v6097_v6 = vld [vmem:[#allocation50_spill] sm:$0xff] }
 0x2b0   :  { %2726 = vst [vmem:[%s5854_s3 + $0x90] sm:$0xff] %v2690_v17  ;;  %v2656_v58 = vmul.f32 0.1, %v2620_v54  ;;  %v2579_v22 = vmax.f32 %v6086_v8, %v2543_v49  ;;  %v2427_v56 = vadd.f32 %v2426_v24, %v6087_v9  ;;  %v6090_v0 = vmax.f32 %v6088_v48, %v6089_v3  ;;  %v6098_v17 = vld [vmem:[#allocation78_spill] sm:$0xff]  ;;  %v6100_v51 = vld [vmem:[#allocation95_spill] sm:$0xff]  ;;  %v6111_v3 = vld [vmem:[#allocation53_spill] sm:$0xff] }
 0x2b1   :  { %v2693_v47 = vmax.f32 %v2621_v33, %v2657_v36  ;;  %v2623_v55 = vadd.f32 %v5490_v45, %v2580_v18  ;;  %v2546_v21 = vmax.f32 %v5613_v1, %v2432_v30  ;;  %v6102_v19 = vld [vmem:[#allocation51_spill] sm:$0xff]  ;;  %v6105_v30 = vld [vmem:[#allocation30_spill] sm:$0xff] }
 0x2b2   :  { %v2692_v13 = vmax.f32 %v2620_v54, %v2656_v58  ;;  %v2622_v41 = vadd.f32 %v5490_v45, %v2579_v22  ;;  %v2545_v29 = vmax.f32 %v5592_v5, %v2427_v56  ;;  %v1496_v28 = vpop.f32.mrb[206].mxu0  ;;  %v3252_v40 = vpop.f32.mrb[206].mxu1  ;;  %v6099_v54 = vmax.f32 %v6097_v6, %v6098_v17  ;;  %v6103_v18 = vld [vmem:[#allocation79_spill] sm:$0xff] }
 0x2b3   :  { %2729 = vst [vmem:[%s5854_s3 + $0xa8] sm:$0xff] %v2693_v47  ;;  %v2659_v46 = vmul.f32 0.1, %v2623_v55  ;;  %v2582_v16 = vmax.f32 %v6090_v0, %v2546_v21  ;;  %v2282_v43 = vadd.f32 %v6091_v57, %v1496_v28  ;;  %v2442_v1 = vadd.f32 %v3252_v40, %v6092_v27  ;;  %v2436_v11 = vpop.f32.mrb[207].mxu1  ;;  %v1498_v7 = vpop.f32.mrb[207].mxu0  ;;  %v6107_v21 = vld [vmem:[#allocation80_spill] sm:$0xff] }
 0x2b4   :  { %2728 = vst [vmem:[%s5854_s3 + $0xa0] sm:$0xff] %v2692_v13  ;;  %v2658_v5 = vmul.f32 0.1, %v2622_v41  ;;  %v2581_v52 = vmax.f32 %v6095_v38, %v2545_v29  ;;  %v2437_v39 = vadd.f32 %v2436_v11, %v6096_v34  ;;  %v6104_v4 = vmax.f32 %v6102_v19, %v6103_v18  ;;  %v6109_v29 = vld [vmem:[#allocation93_spill] sm:$0xff]  ;;  %v6114_v27 = vld [vmem:[#allocation32_spill] sm:$0xff]  ;;  %v6120_v6 = vld [vmem:[#allocation55_spill] sm:$0xff] }
 0x2b5   :  { %v2695_v31 = vmax.f32 %v2623_v55, %v2659_v46  ;;  %v2625_v59 = vadd.f32 %v5490_v45, %v2582_v16  ;;  %v2548_v32 = vmax.f32 %v5655_v60, %v2442_v1  ;;  %v6101_v60 = vld [vmem:[#allocation31_spill] sm:$0xff]  ;;  %v6106_v55 = vld [vmem:[#allocation52_spill] sm:$0xff]  ;;  %v6110_v40 = vld [vmem:[#allocation33_spill] sm:$0xff] }
 0x2b6   :  { %v2694_v26 = vmax.f32 %v2622_v41, %v2658_v5  ;;  %v2624_v44 = vadd.f32 %v5490_v45, %v2581_v52  ;;  %v2547_v61 = vmax.f32 %v5634_v14, %v2437_v39  ;;  %v1501_v63 = vpop.f32.mrb[208].mxu0  ;;  %v3255_v15 = vpop.f32.mrb[208].mxu1  ;;  %v6108_v13 = vmax.f32 %v6106_v55, %v6107_v21  ;;  %v6112_v0 = vld [vmem:[#allocation81_spill] sm:$0xff]  ;;  %v6121_v17 = vld [vmem:[#allocation83_spill] sm:$0xff] }
 0x2b7   :  { %2731 = vst [vmem:[%s5854_s3 + $0xb8] sm:$0xff] %v2695_v31  ;;  %v2661_v33 = vmul.f32 0.1, %v2625_v59  ;;  %v2584_v49 = vmax.f32 %v6099_v54, %v2548_v32  ;;  %v5758_v37 = vadd.f32 %v6100_v51, %v1501_v63  ;;  %v2452_v36 = vadd.f32 %v3255_v15, %v6101_v60  ;;  %v2446_v20 = vpop.f32.mrb[209].mxu1  ;;  %v1503_v35 = vpop.f32.mrb[209].mxu0  ;;  %v6115_v31 = vld [vmem:[#allocation54_spill] sm:$0xff] }
 0x2b8   :  { %2730 = vst [vmem:[%s5854_s3 + $0xb0] sm:$0xff] %v2694_v26  ;;  %v2660_v14 = vmul.f32 0.1, %v2624_v44  ;;  %v2583_v62 = vmax.f32 %v6104_v4, %v2547_v61  ;;  %v2447_v24 = vadd.f32 %v2446_v20, %v6105_v30  ;;  %v6113_v16 = vmax.f32 %v6111_v3, %v6112_v0  ;;  %v6119_v63 = vld [vmem:[#allocation35_spill] sm:$0xff]  ;;  %v6123_v51 = vld [vmem:[#allocation34_spill] sm:$0xff]  ;;  %v6129_v55 = vld [vmem:[#allocation57_spill] sm:$0xff] }
 0x2b9   :  { %v2697_v42 = vmax.f32 %v2625_v59, %v2661_v33  ;;  %v2627_v58 = vadd.f32 %v5490_v45, %v2584_v49  ;;  %v2550_v50 = vmax.f32 %v5697_v12, %v2452_v36  ;;  %v6116_v59 = vld [vmem:[#allocation82_spill] sm:$0xff]  ;;  %v6122_v54 = vmax.f32 %v6120_v6, %v6121_v17  ;;  %v6130_v21 = vld [vmem:[#allocation85_spill] sm:$0xff] }
 0x2ba   :  { %v2696_v10 = vmax.f32 %v2624_v44, %v2660_v14  ;;  %v2626_v8 = vadd.f32 %v5490_v45, %v2583_v62  ;;  %v2549_v22 = vmax.f32 %v5676_v25, %v2447_v24  ;;  %v1506_v9 = vpop.f32.mrb[210].mxu0  ;;  %v3258_v56 = vpop.f32.mrb[210].mxu1  ;;  %v6117_v32 = vmax.f32 %v6115_v31, %v6116_v59  ;;  %v6118_v44 = vld [vmem:[#allocation98_spill] sm:$0xff]  ;;  %v6124_v24 = vld [vmem:[#allocation56_spill] sm:$0xff] }
 0x2bb   :  { %2733 = vst [vmem:[%s5854_s3 + $0xc8] sm:$0xff] %v2697_v42  ;;  %v2663_v47 = vmul.f32 0.1, %v2627_v58  ;;  %v2586_v41 = vmax.f32 %v6108_v13, %v2550_v50  ;;  %v2292_v28 = vadd.f32 %v6109_v29, %v1506_v9  ;;  %v2462_v12 = vadd.f32 %v3258_v56, %v6110_v40  ;;  %v2456_v46 = vpop.f32.mrb[211].mxu1  ;;  %v1508_v48 = vpop.f32.mrb[211].mxu0  ;;  %v6125_v42 = vld [vmem:[#allocation84_spill] sm:$0xff] }
 0x2bc   :  { %2732 = vst [vmem:[%s5854_s3 + $0xc0] sm:$0xff] %v2696_v10  ;;  %v2662_v25 = vmul.f32 0.1, %v2626_v8  ;;  %v2585_v57 = vmax.f32 %v6113_v16, %v2549_v22  ;;  %v2457_v1 = vadd.f32 %v2456_v46, %v6114_v27  ;;  %v6127_v10 = vld [vmem:[#allocation96_spill] sm:$0xff]  ;;  %v6128_v22 = vld [vmem:[#allocation37_spill] sm:$0xff]  ;;  %v6131_v13 = vmax.f32 %v6129_v55, %v6130_v21  ;;  %v6133_v16 = vld [vmem:[#allocation58_spill] sm:$0xff] }
 0x2bd   :  { %v2699_v11 = vmax.f32 %v2627_v58, %v2663_v47  ;;  %v2629_v7 = vadd.f32 %v5490_v45, %v2586_v41  ;;  %v2552_v5 = vmax.f32 %v2282_v43, %v2462_v12  ;;  %v6126_v58 = vmax.f32 %v6124_v24, %v6125_v42  ;;  %v6132_v29 = vld [vmem:[#allocation36_spill] sm:$0xff] }
 0x2be   :  { %v2698_v53 = vmax.f32 %v2626_v8, %v2662_v25  ;;  %v2628_v2 = vadd.f32 %v5490_v45, %v2585_v57  ;;  %v2551_v38 = vmax.f32 %v5718_v23, %v2457_v1  ;;  %v1511_v52 = vpop.f32.mrb[212].mxu0  ;;  %v3261_v34 = vpop.f32.mrb[212].mxu1  ;;  %v6134_v57 = vld [vmem:[#allocation86_spill] sm:$0xff] }
 0x2bf   :  { %2735 = vst [vmem:[%s5854_s3 + $0xd8] sm:$0xff] %v2699_v11  ;;  %v2665_v39 = vmul.f32 0.1, %v2629_v7  ;;  %v2588_v26 = vmax.f32 %v6117_v32, %v2552_v5  ;;  %v2297_v61 = vadd.f32 %v6118_v44, %v1511_v52  ;;  %v2472_v43 = vadd.f32 %v3261_v34, %v6119_v63  ;;  %v2466_v15 = vpop.f32.mrb[213].mxu1  ;;  %v1513_v33 = vpop.f32.mrb[213].mxu0  ;;  %v6137_v5 = vld [vmem:[#allocation87_spill] sm:$0xff] }
 0x2c0   :  { %2734 = vst [vmem:[%s5854_s3 + $0xd0] sm:$0xff] %v2698_v53  ;;  %v2664_v23 = vmul.f32 0.1, %v2628_v2  ;;  %v2587_v49 = vmax.f32 %v6122_v54, %v2551_v38  ;;  %v2467_v60 = vadd.f32 %v2466_v15, %v6123_v51  ;;  %v6135_v27 = vmax.f32 %v6133_v16, %v6134_v57 }
 0x2c1   :  { %v2701_v36 = vmax.f32 %v2629_v7, %v2665_v39  ;;  %v2631_v20 = vadd.f32 %v5490_v45, %v2588_v26  ;;  %v2554_v35 = vmax.f32 %v2292_v28, %v2472_v43  ;;  %v6136_v7 = vld [vmem:[#allocation59_spill] sm:$0xff] }
 0x2c2   :  { %v2700_v14 = vmax.f32 %v2628_v2, %v2664_v23  ;;  %v2630_v19 = vadd.f32 %v5490_v45, %v2587_v49  ;;  %v2553_v18 = vmax.f32 %v5758_v37, %v2467_v60  ;;  %v1516_v4 = vpop.f32.mrb[214].mxu0  ;;  %v3264_v62 = vpop.f32.mrb[214].mxu1  ;;  %v6138_v53 = vmax.f32 %v6136_v7, %v6137_v5 }
 0x2c3   :  { %2737 = vst [vmem:[%s5854_s3 + $0xe8] sm:$0xff] %v2701_v36  ;;  %v2667_v30 = vmul.f32 0.1, %v2631_v20  ;;  %v2590_v50 = vmax.f32 %v6126_v58, %v2554_v35  ;;  %v2302_v8 = vadd.f32 %v6127_v10, %v1516_v4  ;;  %v2482_v9 = vadd.f32 %v3264_v62, %v6128_v22  ;;  %v2476_v56 = vpop.f32.mrb[215].mxu1  ;;  %v1518_v47 = vpop.f32.mrb[215].mxu0 }
 0x2c4   :  { %2736 = vst [vmem:[%s5854_s3 + $0xe0] sm:$0xff] %v2700_v14  ;;  %v2666_v37 = vmul.f32 0.1, %v2630_v19  ;;  %v2589_v41 = vmax.f32 %v6131_v13, %v2553_v18  ;;  %v2477_v28 = vadd.f32 %v2476_v56, %v6132_v29 }
 0x2c5   :  { %v2703_v40 = vmax.f32 %v2631_v20, %v2667_v30  ;;  %v2633_v12 = vadd.f32 %v5490_v45, %v2590_v50  ;;  %v2556_v46 = vmax.f32 %v2302_v8, %v2482_v9 }
 0x2c6   :  { %v2702_v48 = vmax.f32 %v2630_v19, %v2666_v37  ;;  %v2632_v25 = vadd.f32 %v5490_v45, %v2589_v41  ;;  %v2555_v3 = vmax.f32 %v2297_v61, %v2477_v28 }
 0x2c7   :  { %2739 = vst [vmem:[%s5854_s3 + $0xf8] sm:$0xff] %v2703_v40  ;;  %v2669_v0 = vmul.f32 0.1, %v2633_v12  ;;  %v2592_v1 = vmax.f32 %v6135_v27, %v2556_v46 }
 0x2c8   :  { %2738 = vst [vmem:[%s5854_s3 + $0xf0] sm:$0xff] %v2702_v48  ;;  %v2668_v11 = vmul.f32 0.1, %v2632_v25  ;;  %v2591_v2 = vmax.f32 %v6138_v53, %v2555_v3 }
 0x2c9   :  { %v2705_v38 = vmax.f32 %v2633_v12, %v2669_v0  ;;  %v2635_v52 = vadd.f32 %v5490_v45, %v2592_v1 }
 0x2ca   :  { %v2704_v34 = vmax.f32 %v2632_v25, %v2668_v11  ;;  %v2634_v39 = vadd.f32 %v5490_v45, %v2591_v2 }
 0x2cb   :  { %2741 = vst [vmem:[%s5854_s3 + $0x108] sm:$0xff] %v2705_v38  ;;  %v2671_v31 = vmul.f32 0.1, %v2635_v52 }
 0x2cc   :  { %2740 = vst [vmem:[%s5854_s3 + $0x100] sm:$0xff] %v2704_v34  ;;  %v2670_v59 = vmul.f32 0.1, %v2634_v39 }
 0x2cd   :  { %v2707_v32 = vmax.f32 %v2635_v52, %v2671_v31 }
 0x2ce   :  { %v2706_v26 = vmax.f32 %v2634_v39, %v2670_v59 }
 0x2cf   :  { %2743 = vst [vmem:[%s5854_s3 + $0x118] sm:$0xff] %v2707_v32 }
 0x2d0   :  { %2742 = vst [vmem:[%s5854_s3 + $0x110] sm:$0xff] %v2706_v26 }

// kernel: leaky_relu_cnn_forward.6
= control target key start
LH: loop header
LB: loop body
LE: loop exit
PB: predicated region body
PF: predicated region fallthrough
CT: control target
= control target key end

     0   :  { %v1525_v0 = vmov 0.0|0.0   ;;  %vm266_vm0 = vcmask 523264   ;;  %s2632_s1 = inlined_call_operand.vmem [shape: f32[576,128], index: 1, kind: input, shape index: {}]   ;;  %s2633_s0 = inlined_call_operand.vmem [shape: f32[288,576], index: 0, kind: input, shape index: {}]   ;;  %s2634_s2 = inlined_call_operand.vmem [shape: f32[1,128], index: 2, kind: input, shape index: {}]   ;;  %s2635_s3 = inlined_call_operand.vmem [shape: f32[72,128], index: 3, kind: output, shape index: {}]  }
   0x1   :  { %1335 = vmatprep.subr.bf16.mxu0 %v1525_v0  ;;  %1447 = vmatprep.subr.bf16.mxu1 %v1525_v0  ;;  %v194_v1 = vld [vmem:[%s2632_s1] sm:$0xff]  ;;  %v195_v2 = vld [vmem:[%s2632_s1 + $0x8] sm:$0xff]  ;;  %v196_v6 = vld [vmem:[%s2632_s1 + $0x10] sm:$0xff] }
   0x2   :  { %v226_v3 = vld [vmem:[%s2632_s1 + $0x100] sm:$0xff]  ;;  %v1336_v4 = vpack.c.bf16 %v195_v2, %v194_v1  ;;  %v227_v5 = vld [vmem:[%s2632_s1 + $0x108] sm:$0xff]  ;;  %v197_v7 = vld [vmem:[%s2632_s1 + $0x18] sm:$0xff] }
   0x3   :  { %v1566_v8 = vpack.c.bf16 %v227_v5, %v226_v3  ;;  %v228_v9 = vld [vmem:[%s2632_s1 + $0x110] sm:$0xff]  ;;  %v229_v10 = vld [vmem:[%s2632_s1 + $0x118] sm:$0xff]  ;;  %v1339_v11 = vpack.c.bf16 %v197_v7, %v196_v6  ;;  %v198_v13 = vld [vmem:[%s2632_s1 + $0x20] sm:$0xff] }
   0x4   :  { %1337 = vmatpush1.bf16.msra.mxu0 %v1336_v4  ;;  %v1576_v12 = vpack.c.bf16 %v229_v10, %v228_v9  ;;  %v199_v14 = vld [vmem:[%s2632_s1 + $0x28] sm:$0xff]  ;;  %v230_v15 = vld [vmem:[%s2632_s1 + $0x120] sm:$0xff]  ;;  %v200_v19 = vld [vmem:[%s2632_s1 + $0x30] sm:$0xff] }
   0x5   :  { %1463 = vmatpush1.bf16.msra.mxu1 %v1566_v8  ;;  %1338 = vmatprep.subr.bf16.mxu0 %v1525_v0  ;;  %v231_v16 = vld [vmem:[%s2632_s1 + $0x128] sm:$0xff]  ;;  %v1342_v17 = vpack.c.bf16 %v199_v14, %v198_v13  ;;  %v201_v20 = vld [vmem:[%s2632_s1 + $0x38] sm:$0xff]  ;;  %v232_v21 = vld [vmem:[%s2632_s1 + $0x130] sm:$0xff] }
   0x6   :  { %1448 = vmatprep.subr.bf16.mxu1 %v1525_v0  ;;  %v1593_v18 = vpack.c.bf16 %v231_v16, %v230_v15  ;;  %v233_v22 = vld [vmem:[%s2632_s1 + $0x138] sm:$0xff]  ;;  %v1345_v23 = vpack.c.bf16 %v201_v20, %v200_v19  ;;  %v202_v25 = vld [vmem:[%s2632_s1 + $0x40] sm:$0xff]  ;;  %v203_v26 = vld [vmem:[%s2632_s1 + $0x48] sm:$0xff] }
   0x7   :  { %v1610_v24 = vpack.c.bf16 %v233_v22, %v232_v21  ;;  %v234_v27 = vld [vmem:[%s2632_s1 + $0x140] sm:$0xff]  ;;  %v235_v28 = vld [vmem:[%s2632_s1 + $0x148] sm:$0xff]  ;;  %v1348_v29 = vpack.c.bf16 %v203_v26, %v202_v25  ;;  %v204_v31 = vld [vmem:[%s2632_s1 + $0x50] sm:$0xff] }
   0x8   :  { %1340 = vmatpush1.bf16.msra.mxu0 %v1339_v11  ;;  %v1627_v30 = vpack.c.bf16 %v235_v28, %v234_v27  ;;  %v205_v32 = vld [vmem:[%s2632_s1 + $0x58] sm:$0xff]  ;;  %v236_v33 = vld [vmem:[%s2632_s1 + $0x150] sm:$0xff]  ;;  %v206_v37 = vld [vmem:[%s2632_s1 + $0x60] sm:$0xff] }
   0x9   :  { %1464 = vmatpush1.bf16.msra.mxu1 %v1576_v12  ;;  %1341 = vmatprep.subr.bf16.mxu0 %v1525_v0  ;;  %v237_v34 = vld [vmem:[%s2632_s1 + $0x158] sm:$0xff]  ;;  %v1351_v35 = vpack.c.bf16 %v205_v32, %v204_v31  ;;  %v207_v38 = vld [vmem:[%s2632_s1 + $0x68] sm:$0xff]  ;;  %v238_v39 = vld [vmem:[%s2632_s1 + $0x160] sm:$0xff] }
   0xa   :  { %1449 = vmatprep.subr.bf16.mxu1 %v1525_v0  ;;  %v1644_v36 = vpack.c.bf16 %v237_v34, %v236_v33  ;;  %v239_v40 = vld [vmem:[%s2632_s1 + $0x168] sm:$0xff]  ;;  %v62_v42 = vld [vmem:[%s2633_s0 + $0x180] sm:$0xff]  ;;  %v1354_v43 = vpack.c.bf16 %v207_v38, %v206_v37  ;;  %v208_v45 = vld [vmem:[%s2632_s1 + $0x70] sm:$0xff] }
   0xb   :  { %v15_v41 = vld [vmem:[%s2633_s0 + $0x8] sm:$0xff]  ;;  %729 = vmatprep.mubr.f32.mxu1 %v62_v42  ;;  %v1667_v44 = vpack.c.bf16 %v239_v40, %v238_v39  ;;  %v209_v46 = vld [vmem:[%s2632_s1 + $0x78] sm:$0xff]  ;;  %v240_v47 = vld [vmem:[%s2632_s1 + $0x170] sm:$0xff] }
   0xc   :  { %1343 = vmatpush1.bf16.msra.mxu0 %v1342_v17  ;;  %439 = vmatprep.mubr.f32.mxu0 %v15_v41  ;;  %v241_v48 = vld [vmem:[%s2632_s1 + $0x178] sm:$0xff]  ;;  %v1357_v49 = vpack.c.bf16 %v209_v46, %v208_v45  ;;  %v210_v51 = vld [vmem:[%s2632_s1 + $0x80] sm:$0xff]  ;;  %v211_v52 = vld [vmem:[%s2632_s1 + $0x88] sm:$0xff] }
   0xd   :  { %1465 = vmatpush1.bf16.msra.mxu1 %v1593_v18  ;;  %1344 = vmatprep.subr.bf16.mxu0 %v1525_v0  ;;  %v1684_v50 = vpack.c.bf16 %v241_v48, %v240_v47  ;;  %v242_v53 = vld [vmem:[%s2632_s1 + $0x180] sm:$0xff]  ;;  %v243_v54 = vld [vmem:[%s2632_s1 + $0x188] sm:$0xff]  ;;  %v1360_v55 = vpack.c.bf16 %v211_v52, %v210_v51  ;;  %v212_v57 = vld [vmem:[%s2632_s1 + $0x90] sm:$0xff] }
   0xe   :  { %1450 = vmatprep.subr.bf16.mxu1 %v1525_v0  ;;  %v1701_v56 = vpack.c.bf16 %v243_v54, %v242_v53  ;;  %v213_v58 = vld [vmem:[%s2632_s1 + $0x98] sm:$0xff]  ;;  %v244_v59 = vld [vmem:[%s2632_s1 + $0x190] sm:$0xff]  ;;  %v214_v63 = vld [vmem:[%s2632_s1 + $0xa0] sm:$0xff] }
   0xf   :  { %v245_v60 = vld [vmem:[%s2632_s1 + $0x198] sm:$0xff]  ;;  %v1363_v61 = vpack.c.bf16 %v213_v58, %v212_v57  ;;  %v215_v1 = vld [vmem:[%s2632_s1 + $0xa8] sm:$0xff]  ;;  %v246_v2 = vld [vmem:[%s2632_s1 + $0x1a0] sm:$0xff] }
  0x10   :  { %1346 = vmatpush1.bf16.msra.mxu0 %v1345_v23  ;;  %v1718_v62 = vpack.c.bf16 %v245_v60, %v244_v59  ;;  %v247_v3 = vld [vmem:[%s2632_s1 + $0x1a8] sm:$0xff]  ;;  %v1366_v4 = vpack.c.bf16 %v215_v1, %v214_v63  ;;  %v216_v6 = vld [vmem:[%s2632_s1 + $0xb0] sm:$0xff]  ;;  %v217_v7 = vld [vmem:[%s2632_s1 + $0xb8] sm:$0xff] }
  0x11   :  { %1466 = vmatpush1.bf16.msra.mxu1 %v1610_v24  ;;  %1347 = vmatprep.subr.bf16.mxu0 %v1525_v0  ;;  %v1735_v5 = vpack.c.bf16 %v247_v3, %v246_v2  ;;  %v248_v9 = vld [vmem:[%s2632_s1 + $0x1b0] sm:$0xff]  ;;  %v249_v10 = vld [vmem:[%s2632_s1 + $0x1b8] sm:$0xff]  ;;  %v1369_v11 = vpack.c.bf16 %v217_v7, %v216_v6  ;;  %v218_v14 = vld [vmem:[%s2632_s1 + $0xc0] sm:$0xff] }
  0x12   :  { %1451 = vmatprep.subr.bf16.mxu1 %v1525_v0  ;;  %v1752_v13 = vpack.c.bf16 %v249_v10, %v248_v9  ;;  %v219_v15 = vld [vmem:[%s2632_s1 + $0xc8] sm:$0xff]  ;;  %v250_v16 = vld [vmem:[%s2632_s1 + $0x1c0] sm:$0xff]  ;;  %v220_v21 = vld [vmem:[%s2632_s1 + $0xd0] sm:$0xff] }
  0x13   :  { %v251_v17 = vld [vmem:[%s2632_s1 + $0x1c8] sm:$0xff]  ;;  %v1372_v19 = vpack.c.bf16 %v219_v15, %v218_v14  ;;  %v221_v22 = vld [vmem:[%s2632_s1 + $0xd8] sm:$0xff]  ;;  %v252_v23 = vld [vmem:[%s2632_s1 + $0x1d0] sm:$0xff] }
  0x14   :  { %1349 = vmatpush1.bf16.msra.mxu0 %v1348_v29  ;;  %v1769_v20 = vpack.c.bf16 %v251_v17, %v250_v16  ;;  %v253_v25 = vld [vmem:[%s2632_s1 + $0x1d8] sm:$0xff]  ;;  %v1375_v26 = vpack.c.bf16 %v221_v22, %v220_v21  ;;  %v222_v28 = vld [vmem:[%s2632_s1 + $0xe0] sm:$0xff]  ;;  %v223_v29 = vld [vmem:[%s2632_s1 + $0xe8] sm:$0xff] }
  0x15   :  { %1467 = vmatpush1.bf16.msra.mxu1 %v1627_v30  ;;  %1350 = vmatprep.subr.bf16.mxu0 %v1525_v0  ;;  %v1786_v27 = vpack.c.bf16 %v253_v25, %v252_v23  ;;  %v254_v31 = vld [vmem:[%s2632_s1 + $0x1e0] sm:$0xff]  ;;  %v255_v32 = vld [vmem:[%s2632_s1 + $0x1e8] sm:$0xff]  ;;  %v1378_v33 = vpack.c.bf16 %v223_v29, %v222_v28  ;;  %v225_v37 = vld [vmem:[%s2632_s1 + $0xf8] sm:$0xff] }
  0x16   :  { %1452 = vmatprep.subr.bf16.mxu1 %v1525_v0  ;;  %v1803_v34 = vpack.c.bf16 %v255_v32, %v254_v31  ;;  %v256_v38 = vld [vmem:[%s2632_s1 + $0x1f0] sm:$0xff]  ;;  %v257_v39 = vld [vmem:[%s2632_s1 + $0x1f8] sm:$0xff]  ;;  %v258_v40 = vld [vmem:[%s2632_s1 + $0x200] sm:$0xff] }
  0x17   :  { %v259_v41 = vld [vmem:[%s2632_s1 + $0x208] sm:$0xff]  ;;  %v14_v46 = vld [vmem:[%s2633_s0] sm:$0xff]  ;;  %v260_v47 = vld [vmem:[%s2632_s1 + $0x210] sm:$0xff] }
  0x18   :  { %1352 = vmatpush1.bf16.msra.mxu0 %v1351_v35  ;;  %v224_v35 = vld [vmem:[%s2632_s1 + $0xf0] sm:$0xff]  ;;  %v1431_v45 = vpack.c.bf16 %v259_v41, %v258_v40  ;;  %v261_v48 = vld [vmem:[%s2632_s1 + $0x218] sm:$0xff]  ;;  %v67_v52 = vld [vmem:[%s2633_s0 + $0x1a8] sm:$0xff] }
  0x19   :  { %1468 = vmatpush1.bf16.msra.mxu1 %v1644_v36  ;;  %1353 = vmatprep.subr.bf16.mxu0 %v1525_v0  ;;  %v1381_v42 = vpack.c.bf16 %v225_v37, %v224_v35  ;;  %v20_v51 = vld [vmem:[%s2633_s0 + $0x30] sm:$0xff]  ;;  %v1435_v53 = vpack.c.bf16 %v261_v48, %v260_v47  ;;  %v19_v54 = vld [vmem:[%s2633_s0 + $0x28] sm:$0xff]  ;;  %v66_v58 = vld [vmem:[%s2633_s0 + $0x1a0] sm:$0xff] }
  0x1a   :  { %1453 = vmatprep.subr.bf16.mxu1 %v1525_v0  ;;  %v263_v57 = vld [vmem:[%s2632_s1 + $0x228] sm:$0xff]  ;;  %v72_v59 = vld [vmem:[%s2633_s0 + $0x1d0] sm:$0xff]  ;;  %v265_v1 = vld [vmem:[%s2632_s1 + $0x238] sm:$0xff] }
  0x1b   :  { %v264_v63 = vld [vmem:[%s2632_s1 + $0x230] sm:$0xff]  ;;  %v71_v2 = vld [vmem:[%s2633_s0 + $0x1c8] sm:$0xff]  ;;  %v30_v3 = vld [vmem:[%s2633_s0 + $0x80] sm:$0xff] }
  0x1c   :  { %1355 = vmatpush1.bf16.msra.mxu0 %v1354_v43  ;;  %v1826_v43 = vpack.c.bf16 %v257_v39, %v256_v38  ;;  %v1443_v6 = vpack.c.bf16 %v265_v1, %v264_v63  ;;  %v29_v7 = vld [vmem:[%s2633_s0 + $0x78] sm:$0xff]  ;;  %v35_v9 = vld [vmem:[%s2633_s0 + $0xa8] sm:$0xff]  ;;  %v82_v10 = vld [vmem:[%s2633_s0 + $0x220] sm:$0xff] }
  0x1d   :  { %1469 = vmatpush1.bf16.msra.mxu1 %v1667_v44  ;;  %1356 = vmatprep.subr.bf16.mxu0 %v1525_v0  ;;  %v40_v14 = vld [vmem:[%s2633_s0 + $0xd0] sm:$0xff]  ;;  %v87_v15 = vld [vmem:[%s2633_s0 + $0x248] sm:$0xff]  ;;  %v86_v17 = vld [vmem:[%s2633_s0 + $0x240] sm:$0xff] }
  0x1e   :  { %1454 = vmatprep.subr.bf16.mxu1 %v1525_v0  ;;  %v39_v16 = vld [vmem:[%s2633_s0 + $0xc8] sm:$0xff]  ;;  %v44_v21 = vld [vmem:[%s2633_s0 + $0xf0] sm:$0xff]  ;;  %v97_v23 = vld [vmem:[%s2633_s0 + $0x298] sm:$0xff] }
  0x1f   :  { %v91_v22 = vld [vmem:[%s2633_s0 + $0x268] sm:$0xff]  ;;  %v49_v25 = vld [vmem:[%s2633_s0 + $0x118] sm:$0xff]  ;;  %v102_v28 = vld [vmem:[%s2633_s0 + $0x2c0] sm:$0xff] }
  0x20   :  { %1358 = vmatpush1.bf16.msra.mxu0 %v1357_v49  ;;  %v61_v49 = vld [vmem:[%s2633_s0 + $0x178] sm:$0xff]  ;;  %v54_v29 = vld [vmem:[%s2633_s0 + $0x140] sm:$0xff]  ;;  %v107_v32 = vld [vmem:[%s2633_s0 + $0x2e8] sm:$0xff] }
  0x21   :  { %1470 = vmatpush1.bf16.msra.mxu1 %v1684_v50  ;;  %1359 = vmatprep.subr.bf16.mxu0 %v1525_v0  ;;  %v101_v31 = vld [vmem:[%s2633_s0 + $0x2b8] sm:$0xff]  ;;  %v106_v35 = vld [vmem:[%s2633_s0 + $0x2e0] sm:$0xff]  ;;  %v112_v37 = vld [vmem:[%s2633_s0 + $0x310] sm:$0xff] }
  0x22   :  { %1455 = vmatprep.subr.bf16.mxu1 %v1525_v0  ;;  %v64_v38 = vld [vmem:[%s2633_s0 + $0x190] sm:$0xff]  ;;  %v111_v39 = vld [vmem:[%s2633_s0 + $0x308] sm:$0xff]  ;;  %v117_v40 = vld [vmem:[%s2633_s0 + $0x338] sm:$0xff] }
  0x23   :  { %v69_v41 = vld [vmem:[%s2633_s0 + $0x1b8] sm:$0xff]  ;;  %v127_v48 = vld [vmem:[%s2633_s0 + $0x388] sm:$0xff]  ;;  %v146_v63 = vld [vmem:[%s2633_s0 + $0x420] sm:$0xff] }
  0x24   :  { %1361 = vmatpush1.bf16.msra.mxu0 %v1360_v55  ;;  %v262_v55 = vld [vmem:[%s2632_s1 + $0x220] sm:$0xff]  ;;  %v121_v47 = vld [vmem:[%s2633_s0 + $0x358] sm:$0xff]  ;;  %v152_v1 = vld [vmem:[%s2633_s0 + $0x450] sm:$0xff] }
  0x25   :  { %1471 = vmatpush1.bf16.msra.mxu1 %v1701_v56  ;;  %1362 = vmatprep.subr.bf16.mxu0 %v1525_v0  ;;  %v1439_v60 = vpack.c.bf16 %v263_v57, %v262_v55  ;;  %v137_v55 = vld [vmem:[%s2633_s0 + $0x3d8] sm:$0xff] }
  0x26   :  { %1456 = vmatprep.subr.bf16.mxu1 %v1525_v0  ;;  %v89_v57 = vld [vmem:[%s2633_s0 + $0x258] sm:$0xff] }
  0x28   :  { %1364 = vmatpush1.bf16.msra.mxu0 %v1363_v61  ;;  %v24_v61 = vld [vmem:[%s2633_s0 + $0x50] sm:$0xff] }
  0x29   :  { %1472 = vmatpush1.bf16.msra.mxu1 %v1718_v62  ;;  %1365 = vmatprep.subr.bf16.mxu0 %v1525_v0 }
  0x2a   :  { %1457 = vmatprep.subr.bf16.mxu1 %v1525_v0 }
  0x2c   :  { %1367 = vmatpush1.bf16.msra.mxu0 %v1366_v4  ;;  %v77_v4 = vld [vmem:[%s2633_s0 + $0x1f8] sm:$0xff] }
  0x2d   :  { %1473 = vmatpush1.bf16.msra.mxu1 %v1735_v5  ;;  %1368 = vmatprep.subr.bf16.mxu0 %v1525_v0 }
  0x2e   :  { %1458 = vmatprep.subr.bf16.mxu1 %v1525_v0 }
  0x30   :  { %1370 = vmatpush1.bf16.msra.mxu0 %v1369_v11  ;;  %v34_v11 = vld [vmem:[%s2633_s0 + $0xa0] sm:$0xff] }
  0x31   :  { %1474 = vmatpush1.bf16.msra.mxu1 %v1752_v13  ;;  %1371 = vmatprep.subr.bf16.mxu0 %v1525_v0 }
  0x32   :  { %1459 = vmatprep.subr.bf16.mxu1 %v1525_v0 }
  0x34   :  { %1373 = vmatpush1.bf16.msra.mxu0 %v1372_v19  ;;  %v92_v19 = vld [vmem:[%s2633_s0 + $0x270] sm:$0xff] }
  0x35   :  { %1475 = vmatpush1.bf16.msra.mxu1 %v1769_v20  ;;  %1374 = vmatprep.subr.bf16.mxu0 %v1525_v0 }
  0x36   :  { %1460 = vmatprep.subr.bf16.mxu1 %v1525_v0 }
  0x38   :  { %1376 = vmatpush1.bf16.msra.mxu0 %v1375_v26  ;;  %v96_v26 = vld [vmem:[%s2633_s0 + $0x290] sm:$0xff] }
  0x39   :  { %1476 = vmatpush1.bf16.msra.mxu1 %v1786_v27  ;;  %1377 = vmatprep.subr.bf16.mxu0 %v1525_v0 }
  0x3a   :  { %1461 = vmatprep.subr.bf16.mxu1 %v1525_v0 }
  0x3c   :  { %1379 = vmatpush1.bf16.msra.mxu0 %v1378_v33  ;;  %v59_v33 = vld [vmem:[%s2633_s0 + $0x168] sm:$0xff] }
  0x3d   :  { %1477 = vmatpush1.bf16.msra.mxu1 %v1803_v34  ;;  %1380 = vmatprep.subr.bf16.mxu0 %v1525_v0 }
  0x3e   :  { %1462 = vmatprep.subr.bf16.mxu1 %v1525_v0 }
  0x40   :  { %1382 = vmatpush1.bf16.msra.mxu0 %v1381_v42  ;;  %v116_v42 = vld [vmem:[%s2633_s0 + $0x330] sm:$0xff] }
  0x41   :  { %1478 = vmatpush1.bf16.msra.mxu1 %v1826_v43  ;;  %1383 = vmatprep.subr.bf16.mxu0 %v1525_v0 }
  0x42   :  { %1432 = vmatprep.subr.bf16.mxu1 %v1431_v45 }
  0x43   :  { %440 = vmatmul.mubr.f32.vlgmr.msra.gmra.mrb[0].mxu0 %v14_v46  ;;  %v74_v46 = vld [vmem:[%s2633_s0 + $0x1e0] sm:$0xff] }
  0x44   :  { %730 = vmatmul.mubr.f32.vlgmr.msra.gmra.mrb[0].mxu1 %v61_v49  ;;  %1385 = vmatpush1.bf16.msra.mxu0 %v1566_v8  ;;  %v25_v8 = vld [vmem:[%s2633_s0 + $0x58] sm:$0xff]  ;;  %v79_v49 = vld [vmem:[%s2633_s0 + $0x208] sm:$0xff] }
  0x45   :  { %1434 = vmatpush3.bf16.msra.mxu1 %v1431_v45  ;;  %444 = vmatprep.mubr.f32.mxu0 %v20_v51  ;;  %v122_v45 = vld [vmem:[%s2633_s0 + $0x360] sm:$0xff] }
  0x46   :  { %734 = vmatprep.mubr.f32.mxu1 %v67_v52  ;;  %1386 = vmatprep.subr.bf16.mxu0 %v1525_v0  ;;  %v126_v51 = vld [vmem:[%s2633_s0 + $0x380] sm:$0xff]  ;;  %v132_v52 = vld [vmem:[%s2633_s0 + $0x3b0] sm:$0xff] }
  0x47   :  { %445 = vmatmul.mubr.f32.gmra.mrb[2].mxu0 %v19_v54  ;;  %1436 = vmatprep.subr.bf16.mxu1 %v1435_v53  ;;  %v131_v54 = vld [vmem:[%s2633_s0 + $0x3a8] sm:$0xff] }
  0x48   :  { %735 = vmatmul.mubr.f32.gmra.mrb[2].mxu1 %v66_v58  ;;  %449 = vmatprep.mubr.f32.mxu0 %v25_v8  ;;  %v136_v58 = vld [vmem:[%s2633_s0 + $0x3d0] sm:$0xff]  ;;  %v142_v8 = vld [vmem:[%s2633_s0 + $0x400] sm:$0xff] }
  0x49   :  { %739 = vmatprep.mubr.f32.mxu1 %v72_v59  ;;  %1388 = vmatpush1.bf16.msra.mxu0 %v1576_v12  ;;  %v76_v12 = vld [vmem:[%s2633_s0 + $0x1f0] sm:$0xff]  ;;  %v94_v59 = vld [vmem:[%s2633_s0 + $0x280] sm:$0xff] }
  0x4a   :  { %1389 = vmatprep.subr.bf16.mxu0 %v1525_v0  ;;  %1438 = vmatpush3.bf16.msra.mxu1 %v1435_v53  ;;  %v84_v53 = vld [vmem:[%s2633_s0 + $0x230] sm:$0xff] }
  0x4b   :  { %450 = vmatmul.mubr.f32.gmra.mrb[4].mxu0 %v24_v61  ;;  %1440 = vmatprep.subr.bf16.mxu1 %v1439_v60  ;;  %v99_v61 = vld [vmem:[%s2633_s0 + $0x2a8] sm:$0xff] }
  0x4c   :  { %740 = vmatmul.mubr.f32.gmra.mrb[4].mxu1 %v71_v2  ;;  %454 = vmatprep.mubr.f32.mxu0 %v30_v3  ;;  %v104_v2 = vld [vmem:[%s2633_s0 + $0x2d0] sm:$0xff]  ;;  %v151_v3 = vld [vmem:[%s2633_s0 + $0x448] sm:$0xff] }
  0x4d   :  { %744 = vmatprep.mubr.f32.mxu1 %v77_v4  ;;  %1391 = vmatpush1.bf16.msra.mxu0 %v1593_v18  ;;  %v81_v18 = vld [vmem:[%s2633_s0 + $0x218] sm:$0xff]  ;;  %v110_v4 = vld [vmem:[%s2633_s0 + $0x300] sm:$0xff] }
  0x4e   :  { %1392 = vmatprep.subr.bf16.mxu0 %v1525_v0  ;;  %1442 = vmatpush3.bf16.msra.mxu1 %v1439_v60  ;;  %v141_v60 = vld [vmem:[%s2633_s0 + $0x3f8] sm:$0xff] }
  0x4f   :  { %455 = vmatmul.mubr.f32.gmra.mrb[6].mxu0 %v29_v7  ;;  %1444 = vmatprep.subr.bf16.mxu1 %v1443_v6  ;;  %v109_v7 = vld [vmem:[%s2633_s0 + $0x2f8] sm:$0xff] }
  0x50   :  { %745 = vmatmul.mubr.f32.gmra.mrb[6].mxu1 %v76_v12  ;;  %459 = vmatprep.mubr.f32.mxu0 %v35_v9  ;;  %v156_v12 = vld [vmem:[%s2633_s0 + $0x470] sm:$0xff]  ;;  %v115_v9 = vld [vmem:[%s2633_s0 + $0x328] sm:$0xff] }
  0x51   :  { %749 = vmatprep.mubr.f32.mxu1 %v82_v10  ;;  %1394 = vmatpush1.bf16.msra.mxu0 %v1610_v24  ;;  %v45_v24 = vld [vmem:[%s2633_s0 + $0xf8] sm:$0xff]  ;;  %v162_v10 = vld [vmem:[%s2633_s0 + $0x4a0] sm:$0xff] }
  0x52   :  { %1395 = vmatprep.subr.bf16.mxu0 %v1525_v0  ;;  %1446 = vmatpush3.bf16.msra.mxu1 %v1443_v6  ;;  %v157_v6 = vld [vmem:[%s2633_s0 + $0x478] sm:$0xff] }
  0x53   :  { %460 = vmatmul.mubr.f32.gmra.mrb[8].mxu0 %v34_v11  ;;  %v114_v11 = vld [vmem:[%s2633_s0 + $0x320] sm:$0xff] }
  0x54   :  { %750 = vmatmul.mubr.f32.gmra.mrb[8].mxu1 %v81_v18  ;;  %464 = vmatprep.mubr.f32.mxu0 %v40_v14  ;;  %v161_v18 = vld [vmem:[%s2633_s0 + $0x498] sm:$0xff]  ;;  %v120_v14 = vld [vmem:[%s2633_s0 + $0x350] sm:$0xff] }
  0x55   :  { %754 = vmatprep.mubr.f32.mxu1 %v87_v15  ;;  %1397 = vmatpush1.bf16.msra.mxu0 %v1627_v30  ;;  %v50_v30 = vld [vmem:[%s2633_s0 + $0x120] sm:$0xff]  ;;  %v167_v15 = vld [vmem:[%s2633_s0 + $0x4c8] sm:$0xff] }
  0x56   :  { %1398 = vmatprep.subr.bf16.mxu0 %v1525_v0 }
  0x57   :  { %465 = vmatmul.mubr.f32.gmra.mrb[10].mxu0 %v39_v16  ;;  %v119_v16 = vld [vmem:[%s2633_s0 + $0x348] sm:$0xff] }
  0x58   :  { %755 = vmatmul.mubr.f32.gmra.mrb[10].mxu1 %v86_v17  ;;  %469 = vmatprep.mubr.f32.mxu0 %v45_v24  ;;  %v166_v17 = vld [vmem:[%s2633_s0 + $0x4c0] sm:$0xff]  ;;  %v125_v24 = vld [vmem:[%s2633_s0 + $0x378] sm:$0xff] }
  0x59   :  { %759 = vmatprep.mubr.f32.mxu1 %v92_v19  ;;  %1400 = vmatpush1.bf16.msra.mxu0 %v1644_v36  ;;  %v55_v36 = vld [vmem:[%s2633_s0 + $0x148] sm:$0xff]  ;;  %v172_v19 = vld [vmem:[%s2633_s0 + $0x4f0] sm:$0xff] }
  0x5a   :  { %1401 = vmatprep.subr.bf16.mxu0 %v1525_v0 }
  0x5b   :  { %470 = vmatmul.mubr.f32.gmra.mrb[12].mxu0 %v44_v21  ;;  %v124_v21 = vld [vmem:[%s2633_s0 + $0x370] sm:$0xff] }
  0x5c   :  { %760 = vmatmul.mubr.f32.gmra.mrb[12].mxu1 %v91_v22  ;;  %474 = vmatprep.mubr.f32.mxu0 %v50_v30  ;;  %v171_v22 = vld [vmem:[%s2633_s0 + $0x4e8] sm:$0xff]  ;;  %v130_v30 = vld [vmem:[%s2633_s0 + $0x3a0] sm:$0xff] }
  0x5d   :  { %764 = vmatprep.mubr.f32.mxu1 %v97_v23  ;;  %1403 = vmatpush1.bf16.msra.mxu0 %v1667_v44  ;;  %v60_v44 = vld [vmem:[%s2633_s0 + $0x170] sm:$0xff]  ;;  %v177_v23 = vld [vmem:[%s2633_s0 + $0x518] sm:$0xff] }
  0x5e   :  { %1404 = vmatprep.subr.bf16.mxu0 %v1525_v0 }
  0x5f   :  { %475 = vmatmul.mubr.f32.gmra.mrb[14].mxu0 %v49_v25  ;;  %v129_v25 = vld [vmem:[%s2633_s0 + $0x398] sm:$0xff] }
  0x60   :  { %765 = vmatmul.mubr.f32.gmra.mrb[14].mxu1 %v96_v26  ;;  %479 = vmatprep.mubr.f32.mxu0 %v55_v36  ;;  %v176_v26 = vld [vmem:[%s2633_s0 + $0x510] sm:$0xff]  ;;  %v135_v36 = vld [vmem:[%s2633_s0 + $0x3c8] sm:$0xff] }
  0x61   :  { %769 = vmatprep.mubr.f32.mxu1 %v102_v28  ;;  %1406 = vmatpush1.bf16.msra.mxu0 %v1684_v50  ;;  %v65_v50 = vld [vmem:[%s2633_s0 + $0x198] sm:$0xff]  ;;  %v182_v28 = vld [vmem:[%s2633_s0 + $0x540] sm:$0xff] }
  0x62   :  { %1407 = vmatprep.subr.bf16.mxu0 %v1525_v0 }
  0x63   :  { %480 = vmatmul.mubr.f32.gmra.mrb[16].mxu0 %v54_v29  ;;  %v134_v29 = vld [vmem:[%s2633_s0 + $0x3c0] sm:$0xff] }
  0x64   :  { %770 = vmatmul.mubr.f32.gmra.mrb[16].mxu1 %v101_v31  ;;  %484 = vmatprep.mubr.f32.mxu0 %v60_v44  ;;  %v181_v31 = vld [vmem:[%s2633_s0 + $0x538] sm:$0xff]  ;;  %v140_v44 = vld [vmem:[%s2633_s0 + $0x3f0] sm:$0xff] }
  0x65   :  { %774 = vmatprep.mubr.f32.mxu1 %v107_v32  ;;  %1409 = vmatpush1.bf16.msra.mxu0 %v1701_v56  ;;  %v70_v56 = vld [vmem:[%s2633_s0 + $0x1c0] sm:$0xff]  ;;  %v187_v32 = vld [vmem:[%s2633_s0 + $0x568] sm:$0xff] }
  0x66   :  { %1410 = vmatprep.subr.bf16.mxu0 %v1525_v0 }
  0x67   :  { %485 = vmatmul.mubr.f32.gmra.mrb[18].mxu0 %v59_v33  ;;  %v139_v33 = vld [vmem:[%s2633_s0 + $0x3e8] sm:$0xff] }
  0x68   :  { %775 = vmatmul.mubr.f32.gmra.mrb[18].mxu1 %v106_v35  ;;  %489 = vmatprep.mubr.f32.mxu0 %v65_v50  ;;  %v186_v35 = vld [vmem:[%s2633_s0 + $0x560] sm:$0xff]  ;;  %v145_v50 = vld [vmem:[%s2633_s0 + $0x418] sm:$0xff] }
  0x69   :  { %779 = vmatprep.mubr.f32.mxu1 %v112_v37  ;;  %1412 = vmatpush1.bf16.msra.mxu0 %v1718_v62  ;;  %v75_v62 = vld [vmem:[%s2633_s0 + $0x1e8] sm:$0xff]  ;;  %v192_v37 = vld [vmem:[%s2633_s0 + $0x590] sm:$0xff] }
  0x6a   :  { %1413 = vmatprep.subr.bf16.mxu0 %v1525_v0 }
  0x6b   :  { %490 = vmatmul.mubr.f32.gmra.mrb[20].mxu0 %v64_v38  ;;  %v144_v38 = vld [vmem:[%s2633_s0 + $0x410] sm:$0xff] }
  0x6c   :  { %780 = vmatmul.mubr.f32.gmra.mrb[20].mxu1 %v111_v39  ;;  %494 = vmatprep.mubr.f32.mxu0 %v70_v56  ;;  %v191_v39 = vld [vmem:[%s2633_s0 + $0x588] sm:$0xff]  ;;  %v150_v56 = vld [vmem:[%s2633_s0 + $0x440] sm:$0xff] }
  0x6d   :  { %784 = vmatprep.mubr.f32.mxu1 %v117_v40  ;;  %1415 = vmatpush1.bf16.msra.mxu0 %v1735_v5  ;;  %v80_v5 = vld [vmem:[%s2633_s0 + $0x210] sm:$0xff]  ;;  %v18_v40 = vld [vmem:[%s2633_s0 + $0x20] sm:$0xff] }
  0x6e   :  { %1416 = vmatprep.subr.bf16.mxu0 %v1525_v0 }
  0x6f   :  { %495 = vmatmul.mubr.f32.gmra.mrb[22].mxu0 %v69_v41  ;;  %v149_v41 = vld [vmem:[%s2633_s0 + $0x438] sm:$0xff] }
  0x70   :  { %785 = vmatmul.mubr.f32.gmra.mrb[22].mxu1 %v116_v42  ;;  %499 = vmatprep.mubr.f32.mxu0 %v75_v62  ;;  %v23_v42 = vld [vmem:[%s2633_s0 + $0x48] sm:$0xff] }
  0x71   :  { %789 = vmatprep.mubr.f32.mxu1 %v122_v45  ;;  %1418 = vmatpush1.bf16.msra.mxu0 %v1752_v13  ;;  %v85_v13 = vld [vmem:[%s2633_s0 + $0x238] sm:$0xff]  ;;  %v155_v62 = vld [vmem:[%s2633_s0 + $0x468] sm:$0xff]  ;;  %v28_v45 = vld [vmem:[%s2633_s0 + $0x70] sm:$0xff] }
  0x72   :  { %1419 = vmatprep.subr.bf16.mxu0 %v1525_v0 }
  0x73   :  { %500 = vmatmul.mubr.f32.gmra.mrb[24].mxu0 %v74_v46  ;;  %v154_v46 = vld [vmem:[%s2633_s0 + $0x460] sm:$0xff] }
  0x74   :  { %790 = vmatmul.mubr.f32.gmra.mrb[24].mxu1 %v121_v47  ;;  %504 = vmatprep.mubr.f32.mxu0 %v80_v5  ;;  %v33_v47 = vld [vmem:[%s2633_s0 + $0x98] sm:$0xff]  ;;  %v160_v5 = vld [vmem:[%s2633_s0 + $0x490] sm:$0xff] }
  0x75   :  { %794 = vmatprep.mubr.f32.mxu1 %v127_v48  ;;  %1421 = vmatpush1.bf16.msra.mxu0 %v1769_v20  ;;  %v90_v20 = vld [vmem:[%s2633_s0 + $0x260] sm:$0xff] }
  0x76   :  { %1422 = vmatprep.subr.bf16.mxu0 %v1525_v0  ;;  %v38_v48 = vld [vmem:[%s2633_s0 + $0xc0] sm:$0xff] }
  0x77   :  { %505 = vmatmul.mubr.f32.gmra.mrb[26].mxu0 %v79_v49  ;;  %v159_v49 = vld [vmem:[%s2633_s0 + $0x488] sm:$0xff] }
  0x78   :  { %795 = vmatmul.mubr.f32.gmra.mrb[26].mxu1 %v126_v51  ;;  %509 = vmatprep.mubr.f32.mxu0 %v85_v13  ;;  %v43_v51 = vld [vmem:[%s2633_s0 + $0xe8] sm:$0xff]  ;;  %v165_v13 = vld [vmem:[%s2633_s0 + $0x4b8] sm:$0xff] }
  0x79   :  { %799 = vmatprep.mubr.f32.mxu1 %v132_v52  ;;  %1424 = vmatpush1.bf16.msra.mxu0 %v1786_v27  ;;  %v95_v27 = vld [vmem:[%s2633_s0 + $0x288] sm:$0xff]  ;;  %v48_v52 = vld [vmem:[%s2633_s0 + $0x110] sm:$0xff] }
  0x7a   :  { %1425 = vmatprep.subr.bf16.mxu0 %v1525_v0 }
  0x7b   :  { %510 = vmatmul.mubr.f32.gmra.mrb[28].mxu0 %v84_v53  ;;  %v164_v53 = vld [vmem:[%s2633_s0 + $0x4b0] sm:$0xff] }
  0x7c   :  { %800 = vmatmul.mubr.f32.gmra.mrb[28].mxu1 %v131_v54  ;;  %514 = vmatprep.mubr.f32.mxu0 %v90_v20  ;;  %v53_v54 = vld [vmem:[%s2633_s0 + $0x138] sm:$0xff]  ;;  %v170_v20 = vld [vmem:[%s2633_s0 + $0x4e0] sm:$0xff] }
  0x7d   :  { %804 = vmatprep.mubr.f32.mxu1 %v137_v55  ;;  %1427 = vmatpush1.bf16.msra.mxu0 %v1803_v34  ;;  %v100_v34 = vld [vmem:[%s2633_s0 + $0x2b0] sm:$0xff]  ;;  %v58_v55 = vld [vmem:[%s2633_s0 + $0x160] sm:$0xff] }
  0x7e   :  { %1428 = vmatprep.subr.bf16.mxu0 %v1525_v0  ;;  %v147_v0 = vld [vmem:[%s2633_s0 + $0x428] sm:$0xff] }
  0x7f   :  { %515 = vmatmul.mubr.f32.gmra.mrb[30].mxu0 %v89_v57  ;;  %v169_v57 = vld [vmem:[%s2633_s0 + $0x4d8] sm:$0xff] }
  0x80   :  { %805 = vmatmul.mubr.f32.gmra.mrb[30].mxu1 %v136_v58  ;;  %519 = vmatprep.mubr.f32.mxu0 %v95_v27  ;;  %v63_v58 = vld [vmem:[%s2633_s0 + $0x188] sm:$0xff] }
  0x81   :  { %809 = vmatprep.mubr.f32.mxu1 %v142_v8  ;;  %1430 = vmatpush1.bf16.msra.mxu0 %v1826_v43  ;;  %v105_v43 = vld [vmem:[%s2633_s0 + $0x2d8] sm:$0xff]  ;;  %v175_v27 = vld [vmem:[%s2633_s0 + $0x508] sm:$0xff]  ;;  %v68_v8 = vld [vmem:[%s2633_s0 + $0x1b0] sm:$0xff] }
  0x83   :  { %520 = vmatmul.mubr.f32.gmra.mrb[32].mxu0 %v94_v59  ;;  %v174_v59 = vld [vmem:[%s2633_s0 + $0x500] sm:$0xff] }
  0x84   :  { %810 = vmatmul.mubr.f32.gmra.mrb[32].mxu1 %v141_v60  ;;  %524 = vmatprep.mubr.f32.mxu0 %v100_v34  ;;  %v73_v60 = vld [vmem:[%s2633_s0 + $0x1d8] sm:$0xff]  ;;  %v180_v34 = vld [vmem:[%s2633_s0 + $0x530] sm:$0xff] }
  0x85   :  { %814 = vmatprep.mubr.f32.mxu1 %v147_v0  ;;  %v78_v0 = vld [vmem:[%s2633_s0 + $0x200] sm:$0xff] }
  0x87   :  { %525 = vmatmul.mubr.f32.gmra.mrb[34].mxu0 %v99_v61  ;;  %v179_v61 = vld [vmem:[%s2633_s0 + $0x528] sm:$0xff] }
  0x88   :  { %815 = vmatmul.mubr.f32.gmra.mrb[34].mxu1 %v146_v63  ;;  %529 = vmatprep.mubr.f32.mxu0 %v105_v43  ;;  %v83_v63 = vld [vmem:[%s2633_s0 + $0x228] sm:$0xff]  ;;  %v185_v43 = vld [vmem:[%s2633_s0 + $0x558] sm:$0xff] }
  0x89   :  { %819 = vmatprep.mubr.f32.mxu1 %v152_v1  ;;  %v88_v1 = vld [vmem:[%s2633_s0 + $0x250] sm:$0xff] }
  0x8b   :  { %530 = vmatmul.mubr.f32.gmra.mrb[36].mxu0 %v104_v2  ;;  %v184_v2 = vld [vmem:[%s2633_s0 + $0x550] sm:$0xff] }
  0x8c   :  { %820 = vmatmul.mubr.f32.gmra.mrb[36].mxu1 %v151_v3  ;;  %534 = vmatprep.mubr.f32.mxu0 %v110_v4  ;;  %v93_v3 = vld [vmem:[%s2633_s0 + $0x278] sm:$0xff]  ;;  %v190_v4 = vld [vmem:[%s2633_s0 + $0x580] sm:$0xff] }
  0x8d   :  { %824 = vmatprep.mubr.f32.mxu1 %v157_v6  ;;  %v98_v6 = vld [vmem:[%s2633_s0 + $0x2a0] sm:$0xff] }
  0x8f   :  { %535 = vmatmul.mubr.f32.gmra.mrb[38].mxu0 %v109_v7  ;;  %v189_v7 = vld [vmem:[%s2633_s0 + $0x578] sm:$0xff] }
  0x90   :  { %825 = vmatmul.mubr.f32.gmra.mrb[38].mxu1 %v156_v12  ;;  %539 = vmatprep.mubr.f32.mxu0 %v115_v9  ;;  %v103_v12 = vld [vmem:[%s2633_s0 + $0x2c8] sm:$0xff]  ;;  %v17_v9 = vld [vmem:[%s2633_s0 + $0x18] sm:$0xff] }
  0x91   :  { %829 = vmatprep.mubr.f32.mxu1 %v162_v10  ;;  %v108_v10 = vld [vmem:[%s2633_s0 + $0x2f0] sm:$0xff] }
  0x93   :  { %540 = vmatmul.mubr.f32.gmra.mrb[40].mxu0 %v114_v11  ;;  %v16_v11 = vld [vmem:[%s2633_s0 + $0x10] sm:$0xff] }
  0x94   :  { %830 = vmatmul.mubr.f32.gmra.mrb[40].mxu1 %v161_v18  ;;  %544 = vmatprep.mubr.f32.mxu0 %v120_v14  ;;  %v113_v18 = vld [vmem:[%s2633_s0 + $0x318] sm:$0xff]  ;;  %v22_v14 = vld [vmem:[%s2633_s0 + $0x40] sm:$0xff] }
  0x95   :  { %834 = vmatprep.mubr.f32.mxu1 %v167_v15  ;;  %v118_v15 = vld [vmem:[%s2633_s0 + $0x340] sm:$0xff] }
  0x97   :  { %545 = vmatmul.mubr.f32.gmra.mrb[42].mxu0 %v119_v16  ;;  %v21_v16 = vld [vmem:[%s2633_s0 + $0x38] sm:$0xff] }
  0x98   :  { %835 = vmatmul.mubr.f32.gmra.mrb[42].mxu1 %v166_v17  ;;  %549 = vmatprep.mubr.f32.mxu0 %v125_v24  ;;  %v123_v17 = vld [vmem:[%s2633_s0 + $0x368] sm:$0xff] }
  0x99   :  { %839 = vmatprep.mubr.f32.mxu1 %v172_v19  ;;  %v27_v24 = vld [vmem:[%s2633_s0 + $0x68] sm:$0xff]  ;;  %v128_v19 = vld [vmem:[%s2633_s0 + $0x390] sm:$0xff] }
  0x9b   :  { %550 = vmatmul.mubr.f32.gmra.mrb[44].mxu0 %v124_v21  ;;  %v26_v21 = vld [vmem:[%s2633_s0 + $0x60] sm:$0xff] }
  0x9c   :  { %840 = vmatmul.mubr.f32.gmra.mrb[44].mxu1 %v171_v22  ;;  %554 = vmatprep.mubr.f32.mxu0 %v130_v30  ;;  %v133_v22 = vld [vmem:[%s2633_s0 + $0x3b8] sm:$0xff]  ;;  %v32_v30 = vld [vmem:[%s2633_s0 + $0x90] sm:$0xff] }
  0x9d   :  { %844 = vmatprep.mubr.f32.mxu1 %v177_v23  ;;  %v138_v23 = vld [vmem:[%s2633_s0 + $0x3e0] sm:$0xff] }
  0x9f   :  { %555 = vmatmul.mubr.f32.gmra.mrb[46].mxu0 %v129_v25  ;;  %v31_v25 = vld [vmem:[%s2633_s0 + $0x88] sm:$0xff] }
  0xa0   :  { %845 = vmatmul.mubr.f32.gmra.mrb[46].mxu1 %v176_v26  ;;  %559 = vmatprep.mubr.f32.mxu0 %v135_v36  ;;  %v143_v26 = vld [vmem:[%s2633_s0 + $0x408] sm:$0xff]  ;;  %v37_v36 = vld [vmem:[%s2633_s0 + $0xb8] sm:$0xff] }
  0xa1   :  { %849 = vmatprep.mubr.f32.mxu1 %v182_v28  ;;  %v148_v28 = vld [vmem:[%s2633_s0 + $0x430] sm:$0xff] }
  0xa3   :  { %560 = vmatmul.mubr.f32.gmra.mrb[48].mxu0 %v134_v29  ;;  %v36_v29 = vld [vmem:[%s2633_s0 + $0xb0] sm:$0xff] }
  0xa4   :  { %850 = vmatmul.mubr.f32.gmra.mrb[48].mxu1 %v181_v31  ;;  %564 = vmatprep.mubr.f32.mxu0 %v140_v44  ;;  %v153_v31 = vld [vmem:[%s2633_s0 + $0x458] sm:$0xff]  ;;  %v42_v44 = vld [vmem:[%s2633_s0 + $0xe0] sm:$0xff] }
  0xa5   :  { %854 = vmatprep.mubr.f32.mxu1 %v187_v32  ;;  %v158_v32 = vld [vmem:[%s2633_s0 + $0x480] sm:$0xff] }
  0xa7   :  { %565 = vmatmul.mubr.f32.gmra.mrb[50].mxu0 %v139_v33  ;;  %v41_v33 = vld [vmem:[%s2633_s0 + $0xd8] sm:$0xff] }
  0xa8   :  { %855 = vmatmul.mubr.f32.gmra.mrb[50].mxu1 %v186_v35  ;;  %569 = vmatprep.mubr.f32.mxu0 %v145_v50  ;;  %v163_v35 = vld [vmem:[%s2633_s0 + $0x4a8] sm:$0xff] }
  0xa9   :  { %859 = vmatprep.mubr.f32.mxu1 %v192_v37  ;;  %v47_v50 = vld [vmem:[%s2633_s0 + $0x108] sm:$0xff]  ;;  %v168_v37 = vld [vmem:[%s2633_s0 + $0x4d0] sm:$0xff] }
  0xab   :  { %570 = vmatmul.mubr.f32.gmra.mrb[52].mxu0 %v144_v38  ;;  %v46_v38 = vld [vmem:[%s2633_s0 + $0x100] sm:$0xff] }
  0xac   :  { %860 = vmatmul.mubr.f32.gmra.mrb[52].mxu1 %v191_v39  ;;  %574 = vmatprep.mubr.f32.mxu0 %v150_v56  ;;  %v173_v39 = vld [vmem:[%s2633_s0 + $0x4f8] sm:$0xff]  ;;  %v52_v56 = vld [vmem:[%s2633_s0 + $0x130] sm:$0xff] }
  0xad   :  { %1281 = vmatprep.mubr.msk.f32.mxu1 %vm266_vm0, %v18_v40  ;;  %v178_v40 = vld [vmem:[%s2633_s0 + $0x520] sm:$0xff] }
  0xaf   :  { %575 = vmatmul.mubr.f32.gmra.mrb[54].mxu0 %v149_v41  ;;  %v51_v41 = vld [vmem:[%s2633_s0 + $0x128] sm:$0xff] }
  0xb0   :  { %1282 = vmatmul.mubr.msk.f32.vlgmr.msra.gmra.mrb[54].mxu1 %vm266_vm0, %v23_v42  ;;  %579 = vmatprep.mubr.f32.mxu0 %v155_v62  ;;  %v183_v42 = vld [vmem:[%s2633_s0 + $0x548] sm:$0xff]  ;;  %v57_v62 = vld [vmem:[%s2633_s0 + $0x158] sm:$0xff] }
  0xb1   :  { %1284 = vmatprep.mubr.msk.f32.mxu1 %vm266_vm0, %v28_v45  ;;  %v188_v45 = vld [vmem:[%s2633_s0 + $0x570] sm:$0xff] }
  0xb3   :  { %580 = vmatmul.mubr.f32.gmra.mrb[56].mxu0 %v154_v46  ;;  %v56_v46 = vld [vmem:[%s2633_s0 + $0x150] sm:$0xff] }
  0xb4   :  { %1285 = vmatmul.mubr.msk.f32.gmra.mrb[56].mxu1 %vm266_vm0, %v33_v47  ;;  %584 = vmatprep.mubr.f32.mxu0 %v160_v5  ;;  %v193_v47 = vld [vmem:[%s2633_s0 + $0x598] sm:$0xff] }
  0xb5   :  { %1287 = vmatprep.mubr.msk.f32.mxu1 %vm266_vm0, %v38_v48 }
  0xb7   :  { %585 = vmatmul.mubr.f32.gmra.mrb[58].mxu0 %v159_v49 }
  0xb8   :  { %1288 = vmatmul.mubr.msk.f32.gmra.mrb[58].mxu1 %vm266_vm0, %v43_v51  ;;  %589 = vmatprep.mubr.f32.mxu0 %v165_v13 }
  0xb9   :  { %1290 = vmatprep.mubr.msk.f32.mxu1 %vm266_vm0, %v48_v52 }
  0xbb   :  { %590 = vmatmul.mubr.f32.gmra.mrb[60].mxu0 %v164_v53 }
  0xbc   :  { %1291 = vmatmul.mubr.msk.f32.gmra.mrb[60].mxu1 %vm266_vm0, %v53_v54  ;;  %594 = vmatprep.mubr.f32.mxu0 %v170_v20 }
  0xbd   :  { %1293 = vmatprep.mubr.msk.f32.mxu1 %vm266_vm0, %v58_v55 }
  0xbf   :  { %595 = vmatmul.mubr.f32.gmra.mrb[62].mxu0 %v169_v57 }
  0xc0   :  { %1294 = vmatmul.mubr.msk.f32.gmra.mrb[62].mxu1 %vm266_vm0, %v63_v58  ;;  %599 = vmatprep.mubr.f32.mxu0 %v175_v27 }
  0xc1   :  { %1296 = vmatprep.mubr.msk.f32.mxu1 %vm266_vm0, %v68_v8 }
  0xc3   :  { %600 = vmatmul.mubr.f32.gmra.mrb[64].mxu0 %v174_v59 }
  0xc4   :  { %1297 = vmatmul.mubr.msk.f32.gmra.mrb[64].mxu1 %vm266_vm0, %v73_v60  ;;  %604 = vmatprep.mubr.f32.mxu0 %v180_v34 }
  0xc5   :  { %1299 = vmatprep.mubr.msk.f32.mxu1 %vm266_vm0, %v78_v0 }
  0xc7   :  { %605 = vmatmul.mubr.f32.gmra.mrb[66].mxu0 %v179_v61 }
  0xc8   :  { %1300 = vmatmul.mubr.msk.f32.gmra.mrb[66].mxu1 %vm266_vm0, %v83_v63  ;;  %609 = vmatprep.mubr.f32.mxu0 %v185_v43 }
  0xc9   :  { %1302 = vmatprep.mubr.msk.f32.mxu1 %vm266_vm0, %v88_v1 }
  0xcb   :  { %610 = vmatmul.mubr.f32.gmra.mrb[68].mxu0 %v184_v2 }
  0xcc   :  { %1303 = vmatmul.mubr.msk.f32.gmra.mrb[68].mxu1 %vm266_vm0, %v93_v3  ;;  %614 = vmatprep.mubr.f32.mxu0 %v190_v4 }
  0xcd   :  { %1305 = vmatprep.mubr.msk.f32.mxu1 %vm266_vm0, %v98_v6 }
  0xcf   :  { %615 = vmatmul.mubr.f32.gmra.mrb[70].mxu0 %v189_v7 }
  0xd0   :  { %1306 = vmatmul.mubr.msk.f32.gmra.mrb[70].mxu1 %vm266_vm0, %v103_v12  ;;  %684 = vmatprep.mubr.f32.mxu0 %v17_v9 }
  0xd1   :  { %1308 = vmatprep.mubr.msk.f32.mxu1 %vm266_vm0, %v108_v10 }
  0xd3   :  { %685 = vmatmul.mubr.f32.vlgmr.msra.gmra.mrb[0].mxu0 %v16_v11 }
  0xd4   :  { %1309 = vmatmul.mubr.msk.f32.gmra.mrb[72].mxu1 %vm266_vm0, %v113_v18  ;;  %689 = vmatprep.mubr.f32.mxu0 %v22_v14 }
  0xd5   :  { %1311 = vmatprep.mubr.msk.f32.mxu1 %vm266_vm0, %v118_v15 }
  0xd7   :  { %690 = vmatmul.mubr.f32.gmra.mrb[2].mxu0 %v21_v16 }
  0xd8   :  { %1312 = vmatmul.mubr.msk.f32.gmra.mrb[74].mxu1 %vm266_vm0, %v123_v17  ;;  %694 = vmatprep.mubr.f32.mxu0 %v27_v24 }
  0xd9   :  { %1314 = vmatprep.mubr.msk.f32.mxu1 %vm266_vm0, %v128_v19 }
  0xdb   :  { %695 = vmatmul.mubr.f32.gmra.mrb[4].mxu0 %v26_v21 }
  0xdc   :  { %1315 = vmatmul.mubr.msk.f32.gmra.mrb[76].mxu1 %vm266_vm0, %v133_v22  ;;  %699 = vmatprep.mubr.f32.mxu0 %v32_v30 }
  0xdd   :  { %1317 = vmatprep.mubr.msk.f32.mxu1 %vm266_vm0, %v138_v23 }
  0xdf   :  { %700 = vmatmul.mubr.f32.gmra.mrb[6].mxu0 %v31_v25 }
  0xe0   :  { %1318 = vmatmul.mubr.msk.f32.gmra.mrb[78].mxu1 %vm266_vm0, %v143_v26  ;;  %704 = vmatprep.mubr.f32.mxu0 %v37_v36 }
  0xe1   :  { %1320 = vmatprep.mubr.msk.f32.mxu1 %vm266_vm0, %v148_v28 }
  0xe3   :  { %705 = vmatmul.mubr.f32.gmra.mrb[8].mxu0 %v36_v29 }
  0xe4   :  { %1321 = vmatmul.mubr.msk.f32.gmra.mrb[80].mxu1 %vm266_vm0, %v153_v31  ;;  %709 = vmatprep.mubr.f32.mxu0 %v42_v44 }
  0xe5   :  { %1323 = vmatprep.mubr.msk.f32.mxu1 %vm266_vm0, %v158_v32 }
  0xe7   :  { %710 = vmatmul.mubr.f32.gmra.mrb[10].mxu0 %v41_v33 }
  0xe8   :  { %1324 = vmatmul.mubr.msk.f32.gmra.mrb[82].mxu1 %vm266_vm0, %v163_v35  ;;  %714 = vmatprep.mubr.f32.mxu0 %v47_v50 }
  0xe9   :  { %1326 = vmatprep.mubr.msk.f32.mxu1 %vm266_vm0, %v168_v37 }
  0xeb   :  { %715 = vmatmul.mubr.f32.gmra.mrb[12].mxu0 %v46_v38 }
  0xec   :  { %1327 = vmatmul.mubr.msk.f32.gmra.mrb[84].mxu1 %vm266_vm0, %v173_v39  ;;  %719 = vmatprep.mubr.f32.mxu0 %v52_v56 }
  0xed   :  { %1329 = vmatprep.mubr.msk.f32.mxu1 %vm266_vm0, %v178_v40 }
  0xef   :  { %720 = vmatmul.mubr.f32.gmra.mrb[14].mxu0 %v51_v41 }
  0xf0   :  { %1330 = vmatmul.mubr.msk.f32.gmra.mrb[86].mxu1 %vm266_vm0, %v183_v42  ;;  %724 = vmatprep.mubr.f32.mxu0 %v57_v62 }
  0xf1   :  { %1332 = vmatprep.mubr.msk.f32.mxu1 %vm266_vm0, %v188_v45 }
  0xf3   :  { %725 = vmatmul.mubr.f32.gmra.mrb[16].mxu0 %v56_v46 }
  0xf4   :  { %1333 = vmatmul.mubr.msk.f32.gmra.mrb[88].mxu1 %vm266_vm0, %v193_v47 }
 0x117   :  { %v731_v5 = vpop.f32.mrb[0].mxu1 }
 0x118   :  { %v733_v48 = vpop.f32.mrb[1].mxu1 }
 0x11b   :  { %v736_v49 = vpop.f32.mrb[2].mxu1 }
 0x11c   :  { %v738_v51 = vpop.f32.mrb[3].mxu1 }
 0x11f   :  { %v741_v13 = vpop.f32.mrb[4].mxu1 }
 0x120   :  { %v743_v52 = vpop.f32.mrb[5].mxu1 }
 0x123   :  { %v746_v53 = vpop.f32.mrb[6].mxu1 }
 0x124   :  { %v748_v54 = vpop.f32.mrb[7].mxu1 }
 0x127   :  { %v751_v20 = vpop.f32.mrb[8].mxu1 }
 0x128   :  { %v753_v55 = vpop.f32.mrb[9].mxu1 }
 0x12b   :  { %v756_v57 = vpop.f32.mrb[10].mxu1 }
 0x12c   :  { %v758_v58 = vpop.f32.mrb[11].mxu1 }
 0x12f   :  { %v761_v27 = vpop.f32.mrb[12].mxu1 }
 0x130   :  { %v763_v8 = vpop.f32.mrb[13].mxu1 }
 0x133   :  { %v766_v59 = vpop.f32.mrb[14].mxu1 }
 0x134   :  { %v768_v60 = vpop.f32.mrb[15].mxu1 }
 0x137   :  { %v771_v34 = vpop.f32.mrb[16].mxu1 }
 0x138   :  { %v773_v0 = vpop.f32.mrb[17].mxu1 }
 0x13a   :  { %v486_v61 = vpop.f32.mrb[18].mxu0 }
 0x13b   :  { %v2450_v63 = vadd.f32 %v731_v5, %v486_v61  ;;  %v776_v43 = vpop.f32.mrb[18].mxu1  ;;  %v488_v1 = vpop.f32.mrb[19].mxu0 }
 0x13c   :  { %v778_v2 = vpop.f32.mrb[19].mxu1 }
 0x13e   :  { %v491_v3 = vpop.f32.mrb[20].mxu0 }
 0x13f   :  { %v2452_v4 = vadd.f32 %v736_v49, %v491_v3  ;;  %v781_v6 = vpop.f32.mrb[20].mxu1  ;;  %v493_v7 = vpop.f32.mrb[21].mxu0 }
 0x140   :  { %v783_v12 = vpop.f32.mrb[21].mxu1 }
 0x142   :  { %v496_v9 = vpop.f32.mrb[22].mxu0 }
 0x143   :  { %v2454_v10 = vadd.f32 %v741_v13, %v496_v9  ;;  %v786_v11 = vpop.f32.mrb[22].mxu1  ;;  %v498_v18 = vpop.f32.mrb[23].mxu0 }
 0x144   :  { %v788_v14 = vpop.f32.mrb[23].mxu1 }
 0x146   :  { %v501_v15 = vpop.f32.mrb[24].mxu0 }
 0x147   :  { %v2456_v16 = vadd.f32 %v746_v53, %v501_v15  ;;  %v791_v17 = vpop.f32.mrb[24].mxu1  ;;  %v503_v24 = vpop.f32.mrb[25].mxu0 }
 0x148   :  { %v793_v19 = vpop.f32.mrb[25].mxu1 }
 0x14a   :  { %v506_v21 = vpop.f32.mrb[26].mxu0 }
 0x14b   :  { %v2458_v22 = vadd.f32 %v751_v20, %v506_v21  ;;  %v796_v30 = vpop.f32.mrb[26].mxu1  ;;  %v508_v23 = vpop.f32.mrb[27].mxu0 }
 0x14c   :  { %v798_v25 = vpop.f32.mrb[27].mxu1 }
 0x14e   :  { %v511_v26 = vpop.f32.mrb[28].mxu0 }
 0x14f   :  { %v2460_v36 = vadd.f32 %v756_v57, %v511_v26  ;;  %v801_v28 = vpop.f32.mrb[28].mxu1  ;;  %v513_v29 = vpop.f32.mrb[29].mxu0 }
 0x150   :  { %v803_v31 = vpop.f32.mrb[29].mxu1 }
 0x152   :  { %v516_v44 = vpop.f32.mrb[30].mxu0 }
 0x153   :  { %v2462_v32 = vadd.f32 %v761_v27, %v516_v44  ;;  %v806_v33 = vpop.f32.mrb[30].mxu1  ;;  %v518_v35 = vpop.f32.mrb[31].mxu0 }
 0x154   :  { %v808_v50 = vpop.f32.mrb[31].mxu1 }
 0x156   :  { %v521_v37 = vpop.f32.mrb[32].mxu0 }
 0x157   :  { %v2464_v38 = vadd.f32 %v766_v59, %v521_v37  ;;  %v811_v39 = vpop.f32.mrb[32].mxu1  ;;  %v523_v56 = vpop.f32.mrb[33].mxu0 }
 0x158   :  { %v813_v40 = vpop.f32.mrb[33].mxu1 }
 0x15a   :  { %v526_v41 = vpop.f32.mrb[34].mxu0 }
 0x15b   :  { %v2466_v42 = vadd.f32 %v771_v34, %v526_v41  ;;  %v816_v62 = vpop.f32.mrb[34].mxu1  ;;  %v528_v45 = vpop.f32.mrb[35].mxu0 }
 0x15c   :  { %v818_v46 = vpop.f32.mrb[35].mxu1 }
 0x15e   :  { %v531_v47 = vpop.f32.mrb[36].mxu0 }
 0x15f   :  { %v2468_v5 = vadd.f32 %v776_v43, %v531_v47  ;;  %v821_v48 = vpop.f32.mrb[36].mxu1  ;;  %v533_v49 = vpop.f32.mrb[37].mxu0 }
 0x160   :  { %v823_v51 = vpop.f32.mrb[37].mxu1 }
 0x162   :  { %v536_v13 = vpop.f32.mrb[38].mxu0 }
 0x163   :  { %v2470_v52 = vadd.f32 %v781_v6, %v536_v13  ;;  %v826_v53 = vpop.f32.mrb[38].mxu1  ;;  %v538_v54 = vpop.f32.mrb[39].mxu0 }
 0x164   :  { %v828_v20 = vpop.f32.mrb[39].mxu1 }
 0x166   :  { %v541_v55 = vpop.f32.mrb[40].mxu0 }
 0x167   :  { %v2472_v57 = vadd.f32 %v786_v11, %v541_v55  ;;  %v831_v58 = vpop.f32.mrb[40].mxu1  ;;  %v543_v27 = vpop.f32.mrb[41].mxu0 }
 0x168   :  { %v833_v8 = vpop.f32.mrb[41].mxu1 }
 0x16a   :  { %v546_v59 = vpop.f32.mrb[42].mxu0 }
 0x16b   :  { %v2474_v60 = vadd.f32 %v791_v17, %v546_v59  ;;  %v836_v34 = vpop.f32.mrb[42].mxu1  ;;  %v548_v0 = vpop.f32.mrb[43].mxu0 }
 0x16c   :  { %v838_v61 = vpop.f32.mrb[43].mxu1 }
 0x16e   :  { %v551_v43 = vpop.f32.mrb[44].mxu0 }
 0x16f   :  { %v2476_v1 = vadd.f32 %v796_v30, %v551_v43  ;;  %v841_v2 = vpop.f32.mrb[44].mxu1  ;;  %v553_v3 = vpop.f32.mrb[45].mxu0 }
 0x170   :  { %v843_v6 = vpop.f32.mrb[45].mxu1 }
 0x172   :  { %v556_v7 = vpop.f32.mrb[46].mxu0 }
 0x173   :  { %v2478_v12 = vadd.f32 %v801_v28, %v556_v7  ;;  %v846_v9 = vpop.f32.mrb[46].mxu1  ;;  %v558_v11 = vpop.f32.mrb[47].mxu0 }
 0x174   :  { %v848_v18 = vpop.f32.mrb[47].mxu1 }
 0x176   :  { %v561_v14 = vpop.f32.mrb[48].mxu0 }
 0x177   :  { %v2480_v15 = vadd.f32 %v806_v33, %v561_v14  ;;  %v851_v17 = vpop.f32.mrb[48].mxu1  ;;  %v563_v24 = vpop.f32.mrb[49].mxu0 }
 0x178   :  { %v853_v19 = vpop.f32.mrb[49].mxu1 }
 0x17a   :  { %v566_v21 = vpop.f32.mrb[50].mxu0 }
 0x17b   :  { %v2482_v23 = vadd.f32 %v811_v39, %v566_v21  ;;  %v856_v30 = vpop.f32.mrb[50].mxu1  ;;  %v568_v25 = vpop.f32.mrb[51].mxu0 }
 0x17c   :  { %v858_v26 = vpop.f32.mrb[51].mxu1 }
 0x17e   :  { %v571_v29 = vpop.f32.mrb[52].mxu0 }
 0x17f   :  { %v2484_v31 = vadd.f32 %v816_v62, %v571_v29  ;;  %v861_v28 = vpop.f32.mrb[52].mxu1  ;;  %v573_v44 = vpop.f32.mrb[53].mxu0 }
 0x180   :  { %v863_v35 = vpop.f32.mrb[53].mxu1 }
 0x182   :  { %v576_v50 = vpop.f32.mrb[54].mxu0 }
 0x183   :  { %v2486_v37 = vadd.f32 %v821_v48, %v576_v50  ;;  %v1283_v33 = vpop.f32.mrb[54].mxu1  ;;  %v578_v56 = vpop.f32.mrb[55].mxu0 }
 0x184   :  { %v931_v40 = vpop.f32.mrb[55].mxu1 }
 0x186   :  { %v581_v41 = vpop.f32.mrb[56].mxu0 }
 0x187   :  { %v2488_v45 = vadd.f32 %v826_v53, %v581_v41  ;;  %v2490_v39 = vpop.f32.mrb[56].mxu1  ;;  %v583_v46 = vpop.f32.mrb[57].mxu0 }
 0x188   :  { %v941_v47 = vpop.f32.mrb[57].mxu1 }
 0x18a   :  { %v586_v49 = vpop.f32.mrb[58].mxu0 }
 0x18b   :  { %v2492_v51 = vadd.f32 %v831_v58, %v586_v49  ;;  %v2494_v62 = vpop.f32.mrb[58].mxu1  ;;  %v588_v13 = vpop.f32.mrb[59].mxu0 }
 0x18c   :  { %v2496_v54 = vpop.f32.mrb[59].mxu1 }
 0x18e   :  { %v591_v48 = vpop.f32.mrb[60].mxu0 }
 0x18f   :  { %v2498_v20 = vadd.f32 %v836_v34, %v591_v48  ;;  %v2500_v55 = vpop.f32.mrb[60].mxu1  ;;  %v593_v27 = vpop.f32.mrb[61].mxu0 }
 0x190   :  { %v2502_v53 = vpop.f32.mrb[61].mxu1 }
 0x192   :  { %v596_v8 = vpop.f32.mrb[62].mxu0 }
 0x193   :  { %v2504_v59 = vadd.f32 %v841_v2, %v596_v8  ;;  %v1295_v0 = vpop.f32.mrb[62].mxu1  ;;  %v598_v61 = vpop.f32.mrb[63].mxu0 }
 0x194   :  { %v2507_v58 = vadd.f32 %v1295_v0, %v2450_v63  ;;  %v2509_v43 = vpop.f32.mrb[63].mxu1 }
 0x196   :  { %v601_v3 = vpop.f32.mrb[64].mxu0 }
 0x197   :  { %v2511_v6 = vadd.f32 %v846_v9, %v601_v3  ;;  %v1298_v34 = vpop.f32.mrb[64].mxu1  ;;  %v603_v7 = vpop.f32.mrb[65].mxu0 }
 0x198   :  { %v2514_v11 = vadd.f32 %v1298_v34, %v2454_v10  ;;  %v981_v18 = vpop.f32.mrb[65].mxu1 }
 0x199   :  { %v2517_v14 = vadd.f32 %v981_v18, %v2452_v4 }
 0x19a   :  { %v606_v2 = vpop.f32.mrb[66].mxu0 }
 0x19b   :  { %v2519_v24 = vadd.f32 %v851_v17, %v606_v2  ;;  %v1301_v19 = vpop.f32.mrb[66].mxu1  ;;  %v608_v63 = vpop.f32.mrb[67].mxu0 }
 0x19c   :  { %v2522_v21 = vadd.f32 %v1301_v19, %v2458_v22  ;;  %v991_v25 = vpop.f32.mrb[67].mxu1 }
 0x19d   :  { %v2525_v9 = vadd.f32 %v991_v25, %v2456_v16 }
 0x19e   :  { %v611_v26 = vpop.f32.mrb[68].mxu0 }
 0x19f   :  { %v2527_v29 = vadd.f32 %v856_v30, %v611_v26  ;;  %v1304_v10 = vpop.f32.mrb[68].mxu1  ;;  %v613_v44 = vpop.f32.mrb[69].mxu0 }
 0x1a0   :  { %v2530_v4 = vadd.f32 %v1304_v10, %v2462_v32  ;;  %v1001_v35 = vpop.f32.mrb[69].mxu1 }
 0x1a1   :  { %v2533_v17 = vadd.f32 %v1001_v35, %v2460_v36 }
 0x1a2   :  { %v616_v50 = vpop.f32.mrb[70].mxu0 }
 0x1a3   :  { %v2535_v56 = vadd.f32 %v861_v28, %v616_v50  ;;  %v1307_v22 = vpop.f32.mrb[70].mxu1  ;;  %v618_v41 = vpop.f32.mrb[71].mxu0 }
 0x1a4   :  { %v2538_v16 = vadd.f32 %v1307_v22, %v2466_v42  ;;  %v1011_v46 = vpop.f32.mrb[71].mxu1 }
 0x1a5   :  { %v2541_v30 = vadd.f32 %v1011_v46, %v2464_v38 }
 0x1a6   :  { %v686_v49 = vpop.f32.mrb[0].mxu0 }
 0x1a7   :  { %v932_v13 = vadd.f32 %v931_v40, %v686_v49  ;;  %v1310_v32 = vpop.f32.mrb[72].mxu1  ;;  %v688_v48 = vpop.f32.mrb[1].mxu0 }
 0x1a8   :  { %v1027_v27 = vadd.f32 %v1310_v32, %v2470_v52  ;;  %v1021_v36 = vpop.f32.mrb[73].mxu1 }
 0x1a9   :  { %v1110_v8 = vmax.f32 %v932_v13, %v2507_v58  ;;  %v1022_v28 = vadd.f32 %v1021_v36, %v2468_v5 }
 0x1aa   :  { %v691_v0 = vpop.f32.mrb[2].mxu0 }
 0x1ab   :  { %v937_v61 = vadd.f32 %v1283_v33, %v691_v0  ;;  %v1313_v3 = vpop.f32.mrb[74].mxu1  ;;  %v693_v42 = vpop.f32.mrb[3].mxu0 }
 0x1ac   :  { %v2547_v34 = vadd.f32 %v1313_v3, %v2474_v60  ;;  %v1031_v38 = vpop.f32.mrb[75].mxu1 }
 0x1ad   :  { %v1111_v7 = vmax.f32 %v937_v61, %v2517_v14  ;;  %v1032_v40 = vadd.f32 %v1031_v38, %v2472_v57 }
 0x1ae   :  { %v696_v18 = vpop.f32.mrb[4].mxu0 }
 0x1af   :  { %v942_v2 = vadd.f32 %v941_v47, %v696_v18  ;;  %v1316_v52 = vpop.f32.mrb[76].mxu1  ;;  %v698_v19 = vpop.f32.mrb[5].mxu0 }
 0x1b0   :  { %v2552_v58 = vadd.f32 %v1316_v52, %v2478_v12  ;;  %v1041_v5 = vpop.f32.mrb[77].mxu1 }
 0x1b1   :  { %v1112_v33 = vmax.f32 %v942_v2, %v2514_v11  ;;  %v1042_v63 = vadd.f32 %v1041_v5, %v2476_v1 }
 0x1b2   :  { %v701_v25 = vpop.f32.mrb[6].mxu0 }
 0x1b3   :  { %v947_v60 = vadd.f32 %v2490_v39, %v701_v25  ;;  %v1319_v26 = vpop.f32.mrb[78].mxu1  ;;  %v703_v10 = vpop.f32.mrb[7].mxu0 }
 0x1b4   :  { %v2558_v14 = vadd.f32 %v1319_v26, %v2482_v23  ;;  %v1051_v57 = vpop.f32.mrb[79].mxu1 }
 0x1b5   :  { %v1113_v47 = vmax.f32 %v947_v60, %v2525_v9  ;;  %v2562_v44 = vadd.f32 %v1051_v57, %v2480_v15  ;;  %v2573_v15 = vld [vmem:[%s2634_s2] ss:$0 sm:$0xff] }
 0x1b6   :  { %v706_v12 = vpop.f32.mrb[8].mxu0 }
 0x1b7   :  { %v952_v35 = vadd.f32 %v2496_v54, %v706_v12  ;;  %v1322_v11 = vpop.f32.mrb[80].mxu1  ;;  %v708_v50 = vpop.f32.mrb[9].mxu0 }
 0x1b8   :  { %v1067_v1 = vadd.f32 %v1322_v11, %v2486_v37  ;;  %v1061_v22 = vpop.f32.mrb[81].mxu1 }
 0x1b9   :  { %v1114_v39 = vmax.f32 %v952_v35, %v2522_v21  ;;  %v2568_v41 = vadd.f32 %v1061_v22, %v2484_v31 }
 0x1ba   :  { %v1119_v23 = vmax.f32 %v1022_v28, %v1067_v1  ;;  %v711_v46 = vpop.f32.mrb[10].mxu0 }
 0x1bb   :  { %v957_v9 = vadd.f32 %v2494_v62, %v711_v46  ;;  %v1325_v54 = vpop.f32.mrb[82].mxu1  ;;  %v713_v49 = vpop.f32.mrb[11].mxu0 }
 0x1bc   :  { %v1128_v13 = vmax.f32 %v1110_v8, %v1119_v23  ;;  %v1077_v37 = vadd.f32 %v1325_v54, %v2492_v51  ;;  %v1071_v32 = vpop.f32.mrb[83].mxu1 }
 0x1bd   :  { %v1115_v21 = vmax.f32 %v957_v9, %v2533_v17  ;;  %v1072_v31 = vadd.f32 %v1071_v32, %v2488_v45 }
 0x1be   :  { %v1144_v48 = vadd.f32 %v2573_v15, %v1128_v13  ;;  %v1121_v36 = vmax.f32 %v1032_v40, %v1077_v37  ;;  %v716_v28 = vpop.f32.mrb[12].mxu0 }
 0x1bf   :  { %v1120_v0 = vmax.f32 %v1027_v27, %v1072_v31  ;;  %v962_v61 = vadd.f32 %v2502_v53, %v716_v28  ;;  %v1328_v3 = vpop.f32.mrb[84].mxu1  ;;  %v718_v42 = vpop.f32.mrb[13].mxu0 }
 0x1c0   :  { %v1153_v62 = vmul.f32 0.1, %v1144_v48  ;;  %v1130_v38 = vmax.f32 %v1112_v33, %v1121_v36  ;;  %v1087_v8 = vadd.f32 %v1328_v3, %v2504_v59  ;;  %v1081_v18 = vpop.f32.mrb[85].mxu1 }
 0x1c1   :  { %v1129_v51 = vmax.f32 %v1111_v7, %v1120_v0  ;;  %v1116_v2 = vmax.f32 %v962_v61, %v2530_v4  ;;  %v1082_v17 = vadd.f32 %v1081_v18, %v2498_v20 }
 0x1c2   :  { %v1162_v45 = vmax.f32 %v1144_v48, %v1153_v62  ;;  %v1146_v52 = vadd.f32 %v2573_v15, %v1130_v38  ;;  %v1123_v40 = vmax.f32 %v1042_v63, %v1087_v8  ;;  %v721_v19 = vpop.f32.mrb[14].mxu0 }
 0x1c3   :  { %v1145_v27 = vadd.f32 %v2573_v15, %v1129_v51  ;;  %v1122_v53 = vmax.f32 %v2547_v34, %v1082_v17  ;;  %v967_v5 = vadd.f32 %v2500_v55, %v721_v19  ;;  %v1331_v33 = vpop.f32.mrb[86].mxu1  ;;  %v723_v25 = vpop.f32.mrb[15].mxu0 }
 0x1c4   :  { %1171 = vst [vmem:[%s2635_s3] sm:$0xff] %v1162_v45  ;;  %v1155_v59 = vmul.f32 0.1, %v1146_v52  ;;  %v1132_v4 = vmax.f32 %v1114_v39, %v1123_v40  ;;  %v1097_v20 = vadd.f32 %v1331_v33, %v2519_v24  ;;  %v1091_v7 = vpop.f32.mrb[87].mxu1 }
 0x1c5   :  { %v1154_v60 = vmul.f32 0.1, %v1145_v27  ;;  %v1131_v63 = vmax.f32 %v1113_v47, %v1122_v53  ;;  %v1117_v26 = vmax.f32 %v967_v5, %v2541_v30  ;;  %v1092_v10 = vadd.f32 %v1091_v7, %v2511_v6 }
 0x1c6   :  { %v1164_v34 = vmax.f32 %v1146_v52, %v1155_v59  ;;  %v1148_v55 = vadd.f32 %v2573_v15, %v1132_v4  ;;  %v1125_v57 = vmax.f32 %v2562_v44, %v1097_v20  ;;  %v726_v12 = vpop.f32.mrb[16].mxu0 }
 0x1c7   :  { %v1163_v35 = vmax.f32 %v1145_v27, %v1154_v60  ;;  %v1147_v11 = vadd.f32 %v2573_v15, %v1131_v63  ;;  %v1124_v50 = vmax.f32 %v2552_v58, %v1092_v10  ;;  %v972_v24 = vadd.f32 %v2509_v43, %v726_v12  ;;  %v1334_v1 = vpop.f32.mrb[88].mxu1  ;;  %v728_v22 = vpop.f32.mrb[17].mxu0 }
 0x1c8   :  { %1173 = vst [vmem:[%s2635_s3 + $0x10] sm:$0xff] %v1164_v34  ;;  %v1157_v6 = vmul.f32 0.1, %v1148_v55  ;;  %v1134_v30 = vmax.f32 %v1116_v2, %v1125_v57  ;;  %v1107_v47 = vadd.f32 %v1334_v1, %v2535_v56  ;;  %v1101_v39 = vpop.f32.mrb[89].mxu1 }
 0x1c9   :  { %1172 = vst [vmem:[%s2635_s3 + $0x8] sm:$0xff] %v1163_v35  ;;  %v1156_v44 = vmul.f32 0.1, %v1147_v11  ;;  %v1133_v23 = vmax.f32 %v1115_v21, %v1124_v50  ;;  %v1118_v58 = vmax.f32 %v972_v24, %v2538_v16  ;;  %v1102_v43 = vadd.f32 %v1101_v39, %v2527_v29 }
 0x1ca   :  { %v1166_v46 = vmax.f32 %v1148_v55, %v1157_v6  ;;  %v1150_v9 = vadd.f32 %v2573_v15, %v1134_v30  ;;  %v1127_v54 = vmax.f32 %v2568_v41, %v1107_v47 }
 0x1cb   :  { %v1165_v49 = vmax.f32 %v1147_v11, %v1156_v44  ;;  %v1149_v13 = vadd.f32 %v2573_v15, %v1133_v23  ;;  %v1126_v56 = vmax.f32 %v2558_v14, %v1102_v43 }
 0x1cc   :  { %1175 = vst [vmem:[%s2635_s3 + $0x20] sm:$0xff] %v1166_v46  ;;  %v1159_v37 = vmul.f32 0.1, %v1150_v9  ;;  %v1136_v32 = vmax.f32 %v1118_v58, %v1127_v54 }
 0x1cd   :  { %1174 = vst [vmem:[%s2635_s3 + $0x18] sm:$0xff] %v1165_v49  ;;  %v1158_v29 = vmul.f32 0.1, %v1149_v13  ;;  %v1135_v16 = vmax.f32 %v1117_v26, %v1126_v56 }
 0x1ce   :  { %v1168_v21 = vmax.f32 %v1150_v9, %v1159_v37  ;;  %v1152_v41 = vadd.f32 %v2573_v15, %v1136_v32 }
 0x1cf   :  { %v1167_v31 = vmax.f32 %v1149_v13, %v1158_v29  ;;  %v1151_v48 = vadd.f32 %v2573_v15, %v1135_v16 }
 0x1d0   :  { %1177 = vst [vmem:[%s2635_s3 + $0x30] sm:$0xff] %v1168_v21  ;;  %v1161_v14 = vmul.f32 0.1, %v1152_v41 }
 0x1d1   :  { %1176 = vst [vmem:[%s2635_s3 + $0x28] sm:$0xff] %v1167_v31  ;;  %v1160_v36 = vmul.f32 0.1, %v1151_v48 }
 0x1d2   :  { %v1170_v28 = vmax.f32 %v1152_v41, %v1161_v14 }
 0x1d3   :  { %v1169_v0 = vmax.f32 %v1151_v48, %v1160_v36 }
 0x1d4   :  { %1179 = vst [vmem:[%s2635_s3 + $0x40] sm:$0xff] %v1170_v28 }
 0x1d5   :  { %1178 = vst [vmem:[%s2635_s3 + $0x38] sm:$0xff] %v1169_v0 }

// kernel: leaky_relu_cnn_forward.7
= control target key start
LH: loop header
LB: loop body
LE: loop exit
PB: predicated region body
PF: predicated region fallthrough
CT: control target
= control target key end

     0   :  { %10 = vsyncpa [#allocation4], 0  ;;  %s3801_s18 = smov 0   ;;  %s4382_s0 = inlined_call_operand.vmem [shape: f32[2,4608], index: 0, kind: input, shape index: {}]   ;;  %s4383_s1 = inlined_call_operand.vmem [shape: bf16[4608,512], index: 1, kind: input, shape index: {}]   ;;  %s4384_s2 = inlined_call_operand.vmem [shape: f32[1,512], index: 2, kind: input, shape index: {}]   ;;  %s4385_s3 = inlined_call_operand.vmem [shape: f32[512,128], index: 3, kind: input, shape index: {}]   ;;  %s4386_s4 = inlined_call_operand.vmem [shape: f32[1,128], index: 4, kind: input, shape index: {}]   ;;  %s4387_s5 = inlined_call_operand.hbm [shape: f32[2,128], index: 5, kind: output, shape index: {}]  }
   0x1 LB: > { %s3807_s19 = sadd.s32 4294967295, %s3765_s18   ;;  %p2810_p0 = scmp.ge.s32.totalorder %s3765_s18, 1  ;;  %s3765_s18 = sphi %s3801_s18, %s16_s18  }
   0x2   : > { %p196_p1 = scmp.lt.s32.totalorder %s3765_s18, 5 }
   0x4   : > { %p197_p2 = pnand %p2810_p0, %p196_p1 }
   0x5   : > { %s225_s20 = smul.u32 (!%p197_p2), 9, %s3807_s19  ;;  %p2814_p5 = scmp.ne.s32.totalorder (!%p197_p2), %s3807_s19, 0 }
   0x6   : > { %200 = sbr.rel (%p197_p2) target bundleno = 795 (0x31b), region = 40 }
   0x7   : > { %s231_s21 = smul.u32 (!%p197_p2), 144, %s3807_s19  ;;  %p226_p3 = scmp.lt.s32.totalorder (!%p197_p2), %s225_s20, 35 }
   0x9   : > { %p232_p4 = scmp.lt.s32.totalorder (!%p197_p2), %s231_s21, 575 }
   0xd   : > { %s4389_s20 = smov (!%p226_p3, %s225_s20), 35  ;;  %s4391_s21 = smov (!%p232_p4, %s231_s21), 575 }
   0xe   : > { %s2811_s22 = sshll.u32 %s4389_s20, 1  ;;  %s3110_s26 = sshll.u32 %s4391_s21, 4  ;;  %v3767_v0 = vmov (!%p2814_p5), 0.0  }
   0xf   : > { %s3816_s25 = scalar_lea.vmem %s4382_s0, %s2811_s22  ;;  %s3821_s29 = scalar_lea.vmem %s4383_s1, %s3110_s26  ;;  %243 = vst [vmem:[#allocation2] sm:$0xff] (!%p2814_p5), %v3767_v0 }
  0x10   : > { %242 = sbr.rel (%p2814_p5) target bundleno = 23 (0x17), region = 44 }
  0x17 PF: > { %v3295_v1 = vld [vmem:[%s3821_s29 + $0x4] ss:$16 sps:$4 sm:$0xff]   ;;  %v3297_v2 = vld [vmem:[%s3821_s29 + $0xc] ss:$16 sps:$4 sm:$0xff]   ;;  %v3299_v3 = vld [vmem:[%s3821_s29] ss:$16 sps:$4 sm:$0xff]   ;;  %v255_v39 = vlaneseq }
  0x18   : > { %2038 = vmatprep.subr.bf16.mxu0 %v3295_v1  ;;  %v3300_v4 = vld [vmem:[%s3821_s29 + $0x8] ss:$16 sps:$4 sm:$0xff]   ;;  %2243 = vmatprep.subr.bf16.mxu1 %v3297_v2  ;;  %v3301_v5 = vld [vmem:[%s3821_s29 + $0x24] ss:$16 sps:$4 sm:$0xff]   ;;  %v3303_v6 = vld [vmem:[%s3821_s29 + $0x2c] ss:$16 sps:$4 sm:$0xff]  }
  0x19   : > { %2039 = vmatpush1.bf16.msra.mxu0 %v3299_v3  ;;  %2244 = vmatpush1.bf16.msra.mxu1 %v3300_v4  ;;  %v3305_v7 = vld [vmem:[%s3821_s29 + $0x20] ss:$16 sps:$4 sm:$0xff]   ;;  %v3306_v8 = vld [vmem:[%s3821_s29 + $0x28] ss:$16 sps:$4 sm:$0xff]   ;;  %v3307_v9 = vld [vmem:[%s3821_s29 + $0x44] ss:$16 sps:$4 sm:$0xff]  }
  0x1a   : > { %2040 = vmatprep.subr.bf16.mxu0 %v3301_v5  ;;  %2245 = vmatprep.subr.bf16.mxu1 %v3303_v6  ;;  %v3309_v10 = vld [vmem:[%s3821_s29 + $0x4c] ss:$16 sps:$4 sm:$0xff]   ;;  %v3311_v11 = vld [vmem:[%s3821_s29 + $0x40] ss:$16 sps:$4 sm:$0xff]   ;;  %v3312_v12 = vld [vmem:[%s3821_s29 + $0x48] ss:$16 sps:$4 sm:$0xff]  }
  0x1b   : > { %v3313_v13 = vld [vmem:[%s3821_s29 + $0x64] ss:$16 sps:$4 sm:$0xff]   ;;  %v3315_v14 = vld [vmem:[%s3821_s29 + $0x6c] ss:$16 sps:$4 sm:$0xff]   ;;  %v3317_v15 = vld [vmem:[%s3821_s29 + $0x60] ss:$16 sps:$4 sm:$0xff]  }
  0x1c   : > { %v3318_v16 = vld [vmem:[%s3821_s29 + $0x68] ss:$16 sps:$4 sm:$0xff]   ;;  %v3319_v17 = vld [vmem:[%s3821_s29 + $0x84] ss:$16 sps:$4 sm:$0xff]   ;;  %v3321_v18 = vld [vmem:[%s3821_s29 + $0x8c] ss:$16 sps:$4 sm:$0xff]  }
  0x1d   : > { %2041 = vmatpush1.bf16.msra.mxu0 %v3305_v7  ;;  %2246 = vmatpush1.bf16.msra.mxu1 %v3306_v8  ;;  %v3323_v19 = vld [vmem:[%s3821_s29 + $0x80] ss:$16 sps:$4 sm:$0xff]   ;;  %v3324_v20 = vld [vmem:[%s3821_s29 + $0x88] ss:$16 sps:$4 sm:$0xff]   ;;  %v3325_v21 = vld [vmem:[%s3821_s29 + $0xa4] ss:$16 sps:$4 sm:$0xff]  }
  0x1e   : > { %2042 = vmatprep.subr.bf16.mxu0 %v3307_v9  ;;  %2247 = vmatprep.subr.bf16.mxu1 %v3309_v10  ;;  %v3327_v22 = vld [vmem:[%s3821_s29 + $0xac] ss:$16 sps:$4 sm:$0xff]   ;;  %v3329_v23 = vld [vmem:[%s3821_s29 + $0xa0] ss:$16 sps:$4 sm:$0xff]   ;;  %v3330_v24 = vld [vmem:[%s3821_s29 + $0xa8] ss:$16 sps:$4 sm:$0xff]  }
  0x1f   : > { %v3331_v25 = vld [vmem:[%s3821_s29 + $0xc4] ss:$16 sps:$4 sm:$0xff]   ;;  %v3333_v26 = vld [vmem:[%s3821_s29 + $0xcc] ss:$16 sps:$4 sm:$0xff]   ;;  %v3335_v27 = vld [vmem:[%s3821_s29 + $0xc0] ss:$16 sps:$4 sm:$0xff]  }
  0x20   : > { %v3336_v28 = vld [vmem:[%s3821_s29 + $0xc8] ss:$16 sps:$4 sm:$0xff]   ;;  %v3337_v29 = vld [vmem:[%s3821_s29 + $0xe4] ss:$16 sps:$4 sm:$0xff]   ;;  %v3339_v30 = vld [vmem:[%s3821_s29 + $0xec] ss:$16 sps:$4 sm:$0xff]  }
  0x21   : > { %2043 = vmatpush1.bf16.msra.mxu0 %v3311_v11  ;;  %2248 = vmatpush1.bf16.msra.mxu1 %v3312_v12  ;;  %v3341_v31 = vld [vmem:[%s3821_s29 + $0xe0] ss:$16 sps:$4 sm:$0xff]   ;;  %v3342_v32 = vld [vmem:[%s3821_s29 + $0xe8] ss:$16 sps:$4 sm:$0xff]   ;;  %v3343_v33 = vld [vmem:[%s3821_s29 + $0x104] ss:$16 sps:$4 sm:$0xff]  }
  0x22   : > { %2044 = vmatprep.subr.bf16.mxu0 %v3313_v13  ;;  %2249 = vmatprep.subr.bf16.mxu1 %v3315_v14  ;;  %v3345_v34 = vld [vmem:[%s3821_s29 + $0x10c] ss:$16 sps:$4 sm:$0xff]   ;;  %v3347_v35 = vld [vmem:[%s3821_s29 + $0x100] ss:$16 sps:$4 sm:$0xff]   ;;  %v3348_v36 = vld [vmem:[%s3821_s29 + $0x108] ss:$16 sps:$4 sm:$0xff]  }
  0x23   : > { %v3768_v37 = vmov 1983009808   ;;  %v3349_v40 = vld [vmem:[%s3821_s29 + $0x124] ss:$16 sps:$4 sm:$0xff]   ;;  %v3351_v41 = vld [vmem:[%s3821_s29 + $0x12c] ss:$16 sps:$4 sm:$0xff]  }
  0x24   : > { %v253_v38 = vunpack.c.l.s4 %v3768_v37  ;;  %v3353_v42 = vld [vmem:[%s3821_s29 + $0x120] ss:$16 sps:$4 sm:$0xff]   ;;  %v3863_v44 = vshrl.u32 %v255_v39, 7  ;;  %v3354_v45 = vld [vmem:[%s3821_s29 + $0x128] ss:$16 sps:$4 sm:$0xff]   ;;  %p3104_p6 = scmp.ne.s32.totalorder %s3807_s19, 3 }
  0x25   : > { %2045 = vmatpush1.bf16.msra.mxu0 %v3317_v15  ;;  %2250 = vmatpush1.bf16.msra.mxu1 %v3318_v16  ;;  %v3355_v46 = vld [vmem:[%s3821_s29 + $0x144] ss:$16 sps:$4 sm:$0xff]   ;;  %v3357_v47 = vld [vmem:[%s3821_s29 + $0x14c] ss:$16 sps:$4 sm:$0xff]   ;;  %v3359_v48 = vld [vmem:[%s3821_s29 + $0x140] ss:$16 sps:$4 sm:$0xff]  }
  0x26   : > { %2046 = vmatprep.subr.bf16.mxu0 %v3319_v17  ;;  %2251 = vmatprep.subr.bf16.mxu1 %v3321_v18  ;;  %v254_v43 = vunpack.c.0.s8 %v253_v38  ;;  %v3360_v49 = vld [vmem:[%s3821_s29 + $0x148] ss:$16 sps:$4 sm:$0xff]   ;;  %v3361_v51 = vld [vmem:[%s3821_s29 + $0x164] ss:$16 sps:$4 sm:$0xff]   ;;  %v3363_v52 = vld [vmem:[%s3821_s29 + $0x16c] ss:$16 sps:$4 sm:$0xff]  }
  0x27   : > { %v245_v53 = vld [vmem:[%s3816_s25] sm:$0xff]  ;;  %v3366_v56 = vld [vmem:[%s3821_s29 + $0x168] ss:$16 sps:$4 sm:$0xff]   ;;  %v3369_v58 = vld [vmem:[%s3821_s29 + $0x18c] ss:$16 sps:$4 sm:$0xff]  }
  0x28   : > { %v3871_v50 = vsub.s32 %v254_v43, %v3863_v44  ;;  %v3365_v54 = vld [vmem:[%s3821_s29 + $0x160] ss:$16 sps:$4 sm:$0xff]   ;;  %v3367_v57 = vld [vmem:[%s3821_s29 + $0x184] ss:$16 sps:$4 sm:$0xff]   ;;  %v3372_v62 = vld [vmem:[%s3821_s29 + $0x188] ss:$16 sps:$4 sm:$0xff]   ;;  %v251_v5 = vcombine.high %v245_v53, %v245_v53 }
  0x29   : > { %2047 = vmatpush1.bf16.msra.mxu0 %v3323_v19  ;;  %2252 = vmatpush1.bf16.msra.mxu1 %v3324_v20  ;;  %v3371_v60 = vld [vmem:[%s3821_s29 + $0x180] ss:$16 sps:$4 sm:$0xff]   ;;  %v3373_v63 = vld [vmem:[%s3821_s29 + $0x1a4] ss:$16 sps:$4 sm:$0xff]   ;;  %v3375_v0 = vld [vmem:[%s3821_s29 + $0x1ac] ss:$16 sps:$4 sm:$0xff]  }
  0x2a   : > { %2048 = vmatprep.subr.bf16.mxu0 %v3325_v21  ;;  %2253 = vmatprep.subr.bf16.mxu1 %v3327_v22  ;;  %v258_v55 = vrot.slane %v245_v53, %v3871_v50  ;;  %v3377_v1 = vld [vmem:[%s3821_s29 + $0x1a0] ss:$16 sps:$4 sm:$0xff]   ;;  %v3378_v2 = vld [vmem:[%s3821_s29 + $0x1a8] ss:$16 sps:$4 sm:$0xff]   ;;  %v3379_v3 = vld [vmem:[%s3821_s29 + $0x1c4] ss:$16 sps:$4 sm:$0xff]   ;;  %v3894_v10 = vrot.slane %v251_v5, %v3871_v50 }
  0x2b   : > { %v3381_v4 = vld [vmem:[%s3821_s29 + $0x1cc] ss:$16 sps:$4 sm:$0xff]   ;;  %v3383_v6 = vld [vmem:[%s3821_s29 + $0x1c0] ss:$16 sps:$4 sm:$0xff]   ;;  %v3384_v7 = vld [vmem:[%s3821_s29 + $0x1c8] ss:$16 sps:$4 sm:$0xff]  }
  0x2c   : > { %v266_v59 = vcombine.high %v258_v55, %v258_v55  ;;  %v3385_v8 = vld [vmem:[%s3821_s29 + $0x1e4] ss:$16 sps:$4 sm:$0xff]   ;;  %v3387_v9 = vld [vmem:[%s3821_s29 + $0x1ec] ss:$16 sps:$4 sm:$0xff]   ;;  %v3389_v11 = vld [vmem:[%s3821_s29 + $0x1e0] ss:$16 sps:$4 sm:$0xff]   ;;  %v267_v15 = vcombine.high %v3894_v10, %v3894_v10  ;;  %v301_v17 = vpack.c.bf16 %v258_v55, %v258_v55 }
  0x2d   : > { %2049 = vmatpush1.bf16.msra.mxu0 %v3329_v23  ;;  %2254 = vmatpush1.bf16.msra.mxu1 %v3330_v24  ;;  %v3390_v12 = vld [vmem:[%s3821_s29 + $0x1e8] ss:$16 sps:$4 sm:$0xff]   ;;  %v3394_v13 = vld [vmem:[%s3821_s29 + $0x204] ss:$16 sps:$4 sm:$0xff]   ;;  %v3397_v14 = vld [vmem:[%s3821_s29 + $0x20c] ss:$16 sps:$4 sm:$0xff]  }
  0x2e   : > { %2050 = vmatprep.subr.bf16.mxu0 %v3331_v25  ;;  %2255 = vmatprep.subr.bf16.mxu1 %v3333_v26  ;;  %v302_v61 = vpack.c.bf16 %v266_v59, %v266_v59  ;;  %v3392_v16 = vld [vmem:[%s3821_s29 + $0x200] ss:$16 sps:$4 sm:$0xff]   ;;  %v3395_v18 = vld [vmem:[%s3821_s29 + $0x208] ss:$16 sps:$4 sm:$0xff]   ;;  %v3400_v19 = vld [vmem:[%s3821_s29 + $0x224] ss:$16 sps:$4 sm:$0xff]   ;;  %v304_v21 = vpack.c.bf16 %v267_v15, %v267_v15 }
  0x2f   : > { %v3403_v20 = vld [vmem:[%s3821_s29 + $0x22c] ss:$16 sps:$4 sm:$0xff]   ;;  %v3398_v22 = vld [vmem:[%s3821_s29 + $0x220] ss:$16 sps:$4 sm:$0xff]   ;;  %v3401_v23 = vld [vmem:[%s3821_s29 + $0x228] ss:$16 sps:$4 sm:$0xff]  }
  0x30   : > { %2070 = vmatprep.mubr.bf16.mxu0 %v302_v61  ;;  %2275 = vmatprep.mubr.bf16.mxu1 %v302_v61  ;;  %v3406_v24 = vld [vmem:[%s3821_s29 + $0x244] ss:$16 sps:$4 sm:$0xff]   ;;  %v3409_v25 = vld [vmem:[%s3821_s29 + $0x24c] ss:$16 sps:$4 sm:$0xff]   ;;  %v3404_v26 = vld [vmem:[%s3821_s29 + $0x240] ss:$16 sps:$4 sm:$0xff]  }
  0x31   : > { %2051 = vmatpush1.bf16.msra.mxu0 %v3335_v27  ;;  %2256 = vmatpush1.bf16.msra.mxu1 %v3336_v28  ;;  %v3407_v27 = vld [vmem:[%s3821_s29 + $0x248] ss:$16 sps:$4 sm:$0xff]   ;;  %v3412_v28 = vld [vmem:[%s3821_s29 + $0x264] ss:$16 sps:$4 sm:$0xff]   ;;  %v3427_v37 = vld [vmem:[%s3821_s29 + $0x2ac] ss:$16 sps:$4 sm:$0xff]  }
  0x32   : > { %2052 = vmatprep.subr.bf16.mxu0 %v3337_v29  ;;  %2257 = vmatprep.subr.bf16.mxu1 %v3339_v30  ;;  %v3415_v29 = vld [vmem:[%s3821_s29 + $0x26c] ss:$16 sps:$4 sm:$0xff]   ;;  %v3410_v30 = vld [vmem:[%s3821_s29 + $0x260] ss:$16 sps:$4 sm:$0xff]   ;;  %v3425_v39 = vld [vmem:[%s3821_s29 + $0x2a8] ss:$16 sps:$4 sm:$0xff]  }
  0x33   : > { %v3422_v38 = vld [vmem:[%s3821_s29 + $0x2a0] ss:$16 sps:$4 sm:$0xff]   ;;  %v3431_v43 = vld [vmem:[%s3821_s29 + $0x2c8] ss:$16 sps:$4 sm:$0xff]   ;;  %v3451_v55 = vld [vmem:[%s3821_s29 + $0x32c] ss:$16 sps:$4 sm:$0xff]  }
  0x34   : > { %v3443_v53 = vld [vmem:[%s3821_s29 + $0x308] ss:$16 sps:$4 sm:$0xff]   ;;  %v3457_v59 = vld [vmem:[%s3821_s29 + $0x34c] ss:$16 sps:$4 sm:$0xff]   ;;  %v3484_v15 = vld [vmem:[%s3821_s29 + $0x3e4] ss:$16 sps:$4 sm:$0xff]  }
  0x35   : > { %2053 = vmatpush1.bf16.msra.mxu0 %v3341_v31  ;;  %2258 = vmatpush1.bf16.msra.mxu1 %v3342_v32  ;;  %v3413_v31 = vld [vmem:[%s3821_s29 + $0x268] ss:$16 sps:$4 sm:$0xff]   ;;  %v3418_v32 = vld [vmem:[%s3821_s29 + $0x284] ss:$16 sps:$4 sm:$0xff]  }
  0x36   : > { %2054 = vmatprep.subr.bf16.mxu0 %v3343_v33  ;;  %2259 = vmatprep.subr.bf16.mxu1 %v3345_v34  ;;  %v3421_v33 = vld [vmem:[%s3821_s29 + $0x28c] ss:$16 sps:$4 sm:$0xff]   ;;  %v3416_v34 = vld [vmem:[%s3821_s29 + $0x280] ss:$16 sps:$4 sm:$0xff]   ;;  %v3455_v61 = vld [vmem:[%s3821_s29 + $0x348] ss:$16 sps:$4 sm:$0xff]  }
  0x37   : > { %v3467_v5 = vld [vmem:[%s3821_s29 + $0x388] ss:$16 sps:$4 sm:$0xff]  }
  0x39   : > { %2055 = vmatpush1.bf16.msra.mxu0 %v3347_v35  ;;  %2260 = vmatpush1.bf16.msra.mxu1 %v3348_v36  ;;  %v3419_v35 = vld [vmem:[%s3821_s29 + $0x288] ss:$16 sps:$4 sm:$0xff]   ;;  %v3424_v36 = vld [vmem:[%s3821_s29 + $0x2a4] ss:$16 sps:$4 sm:$0xff]  }
  0x3a   : > { %2056 = vmatprep.subr.bf16.mxu0 %v3349_v40  ;;  %2261 = vmatprep.subr.bf16.mxu1 %v3351_v41  ;;  %v3430_v40 = vld [vmem:[%s3821_s29 + $0x2c4] ss:$16 sps:$4 sm:$0xff]   ;;  %v3433_v41 = vld [vmem:[%s3821_s29 + $0x2cc] ss:$16 sps:$4 sm:$0xff]  }
  0x3d   : > { %2057 = vmatpush1.bf16.msra.mxu0 %v3353_v42  ;;  %2262 = vmatpush1.bf16.msra.mxu1 %v3354_v45  ;;  %v3428_v42 = vld [vmem:[%s3821_s29 + $0x2c0] ss:$16 sps:$4 sm:$0xff]   ;;  %v3436_v45 = vld [vmem:[%s3821_s29 + $0x2e4] ss:$16 sps:$4 sm:$0xff]  }
  0x3e   : > { %2058 = vmatprep.subr.bf16.mxu0 %v3355_v46  ;;  %2263 = vmatprep.subr.bf16.mxu1 %v3357_v47  ;;  %v3439_v46 = vld [vmem:[%s3821_s29 + $0x2ec] ss:$16 sps:$4 sm:$0xff]   ;;  %v3434_v47 = vld [vmem:[%s3821_s29 + $0x2e0] ss:$16 sps:$4 sm:$0xff]  }
  0x41   : > { %2059 = vmatpush1.bf16.msra.mxu0 %v3359_v48  ;;  %2264 = vmatpush1.bf16.msra.mxu1 %v3360_v49  ;;  %v3437_v48 = vld [vmem:[%s3821_s29 + $0x2e8] ss:$16 sps:$4 sm:$0xff]   ;;  %v3442_v49 = vld [vmem:[%s3821_s29 + $0x304] ss:$16 sps:$4 sm:$0xff]  }
  0x42   : > { %2060 = vmatprep.subr.bf16.mxu0 %v3361_v51  ;;  %2265 = vmatprep.subr.bf16.mxu1 %v3363_v52  ;;  %v3445_v51 = vld [vmem:[%s3821_s29 + $0x30c] ss:$16 sps:$4 sm:$0xff]   ;;  %v3440_v52 = vld [vmem:[%s3821_s29 + $0x300] ss:$16 sps:$4 sm:$0xff]  }
  0x45   : > { %2061 = vmatpush1.bf16.msra.mxu0 %v3365_v54  ;;  %2266 = vmatpush1.bf16.msra.mxu1 %v3366_v56  ;;  %v3448_v54 = vld [vmem:[%s3821_s29 + $0x324] ss:$16 sps:$4 sm:$0xff]   ;;  %v3446_v56 = vld [vmem:[%s3821_s29 + $0x320] ss:$16 sps:$4 sm:$0xff]  }
  0x46   : > { %2062 = vmatprep.subr.bf16.mxu0 %v3367_v57  ;;  %2267 = vmatprep.subr.bf16.mxu1 %v3369_v58  ;;  %v3449_v57 = vld [vmem:[%s3821_s29 + $0x328] ss:$16 sps:$4 sm:$0xff]   ;;  %v3454_v58 = vld [vmem:[%s3821_s29 + $0x344] ss:$16 sps:$4 sm:$0xff]  }
  0x49   : > { %2063 = vmatpush1.bf16.msra.mxu0 %v3371_v60  ;;  %2268 = vmatpush1.bf16.msra.mxu1 %v3372_v62  ;;  %v3452_v60 = vld [vmem:[%s3821_s29 + $0x340] ss:$16 sps:$4 sm:$0xff]   ;;  %v3460_v62 = vld [vmem:[%s3821_s29 + $0x364] ss:$16 sps:$4 sm:$0xff]  }
  0x4a   : > { %2064 = vmatprep.subr.bf16.mxu0 %v3373_v63  ;;  %2269 = vmatprep.subr.bf16.mxu1 %v3375_v0  ;;  %v3463_v63 = vld [vmem:[%s3821_s29 + $0x36c] ss:$16 sps:$4 sm:$0xff]   ;;  %v3458_v0 = vld [vmem:[%s3821_s29 + $0x360] ss:$16 sps:$4 sm:$0xff]  }
  0x4d   : > { %2065 = vmatpush1.bf16.msra.mxu0 %v3377_v1  ;;  %2270 = vmatpush1.bf16.msra.mxu1 %v3378_v2  ;;  %v3461_v1 = vld [vmem:[%s3821_s29 + $0x368] ss:$16 sps:$4 sm:$0xff]   ;;  %v3466_v2 = vld [vmem:[%s3821_s29 + $0x384] ss:$16 sps:$4 sm:$0xff]  }
  0x4e   : > { %2066 = vmatprep.subr.bf16.mxu0 %v3379_v3  ;;  %2271 = vmatprep.subr.bf16.mxu1 %v3381_v4  ;;  %v3469_v3 = vld [vmem:[%s3821_s29 + $0x38c] ss:$16 sps:$4 sm:$0xff]   ;;  %v3464_v4 = vld [vmem:[%s3821_s29 + $0x380] ss:$16 sps:$4 sm:$0xff]  }
  0x51   : > { %2067 = vmatpush1.bf16.msra.mxu0 %v3383_v6  ;;  %2272 = vmatpush1.bf16.msra.mxu1 %v3384_v7  ;;  %v3472_v6 = vld [vmem:[%s3821_s29 + $0x3a4] ss:$16 sps:$4 sm:$0xff]   ;;  %v3475_v7 = vld [vmem:[%s3821_s29 + $0x3ac] ss:$16 sps:$4 sm:$0xff]  }
  0x52   : > { %2068 = vmatprep.subr.bf16.mxu0 %v3385_v8  ;;  %2273 = vmatprep.subr.bf16.mxu1 %v3387_v9  ;;  %v3470_v8 = vld [vmem:[%s3821_s29 + $0x3a0] ss:$16 sps:$4 sm:$0xff]   ;;  %v3473_v9 = vld [vmem:[%s3821_s29 + $0x3a8] ss:$16 sps:$4 sm:$0xff]  }
  0x55   : > { %2069 = vmatpush1.bf16.msra.mxu0 %v3389_v11  ;;  %2274 = vmatpush1.bf16.msra.mxu1 %v3390_v12  ;;  %v3478_v11 = vld [vmem:[%s3821_s29 + $0x3c4] ss:$16 sps:$4 sm:$0xff]   ;;  %v3481_v12 = vld [vmem:[%s3821_s29 + $0x3cc] ss:$16 sps:$4 sm:$0xff]  }
  0x56   : > { %2079 = vmatprep.subr.bf16.mxu0 %v3394_v13  ;;  %2284 = vmatprep.subr.bf16.mxu1 %v3397_v14  ;;  %v3476_v13 = vld [vmem:[%s3821_s29 + $0x3c0] ss:$16 sps:$4 sm:$0xff]   ;;  %v3479_v14 = vld [vmem:[%s3821_s29 + $0x3c8] ss:$16 sps:$4 sm:$0xff]  }
  0x58   : > { %2071 = vmatmul.mubr.bf16.vlgmr.msra.gmra.mrb[0].mxu0 %v301_v17  ;;  %2276 = vmatmul.mubr.bf16.vlgmr.msra.gmra.mrb[0].mxu1 %v301_v17  ;;  %v3482_v17 = vld [vmem:[%s3821_s29 + $0x3e0] ss:$16 sps:$4 sm:$0xff]  }
  0x59   : > { %2080 = vmatpush1.bf16.msra.mxu0 %v3392_v16  ;;  %2285 = vmatpush1.bf16.msra.mxu1 %v3395_v18  ;;  %v3487_v16 = vld [vmem:[%s3821_s29 + $0x3ec] ss:$16 sps:$4 sm:$0xff]   ;;  %v3485_v18 = vld [vmem:[%s3821_s29 + $0x3e8] ss:$16 sps:$4 sm:$0xff]  }
  0x5a   : > { %2081 = vmatprep.subr.bf16.mxu0 %v3400_v19  ;;  %2286 = vmatprep.subr.bf16.mxu1 %v3403_v20  ;;  %v3490_v19 = vld [vmem:[%s3821_s29 + $0x404] ss:$16 sps:$4 sm:$0xff]   ;;  %v3493_v20 = vld [vmem:[%s3821_s29 + $0x40c] ss:$16 sps:$4 sm:$0xff]  }
  0x5b   : > { %2111 = vmatprep.mubr.bf16.mxu0 %v304_v21  ;;  %2316 = vmatprep.mubr.bf16.mxu1 %v304_v21  ;;  %v3488_v21 = vld [vmem:[%s3821_s29 + $0x400] ss:$16 sps:$4 sm:$0xff]  }
  0x5d   : > { %2082 = vmatpush1.bf16.msra.mxu0 %v3398_v22  ;;  %2287 = vmatpush1.bf16.msra.mxu1 %v3401_v23  ;;  %v303_v22 = vpack.c.bf16 %v3894_v10, %v3894_v10  ;;  %v3491_v23 = vld [vmem:[%s3821_s29 + $0x408] ss:$16 sps:$4 sm:$0xff]  }
  0x5e   : > { %2083 = vmatprep.subr.bf16.mxu0 %v3406_v24  ;;  %2288 = vmatprep.subr.bf16.mxu1 %v3409_v25  ;;  %v3971_v24 = vld [vmem:[%s3816_s25 + $0x8] sm:$0xff]  ;;  %v3496_v25 = vld [vmem:[%s3821_s29 + $0x424] ss:$16 sps:$4 sm:$0xff]  }
  0x61   : > { %2084 = vmatpush1.bf16.msra.mxu0 %v3404_v26  ;;  %2289 = vmatpush1.bf16.msra.mxu1 %v3407_v27  ;;  %v3499_v26 = vld [vmem:[%s3821_s29 + $0x42c] ss:$16 sps:$4 sm:$0xff]   ;;  %v3977_v27 = vrot.slane %v3971_v24, %v3871_v50 }
  0x62   : > { %2085 = vmatprep.subr.bf16.mxu0 %v3412_v28  ;;  %2290 = vmatprep.subr.bf16.mxu1 %v3415_v29  ;;  %v3494_v28 = vld [vmem:[%s3821_s29 + $0x420] ss:$16 sps:$4 sm:$0xff]   ;;  %v3497_v29 = vld [vmem:[%s3821_s29 + $0x428] ss:$16 sps:$4 sm:$0xff]  }
  0x63   : > { %v283_v10 = vcombine.high %v3977_v27, %v3977_v27 }
  0x65   : > { %2086 = vmatpush1.bf16.msra.mxu0 %v3410_v30  ;;  %2291 = vmatpush1.bf16.msra.mxu1 %v3413_v31  ;;  %v3502_v30 = vld [vmem:[%s3821_s29 + $0x444] ss:$16 sps:$4 sm:$0xff]   ;;  %v3505_v31 = vld [vmem:[%s3821_s29 + $0x44c] ss:$16 sps:$4 sm:$0xff]  }
  0x66   : > { %2087 = vmatprep.subr.bf16.mxu0 %v3418_v32  ;;  %2292 = vmatprep.subr.bf16.mxu1 %v3421_v33  ;;  %v306_v32 = vpack.c.bf16 %v283_v10, %v283_v10  ;;  %v3500_v33 = vld [vmem:[%s3821_s29 + $0x440] ss:$16 sps:$4 sm:$0xff]   ;;  %v3581_v10 = vld [vmem:[%s3821_s29 + $0x5e8] ss:$16 sps:$4 sm:$0xff]  }
  0x69   : > { %2088 = vmatpush1.bf16.msra.mxu0 %v3416_v34  ;;  %2293 = vmatpush1.bf16.msra.mxu1 %v3419_v35  ;;  %v3503_v34 = vld [vmem:[%s3821_s29 + $0x448] ss:$16 sps:$4 sm:$0xff]   ;;  %v3508_v35 = vld [vmem:[%s3821_s29 + $0x464] ss:$16 sps:$4 sm:$0xff]  }
  0x6a   : > { %2089 = vmatprep.subr.bf16.mxu0 %v3424_v36  ;;  %2294 = vmatprep.subr.bf16.mxu1 %v3427_v37  ;;  %v3511_v36 = vld [vmem:[%s3821_s29 + $0x46c] ss:$16 sps:$4 sm:$0xff]   ;;  %v3506_v37 = vld [vmem:[%s3821_s29 + $0x460] ss:$16 sps:$4 sm:$0xff]  }
  0x6d   : > { %2090 = vmatpush1.bf16.msra.mxu0 %v3422_v38  ;;  %2295 = vmatpush1.bf16.msra.mxu1 %v3425_v39  ;;  %v3509_v38 = vld [vmem:[%s3821_s29 + $0x468] ss:$16 sps:$4 sm:$0xff]   ;;  %v3514_v39 = vld [vmem:[%s3821_s29 + $0x484] ss:$16 sps:$4 sm:$0xff]  }
  0x6e   : > { %2091 = vmatprep.subr.bf16.mxu0 %v3430_v40  ;;  %2296 = vmatprep.subr.bf16.mxu1 %v3433_v41  ;;  %v3517_v40 = vld [vmem:[%s3821_s29 + $0x48c] ss:$16 sps:$4 sm:$0xff]   ;;  %v3512_v41 = vld [vmem:[%s3821_s29 + $0x480] ss:$16 sps:$4 sm:$0xff]  }
  0x71   : > { %2092 = vmatpush1.bf16.msra.mxu0 %v3428_v42  ;;  %2297 = vmatpush1.bf16.msra.mxu1 %v3431_v43  ;;  %v3515_v42 = vld [vmem:[%s3821_s29 + $0x488] ss:$16 sps:$4 sm:$0xff]   ;;  %v3520_v43 = vld [vmem:[%s3821_s29 + $0x4a4] ss:$16 sps:$4 sm:$0xff]  }
  0x72   : > { %2093 = vmatprep.subr.bf16.mxu0 %v3436_v45  ;;  %2298 = vmatprep.subr.bf16.mxu1 %v3439_v46  ;;  %v3523_v45 = vld [vmem:[%s3821_s29 + $0x4ac] ss:$16 sps:$4 sm:$0xff]   ;;  %v3518_v46 = vld [vmem:[%s3821_s29 + $0x4a0] ss:$16 sps:$4 sm:$0xff]  }
  0x75   : > { %2094 = vmatpush1.bf16.msra.mxu0 %v3434_v47  ;;  %2299 = vmatpush1.bf16.msra.mxu1 %v3437_v48  ;;  %v3521_v47 = vld [vmem:[%s3821_s29 + $0x4a8] ss:$16 sps:$4 sm:$0xff]   ;;  %v3526_v48 = vld [vmem:[%s3821_s29 + $0x4c4] ss:$16 sps:$4 sm:$0xff]  }
  0x76   : > { %2095 = vmatprep.subr.bf16.mxu0 %v3442_v49  ;;  %2300 = vmatprep.subr.bf16.mxu1 %v3445_v51  ;;  %v3529_v49 = vld [vmem:[%s3821_s29 + $0x4cc] ss:$16 sps:$4 sm:$0xff]   ;;  %v3524_v51 = vld [vmem:[%s3821_s29 + $0x4c0] ss:$16 sps:$4 sm:$0xff]  }
  0x79   : > { %2096 = vmatpush1.bf16.msra.mxu0 %v3440_v52  ;;  %2301 = vmatpush1.bf16.msra.mxu1 %v3443_v53  ;;  %v3527_v52 = vld [vmem:[%s3821_s29 + $0x4c8] ss:$16 sps:$4 sm:$0xff]   ;;  %v3532_v53 = vld [vmem:[%s3821_s29 + $0x4e4] ss:$16 sps:$4 sm:$0xff]  }
  0x7a   : > { %2097 = vmatprep.subr.bf16.mxu0 %v3448_v54  ;;  %2302 = vmatprep.subr.bf16.mxu1 %v3451_v55  ;;  %v3535_v54 = vld [vmem:[%s3821_s29 + $0x4ec] ss:$16 sps:$4 sm:$0xff]   ;;  %v3530_v55 = vld [vmem:[%s3821_s29 + $0x4e0] ss:$16 sps:$4 sm:$0xff]  }
  0x7d   : > { %2098 = vmatpush1.bf16.msra.mxu0 %v3446_v56  ;;  %2303 = vmatpush1.bf16.msra.mxu1 %v3449_v57  ;;  %v3533_v56 = vld [vmem:[%s3821_s29 + $0x4e8] ss:$16 sps:$4 sm:$0xff]   ;;  %v3538_v57 = vld [vmem:[%s3821_s29 + $0x504] ss:$16 sps:$4 sm:$0xff]  }
  0x7e   : > { %2099 = vmatprep.subr.bf16.mxu0 %v3454_v58  ;;  %2304 = vmatprep.subr.bf16.mxu1 %v3457_v59  ;;  %v3541_v58 = vld [vmem:[%s3821_s29 + $0x50c] ss:$16 sps:$4 sm:$0xff]   ;;  %v3536_v59 = vld [vmem:[%s3821_s29 + $0x500] ss:$16 sps:$4 sm:$0xff]  }
  0x81   : > { %2100 = vmatpush1.bf16.msra.mxu0 %v3452_v60  ;;  %2305 = vmatpush1.bf16.msra.mxu1 %v3455_v61  ;;  %v3539_v60 = vld [vmem:[%s3821_s29 + $0x508] ss:$16 sps:$4 sm:$0xff]   ;;  %v3544_v61 = vld [vmem:[%s3821_s29 + $0x524] ss:$16 sps:$4 sm:$0xff]  }
  0x82   : > { %2101 = vmatprep.subr.bf16.mxu0 %v3460_v62  ;;  %2306 = vmatprep.subr.bf16.mxu1 %v3463_v63  ;;  %v3547_v62 = vld [vmem:[%s3821_s29 + $0x52c] ss:$16 sps:$4 sm:$0xff]   ;;  %v3542_v63 = vld [vmem:[%s3821_s29 + $0x520] ss:$16 sps:$4 sm:$0xff]  }
  0x85   : > { %2102 = vmatpush1.bf16.msra.mxu0 %v3458_v0  ;;  %2307 = vmatpush1.bf16.msra.mxu1 %v3461_v1  ;;  %v3545_v0 = vld [vmem:[%s3821_s29 + $0x528] ss:$16 sps:$4 sm:$0xff]   ;;  %v3550_v1 = vld [vmem:[%s3821_s29 + $0x544] ss:$16 sps:$4 sm:$0xff]  }
  0x86   : > { %2103 = vmatprep.subr.bf16.mxu0 %v3466_v2  ;;  %2308 = vmatprep.subr.bf16.mxu1 %v3469_v3  ;;  %v3553_v2 = vld [vmem:[%s3821_s29 + $0x54c] ss:$16 sps:$4 sm:$0xff]   ;;  %v3548_v3 = vld [vmem:[%s3821_s29 + $0x540] ss:$16 sps:$4 sm:$0xff]  }
  0x89   : > { %2104 = vmatpush1.bf16.msra.mxu0 %v3464_v4  ;;  %2309 = vmatpush1.bf16.msra.mxu1 %v3467_v5  ;;  %v3551_v4 = vld [vmem:[%s3821_s29 + $0x548] ss:$16 sps:$4 sm:$0xff]   ;;  %v3556_v5 = vld [vmem:[%s3821_s29 + $0x564] ss:$16 sps:$4 sm:$0xff]  }
  0x8a   : > { %2105 = vmatprep.subr.bf16.mxu0 %v3472_v6  ;;  %2310 = vmatprep.subr.bf16.mxu1 %v3475_v7  ;;  %v3559_v6 = vld [vmem:[%s3821_s29 + $0x56c] ss:$16 sps:$4 sm:$0xff]   ;;  %v3554_v7 = vld [vmem:[%s3821_s29 + $0x560] ss:$16 sps:$4 sm:$0xff]  }
  0x8d   : > { %2106 = vmatpush1.bf16.msra.mxu0 %v3470_v8  ;;  %2311 = vmatpush1.bf16.msra.mxu1 %v3473_v9  ;;  %v3557_v8 = vld [vmem:[%s3821_s29 + $0x568] ss:$16 sps:$4 sm:$0xff]   ;;  %v3562_v9 = vld [vmem:[%s3821_s29 + $0x584] ss:$16 sps:$4 sm:$0xff]  }
  0x8e   : > { %2107 = vmatprep.subr.bf16.mxu0 %v3478_v11  ;;  %2312 = vmatprep.subr.bf16.mxu1 %v3481_v12  ;;  %v3565_v11 = vld [vmem:[%s3821_s29 + $0x58c] ss:$16 sps:$4 sm:$0xff]   ;;  %v3560_v12 = vld [vmem:[%s3821_s29 + $0x580] ss:$16 sps:$4 sm:$0xff]  }
  0x91   : > { %2108 = vmatpush1.bf16.msra.mxu0 %v3476_v13  ;;  %2313 = vmatpush1.bf16.msra.mxu1 %v3479_v14  ;;  %v3563_v13 = vld [vmem:[%s3821_s29 + $0x588] ss:$16 sps:$4 sm:$0xff]   ;;  %v3568_v14 = vld [vmem:[%s3821_s29 + $0x5a4] ss:$16 sps:$4 sm:$0xff]  }
  0x92   : > { %2109 = vmatprep.subr.bf16.mxu0 %v3484_v15  ;;  %2314 = vmatprep.subr.bf16.mxu1 %v3487_v16  ;;  %v3571_v15 = vld [vmem:[%s3821_s29 + $0x5ac] ss:$16 sps:$4 sm:$0xff]   ;;  %v3566_v16 = vld [vmem:[%s3821_s29 + $0x5a0] ss:$16 sps:$4 sm:$0xff]  }
  0x95   : > { %2110 = vmatpush1.bf16.msra.mxu0 %v3482_v17  ;;  %2315 = vmatpush1.bf16.msra.mxu1 %v3485_v18  ;;  %v3569_v17 = vld [vmem:[%s3821_s29 + $0x5a8] ss:$16 sps:$4 sm:$0xff]   ;;  %v3574_v18 = vld [vmem:[%s3821_s29 + $0x5c4] ss:$16 sps:$4 sm:$0xff]  }
  0x96   : > { %2120 = vmatprep.subr.bf16.mxu0 %v3490_v19  ;;  %2325 = vmatprep.subr.bf16.mxu1 %v3493_v20  ;;  %v3577_v19 = vld [vmem:[%s3821_s29 + $0x5cc] ss:$16 sps:$4 sm:$0xff]   ;;  %v268_v20 = vcombine.high %v3971_v24, %v3971_v24  ;;  %v3578_v24 = vld [vmem:[%s3821_s29 + $0x5e0] ss:$16 sps:$4 sm:$0xff]  }
  0x98   : > { %2112 = vmatmul.mubr.bf16.vlgmr.msra.gmra.mrb[0].mxu0 %v303_v22  ;;  %2317 = vmatmul.mubr.bf16.vlgmr.msra.gmra.mrb[0].mxu1 %v303_v22  ;;  %v3575_v22 = vld [vmem:[%s3821_s29 + $0x5c8] ss:$16 sps:$4 sm:$0xff]  }
  0x99   : > { %2121 = vmatpush1.bf16.msra.mxu0 %v3488_v21  ;;  %2326 = vmatpush1.bf16.msra.mxu1 %v3491_v23  ;;  %v3572_v21 = vld [vmem:[%s3821_s29 + $0x5c0] ss:$16 sps:$4 sm:$0xff]   ;;  %v3580_v23 = vld [vmem:[%s3821_s29 + $0x5e4] ss:$16 sps:$4 sm:$0xff]  }
  0x9a   : > { %2122 = vmatprep.subr.bf16.mxu0 %v3496_v25  ;;  %2327 = vmatprep.subr.bf16.mxu1 %v3499_v26  ;;  %v3583_v25 = vld [vmem:[%s3821_s29 + $0x5ec] ss:$16 sps:$4 sm:$0xff]   ;;  %v4040_v26 = vrot.slane %v268_v20, %v3871_v50  ;;  %v3659_v20 = vld [vmem:[%s3821_s29 + $0x788] ss:$16 sps:$4 sm:$0xff]  }
  0x9b   : > { %2152 = vmatprep.mubr.bf16.mxu0 %v306_v32  ;;  %2357 = vmatprep.mubr.bf16.mxu1 %v306_v32  ;;  %v3584_v32 = vld [vmem:[%s3821_s29 + $0x600] ss:$16 sps:$4 sm:$0xff]  }
  0x9d   : > { %2123 = vmatpush1.bf16.msra.mxu0 %v3494_v28  ;;  %2328 = vmatpush1.bf16.msra.mxu1 %v3497_v29  ;;  %v3586_v28 = vld [vmem:[%s3821_s29 + $0x604] ss:$16 sps:$4 sm:$0xff]   ;;  %v3589_v29 = vld [vmem:[%s3821_s29 + $0x60c] ss:$16 sps:$4 sm:$0xff]  }
  0x9e   : > { %2124 = vmatprep.subr.bf16.mxu0 %v3502_v30  ;;  %2329 = vmatprep.subr.bf16.mxu1 %v3505_v31  ;;  %v284_v30 = vcombine.high %v4040_v26, %v4040_v26  ;;  %v305_v31 = vpack.c.bf16 %v3977_v27, %v3977_v27  ;;  %v3590_v27 = vld [vmem:[%s3821_s29 + $0x620] ss:$16 sps:$4 sm:$0xff]  }
  0xa1   : > { %2125 = vmatpush1.bf16.msra.mxu0 %v3500_v33  ;;  %2330 = vmatpush1.bf16.msra.mxu1 %v3503_v34  ;;  %v3587_v33 = vld [vmem:[%s3821_s29 + $0x608] ss:$16 sps:$4 sm:$0xff]   ;;  %v3592_v34 = vld [vmem:[%s3821_s29 + $0x624] ss:$16 sps:$4 sm:$0xff]  }
  0xa2   : > { %2126 = vmatprep.subr.bf16.mxu0 %v3508_v35  ;;  %2331 = vmatprep.subr.bf16.mxu1 %v3511_v36  ;;  %v3595_v35 = vld [vmem:[%s3821_s29 + $0x62c] ss:$16 sps:$4 sm:$0xff]   ;;  %v308_v36 = vpack.c.bf16 %v284_v30, %v284_v30  ;;  %v3676_v30 = vld [vmem:[%s3821_s29 + $0x7e4] ss:$16 sps:$4 sm:$0xff]  }
  0xa5   : > { %2127 = vmatpush1.bf16.msra.mxu0 %v3506_v37  ;;  %2332 = vmatpush1.bf16.msra.mxu1 %v3509_v38  ;;  %v3593_v37 = vld [vmem:[%s3821_s29 + $0x628] ss:$16 sps:$4 sm:$0xff]   ;;  %v3598_v38 = vld [vmem:[%s3821_s29 + $0x644] ss:$16 sps:$4 sm:$0xff]  }
  0xa6   : > { %2128 = vmatprep.subr.bf16.mxu0 %v3514_v39  ;;  %2333 = vmatprep.subr.bf16.mxu1 %v3517_v40  ;;  %v3601_v39 = vld [vmem:[%s3821_s29 + $0x64c] ss:$16 sps:$4 sm:$0xff]   ;;  %v3596_v40 = vld [vmem:[%s3821_s29 + $0x640] ss:$16 sps:$4 sm:$0xff]  }
  0xa9   : > { %2129 = vmatpush1.bf16.msra.mxu0 %v3512_v41  ;;  %2334 = vmatpush1.bf16.msra.mxu1 %v3515_v42  ;;  %v3599_v41 = vld [vmem:[%s3821_s29 + $0x648] ss:$16 sps:$4 sm:$0xff]   ;;  %v3604_v42 = vld [vmem:[%s3821_s29 + $0x664] ss:$16 sps:$4 sm:$0xff]  }
  0xaa   : > { %2130 = vmatprep.subr.bf16.mxu0 %v3520_v43  ;;  %2335 = vmatprep.subr.bf16.mxu1 %v3523_v45  ;;  %v3607_v43 = vld [vmem:[%s3821_s29 + $0x66c] ss:$16 sps:$4 sm:$0xff]   ;;  %v3602_v45 = vld [vmem:[%s3821_s29 + $0x660] ss:$16 sps:$4 sm:$0xff]  }
  0xad   : > { %2131 = vmatpush1.bf16.msra.mxu0 %v3518_v46  ;;  %2336 = vmatpush1.bf16.msra.mxu1 %v3521_v47  ;;  %v3605_v46 = vld [vmem:[%s3821_s29 + $0x668] ss:$16 sps:$4 sm:$0xff]   ;;  %v3610_v47 = vld [vmem:[%s3821_s29 + $0x684] ss:$16 sps:$4 sm:$0xff]  }
  0xae   : > { %2132 = vmatprep.subr.bf16.mxu0 %v3526_v48  ;;  %2337 = vmatprep.subr.bf16.mxu1 %v3529_v49  ;;  %v3613_v48 = vld [vmem:[%s3821_s29 + $0x68c] ss:$16 sps:$4 sm:$0xff]   ;;  %v3608_v49 = vld [vmem:[%s3821_s29 + $0x680] ss:$16 sps:$4 sm:$0xff]  }
  0xb1   : > { %2133 = vmatpush1.bf16.msra.mxu0 %v3524_v51  ;;  %2338 = vmatpush1.bf16.msra.mxu1 %v3527_v52  ;;  %v3611_v51 = vld [vmem:[%s3821_s29 + $0x688] ss:$16 sps:$4 sm:$0xff]   ;;  %v3616_v52 = vld [vmem:[%s3821_s29 + $0x6a4] ss:$16 sps:$4 sm:$0xff]  }
  0xb2   : > { %2134 = vmatprep.subr.bf16.mxu0 %v3532_v53  ;;  %2339 = vmatprep.subr.bf16.mxu1 %v3535_v54  ;;  %v3619_v53 = vld [vmem:[%s3821_s29 + $0x6ac] ss:$16 sps:$4 sm:$0xff]   ;;  %v3614_v54 = vld [vmem:[%s3821_s29 + $0x6a0] ss:$16 sps:$4 sm:$0xff]  }
  0xb5   : > { %2135 = vmatpush1.bf16.msra.mxu0 %v3530_v55  ;;  %2340 = vmatpush1.bf16.msra.mxu1 %v3533_v56  ;;  %v3617_v55 = vld [vmem:[%s3821_s29 + $0x6a8] ss:$16 sps:$4 sm:$0xff]   ;;  %v3622_v56 = vld [vmem:[%s3821_s29 + $0x6c4] ss:$16 sps:$4 sm:$0xff]  }
  0xb6   : > { %2136 = vmatprep.subr.bf16.mxu0 %v3538_v57  ;;  %2341 = vmatprep.subr.bf16.mxu1 %v3541_v58  ;;  %v3625_v57 = vld [vmem:[%s3821_s29 + $0x6cc] ss:$16 sps:$4 sm:$0xff]   ;;  %v3620_v58 = vld [vmem:[%s3821_s29 + $0x6c0] ss:$16 sps:$4 sm:$0xff]  }
  0xb9   : > { %2137 = vmatpush1.bf16.msra.mxu0 %v3536_v59  ;;  %2342 = vmatpush1.bf16.msra.mxu1 %v3539_v60  ;;  %v3623_v59 = vld [vmem:[%s3821_s29 + $0x6c8] ss:$16 sps:$4 sm:$0xff]   ;;  %v3628_v60 = vld [vmem:[%s3821_s29 + $0x6e4] ss:$16 sps:$4 sm:$0xff]  }
  0xba   : > { %2138 = vmatprep.subr.bf16.mxu0 %v3544_v61  ;;  %2343 = vmatprep.subr.bf16.mxu1 %v3547_v62  ;;  %v3631_v61 = vld [vmem:[%s3821_s29 + $0x6ec] ss:$16 sps:$4 sm:$0xff]   ;;  %v3626_v62 = vld [vmem:[%s3821_s29 + $0x6e0] ss:$16 sps:$4 sm:$0xff]  }
  0xbd   : > { %2139 = vmatpush1.bf16.msra.mxu0 %v3542_v63  ;;  %2344 = vmatpush1.bf16.msra.mxu1 %v3545_v0  ;;  %v3629_v63 = vld [vmem:[%s3821_s29 + $0x6e8] ss:$16 sps:$4 sm:$0xff]   ;;  %v3634_v0 = vld [vmem:[%s3821_s29 + $0x704] ss:$16 sps:$4 sm:$0xff]  }
  0xbe   : > { %2140 = vmatprep.subr.bf16.mxu0 %v3550_v1  ;;  %2345 = vmatprep.subr.bf16.mxu1 %v3553_v2  ;;  %v3637_v1 = vld [vmem:[%s3821_s29 + $0x70c] ss:$16 sps:$4 sm:$0xff]   ;;  %v3632_v2 = vld [vmem:[%s3821_s29 + $0x700] ss:$16 sps:$4 sm:$0xff]  }
  0xc1   : > { %2141 = vmatpush1.bf16.msra.mxu0 %v3548_v3  ;;  %2346 = vmatpush1.bf16.msra.mxu1 %v3551_v4  ;;  %v3635_v3 = vld [vmem:[%s3821_s29 + $0x708] ss:$16 sps:$4 sm:$0xff]   ;;  %v3640_v4 = vld [vmem:[%s3821_s29 + $0x724] ss:$16 sps:$4 sm:$0xff]  }
  0xc2   : > { %2142 = vmatprep.subr.bf16.mxu0 %v3556_v5  ;;  %2347 = vmatprep.subr.bf16.mxu1 %v3559_v6  ;;  %v3643_v5 = vld [vmem:[%s3821_s29 + $0x72c] ss:$16 sps:$4 sm:$0xff]   ;;  %v3638_v6 = vld [vmem:[%s3821_s29 + $0x720] ss:$16 sps:$4 sm:$0xff]  }
  0xc5   : > { %2143 = vmatpush1.bf16.msra.mxu0 %v3554_v7  ;;  %2348 = vmatpush1.bf16.msra.mxu1 %v3557_v8  ;;  %v3641_v7 = vld [vmem:[%s3821_s29 + $0x728] ss:$16 sps:$4 sm:$0xff]   ;;  %v3646_v8 = vld [vmem:[%s3821_s29 + $0x744] ss:$16 sps:$4 sm:$0xff]  }
  0xc6   : > { %2144 = vmatprep.subr.bf16.mxu0 %v3562_v9  ;;  %2349 = vmatprep.subr.bf16.mxu1 %v3565_v11  ;;  %v3649_v9 = vld [vmem:[%s3821_s29 + $0x74c] ss:$16 sps:$4 sm:$0xff]   ;;  %v3644_v11 = vld [vmem:[%s3821_s29 + $0x740] ss:$16 sps:$4 sm:$0xff]  }
  0xc9   : > { %2145 = vmatpush1.bf16.msra.mxu0 %v3560_v12  ;;  %2350 = vmatpush1.bf16.msra.mxu1 %v3563_v13  ;;  %v3647_v12 = vld [vmem:[%s3821_s29 + $0x748] ss:$16 sps:$4 sm:$0xff]   ;;  %v3652_v13 = vld [vmem:[%s3821_s29 + $0x764] ss:$16 sps:$4 sm:$0xff]  }
  0xca   : > { %2146 = vmatprep.subr.bf16.mxu0 %v3568_v14  ;;  %2351 = vmatprep.subr.bf16.mxu1 %v3571_v15  ;;  %v3655_v14 = vld [vmem:[%s3821_s29 + $0x76c] ss:$16 sps:$4 sm:$0xff]   ;;  %v3650_v15 = vld [vmem:[%s3821_s29 + $0x760] ss:$16 sps:$4 sm:$0xff]  }
  0xcd   : > { %2147 = vmatpush1.bf16.msra.mxu0 %v3566_v16  ;;  %2352 = vmatpush1.bf16.msra.mxu1 %v3569_v17  ;;  %v3653_v16 = vld [vmem:[%s3821_s29 + $0x768] ss:$16 sps:$4 sm:$0xff]   ;;  %v3658_v17 = vld [vmem:[%s3821_s29 + $0x784] ss:$16 sps:$4 sm:$0xff]  }
  0xce   : > { %2148 = vmatprep.subr.bf16.mxu0 %v3574_v18  ;;  %2353 = vmatprep.subr.bf16.mxu1 %v3577_v19  ;;  %v3661_v18 = vld [vmem:[%s3821_s29 + $0x78c] ss:$16 sps:$4 sm:$0xff]   ;;  %v3656_v19 = vld [vmem:[%s3821_s29 + $0x780] ss:$16 sps:$4 sm:$0xff]  }
  0xd1   : > { %2149 = vmatpush1.bf16.msra.mxu0 %v3572_v21  ;;  %2354 = vmatpush1.bf16.msra.mxu1 %v3575_v22  ;;  %v3664_v21 = vld [vmem:[%s3821_s29 + $0x7a4] ss:$16 sps:$4 sm:$0xff]   ;;  %v3667_v22 = vld [vmem:[%s3821_s29 + $0x7ac] ss:$16 sps:$4 sm:$0xff]  }
  0xd2   : > { %2150 = vmatprep.subr.bf16.mxu0 %v3580_v23  ;;  %2355 = vmatprep.subr.bf16.mxu1 %v3583_v25  ;;  %v3662_v23 = vld [vmem:[%s3821_s29 + $0x7a0] ss:$16 sps:$4 sm:$0xff]   ;;  %v3665_v25 = vld [vmem:[%s3821_s29 + $0x7a8] ss:$16 sps:$4 sm:$0xff]  }
  0xd5   : > { %2151 = vmatpush1.bf16.msra.mxu0 %v3578_v24  ;;  %2356 = vmatpush1.bf16.msra.mxu1 %v3581_v10  ;;  %v3670_v24 = vld [vmem:[%s3821_s29 + $0x7c4] ss:$16 sps:$4 sm:$0xff]   ;;  %v3673_v10 = vld [vmem:[%s3821_s29 + $0x7cc] ss:$16 sps:$4 sm:$0xff]  }
  0xd6   : > { %2161 = vmatprep.subr.bf16.mxu0 %v3586_v28  ;;  %2366 = vmatprep.subr.bf16.mxu1 %v3589_v29  ;;  %v3668_v28 = vld [vmem:[%s3821_s29 + $0x7c0] ss:$16 sps:$4 sm:$0xff]   ;;  %v3671_v29 = vld [vmem:[%s3821_s29 + $0x7c8] ss:$16 sps:$4 sm:$0xff]  }
  0xd8   : > { %2153 = vmatmul.mubr.bf16.vlgmr.msra.gmra.mrb[0].mxu0 %v305_v31  ;;  %2358 = vmatmul.mubr.bf16.vlgmr.msra.gmra.mrb[0].mxu1 %v305_v31  ;;  %v3679_v31 = vld [vmem:[%s3821_s29 + $0x7ec] ss:$16 sps:$4 sm:$0xff]  }
  0xd9   : > { %2162 = vmatpush1.bf16.msra.mxu0 %v3584_v32  ;;  %2367 = vmatpush1.bf16.msra.mxu1 %v3587_v33  ;;  %v3674_v32 = vld [vmem:[%s3821_s29 + $0x7e0] ss:$16 sps:$4 sm:$0xff]   ;;  %v3677_v33 = vld [vmem:[%s3821_s29 + $0x7e8] ss:$16 sps:$4 sm:$0xff]  }
  0xda   : > { %2163 = vmatprep.subr.bf16.mxu0 %v3592_v34  ;;  %2368 = vmatprep.subr.bf16.mxu1 %v3595_v35  ;;  %v3683_v34 = vld [vmem:[%s3821_s29 + $0x804] ss:$16 sps:$4 sm:$0xff]   ;;  %v3686_v35 = vld [vmem:[%s3821_s29 + $0x80c] ss:$16 sps:$4 sm:$0xff]  }
  0xdb   : > { %2193 = vmatprep.mubr.bf16.mxu0 %v308_v36  ;;  %2398 = vmatprep.mubr.bf16.mxu1 %v308_v36  ;;  %v307_v36 = vpack.c.bf16 %v4040_v26, %v4040_v26  ;;  %v3690_v26 = vld [vmem:[%s3821_s29 + $0x828] ss:$16 sps:$4 sm:$0xff]  }
  0xdd   : > { %2164 = vmatpush1.bf16.msra.mxu0 %v3590_v27  ;;  %2369 = vmatpush1.bf16.msra.mxu1 %v3593_v37  ;;  %v3681_v27 = vld [vmem:[%s3821_s29 + $0x800] ss:$16 sps:$4 sm:$0xff]   ;;  %v3684_v37 = vld [vmem:[%s3821_s29 + $0x808] ss:$16 sps:$4 sm:$0xff]  }
  0xde   : > { %2165 = vmatprep.subr.bf16.mxu0 %v3598_v38  ;;  %2370 = vmatprep.subr.bf16.mxu1 %v3601_v39  ;;  %v3689_v38 = vld [vmem:[%s3821_s29 + $0x824] ss:$16 sps:$4 sm:$0xff]   ;;  %v3692_v39 = vld [vmem:[%s3821_s29 + $0x82c] ss:$16 sps:$4 sm:$0xff]  }
  0xe1   : > { %2166 = vmatpush1.bf16.msra.mxu0 %v3596_v40  ;;  %2371 = vmatpush1.bf16.msra.mxu1 %v3599_v41  ;;  %v3687_v40 = vld [vmem:[%s3821_s29 + $0x820] ss:$16 sps:$4 sm:$0xff]   ;;  %v3695_v41 = vld [vmem:[%s3821_s29 + $0x844] ss:$16 sps:$4 sm:$0xff]  }
  0xe2   : > { %2167 = vmatprep.subr.bf16.mxu0 %v3604_v42  ;;  %2372 = vmatprep.subr.bf16.mxu1 %v3607_v43  ;;  %v3698_v42 = vld [vmem:[%s3821_s29 + $0x84c] ss:$16 sps:$4 sm:$0xff]   ;;  %v3769_v43 = vmov 0  }
  0xe5   : > { %2168 = vmatpush1.bf16.msra.mxu0 %v3602_v45  ;;  %2373 = vmatpush1.bf16.msra.mxu1 %v3605_v46  ;;  %v3693_v45 = vld [vmem:[%s3821_s29 + $0x840] ss:$16 sps:$4 sm:$0xff]   ;;  %v3696_v46 = vld [vmem:[%s3821_s29 + $0x848] ss:$16 sps:$4 sm:$0xff]  }
  0xe6   : > { %2169 = vmatprep.subr.bf16.mxu0 %v3610_v47  ;;  %2374 = vmatprep.subr.bf16.mxu1 %v3613_v48  ;;  %v3701_v47 = vld [vmem:[%s3821_s29 + $0x864] ss:$16 sps:$4 sm:$0xff]   ;;  %v3704_v48 = vld [vmem:[%s3821_s29 + $0x86c] ss:$16 sps:$4 sm:$0xff]  }
  0xe9   : > { %2170 = vmatpush1.bf16.msra.mxu0 %v3608_v49  ;;  %2375 = vmatpush1.bf16.msra.mxu1 %v3611_v51  ;;  %v3699_v49 = vld [vmem:[%s3821_s29 + $0x860] ss:$16 sps:$4 sm:$0xff]   ;;  %v3702_v51 = vld [vmem:[%s3821_s29 + $0x868] ss:$16 sps:$4 sm:$0xff]  }
  0xea   : > { %2171 = vmatprep.subr.bf16.mxu0 %v3616_v52  ;;  %2376 = vmatprep.subr.bf16.mxu1 %v3619_v53  ;;  %v3707_v52 = vld [vmem:[%s3821_s29 + $0x884] ss:$16 sps:$4 sm:$0xff]   ;;  %v3710_v53 = vld [vmem:[%s3821_s29 + $0x88c] ss:$16 sps:$4 sm:$0xff]  }
  0xed   : > { %2172 = vmatpush1.bf16.msra.mxu0 %v3614_v54  ;;  %2377 = vmatpush1.bf16.msra.mxu1 %v3617_v55  ;;  %v3705_v54 = vld [vmem:[%s3821_s29 + $0x880] ss:$16 sps:$4 sm:$0xff]   ;;  %v3708_v55 = vld [vmem:[%s3821_s29 + $0x888] ss:$16 sps:$4 sm:$0xff]  }
  0xee   : > { %2173 = vmatprep.subr.bf16.mxu0 %v3622_v56  ;;  %2378 = vmatprep.subr.bf16.mxu1 %v3625_v57  ;;  %v3713_v56 = vld [vmem:[%s3821_s29 + $0x8a4] ss:$16 sps:$4 sm:$0xff]   ;;  %v3716_v57 = vld [vmem:[%s3821_s29 + $0x8ac] ss:$16 sps:$4 sm:$0xff]  }
  0xf1   : > { %2174 = vmatpush1.bf16.msra.mxu0 %v3620_v58  ;;  %2379 = vmatpush1.bf16.msra.mxu1 %v3623_v59  ;;  %v3711_v58 = vld [vmem:[%s3821_s29 + $0x8a0] ss:$16 sps:$4 sm:$0xff]   ;;  %v3714_v59 = vld [vmem:[%s3821_s29 + $0x8a8] ss:$16 sps:$4 sm:$0xff]  }
  0xf2   : > { %2175 = vmatprep.subr.bf16.mxu0 %v3628_v60  ;;  %2380 = vmatprep.subr.bf16.mxu1 %v3631_v61  ;;  %v3719_v60 = vld [vmem:[%s3821_s29 + $0x8c4] ss:$16 sps:$4 sm:$0xff]   ;;  %v3722_v61 = vld [vmem:[%s3821_s29 + $0x8cc] ss:$16 sps:$4 sm:$0xff]  }
  0xf5   : > { %2176 = vmatpush1.bf16.msra.mxu0 %v3626_v62  ;;  %2381 = vmatpush1.bf16.msra.mxu1 %v3629_v63  ;;  %v3717_v62 = vld [vmem:[%s3821_s29 + $0x8c0] ss:$16 sps:$4 sm:$0xff]   ;;  %v3720_v63 = vld [vmem:[%s3821_s29 + $0x8c8] ss:$16 sps:$4 sm:$0xff]  }
  0xf6   : > { %2177 = vmatprep.subr.bf16.mxu0 %v3634_v0  ;;  %2382 = vmatprep.subr.bf16.mxu1 %v3637_v1  ;;  %v3725_v0 = vld [vmem:[%s3821_s29 + $0x8e4] ss:$16 sps:$4 sm:$0xff]   ;;  %v3728_v1 = vld [vmem:[%s3821_s29 + $0x8ec] ss:$16 sps:$4 sm:$0xff]  }
  0xf9   : > { %2178 = vmatpush1.bf16.msra.mxu0 %v3632_v2  ;;  %2383 = vmatpush1.bf16.msra.mxu1 %v3635_v3  ;;  %v3723_v2 = vld [vmem:[%s3821_s29 + $0x8e0] ss:$16 sps:$4 sm:$0xff]   ;;  %v3726_v3 = vld [vmem:[%s3821_s29 + $0x8e8] ss:$16 sps:$4 sm:$0xff]  }
  0xfa   : > { %2179 = vmatprep.subr.bf16.mxu0 %v3640_v4  ;;  %2384 = vmatprep.subr.bf16.mxu1 %v3643_v5  ;;  %v2815_v4 = vld.sshfl [vmem:[%s3816_s25 + $0x10] sm:$0x3 pattern:$0x76325410] }
  0xfb   : > { %v309_v5 = vpack.c.bf16 %v2815_v4, %v2815_v4  ;;  %v2554_v4 = vld [vmem:[%s4385_s3 + $0x138] sm:$0xff] (!%p3104_p6) }
  0xfd   : > { %2180 = vmatpush1.bf16.msra.mxu0 %v3638_v6  ;;  %2385 = vmatpush1.bf16.msra.mxu1 %v3641_v7 }
  0xfe   : > { %2181 = vmatprep.subr.bf16.mxu0 %v3646_v8  ;;  %2386 = vmatprep.subr.bf16.mxu1 %v3649_v9 }
 0x101   : > { %2182 = vmatpush1.bf16.msra.mxu0 %v3644_v11  ;;  %2387 = vmatpush1.bf16.msra.mxu1 %v3647_v12 }
 0x102   : > { %2183 = vmatprep.subr.bf16.mxu0 %v3652_v13  ;;  %2388 = vmatprep.subr.bf16.mxu1 %v3655_v14 }
 0x105   : > { %2184 = vmatpush1.bf16.msra.mxu0 %v3650_v15  ;;  %2389 = vmatpush1.bf16.msra.mxu1 %v3653_v16 }
 0x106   : > { %2185 = vmatprep.subr.bf16.mxu0 %v3658_v17  ;;  %2390 = vmatprep.subr.bf16.mxu1 %v3661_v18 }
 0x109   : > { %2186 = vmatpush1.bf16.msra.mxu0 %v3656_v19  ;;  %2391 = vmatpush1.bf16.msra.mxu1 %v3659_v20  ;;  %v244_v19 = vld [vmem:[#allocation2] sm:$0xff] }
 0x10a   : > { %2187 = vmatprep.subr.bf16.mxu0 %v3664_v21  ;;  %2392 = vmatprep.subr.bf16.mxu1 %v3667_v22  ;;  %v2531_v22 = vld [vmem:[%s4385_s3 + $0x80] sm:$0xff] (!%p3104_p6) }
 0x10d   : > { %2188 = vmatpush1.bf16.msra.mxu0 %v3662_v23  ;;  %2393 = vmatpush1.bf16.msra.mxu1 %v3665_v25  ;;  %v2532_v23 = vld [vmem:[%s4385_s3 + $0x88] sm:$0xff] (!%p3104_p6)  ;;  %v2515_v25 = vld [vmem:[%s4385_s3] sm:$0xff] (!%p3104_p6) }
 0x10e   : > { %2189 = vmatprep.subr.bf16.mxu0 %v3670_v24  ;;  %2394 = vmatprep.subr.bf16.mxu1 %v3673_v10  ;;  %v3181_v24 = vpack.c.bf16 (!%p3104_p6), %v2532_v23, %v2531_v22  ;;  %v2516_v10 = vld [vmem:[%s4385_s3 + $0x8] sm:$0xff] (!%p3104_p6) }
 0x111   : > { %2190 = vmatpush1.bf16.msra.mxu0 %v3668_v28  ;;  %2395 = vmatpush1.bf16.msra.mxu1 %v3671_v29  ;;  %v2563_v28 = vld [vmem:[%s4385_s3 + $0x180] sm:$0xff] (!%p3104_p6)  ;;  %v2564_v29 = vld [vmem:[%s4385_s3 + $0x188] sm:$0xff] (!%p3104_p6) }
 0x112   : > { %2191 = vmatprep.subr.bf16.mxu0 %v3676_v30  ;;  %2396 = vmatprep.subr.bf16.mxu1 %v3679_v31  ;;  %v3183_v30 = vpack.c.bf16 (!%p3104_p6), %v2516_v10, %v2515_v25  ;;  %v3213_v31 = vpack.c.bf16 (!%p3104_p6), %v2564_v29, %v2563_v28  ;;  %v2526_v10 = vld [vmem:[%s4385_s3 + $0x58] sm:$0xff] (!%p3104_p6)  ;;  %v2557_v28 = vld [vmem:[%s4385_s3 + $0x150] sm:$0xff] (!%p3104_p6) }
 0x115   : > { %2192 = vmatpush1.bf16.msra.mxu0 %v3674_v32  ;;  %2397 = vmatpush1.bf16.msra.mxu1 %v3677_v33  ;;  %v2547_v32 = vld [vmem:[%s4385_s3 + $0x100] sm:$0xff] (!%p3104_p6)  ;;  %v2548_v33 = vld [vmem:[%s4385_s3 + $0x108] sm:$0xff] (!%p3104_p6) }
 0x116   : > { %2202 = vmatprep.subr.bf16.mxu0 %v3683_v34  ;;  %2407 = vmatprep.subr.bf16.mxu1 %v3686_v35  ;;  %v2533_v34 = vld [vmem:[%s4385_s3 + $0x90] sm:$0xff] (!%p3104_p6)  ;;  %v3215_v35 = vpack.c.bf16 (!%p3104_p6), %v2548_v33, %v2547_v32  ;;  %v2544_v32 = vld [vmem:[%s4385_s3 + $0xe8] sm:$0xff] (!%p3104_p6)  ;;  %v2481_v33 = vsub.s32 (!%p3104_p6), 0, %v3863_v44 }
 0x118   : > { %2194 = vmatmul.mubr.bf16.vlgmr.msra.gmra.mrb[0].mxu0 %v307_v36  ;;  %2399 = vmatmul.mubr.bf16.vlgmr.msra.gmra.mrb[0].mxu1 %v307_v36  ;;  %v2534_v36 = vld [vmem:[%s4385_s3 + $0x98] sm:$0xff] (!%p3104_p6) }
 0x119   : > { %2203 = vmatpush1.bf16.msra.mxu0 %v3681_v27  ;;  %2408 = vmatpush1.bf16.msra.mxu1 %v3684_v37  ;;  %v2517_v27 = vld [vmem:[%s4385_s3 + $0x10] sm:$0xff] (!%p3104_p6)  ;;  %v2518_v37 = vld [vmem:[%s4385_s3 + $0x18] sm:$0xff] (!%p3104_p6) }
 0x11a   : > { %2204 = vmatprep.subr.bf16.mxu0 %v3689_v38  ;;  %2409 = vmatprep.subr.bf16.mxu1 %v3692_v39  ;;  %v3185_v38 = vpack.c.bf16 (!%p3104_p6), %v2534_v36, %v2533_v34  ;;  %v3187_v39 = vpack.c.bf16 (!%p3104_p6), %v2518_v37, %v2517_v27  ;;  %v2485_v34 = vsub.s32 (!%p3104_p6), 1, %v3863_v44  ;;  %v2575_v36 = vld [vmem:[%s4385_s3 + $0x1e0] sm:$0xff] (!%p3104_p6)  ;;  %v2576_v27 = vld [vmem:[%s4385_s3 + $0x1e8] sm:$0xff] (!%p3104_p6)  ;;  %v2493_v37 = vsub.s32 (!%p3104_p6), 3, %v3863_v44 }
 0x11b   : > { %2234 = vmatprep.mubr.bf16.mxu0 %v3769_v43  ;;  %2439 = vmatprep.mubr.bf16.mxu1 %v3769_v43  ;;  %v2550_v43 = vld [vmem:[%s4385_s3 + $0x118] sm:$0xff] (!%p3104_p6) }
 0x11d   : > { %2205 = vmatpush1.bf16.msra.mxu0 %v3687_v40  ;;  %2410 = vmatpush1.bf16.msra.mxu1 %v3690_v26  ;;  %v2565_v40 = vld [vmem:[%s4385_s3 + $0x190] sm:$0xff] (!%p3104_p6)  ;;  %v2566_v26 = vld [vmem:[%s4385_s3 + $0x198] sm:$0xff] (!%p3104_p6) }
 0x11e   : > { %2206 = vmatprep.subr.bf16.mxu0 %v3695_v41  ;;  %2411 = vmatprep.subr.bf16.mxu1 %v3698_v42  ;;  %v2549_v41 = vld [vmem:[%s4385_s3 + $0x110] sm:$0xff] (!%p3104_p6)  ;;  %v3217_v42 = vpack.c.bf16 (!%p3104_p6), %v2566_v26, %v2565_v40 }
 0x121   : > { %2207 = vmatpush1.bf16.msra.mxu0 %v3693_v45  ;;  %2412 = vmatpush1.bf16.msra.mxu1 %v3696_v46  ;;  %v2535_v45 = vld [vmem:[%s4385_s3 + $0xa0] sm:$0xff] (!%p3104_p6)  ;;  %v2536_v46 = vld [vmem:[%s4385_s3 + $0xa8] sm:$0xff] (!%p3104_p6) }
 0x122   : > { %2208 = vmatprep.subr.bf16.mxu0 %v3701_v47  ;;  %2413 = vmatprep.subr.bf16.mxu1 %v3704_v48  ;;  %v3219_v47 = vpack.c.bf16 (!%p3104_p6), %v2550_v43, %v2549_v41  ;;  %v3189_v48 = vpack.c.bf16 (!%p3104_p6), %v2536_v46, %v2535_v45  ;;  %v2528_v41 = vld [vmem:[%s4385_s3 + $0x68] sm:$0xff] (!%p3104_p6)  ;;  %v3237_v43 = vpack.c.bf16 (!%p3104_p6), %v2576_v27, %v2575_v36  ;;  %v2545_v46 = vld [vmem:[%s4385_s3 + $0xf0] sm:$0xff] (!%p3104_p6) }
 0x123   : > { %v2560_v45 = vld [vmem:[%s4385_s3 + $0x168] sm:$0xff] (!%p3104_p6) }
 0x125   : > { %2209 = vmatpush1.bf16.msra.mxu0 %v3699_v49  ;;  %2414 = vmatpush1.bf16.msra.mxu1 %v3702_v51  ;;  %v2519_v49 = vld [vmem:[%s4385_s3 + $0x20] sm:$0xff] (!%p3104_p6)  ;;  %v2520_v51 = vld [vmem:[%s4385_s3 + $0x28] sm:$0xff] (!%p3104_p6) }
 0x126   : > { %2210 = vmatprep.subr.bf16.mxu0 %v3707_v52  ;;  %2415 = vmatprep.subr.bf16.mxu1 %v3710_v53  ;;  %v2567_v52 = vld [vmem:[%s4385_s3 + $0x1a0] sm:$0xff] (!%p3104_p6)  ;;  %v2568_v53 = vld [vmem:[%s4385_s3 + $0x1a8] sm:$0xff] (!%p3104_p6) }
 0x129   : > { %2211 = vmatpush1.bf16.msra.mxu0 %v3705_v54  ;;  %2416 = vmatpush1.bf16.msra.mxu1 %v3708_v55  ;;  %v2551_v54 = vld [vmem:[%s4385_s3 + $0x120] sm:$0xff] (!%p3104_p6)  ;;  %v2552_v55 = vld [vmem:[%s4385_s3 + $0x128] sm:$0xff] (!%p3104_p6) }
 0x12a   : > { %2212 = vmatprep.subr.bf16.mxu0 %v3713_v56  ;;  %2417 = vmatprep.subr.bf16.mxu1 %v3716_v57  ;;  %v3191_v56 = vpack.c.bf16 (!%p3104_p6), %v2520_v51, %v2519_v49  ;;  %v3221_v57 = vpack.c.bf16 (!%p3104_p6), %v2568_v53, %v2567_v52  ;;  %v2577_v52 = vld [vmem:[%s4385_s3 + $0x1f0] sm:$0xff] (!%p3104_p6)  ;;  %v2578_v53 = vld [vmem:[%s4385_s3 + $0x1f8] sm:$0xff] (!%p3104_p6) }
 0x12d   : > { %2213 = vmatpush1.bf16.msra.mxu0 %v3711_v58  ;;  %2418 = vmatpush1.bf16.msra.mxu1 %v3714_v59  ;;  %v2537_v58 = vld [vmem:[%s4385_s3 + $0xb0] sm:$0xff] (!%p3104_p6)  ;;  %v2538_v59 = vld [vmem:[%s4385_s3 + $0xb8] sm:$0xff] (!%p3104_p6) }
 0x12e   : > { %2214 = vmatprep.subr.bf16.mxu0 %v3719_v60  ;;  %2419 = vmatprep.subr.bf16.mxu1 %v3722_v61  ;;  %v2521_v60 = vld [vmem:[%s4385_s3 + $0x30] sm:$0xff] (!%p3104_p6)  ;;  %v3223_v61 = vpack.c.bf16 (!%p3104_p6), %v2552_v55, %v2551_v54 }
 0x131   : > { %2215 = vmatpush1.bf16.msra.mxu0 %v3717_v62  ;;  %2420 = vmatpush1.bf16.msra.mxu1 %v3720_v63  ;;  %v3193_v62 = vpack.c.bf16 (!%p3104_p6), %v2538_v59, %v2537_v58  ;;  %v2522_v63 = vld [vmem:[%s4385_s3 + $0x38] sm:$0xff] (!%p3104_p6)  ;;  %v2529_v59 = vld [vmem:[%s4385_s3 + $0x70] sm:$0xff] (!%p3104_p6) }
 0x132   : > { %2216 = vmatprep.subr.bf16.mxu0 %v3725_v0  ;;  %2421 = vmatprep.subr.bf16.mxu1 %v3728_v1  ;;  %v2569_v0 = vld [vmem:[%s4385_s3 + $0x1b0] sm:$0xff] (!%p3104_p6)  ;;  %v2570_v1 = vld [vmem:[%s4385_s3 + $0x1b8] sm:$0xff] (!%p3104_p6) }
 0x135   : > { %2217 = vmatpush1.bf16.msra.mxu0 %v3723_v2  ;;  %2422 = vmatpush1.bf16.msra.mxu1 %v3726_v3  ;;  %v3225_v2 = vpack.c.bf16 (!%p3104_p6), %v2570_v1, %v2569_v0  ;;  %v2553_v3 = vld [vmem:[%s4385_s3 + $0x130] sm:$0xff] (!%p3104_p6)  ;;  %v2562_v0 = vld [vmem:[%s4385_s3 + $0x178] sm:$0xff] (!%p3104_p6) }
 0x136   : > { %3182 = vmatprep.subr.bf16.mxu0 (!%p3104_p6), %v3181_v24  ;;  %3214 = vmatprep.subr.bf16.mxu1 (!%p3104_p6), %v3213_v31  ;;  %v2525_v24 = vld [vmem:[%s4385_s3 + $0x50] sm:$0xff] (!%p3104_p6)  ;;  %v2543_v31 = vld [vmem:[%s4385_s3 + $0xe0] sm:$0xff] (!%p3104_p6) }
 0x137   : > { %v3205_v26 = vpack.c.bf16 (!%p3104_p6), %v2544_v32, %v2543_v31 }
 0x138   : > { %2235 = vmatmul.mubr.bf16.vlgmr.msra.gmra.mrb[0].mxu0 %v309_v5  ;;  %2440 = vmatmul.mubr.bf16.vlgmr.msra.gmra.mrb[0].mxu1 %v309_v5  ;;  %v2539_v5 = vld [vmem:[%s4385_s3 + $0xc0] sm:$0xff] (!%p3104_p6) }
 0x139   : > { %3184 = vmatpush3.bf16.msra.mxu0 (!%p3104_p6), %v3183_v30  ;;  %3216 = vmatpush3.bf16.msra.mxu1 (!%p3104_p6), %v3215_v35  ;;  %v2558_v30 = vld [vmem:[%s4385_s3 + $0x158] sm:$0xff] (!%p3104_p6)  ;;  %v2489_v35 = vsub.s32 (!%p3104_p6), 2, %v3863_v44  ;;  %v2477_v44 = vld [vmem:[%s4384_s2] sm:$0xf] (!%p3104_p6) }
 0x13a   : > { %3186 = vmatprep.subr.bf16.mxu0 (!%p3104_p6), %v3185_v38  ;;  %3218 = vmatprep.subr.bf16.mxu1 (!%p3104_p6), %v3217_v42  ;;  %v3203_v38 = vpack.c.bf16 (!%p3104_p6), %v2526_v10, %v2525_v24  ;;  %v3235_v40 = vpack.c.bf16 (!%p3104_p6), %v2558_v30, %v2557_v28  ;;  %v2559_v42 = vld [vmem:[%s4385_s3 + $0x160] sm:$0xff] (!%p3104_p6)  ;;  %v2486_v49 = vrot.slane (!%p3104_p6), %v2477_v44, %v2485_v34 }
 0x13b   : > { %v2490_v51 = vrot.slane (!%p3104_p6), %v2477_v44, %v2489_v35  ;;  %v2494_v54 = vrot.slane (!%p3104_p6), %v2477_v44, %v2493_v37 }
 0x13d   : > { %3188 = vmatpush3.bf16.msra.mxu0 (!%p3104_p6), %v3187_v39  ;;  %3220 = vmatpush3.bf16.msra.mxu1 (!%p3104_p6), %v3219_v47  ;;  %v2527_v39 = vld [vmem:[%s4385_s3 + $0x60] sm:$0xff] (!%p3104_p6)  ;;  %v2546_v47 = vld [vmem:[%s4385_s3 + $0xf8] sm:$0xff] (!%p3104_p6) }
 0x13e   : > { %3190 = vmatprep.subr.bf16.mxu0 (!%p3104_p6), %v3189_v48  ;;  %3222 = vmatprep.subr.bf16.mxu1 (!%p3104_p6), %v3221_v57  ;;  %v2482_v48 = vrot.slane (!%p3104_p6), %v2477_v44, %v2481_v33  ;;  %v3207_v55 = vpack.c.bf16 (!%p3104_p6), %v2528_v41, %v2527_v39  ;;  %v3239_v57 = vpack.c.bf16 (!%p3104_p6), %v2560_v45, %v2559_v42 }
 0x13f   : > { %v3209_v58 = vpack.c.bf16 (!%p3104_p6), %v2546_v47, %v2545_v46 }
 0x141   : > { %3192 = vmatpush3.bf16.msra.mxu0 (!%p3104_p6), %v3191_v56  ;;  %3224 = vmatpush3.bf16.msra.mxu1 (!%p3104_p6), %v3223_v61  ;;  %v2495_v56 = vcombine.low (!%p3104_p6), %v2482_v48, %v2486_v49  ;;  %v2496_v61 = vcombine.low (!%p3104_p6), %v2490_v51, %v2494_v54 }
 0x142   : > { %3194 = vmatprep.subr.bf16.mxu0 (!%p3104_p6), %v3193_v62  ;;  %3226 = vmatprep.subr.bf16.mxu1 (!%p3104_p6), %v3225_v2  ;;  %v3241_v62 = vpack.c.bf16 (!%p3104_p6), %v2578_v53, %v2577_v52 }
 0x143   : > { %v2503_v1 = vrot.slane (!%p3104_p6), %v2495_v56, %v3871_v50  ;;  %v2510_v2 = vrot.slane (!%p3104_p6), %v2496_v61, %v3871_v50 }
 0x20b   : > { %v2236_v6 = vpop.f32.mrb[0].mxu0  ;;  %v2441_v7 = vpop.f32.mrb[0].mxu1 }
 0x20c   : > { %v2238_v8 = vpop.f32.mrb[1].mxu0  ;;  %v2443_v9 = vpop.f32.mrb[1].mxu1 }
 0x20d   : > { %v2452_v11 = vcombine.low %v2236_v6, %v2238_v8  ;;  %v2453_v12 = vcombine.low %v2441_v7, %v2443_v9  ;;  %v2240_v13 = vpop.f32.mrb[2].mxu0  ;;  %v2445_v14 = vpop.f32.mrb[2].mxu1  ;;  %v2540_v6 = vld [vmem:[%s4385_s3 + $0xc8] sm:$0xff] (!%p3104_p6)  ;;  %v3195_v7 = vpack.c.bf16 (!%p3104_p6), %v2522_v63, %v2521_v60  ;;  %v2571_v8 = vld [vmem:[%s4385_s3 + $0x1c0] sm:$0xff] (!%p3104_p6)  ;;  %v2530_v60 = vld [vmem:[%s4385_s3 + $0x78] sm:$0xff] (!%p3104_p6) }
 0x20e   : > { %v2241_v15 = vpop.f32.mrb[3].mxu0  ;;  %v2446_v16 = vpop.f32.mrb[3].mxu1  ;;  %v2572_v9 = vld [vmem:[%s4385_s3 + $0x1c8] sm:$0xff] (!%p3104_p6)  ;;  %v2523_v13 = vld [vmem:[%s4385_s3 + $0x40] sm:$0xff] (!%p3104_p6)  ;;  %v2561_v63 = vld [vmem:[%s4385_s3 + $0x170] sm:$0xff] (!%p3104_p6) }
 0x20f   : > { %v2460_v17 = vrot.slane %v2452_v11, %v3871_v50  ;;  %v2467_v18 = vrot.slane %v2453_v12, %v3871_v50  ;;  %2475 = sbr.rel (%p3104_p6) target bundleno = 770 (0x302), region = 48  ;;  %v3227_v11 = vpack.c.bf16 (!%p3104_p6), %v2554_v4, %v2553_v3  ;;  %v3197_v12 = vpack.c.bf16 (!%p3104_p6), %v2540_v6, %v2539_v5  ;;  %v2524_v14 = vld [vmem:[%s4385_s3 + $0x48] sm:$0xff] (!%p3104_p6)  ;;  %v2555_v15 = vld [vmem:[%s4385_s3 + $0x140] sm:$0xff] (!%p3104_p6)  ;;  %3196 = vmatpush3.bf16.msra.mxu0 (!%p3104_p6), %v3195_v7 }
 0x210   : > { %v3229_v16 = vpack.c.bf16 (!%p3104_p6), %v2572_v9, %v2571_v8  ;;  %v3199_v22 = vpack.c.bf16 (!%p3104_p6), %v2524_v14, %v2523_v13  ;;  %v3211_v3 = vpack.c.bf16 (!%p3104_p6), %v2530_v60, %v2529_v59  ;;  %v3243_v5 = vpack.c.bf16 (!%p3104_p6), %v2562_v0, %v2561_v63 }
 0x211   : > { %v2468_v20 = vcombine.low %v2460_v17, %v2467_v18  ;;  %v2556_v17 = vld [vmem:[%s4385_s3 + $0x148] sm:$0xff] (!%p3104_p6)  ;;  %v2541_v18 = vld [vmem:[%s4385_s3 + $0xd0] sm:$0xff] (!%p3104_p6)  ;;  %3228 = vmatpush3.bf16.msra.mxu1 (!%p3104_p6), %v3227_v11  ;;  %3198 = vmatprep.subr.bf16.mxu0 (!%p3104_p6), %v3197_v12  ;;  %v2511_v6 = vcombine.low (!%p3104_p6), %v2503_v1, %v2510_v2 }
 0x212   : > { %v3231_v23 = vpack.c.bf16 (!%p3104_p6), %v2556_v17, %v2555_v15  ;;  %3230 = vmatprep.subr.bf16.mxu1 (!%p3104_p6), %v3229_v16  ;;  %v3105_v16 = vld [vmem:[%s4386_s4] ss:$0 sm:$0xff] (!%p3104_p6) }
 0x213   : > { %v2470_v21 = vadd.f32 %v2468_v20, %v244_v19  ;;  %v2542_v19 = vld [vmem:[%s4385_s3 + $0xd8] sm:$0xff] (!%p3104_p6)  ;;  %v2573_v20 = vld [vmem:[%s4385_s3 + $0x1d0] sm:$0xff] (!%p3104_p6)  ;;  %3200 = vmatpush3.bf16.msra.mxu0 (!%p3104_p6), %v3199_v22 }
 0x214   : > { %v3201_v25 = vpack.c.bf16 (!%p3104_p6), %v2542_v19, %v2541_v18 }
 0x215   : > { %2471 = vst [vmem:[#allocation2] sm:$0xff] %v2470_v21  ;;  %v2574_v21 = vld [vmem:[%s4385_s3 + $0x1d8] sm:$0xff] (!%p3104_p6)  ;;  %3232 = vmatpush3.bf16.msra.mxu1 (!%p3104_p6), %v3231_v23 }
 0x216   : > { %v3233_v29 = vpack.c.bf16 %v2574_v21, %v2573_v20  ;;  %3202 = vmatprep.subr.bf16.mxu0 %v3201_v25 }
 0x217   : > { %3204 = vmatpush3.bf16.msra.mxu0 %v3203_v38 }
 0x218   : > { %3234 = vmatprep.subr.bf16.mxu1 %v3233_v29  ;;  %3206 = vmatprep.subr.bf16.mxu0 %v3205_v26 }
 0x219   : > { %3236 = vmatpush3.bf16.msra.mxu1 %v3235_v40 }
 0x21a   : > { %3238 = vmatprep.subr.bf16.mxu1 %v3237_v43 }
 0x21b   : > { %3208 = vmatpush3.bf16.msra.mxu0 %v3207_v55 }
 0x21c   : > { %v2476_v4 = vld [vmem:[#allocation2] sm:$0xff]  ;;  %3210 = vmatprep.subr.bf16.mxu0 %v3209_v58 }
 0x21d   : > { %3240 = vmatpush3.bf16.msra.mxu1 %v3239_v57  ;;  %v2513_v7 = vadd.f32 %v2511_v6, %v2476_v4 }
 0x21e   : > { %3242 = vmatprep.subr.bf16.mxu1 %v3241_v62 }
 0x21f   : > { %3212 = vmatpush3.bf16.msra.mxu0 %v3211_v3  ;;  %v2514_v8 = vmax.f32 %v2513_v7, 0.0 }
 0x221   : > { %3244 = vmatpush3.bf16.msra.mxu1 %v3243_v5  ;;  %v2594_v9 = vrot.slane %v2514_v8, %v3871_v50  ;;  %v2587_v11 = vcombine.high %v2514_v8, %v2514_v8 }
 0x223   : > { %v2602_v12 = vcombine.high %v2594_v9, %v2594_v9  ;;  %v2601_v13 = vrot.slane %v2587_v11, %v3871_v50 }
 0x225   : > { %2672 = vmatprep.mubr.f32.mxu0 %v2602_v12  ;;  %v2603_v14 = vcombine.high %v2601_v13, %v2601_v13 }
 0x226   : > { %2673 = vmatmul.mubr.f32.vlgmr.msra.gmra.mrb[0].mxu0 %v2594_v9 }
 0x227   : > { %2742 = vmatprep.mubr.f32.mxu1 %v2603_v14 }
 0x228   : > { %2743 = vmatmul.mubr.f32.vlgmr.msra.gmra.mrb[0].mxu1 %v2601_v13 }
 0x2f9   : > { %v3143_v15 = vpop.f32.mrb[0].mxu0 }
 0x2fa   : > { %v3144_v17 = vpop.f32.mrb[1].mxu0 }
 0x2fb   : > { %v3145_v18 = vadd.f32 %v3144_v17, %v3143_v15  ;;  %v3178_v19 = vpop.f32.mrb[0].mxu1 }
 0x2fc   : > { %v3179_v20 = vpop.f32.mrb[1].mxu1 }
 0x2fd   : > { %v2675_v21 = vadd.f32 %v3145_v18, %v3105_v16  ;;  %v3180_v22 = vadd.f32 %v3179_v20, %v3178_v19 }
 0x2ff   : > { %v2745_v23 = vadd.f32 %v3180_v22, %v2675_v21 }
 0x301   : > { %2748 = vst [vmem:[#allocation3] sm:$0x3] %v2745_v23 }
 0x302 PF: > { %p3281_p7 = scmp.eq.s32.totalorder %s3807_s19, 3  ;;  %s3770_s24 = smov [#allocation3]  }
 0x303   : > { %s2756_s25 = sshll.u32 %s3770_s24, 4  ;;  %s2757_s25 = int_to_ptr.vmem [resolvable:$true] %s2756_s25 }
 0x304   : > { %s3729_s26 = scalar_lea.vmem %s2757_s25, 32  ;;  %p3736_p11 = scmp.lt.s32.totalorder %s2757_s25, %s2757_s25 }
 0x305   : > { %p3730_p8 = scmp.ne.s32.totalorder %s2757_s25, %s3729_s26  ;;  %p3737_p12 = scmp.lt.s32.totalorder %s3729_s26, %s3729_s26 }
 0x307   : > { %p3731_p9 = pnand %p3730_p8, %p3281_p7  ;;  %p3738_p13 = por %p3737_p12, %p3736_p11 }
 0x309   : > { %p3732_p10 = pneg %p3731_p9 }
 0x30b   : > { %p3739_p0 = pnand %p3738_p13, %p3732_p10 }
 0x30d   : > { %3742 = shalt.err (!%p3739_p0)
}
 0x30e   : > { %s3743_s29 = scalar_lea.hbm %s4387_s5, 32 }
 0x30f   : > { %p3744_p1 = scmp.ne.s32.totalorder %s4387_s5, %s3743_s29  ;;  %p3749_p4 = scmp.lt.u32.totalorder %s3743_s29, %s4387_s5 }
 0x311   : > { %p3745_p2 = pnand %p3744_p1, %p3281_p7 }
 0x313   : > { %p3746_p3 = pneg %p3745_p2 }
 0x315   : > { %p3751_p5 = pnand %p3749_p4, %p3746_p3 }
 0x317   : > { %3754 = shalt.err (!%p3751_p5)
}
 0x318   : > { %3278 = dma.vmem_to_hbm [thread:$0]  (%p3281_p7), %s2757_s25, 32, %s4387_s5, [#allocation4]  }
 0x319   : > { %3760 = dma.done.wait (%p3281_p7), [#allocation4], 32  }
 0x31a   : > { %3762 = vsyncadd (%p3281_p7), [#allocation4], 4294967264 }
 0x31b PF: > { %s16_s18 = sadd.s32 1, %s3765_s18  }
 0x31c   : > { %p13_p6 = scmp.ge.s32.totalorder %s16_s18, 6  }
 0x31e   :  { %15 = sbr.rel (!%p13_p6) target bundleno = 1 (0x1), region = 78 }
 0x325   :  { %2769 = vsyncpa [#allocation4], 1 }
 0x326   :  { %2771 = vsyncpa [#allocation4 + $0x1], 1 }

</bundles_post_ra>
